<compile_context>
chip_gen: v6e
topology: v6e:2x2x1
jax: 0.10.0
libtpu: 0.0.40
codegen_flags: <defaults>
</compile_context>

<pallas_src>
import jax
import jax.numpy as jnp
from jax.experimental import pallas as pl
from jax.experimental.pallas import tpu as pltpu

EPS = 1e-5


def add_layernorm_kernel(x_ref, y_ref, gamma_ref, beta_ref, o_ref):
    # x_ref, y_ref, o_ref: (tile_rows, H); gamma_ref, beta_ref: (1, H)
    x = x_ref[...].astype(jnp.float32)
    y = y_ref[...].astype(jnp.float32)
    s = x + y
    h_inv = 1.0 / s.shape[-1]
    # One traversal: accumulate sum and sum of squares together.
    mean = jnp.sum(s, axis=-1, keepdims=True) * h_inv
    mean_sq = jnp.sum(s * s, axis=-1, keepdims=True) * h_inv
    var = jnp.maximum(mean_sq - mean * mean, 0.0)  # biased variance, matches PyTorch
    inv = jax.lax.rsqrt(var + EPS)
    out = (s - mean) * inv * gamma_ref[...].astype(jnp.float32) \
        + beta_ref[...].astype(jnp.float32)
    o_ref[...] = out.astype(o_ref.dtype)


def _packing_multiple(dtype) -> int:
    """Sublane packing multiple for the I/O dtype (8 for 4-byte, 16 for 2-byte, 32 for 1-byte)."""
    itemsize = jnp.dtype(dtype).itemsize
    if itemsize >= 4:
        return 8
    if itemsize == 2:
        return 16
    return 32


def _choose_tile_rows(rows: int, H: int, dtype, *,
                      max_tile: int = 512, fastpath_bytes: int = 4 << 20) -> int:
    """Pick a row-tile.

    * Tiny problems: one grid step covering everything (launch overhead dominates).
    * Otherwise: aim for >= 8 grid steps so the pipeline stays overlapped and v7x's
      two TensorCores each get multiple steps; round up to the dtype packing multiple
      and cap at `max_tile` rows (VMEM headroom even on v7x's 64 MiB per TC).
    """
    itemsize = jnp.dtype(dtype).itemsize
    pack = _packing_multiple(dtype)
    total_io = 3 * rows * H * itemsize
    if total_io <= fastpath_bytes:
        # Full-extent block (always legal regardless of (8,128) divisibility).
        return rows
    tile = -(-rows // 8)            # ~>= 8 grid steps
    tile = -(-tile // pack) * pack  # round up to packing multiple
    return max(pack, min(max_tile, tile))


def _vmem_limit_bytes(tile_rows: int, H: int, dtype, grid_steps: int) -> int:
    itemsize = jnp.dtype(dtype).itemsize
    bufs = 2 if grid_steps > 1 else 1
    io = 3 * bufs * tile_rows * H * itemsize   # x, y, out pipeline buffers
    f32_tmp = 3 * tile_rows * H * 4            # f32 intermediates / register spill space
    params = 4 * H * 4                         # gamma/beta (double-buffered)
    needed = io + f32_tmp + params
    # Generous slack (cheap on v5e/v6e's 128 MiB physical); cap at v7x's 64 MiB per TC.
    return int(min(64 << 20, max(needed + (8 << 20), 32 << 20)))


def add_layernorm(x152, x148, gamma, beta, *, tile_rows=None):
    assert x152.shape == x148.shape
    B, S, H = x152.shape
    assert gamma.shape == (H,) and beta.shape == (H,)
    assert H % 128 == 0, "H must be lane-aligned (multiple of 128) for this kernel"

    rows = B * S
    if tile_rows is None:
        tile_rows = _choose_tile_rows(rows, H, x152.dtype)
    tile_rows = min(tile_rows, rows)

    x2 = x152.reshape(rows, H)
    x1 = x148.reshape(rows, H)
    g2 = gamma.reshape(1, H)
    b2 = beta.reshape(1, H)

    grid_steps = pl.cdiv(rows, tile_rows)
    vmem_limit = _vmem_limit_bytes(tile_rows, H, x152.dtype, grid_steps)

    out = pl.pallas_call(
        add_layernorm_kernel,
        out_shape=jax.ShapeDtypeStruct((rows, H), x152.dtype),
        grid_spec=pltpu.PrefetchScalarGridSpec(
            num_scalar_prefetch=0,
            grid=(grid_steps,),
            in_specs=[
                pl.BlockSpec((tile_rows, H), lambda i: (i, 0)),
                pl.BlockSpec((tile_rows, H), lambda i: (i, 0)),
                pl.BlockSpec((1, H), lambda i: (0, 0)),
                pl.BlockSpec((1, H), lambda i: (0, 0)),
            ],
            out_specs=pl.BlockSpec((tile_rows, H), lambda i: (i, 0)),
        ),
        compiler_params=pltpu.CompilerParams(
            dimension_semantics=("parallel",),
            vmem_limit_bytes=vmem_limit,
        ),
    )(x2, x1, g2, b2)
    return out.reshape(B, S, H)


def _ref_add_layernorm(a, b, gamma, beta):
    s = (a.astype(jnp.float32) + b.astype(jnp.float32))
    mean = jnp.mean(s, axis=-1, keepdims=True)
    var = jnp.mean((s - mean) ** 2, axis=-1, keepdims=True)
    out = (s - mean) / jnp.sqrt(var + EPS) * gamma.astype(jnp.float32) + beta.astype(jnp.float32)
    return out.astype(a.dtype)


if __name__ == "__main__":
    key = jax.random.PRNGKey(0)
    k1, k2, k3, k4, k5, k6 = jax.random.split(key, 6)

    # Shapes matching the PyTorch module: (1, 384, 768), LayerNorm over 768.
    B, S, H = 1, 384, 768
    x152 = jax.random.normal(k1, (B, S, H), dtype=jnp.float32)
    x148 = jax.random.normal(k2, (B, S, H), dtype=jnp.float32)
    # PyTorch default LayerNorm init: weight=1, bias=0.
    gamma = jnp.ones((H,), dtype=jnp.float32)
    beta = jnp.zeros((H,), dtype=jnp.float32)

    out = add_layernorm(x152, x148, gamma, beta)
    jax.block_until_ready(out)
    ref = _ref_add_layernorm(x152, x148, gamma, beta)
    assert jnp.allclose(out, ref, atol=1e-4, rtol=1e-4), "mismatch vs reference (main shape)"

    # Robustness check: rows not divisible by the tile (forced partial last block).
    S2 = 200
    a2 = jax.random.normal(k3, (1, S2, H), dtype=jnp.float32)
    b2 = jax.random.normal(k4, (1, S2, H), dtype=jnp.float32)
    out2 = add_layernorm(a2, b2, gamma, beta, tile_rows=128)
    jax.block_until_ready(out2)
    ref2 = _ref_add_layernorm(a2, b2, gamma, beta)
    assert jnp.allclose(out2, ref2, atol=1e-4, rtol=1e-4), "mismatch vs reference (ragged rows)"

    # bf16 path: large enough to take the multi-step tiled path (16-row-packed tiles).
    B3, S3 = 4, 1024
    a3 = jax.random.normal(k5, (B3, S3, H), dtype=jnp.bfloat16)
    b3 = jax.random.normal(k6, (B3, S3, H), dtype=jnp.bfloat16)
    out3 = add_layernorm(a3, b3, gamma, beta)
    jax.block_until_ready(out3)
    ref3 = _ref_add_layernorm(a3, b3, gamma, beta)
    assert jnp.allclose(out3.astype(jnp.float32), ref3.astype(jnp.float32),
                        atol=2e-2, rtol=2e-2), "mismatch vs reference (bf16 tiled path)"

    print("KERNEL_OK")
</pallas_src>

<mosaic_0001>
module attributes {stable_mosaic.version = 11 : i64} {
  func.func @add_layernorm_kernel(%arg0: i32, %arg1: memref<384x768xf32, #tpu.memory_space<vmem>>, %arg2: memref<384x768xf32, #tpu.memory_space<vmem>>, %arg3: memref<1x768xf32, #tpu.memory_space<vmem>>, %arg4: memref<1x768xf32, #tpu.memory_space<vmem>>, %arg5: memref<384x768xf32, #tpu.memory_space<vmem>>) attributes {dimension_semantics = [#tpu.dimension_semantics<parallel>], iteration_bounds = array<i64: 1>, scalar_prefetch = 0 : i64, scratch_operands = 0 : i64, tpu.core_type = #tpu.core_type<tc>, window_params = [{transform_indices = @transform_0, window_bounds = array<i64: 384, 768>}, {transform_indices = @transform_1, window_bounds = array<i64: 384, 768>}, {pipeline_mode = #tpu.pipeline_mode<synchronous>, transform_indices = @transform_2, window_bounds = array<i64: 1, 768>}, {pipeline_mode = #tpu.pipeline_mode<synchronous>, transform_indices = @transform_3, window_bounds = array<i64: 1, 768>}, {transform_indices = @transform_4, window_bounds = array<i64: 384, 768>}]} {
    %c0 = arith.constant 0 : index
    %c0_0 = arith.constant 0 : index
    %0 = vector.load %arg1[%c0, %c0_0] : memref<384x768xf32, #tpu.memory_space<vmem>>, vector<384x768xf32>
    %c0_1 = arith.constant 0 : index
    %c0_2 = arith.constant 0 : index
    %1 = vector.load %arg2[%c0_1, %c0_2] : memref<384x768xf32, #tpu.memory_space<vmem>>, vector<384x768xf32>
    %2 = arith.addf %0, %1 : vector<384x768xf32>
    %cst = arith.constant dense<0.000000e+00> : vector<384xf32>
    %3 = vector.multi_reduction <add>, %2, %cst [1] : vector<384x768xf32> to vector<384xf32>
    %4 = vector.shape_cast %3 : vector<384xf32> to vector<384x1xf32>
    %cst_3 = arith.constant 0.00130208337 : f32
    %5 = vector.broadcast %cst_3 : f32 to vector<384x1xf32>
    %6 = arith.mulf %4, %5 : vector<384x1xf32>
    %7 = arith.mulf %2, %2 : vector<384x768xf32>
    %cst_4 = arith.constant dense<0.000000e+00> : vector<384xf32>
    %8 = vector.multi_reduction <add>, %7, %cst_4 [1] : vector<384x768xf32> to vector<384xf32>
    %9 = vector.shape_cast %8 : vector<384xf32> to vector<384x1xf32>
    %cst_5 = arith.constant 0.00130208337 : f32
    %10 = vector.broadcast %cst_5 : f32 to vector<384x1xf32>
    %11 = arith.mulf %9, %10 : vector<384x1xf32>
    %12 = arith.mulf %6, %6 : vector<384x1xf32>
    %13 = arith.subf %11, %12 : vector<384x1xf32>
    %cst_6 = arith.constant 0.000000e+00 : f32
    %14 = vector.broadcast %cst_6 : f32 to vector<384x1xf32>
    %15 = arith.maximumf %13, %14 : vector<384x1xf32>
    %cst_7 = arith.constant 9.99999974E-6 : f32
    %16 = vector.broadcast %cst_7 : f32 to vector<384x1xf32>
    %17 = arith.addf %15, %16 : vector<384x1xf32>
    %18 = math.rsqrt %17 : vector<384x1xf32>
    %19 = vector.broadcast %6 : vector<384x1xf32> to vector<384x768xf32>
    %20 = arith.subf %2, %19 : vector<384x768xf32>
    %21 = vector.broadcast %18 : vector<384x1xf32> to vector<384x768xf32>
    %22 = arith.mulf %20, %21 : vector<384x768xf32>
    %c0_8 = arith.constant 0 : index
    %c0_9 = arith.constant 0 : index
    %23 = vector.load %arg3[%c0_8, %c0_9] : memref<1x768xf32, #tpu.memory_space<vmem>>, vector<1x768xf32>
    %24 = vector.broadcast %23 : vector<1x768xf32> to vector<384x768xf32>
    %25 = arith.mulf %22, %24 : vector<384x768xf32>
    %c0_10 = arith.constant 0 : index
    %c0_11 = arith.constant 0 : index
    %26 = vector.load %arg4[%c0_10, %c0_11] : memref<1x768xf32, #tpu.memory_space<vmem>>, vector<1x768xf32>
    %27 = vector.broadcast %26 : vector<1x768xf32> to vector<384x768xf32>
    %28 = arith.addf %25, %27 : vector<384x768xf32>
    %c0_12 = arith.constant 0 : index
    %c0_13 = arith.constant 0 : index
    %29 = vector.load %arg5[%c0_12, %c0_13] : memref<384x768xf32, #tpu.memory_space<vmem>>, vector<384x768xf32>
    tpu.vector_store %arg5[%c0_12, %c0_13], %28 {strides = array<i32>} : memref<384x768xf32, #tpu.memory_space<vmem>>, vector<384x768xf32>,
    return
  }
  func.func @transform_0(%arg0: i32) -> (i32, i32) {
    %c0_i32 = arith.constant 0 : i32
    %c0_i32_0 = arith.constant 0 : i32
    return %arg0, %c0_i32 : i32, i32
  }
  func.func @transform_1(%arg0: i32) -> (i32, i32) {
    %c0_i32 = arith.constant 0 : i32
    %c0_i32_0 = arith.constant 0 : i32
    return %arg0, %c0_i32 : i32, i32
  }
  func.func @transform_2(%arg0: i32) -> (i32, i32) {
    %c0_i32 = arith.constant 0 : i32
    %c0_i32_0 = arith.constant 0 : i32
    %c0_i32_1 = arith.constant 0 : i32
    return %c0_i32, %c0_i32_0 : i32, i32
  }
  func.func @transform_3(%arg0: i32) -> (i32, i32) {
    %c0_i32 = arith.constant 0 : i32
    %c0_i32_0 = arith.constant 0 : i32
    %c0_i32_1 = arith.constant 0 : i32
    return %c0_i32, %c0_i32_0 : i32, i32
  }
  func.func @transform_4(%arg0: i32) -> (i32, i32) {
    %c0_i32 = arith.constant 0 : i32
    %c0_i32_0 = arith.constant 0 : i32
    return %arg0, %c0_i32 : i32, i32
  }
}

</mosaic_0001>

<bundles_post_ra>
// kernel: tpu_custom_call.1
= control target key start
LH: loop header
LB: loop body
LE: loop exit
PB: predicated region body
PF: predicated region fallthrough
CT: control target
= control target key end

     0   :  { %9 = vsyncpa [#allocation3], 0  ;;  %s8323_s0 = inlined_call_operand.hbm [shape: f32[384,768], index: 0, kind: input, shape index: {}]   ;;  %s8324_s1 = inlined_call_operand.hbm [shape: f32[384,768], index: 1, kind: input, shape index: {}]   ;;  %s8325_s2 = inlined_call_operand.hbm [shape: f32[1,768], index: 2, kind: input, shape index: {}]   ;;  %s8326_s3 = inlined_call_operand.hbm [shape: f32[1,768], index: 3, kind: input, shape index: {}]   ;;  %s8327_s4 = inlined_call_operand.hbm [shape: f32[384,768], index: 4, kind: output, shape index: {}]  }
   0x1   :  { %10 = vsyncpa [#allocation6], 0 }
   0x2   :  { %11 = vsyncpa [#allocation9], 0 }
   0x3   :  { %12 = vsyncpa [#allocation4], 0  ;;  %s3963_s15 = smov [#allocation5]   ;;  %s3964_s17 = smov [#allocation2]  }
   0x4   :  { %s30_s16 = sshll.u32 %s3963_s15, 4  ;;  %s18_s18 = sshll.u32 %s3964_s17, 4  ;;  %s31_s16 = int_to_ptr.vmem [resolvable:$true] %s30_s16  ;;  %s19_s18 = int_to_ptr.vmem [resolvable:$true] %s18_s18 }
   0x5   :  { %s3863_s19 = scalar_lea.vmem %s31_s16, 36864  ;;  %p3868_p1 = scmp.lt.s32.totalorder %s31_s16, %s31_s16 }
   0x6   :  { %p3864_p0 = scmp.ne.s32.totalorder %s31_s16, %s3863_s19  ;;  %p3869_p2 = scmp.lt.s32.totalorder %s3863_s19, %s3863_s19 }
   0x8   :  { %p3870_p3 = por %p3869_p2, %p3868_p1 }
   0xa   :  { %p3871_p4 = pnand %p3870_p3, %p3864_p0 }
   0xc   :  { %3874 = shalt.err (!%p3871_p4)
}
   0xd   :  { %s3965_s20 = smov 768   ;;  %s3966_s21 = smov 48  }
   0xe   :  { %36 = dma.hbm_to_vmem [thread:$0]  %s8324_s1, 36864, %s31_s16, [#allocation6], %s3965_s20, %s3965_s20, %s3966_s21  }
   0xf   :  { %s3883_s24 = scalar_lea.vmem %s19_s18, 36864  ;;  %p3888_p6 = scmp.lt.s32.totalorder %s19_s18, %s19_s18 }
  0x10   :  { %p3884_p5 = scmp.ne.s32.totalorder %s19_s18, %s3883_s24  ;;  %p3889_p7 = scmp.lt.s32.totalorder %s3883_s24, %s3883_s24 }
  0x12   :  { %p3890_p8 = por %p3889_p7, %p3888_p6 }
  0x14   :  { %p3891_p9 = pnand %p3890_p8, %p3884_p5 }
  0x16   :  { %3894 = shalt.err (!%p3891_p9)
}
  0x17   :  { %24 = dma.hbm_to_vmem [thread:$0]  %s8323_s0, 36864, %s19_s18, [#allocation3], %s3965_s20, %s3965_s20, %s3966_s21  }
  0x18   :  { %s3967_s27 = smov [#allocation7]   ;;  %s3968_s29 = smov [#allocation8]  }
  0x19   :  { %s43_s28 = sshll.u32 %s3967_s27, 4  ;;  %s53_s30 = sshll.u32 %s3968_s29, 4  ;;  %s44_s28 = int_to_ptr.vmem [resolvable:$true] %s43_s28  ;;  %s54_s30 = int_to_ptr.vmem [resolvable:$true] %s53_s30 }
  0x1a   :  { %s3903_s1 = scalar_lea.vmem %s44_s28, 96  ;;  %p3908_p11 = scmp.lt.s32.totalorder %s44_s28, %s44_s28 }
  0x1b   :  { %p3904_p10 = scmp.ne.s32.totalorder %s44_s28, %s3903_s1  ;;  %p3909_p12 = scmp.lt.s32.totalorder %s3903_s1, %s3903_s1 }
  0x1d   :  { %p3910_p13 = por %p3909_p12, %p3908_p11 }
  0x1f   :  { %p3911_p0 = pnand %p3910_p13, %p3904_p10 }
  0x21   :  { %3914 = shalt.err (!%p3911_p0)
}
  0x22   :  { %46 = dma.hbm_to_vmem [thread:$0]  %s8325_s2, 96, %s44_s28, [#allocation6]  }
  0x23   :  { %s3923_s7 = scalar_lea.vmem %s54_s30, 96  ;;  %p3928_p2 = scmp.lt.s32.totalorder %s54_s30, %s54_s30 }
  0x24   :  { %p3924_p1 = scmp.ne.s32.totalorder %s54_s30, %s3923_s7  ;;  %p3929_p3 = scmp.lt.s32.totalorder %s3923_s7, %s3923_s7 }
  0x26   :  { %p3930_p4 = por %p3929_p3, %p3928_p2 }
  0x28   :  { %p3931_p5 = pnand %p3930_p4, %p3924_p1 }
  0x2a   :  { %3934 = shalt.err (!%p3931_p5)
}
  0x2b   :  { %56 = dma.hbm_to_vmem [thread:$0]  %s8326_s3, 96, %s54_s30, [#allocation9]  }
  0x2c   :  { %3955 = dma.done.wait [#allocation3], 36864  }
  0x2d   :  { %3956 = vsyncadd [#allocation3], 4294930432 }
  0x2e   :  { %3957 = dma.done.wait [#allocation6], 36960  }
  0x2f   :  { %3958 = vsyncadd [#allocation6], 4294930336 }
  0x30   :  { %3959 = dma.done.wait [#allocation9], 96  }
  0x31   :  { %3960 = vsyncadd [#allocation9], 4294967200  ;;  %v81_v0 = vld [vmem:[#allocation2 + $0x60] sm:$0xff]  ;;  %v82_v1 = vld [vmem:[#allocation2 + $0x68] sm:$0xff]  ;;  %s3969_s2 = smov [#allocation10]  }
  0x32   :  { %v83_v2 = vld [vmem:[#allocation2 + $0x70] sm:$0xff]  ;;  %v84_v3 = vld [vmem:[#allocation2 + $0x78] sm:$0xff]  ;;  %v369_v4 = vld [vmem:[#allocation5 + $0x60] sm:$0xff]  ;;  %s3738_s3 = sshll.u32 %s3969_s2, 4  ;;  %s3739_s3 = int_to_ptr.vmem [resolvable:$true] %s3738_s3 }
  0x33   :  { %v370_v5 = vld [vmem:[#allocation5 + $0x68] sm:$0xff]  ;;  %v371_v6 = vld [vmem:[#allocation5 + $0x70] sm:$0xff]  ;;  %v85_v7 = vld [vmem:[#allocation2 + $0x80] sm:$0xff]  ;;  %v4013_v10 = vadd.f32 %v369_v4, %v81_v0  ;;  %s3935_s9 = scalar_lea.vmem %s3739_s3, 36864  ;;  %p3940_p7 = scmp.lt.s32.totalorder %s3739_s3, %s3739_s3 }
  0x34   :  { %v372_v8 = vld [vmem:[#allocation5 + $0x78] sm:$0xff]  ;;  %v373_v9 = vld [vmem:[#allocation5 + $0x80] sm:$0xff]  ;;  %v4015_v11 = vadd.f32 %v370_v5, %v82_v1  ;;  %v4017_v12 = vadd.f32 %v371_v6, %v83_v2  ;;  %v70_v14 = vld [vmem:[#allocation2 + $0x8] sm:$0xff]  ;;  %p3936_p6 = scmp.ne.s32.totalorder %s3739_s3, %s3935_s9  ;;  %p3941_p8 = scmp.lt.s32.totalorder %s3935_s9, %s3935_s9 }
  0x35   :  { %9010 = vst [vmem:[#allocation15_spill] sm:$0xff] %v4013_v10  ;;  %v69_v13 = vld [vmem:[#allocation2] sm:$0xff]  ;;  %v71_v15 = vld [vmem:[#allocation2 + $0x10] sm:$0xff]  ;;  %v86_v16 = vld [vmem:[#allocation2 + $0x88] sm:$0xff]  ;;  %v4019_v18 = vadd.f32 %v372_v8, %v84_v3  ;;  %v4023_v21 = vadd.f32 %v373_v9, %v85_v7 }
  0x36   :  { %9011 = vst [vmem:[#allocation16_spill] sm:$0xff] %v4015_v11  ;;  %9012 = vst [vmem:[#allocation17_spill] sm:$0xff] %v4017_v12  ;;  %v374_v17 = vld [vmem:[#allocation5 + $0x88] sm:$0xff]  ;;  %v947_v19 = vadd.f32 %v4015_v11, %v4013_v10  ;;  %v72_v20 = vld [vmem:[#allocation2 + $0x18] sm:$0xff]  ;;  %p3942_p9 = por %p3941_p8, %p3940_p7 }
  0x37   :  { %9013 = vst [vmem:[#allocation18_spill] sm:$0xff] %v4019_v18  ;;  %9014 = vst [vmem:[#allocation19_spill] sm:$0xff] %v4023_v21  ;;  %v357_v22 = vld [vmem:[#allocation5] sm:$0xff]  ;;  %v358_v23 = vld [vmem:[#allocation5 + $0x8] sm:$0xff]  ;;  %v4032_v35 = vadd.f32 %v374_v17, %v86_v16 }
  0x38   :  { %v359_v24 = vld [vmem:[#allocation5 + $0x10] sm:$0xff]  ;;  %v948_v25 = vadd.f32 %v947_v19, %v4017_v12  ;;  %v73_v26 = vld [vmem:[#allocation2 + $0x20] sm:$0xff]  ;;  %v360_v27 = vld [vmem:[#allocation5 + $0x18] sm:$0xff]  ;;  %v4026_v29 = vadd.f32 %v357_v22, %v69_v13  ;;  %v4028_v30 = vadd.f32 %v358_v23, %v70_v14  ;;  %p3943_p10 = pnand %p3942_p9, %p3936_p6 }
  0x39   :  { %v361_v28 = vld [vmem:[#allocation5 + $0x20] sm:$0xff]  ;;  %v4030_v31 = vadd.f32 %v359_v24, %v71_v15  ;;  %v74_v32 = vld [vmem:[#allocation2 + $0x28] sm:$0xff]  ;;  %v87_v33 = vld [vmem:[#allocation2 + $0x90] sm:$0xff]  ;;  %9018 = vst [vmem:[#allocation23_spill] sm:$0xff] %v4032_v35  ;;  %v4035_v38 = vadd.f32 %v360_v27, %v72_v20 }
  0x3a   :  { %9015 = vst [vmem:[#allocation20_spill] sm:$0xff] %v4026_v29  ;;  %9016 = vst [vmem:[#allocation21_spill] sm:$0xff] %v4028_v30  ;;  %v88_v34 = vld [vmem:[#allocation2 + $0x98] sm:$0xff]  ;;  %v949_v36 = vadd.f32 %v948_v25, %v4019_v18  ;;  %v362_v37 = vld [vmem:[#allocation5 + $0x28] sm:$0xff]  ;;  %v933_v39 = vadd.f32 %v4028_v30, %v4026_v29  ;;  %v4039_v42 = vadd.f32 %v361_v28, %v73_v26 }
  0x3b   :  { %9017 = vst [vmem:[#allocation22_spill] sm:$0xff] %v4030_v31  ;;  %9019 = vst [vmem:[#allocation24_spill] sm:$0xff] %v4035_v38  ;;  %v89_v40 = vld [vmem:[#allocation2 + $0xa0] sm:$0xff]  ;;  %v90_v41 = vld [vmem:[#allocation2 + $0xa8] sm:$0xff]  ;;  %v4047_v53 = vadd.f32 %v362_v37, %v74_v32 }
  0x3c   :  { %9020 = vst [vmem:[#allocation25_spill] sm:$0xff] %v4039_v42  ;;  %v375_v43 = vld [vmem:[#allocation5 + $0x90] sm:$0xff]  ;;  %v376_v44 = vld [vmem:[#allocation5 + $0x98] sm:$0xff]  ;;  %v377_v45 = vld [vmem:[#allocation5 + $0xa0] sm:$0xff]  ;;  %v950_v46 = vadd.f32 %v949_v36, %v4023_v21  ;;  %v934_v47 = vadd.f32 %v933_v39, %v4030_v31 }
  0x3d   :  { %v91_v48 = vld [vmem:[#allocation2 + $0xb0] sm:$0xff]  ;;  %v378_v49 = vld [vmem:[#allocation5 + $0xa8] sm:$0xff]  ;;  %v4043_v51 = vadd.f32 %v375_v43, %v87_v33  ;;  %v4045_v52 = vadd.f32 %v376_v44, %v88_v34  ;;  %9023 = vst [vmem:[#allocation28_spill] sm:$0xff] %v4047_v53  ;;  %v92_v54 = vld [vmem:[#allocation2 + $0xb8] sm:$0xff]  ;;  %v4049_v55 = vadd.f32 %v377_v45, %v89_v40 }
  0x3e   :  { %v379_v50 = vld [vmem:[#allocation5 + $0xb0] sm:$0xff]  ;;  %v76_v57 = vld [vmem:[#allocation2 + $0x38] sm:$0xff]  ;;  %v951_v58 = vadd.f32 %v950_v46, %v4032_v35  ;;  %v935_v59 = vadd.f32 %v934_v47, %v4035_v38  ;;  %v4053_v61 = vadd.f32 %v378_v49, %v90_v41  ;;  %v77_v63 = vld [vmem:[#allocation2 + $0x40] sm:$0xff] }
  0x3f   :  { %9021 = vst [vmem:[#allocation26_spill] sm:$0xff] %v4043_v51  ;;  %9022 = vst [vmem:[#allocation27_spill] sm:$0xff] %v4045_v52  ;;  %v75_v56 = vld [vmem:[#allocation2 + $0x30] sm:$0xff]  ;;  %v380_v60 = vld [vmem:[#allocation5 + $0xb8] sm:$0xff]  ;;  %v954_v62 = vadd.f32 %v4045_v52, %v4043_v51  ;;  %v4057_v1 = vadd.f32 %v379_v50, %v91_v48 }
  0x40   :  { %9024 = vst [vmem:[#allocation29_spill] sm:$0xff] %v4049_v55  ;;  %9025 = vst [vmem:[#allocation30_spill] sm:$0xff] %v4053_v61  ;;  %v78_v0 = vld [vmem:[#allocation2 + $0x48] sm:$0xff]  ;;  %v363_v2 = vld [vmem:[#allocation5 + $0x30] sm:$0xff]  ;;  %952 = vadd.xlane.f32.xlu1 %v951_v58  ;;  %v936_v5 = vadd.f32 %v935_v59, %v4039_v42  ;;  %v4065_v15 = vadd.f32 %v380_v60, %v92_v54 }
  0x41   :  { %9026 = vst [vmem:[#allocation31_spill] sm:$0xff] %v4057_v1  ;;  %v364_v3 = vld [vmem:[#allocation5 + $0x38] sm:$0xff]  ;;  %v365_v4 = vld [vmem:[#allocation5 + $0x40] sm:$0xff]  ;;  %v955_v6 = vadd.f32 %v954_v62, %v4049_v55  ;;  %v79_v7 = vld [vmem:[#allocation2 + $0x50] sm:$0xff]  ;;  %v4061_v13 = vadd.f32 %v363_v2, %v75_v56 }
  0x42   :  { %v366_v8 = vld [vmem:[#allocation5 + $0x48] sm:$0xff]  ;;  %v367_v9 = vld [vmem:[#allocation5 + $0x50] sm:$0xff]  ;;  %v4063_v14 = vadd.f32 %v364_v3, %v76_v57  ;;  %9029 = vst [vmem:[#allocation34_spill] sm:$0xff] %v4065_v15  ;;  %v80_v16 = vld [vmem:[#allocation2 + $0x58] sm:$0xff]  ;;  %v4067_v17 = vadd.f32 %v365_v4, %v77_v63  ;;  %v937_v22 = vadd.f32 %v936_v5, %v4047_v53 }
  0x43   :  { %9027 = vst [vmem:[#allocation32_spill] sm:$0xff] %v4061_v13  ;;  %v99_v19 = vld [vmem:[#allocation2 + $0xf0] sm:$0xff]  ;;  %v100_v20 = vld [vmem:[#allocation2 + $0xf8] sm:$0xff]  ;;  %v956_v23 = vadd.f32 %v955_v6, %v4053_v61  ;;  %v4071_v25 = vadd.f32 %v366_v8, %v78_v0  ;;  %v101_v27 = vld [vmem:[#allocation2 + $0x100] sm:$0xff]  ;;  %v4075_v32 = vadd.f32 %v367_v9, %v79_v7 }
  0x44   :  { %9028 = vst [vmem:[#allocation33_spill] sm:$0xff] %v4063_v14  ;;  %9030 = vst [vmem:[#allocation35_spill] sm:$0xff] %v4067_v17  ;;  %v368_v24 = vld [vmem:[#allocation5 + $0x58] sm:$0xff]  ;;  %v940_v26 = vadd.f32 %v4063_v14, %v4061_v13  ;;  %v102_v28 = vld [vmem:[#allocation2 + $0x108] sm:$0xff]  ;;  %938 = vadd.xlane.f32.xlu0 %v937_v22 }
  0x45   :  { %9031 = vst [vmem:[#allocation36_spill] sm:$0xff] %v4071_v25  ;;  %9032 = vst [vmem:[#allocation37_spill] sm:$0xff] %v4075_v32  ;;  %v387_v33 = vld [vmem:[#allocation5 + $0xf0] sm:$0xff]  ;;  %v388_v34 = vld [vmem:[#allocation5 + $0xf8] sm:$0xff]  ;;  %v957_v37 = vadd.f32 %v956_v23, %v4057_v1  ;;  %v4083_v46 = vadd.f32 %v368_v24, %v80_v16 }
  0x46   :  { %v389_v36 = vld [vmem:[#allocation5 + $0x100] sm:$0xff]  ;;  %v941_v39 = vadd.f32 %v940_v26, %v4067_v17  ;;  %v103_v40 = vld [vmem:[#allocation2 + $0x110] sm:$0xff]  ;;  %v390_v41 = vld [vmem:[#allocation5 + $0x108] sm:$0xff]  ;;  %v4079_v44 = vadd.f32 %v387_v33, %v99_v19  ;;  %v4081_v45 = vadd.f32 %v388_v34, %v100_v20 }
  0x47   :  { %v391_v43 = vld [vmem:[#allocation5 + $0x110] sm:$0xff]  ;;  %9035 = vst [vmem:[#allocation40_spill] sm:$0xff] %v4083_v46  ;;  %v104_v47 = vld [vmem:[#allocation2 + $0x118] sm:$0xff]  ;;  %v4085_v48 = vadd.f32 %v389_v36, %v101_v27  ;;  %v93_v49 = vld [vmem:[#allocation2 + $0xc0] sm:$0xff]  ;;  %v958_v54 = vadd.f32 %v957_v37, %v4065_v15  ;;  %v4089_v58 = vadd.f32 %v390_v41, %v102_v28 }
  0x48   :  { %9033 = vst [vmem:[#allocation38_spill] sm:$0xff] %v4079_v44  ;;  %9034 = vst [vmem:[#allocation39_spill] sm:$0xff] %v4081_v45  ;;  %v94_v50 = vld [vmem:[#allocation2 + $0xc8] sm:$0xff]  ;;  %v942_v56 = vadd.f32 %v941_v39, %v4071_v25  ;;  %v392_v57 = vld [vmem:[#allocation5 + $0x118] sm:$0xff]  ;;  %v968_v59 = vadd.f32 %v4081_v45, %v4079_v44  ;;  %v4093_v63 = vadd.f32 %v391_v43, %v103_v40 }
  0x49   :  { %9036 = vst [vmem:[#allocation41_spill] sm:$0xff] %v4085_v48  ;;  %9037 = vst [vmem:[#allocation42_spill] sm:$0xff] %v4089_v58  ;;  %v95_v60 = vld [vmem:[#allocation2 + $0xd0] sm:$0xff]  ;;  %v96_v62 = vld [vmem:[#allocation2 + $0xd8] sm:$0xff]  ;;  %959 = vadd.xlane.f32.xlu1 %v958_v54  ;;  %v4101_v19 = vadd.f32 %v392_v57, %v104_v47 }
  0x4a   :  { %9038 = vst [vmem:[#allocation43_spill] sm:$0xff] %v4093_v63  ;;  %v381_v0 = vld [vmem:[#allocation5 + $0xc0] sm:$0xff]  ;;  %v382_v2 = vld [vmem:[#allocation5 + $0xc8] sm:$0xff]  ;;  %v383_v3 = vld [vmem:[#allocation5 + $0xd0] sm:$0xff]  ;;  %v943_v4 = vadd.f32 %v942_v56, %v4075_v32  ;;  %v969_v5 = vadd.f32 %v968_v59, %v4085_v48 }
  0x4b   :  { %v97_v6 = vld [vmem:[#allocation2 + $0xe0] sm:$0xff]  ;;  %v384_v7 = vld [vmem:[#allocation5 + $0xd8] sm:$0xff]  ;;  %v4097_v9 = vadd.f32 %v381_v0, %v93_v49  ;;  %v4099_v16 = vadd.f32 %v382_v2, %v94_v50  ;;  %9041 = vst [vmem:[#allocation46_spill] sm:$0xff] %v4101_v19  ;;  %v98_v20 = vld [vmem:[#allocation2 + $0xe8] sm:$0xff]  ;;  %v4103_v22 = vadd.f32 %v383_v3, %v95_v60 }
  0x4c   :  { %v385_v8 = vld [vmem:[#allocation5 + $0xe0] sm:$0xff]  ;;  %v111_v23 = vld [vmem:[#allocation2 + $0x150] sm:$0xff]  ;;  %v112_v24 = vld [vmem:[#allocation2 + $0x158] sm:$0xff]  ;;  %v944_v26 = vadd.f32 %v943_v4, %v4083_v46  ;;  %v970_v27 = vadd.f32 %v969_v5, %v4089_v58  ;;  %v4107_v33 = vadd.f32 %v384_v7, %v96_v62 }
  0x4d   :  { %9039 = vst [vmem:[#allocation44_spill] sm:$0xff] %v4097_v9  ;;  %9040 = vst [vmem:[#allocation45_spill] sm:$0xff] %v4099_v16  ;;  %v386_v28 = vld [vmem:[#allocation5 + $0xe8] sm:$0xff]  ;;  %v961_v34 = vadd.f32 %v4099_v16, %v4097_v9  ;;  %v113_v36 = vld [vmem:[#allocation2 + $0x160] sm:$0xff]  ;;  %v4111_v39 = vadd.f32 %v385_v8, %v97_v6 }
  0x4e   :  { %9042 = vst [vmem:[#allocation47_spill] sm:$0xff] %v4103_v22  ;;  %9043 = vst [vmem:[#allocation48_spill] sm:$0xff] %v4107_v33  ;;  %v114_v37 = vld [vmem:[#allocation2 + $0x168] sm:$0xff]  ;;  %v399_v40 = vld [vmem:[#allocation5 + $0x150] sm:$0xff]  ;;  %945 = vadd.xlane.f32.xlu0 %v944_v26  ;;  %v971_v47 = vadd.f32 %v970_v27, %v4093_v63  ;;  %v4119_v60 = vadd.f32 %v386_v28, %v98_v20 }
  0x4f   :  { %9044 = vst [vmem:[#allocation49_spill] sm:$0xff] %v4111_v39  ;;  %v400_v41 = vld [vmem:[#allocation5 + $0x158] sm:$0xff]  ;;  %v401_v43 = vld [vmem:[#allocation5 + $0x160] sm:$0xff]  ;;  %v962_v49 = vadd.f32 %v961_v34, %v4103_v22  ;;  %v115_v50 = vld [vmem:[#allocation2 + $0x170] sm:$0xff]  ;;  %v4115_v57 = vadd.f32 %v399_v40, %v111_v23 }
  0x50   :  { %v402_v54 = vld [vmem:[#allocation5 + $0x168] sm:$0xff]  ;;  %v403_v56 = vld [vmem:[#allocation5 + $0x170] sm:$0xff]  ;;  %v4117_v59 = vadd.f32 %v400_v41, %v112_v24  ;;  %9047 = vst [vmem:[#allocation52_spill] sm:$0xff] %v4119_v60  ;;  %v116_v62 = vld [vmem:[#allocation2 + $0x178] sm:$0xff]  ;;  %v4121_v0 = vadd.f32 %v401_v43, %v113_v36  ;;  %v972_v4 = vadd.f32 %v971_v47, %v4101_v19 }
  0x51   :  { %9045 = vst [vmem:[#allocation50_spill] sm:$0xff] %v4115_v57  ;;  %v105_v2 = vld [vmem:[#allocation2 + $0x120] sm:$0xff]  ;;  %v106_v3 = vld [vmem:[#allocation2 + $0x128] sm:$0xff]  ;;  %v963_v5 = vadd.f32 %v962_v49, %v4107_v33  ;;  %v404_v6 = vld [vmem:[#allocation5 + $0x178] sm:$0xff]  ;;  %v4125_v7 = vadd.f32 %v402_v54, %v114_v37  ;;  %v4129_v26 = vadd.f32 %v403_v56, %v115_v50 }
  0x52   :  { %9046 = vst [vmem:[#allocation51_spill] sm:$0xff] %v4117_v59  ;;  %9048 = vst [vmem:[#allocation53_spill] sm:$0xff] %v4121_v0  ;;  %v982_v8 = vadd.f32 %v4117_v59, %v4115_v57  ;;  %v107_v23 = vld [vmem:[#allocation2 + $0x130] sm:$0xff]  ;;  %v108_v24 = vld [vmem:[#allocation2 + $0x138] sm:$0xff]  ;;  %973 = vadd.xlane.f32.xlu1 %v972_v4  ;;  %v4137_v49 = vadd.f32 %v404_v6, %v116_v62 }
  0x53   :  { %9049 = vst [vmem:[#allocation54_spill] sm:$0xff] %v4125_v7  ;;  %9050 = vst [vmem:[#allocation55_spill] sm:$0xff] %v4129_v26  ;;  %v393_v20 = vld [vmem:[#allocation5 + $0x120] sm:$0xff]  ;;  %v394_v27 = vld [vmem:[#allocation5 + $0x128] sm:$0xff]  ;;  %v964_v34 = vadd.f32 %v963_v5, %v4111_v39 }
  0x54   :  { %v395_v28 = vld [vmem:[#allocation5 + $0x130] sm:$0xff]  ;;  %v983_v36 = vadd.f32 %v982_v8, %v4121_v0  ;;  %v109_v40 = vld [vmem:[#allocation2 + $0x140] sm:$0xff]  ;;  %v396_v41 = vld [vmem:[#allocation5 + $0x138] sm:$0xff]  ;;  %v4133_v37 = vadd.f32 %v393_v20, %v105_v2  ;;  %v4135_v47 = vadd.f32 %v394_v27, %v106_v3  ;;  %9053 = vst [vmem:[#allocation58_spill] sm:$0xff] %v4137_v49 }
  0x55   :  { %v397_v43 = vld [vmem:[#allocation5 + $0x140] sm:$0xff]  ;;  %v110_v54 = vld [vmem:[#allocation2 + $0x148] sm:$0xff]  ;;  %v4139_v50 = vadd.f32 %v395_v28, %v107_v23  ;;  %v123_v56 = vld [vmem:[#allocation2 + $0x1b0] sm:$0xff]  ;;  %v965_v4 = vadd.f32 %v964_v34, %v4119_v60  ;;  %v4143_v8 = vadd.f32 %v396_v41, %v108_v24 }
  0x56   :  { %9051 = vst [vmem:[#allocation56_spill] sm:$0xff] %v4133_v37  ;;  %9052 = vst [vmem:[#allocation57_spill] sm:$0xff] %v4135_v47  ;;  %v124_v59 = vld [vmem:[#allocation2 + $0x1b8] sm:$0xff]  ;;  %v984_v5 = vadd.f32 %v983_v36, %v4125_v7  ;;  %v398_v57 = vld [vmem:[#allocation5 + $0x148] sm:$0xff]  ;;  %v975_v2 = vadd.f32 %v4135_v47, %v4133_v37  ;;  %v4147_v27 = vadd.f32 %v397_v43, %v109_v40 }
  0x57   :  { %9054 = vst [vmem:[#allocation59_spill] sm:$0xff] %v4139_v50  ;;  %9055 = vst [vmem:[#allocation60_spill] sm:$0xff] %v4143_v8  ;;  %v125_v20 = vld [vmem:[#allocation2 + $0x1c0] sm:$0xff]  ;;  %v126_v3 = vld [vmem:[#allocation2 + $0x1c8] sm:$0xff]  ;;  %966 = vadd.xlane.f32.xlu0 %v965_v4  ;;  %v4155_v47 = vadd.f32 %v398_v57, %v110_v54 }
  0x58   :  { %9056 = vst [vmem:[#allocation61_spill] sm:$0xff] %v4147_v27  ;;  %v411_v62 = vld [vmem:[#allocation5 + $0x1b0] sm:$0xff]  ;;  %v412_v6 = vld [vmem:[#allocation5 + $0x1b8] sm:$0xff]  ;;  %v413_v23 = vld [vmem:[#allocation5 + $0x1c0] sm:$0xff]  ;;  %v985_v28 = vadd.f32 %v984_v5, %v4129_v26  ;;  %v976_v34 = vadd.f32 %v975_v2, %v4139_v50 }
  0x59   :  { %v127_v0 = vld [vmem:[#allocation2 + $0x1d0] sm:$0xff]  ;;  %v414_v36 = vld [vmem:[#allocation5 + $0x1c8] sm:$0xff]  ;;  %v4151_v24 = vadd.f32 %v411_v62, %v123_v56  ;;  %v4153_v41 = vadd.f32 %v412_v6, %v124_v59  ;;  %9059 = vst [vmem:[#allocation64_spill] sm:$0xff] %v4155_v47  ;;  %v128_v37 = vld [vmem:[#allocation2 + $0x1d8] sm:$0xff]  ;;  %v4157_v40 = vadd.f32 %v413_v23, %v125_v20 }
  0x5a   :  { %v415_v7 = vld [vmem:[#allocation5 + $0x1d0] sm:$0xff]  ;;  %v117_v43 = vld [vmem:[#allocation2 + $0x180] sm:$0xff]  ;;  %v118_v60 = vld [vmem:[#allocation2 + $0x188] sm:$0xff]  ;;  %v986_v4 = vadd.f32 %v985_v28, %v4137_v49  ;;  %v977_v5 = vadd.f32 %v976_v34, %v4143_v8  ;;  %v4161_v2 = vadd.f32 %v414_v36, %v126_v3 }
  0x5b   :  { %9057 = vst [vmem:[#allocation62_spill] sm:$0xff] %v4151_v24  ;;  %9058 = vst [vmem:[#allocation63_spill] sm:$0xff] %v4153_v41  ;;  %v416_v26 = vld [vmem:[#allocation5 + $0x1d8] sm:$0xff]  ;;  %v996_v56 = vadd.f32 %v4153_v41, %v4151_v24  ;;  %v119_v62 = vld [vmem:[#allocation2 + $0x190] sm:$0xff]  ;;  %v4165_v6 = vadd.f32 %v415_v7, %v127_v0 }
  0x5c   :  { %9060 = vst [vmem:[#allocation65_spill] sm:$0xff] %v4157_v40  ;;  %9061 = vst [vmem:[#allocation66_spill] sm:$0xff] %v4161_v2  ;;  %v120_v59 = vld [vmem:[#allocation2 + $0x198] sm:$0xff]  ;;  %v405_v57 = vld [vmem:[#allocation5 + $0x180] sm:$0xff]  ;;  %987 = vadd.xlane.f32.xlu1 %v986_v4  ;;  %v978_v23 = vadd.f32 %v977_v5, %v4147_v27  ;;  %v4173_v41 = vadd.f32 %v416_v26, %v128_v37 }
  0x5d   :  { %9062 = vst [vmem:[#allocation67_spill] sm:$0xff] %v4165_v6  ;;  %v406_v54 = vld [vmem:[#allocation5 + $0x188] sm:$0xff]  ;;  %v407_v20 = vld [vmem:[#allocation5 + $0x190] sm:$0xff]  ;;  %v997_v28 = vadd.f32 %v996_v56, %v4157_v40  ;;  %v121_v50 = vld [vmem:[#allocation2 + $0x1a0] sm:$0xff]  ;;  %v4169_v3 = vadd.f32 %v405_v57, %v117_v43 }
  0x5e   :  { %v408_v34 = vld [vmem:[#allocation5 + $0x198] sm:$0xff]  ;;  %v409_v8 = vld [vmem:[#allocation5 + $0x1a0] sm:$0xff]  ;;  %v4171_v36 = vadd.f32 %v406_v54, %v118_v60  ;;  %9065 = vst [vmem:[#allocation70_spill] sm:$0xff] %v4173_v41  ;;  %v122_v24 = vld [vmem:[#allocation2 + $0x1a8] sm:$0xff]  ;;  %v4175_v0 = vadd.f32 %v407_v20, %v119_v62  ;;  %v979_v4 = vadd.f32 %v978_v23, %v4155_v47 }
  0x5f   :  { %9063 = vst [vmem:[#allocation68_spill] sm:$0xff] %v4169_v3  ;;  %v135_v7 = vld [vmem:[#allocation2 + $0x210] sm:$0xff]  ;;  %v136_v49 = vld [vmem:[#allocation2 + $0x218] sm:$0xff]  ;;  %v998_v5 = vadd.f32 %v997_v28, %v4161_v2  ;;  %v410_v27 = vld [vmem:[#allocation5 + $0x1a8] sm:$0xff]  ;;  %v4179_v56 = vadd.f32 %v408_v34, %v120_v59  ;;  %v4183_v54 = vadd.f32 %v409_v8, %v121_v50 }
  0x60   :  { %9064 = vst [vmem:[#allocation69_spill] sm:$0xff] %v4171_v36  ;;  %9066 = vst [vmem:[#allocation71_spill] sm:$0xff] %v4175_v0  ;;  %v989_v43 = vadd.f32 %v4171_v36, %v4169_v3  ;;  %v137_v57 = vld [vmem:[#allocation2 + $0x220] sm:$0xff]  ;;  %v138_v60 = vld [vmem:[#allocation2 + $0x228] sm:$0xff]  ;;  %980 = vadd.xlane.f32.xlu0 %v979_v4  ;;  %v4191_v36 = vadd.f32 %v410_v27, %v122_v24 }
  0x61   :  { %9067 = vst [vmem:[#allocation72_spill] sm:$0xff] %v4179_v56  ;;  %9068 = vst [vmem:[#allocation73_spill] sm:$0xff] %v4183_v54  ;;  %v423_v26 = vld [vmem:[#allocation5 + $0x210] sm:$0xff]  ;;  %v424_v37 = vld [vmem:[#allocation5 + $0x218] sm:$0xff]  ;;  %v999_v20 = vadd.f32 %v998_v5, %v4165_v6 }
  0x62   :  { %v425_v62 = vld [vmem:[#allocation5 + $0x220] sm:$0xff]  ;;  %v990_v23 = vadd.f32 %v989_v43, %v4175_v0  ;;  %v139_v40 = vld [vmem:[#allocation2 + $0x230] sm:$0xff]  ;;  %v426_v28 = vld [vmem:[#allocation5 + $0x228] sm:$0xff]  ;;  %v4187_v59 = vadd.f32 %v423_v26, %v135_v7  ;;  %v4189_v34 = vadd.f32 %v424_v37, %v136_v49  ;;  %9071 = vst [vmem:[#allocation76_spill] sm:$0xff] %v4191_v36 }
  0x63   :  { %v427_v2 = vld [vmem:[#allocation5 + $0x230] sm:$0xff]  ;;  %v140_v3 = vld [vmem:[#allocation2 + $0x238] sm:$0xff]  ;;  %v4193_v50 = vadd.f32 %v425_v62, %v137_v57  ;;  %v129_v8 = vld [vmem:[#allocation2 + $0x1e0] sm:$0xff]  ;;  %v1000_v4 = vadd.f32 %v999_v20, %v4173_v41  ;;  %v4197_v43 = vadd.f32 %v426_v28, %v138_v60 }
  0x64   :  { %9069 = vst [vmem:[#allocation74_spill] sm:$0xff] %v4187_v59  ;;  %9070 = vst [vmem:[#allocation75_spill] sm:$0xff] %v4189_v34  ;;  %v130_v47 = vld [vmem:[#allocation2 + $0x1e8] sm:$0xff]  ;;  %v991_v5 = vadd.f32 %v990_v23, %v4179_v56  ;;  %v428_v6 = vld [vmem:[#allocation5 + $0x238] sm:$0xff]  ;;  %v1010_v7 = vadd.f32 %v4189_v34, %v4187_v59  ;;  %v4201_v37 = vadd.f32 %v427_v2, %v139_v40 }
  0x65   :  { %9072 = vst [vmem:[#allocation77_spill] sm:$0xff] %v4193_v50  ;;  %9073 = vst [vmem:[#allocation78_spill] sm:$0xff] %v4197_v43  ;;  %v131_v26 = vld [vmem:[#allocation2 + $0x1f0] sm:$0xff]  ;;  %v132_v49 = vld [vmem:[#allocation2 + $0x1f8] sm:$0xff]  ;;  %1001 = vadd.xlane.f32.xlu1 %v1000_v4  ;;  %v4209_v34 = vadd.f32 %v428_v6, %v140_v3 }
  0x66   :  { %9074 = vst [vmem:[#allocation79_spill] sm:$0xff] %v4201_v37  ;;  %v417_v27 = vld [vmem:[#allocation5 + $0x1e0] sm:$0xff]  ;;  %v418_v24 = vld [vmem:[#allocation5 + $0x1e8] sm:$0xff]  ;;  %v419_v57 = vld [vmem:[#allocation5 + $0x1f0] sm:$0xff]  ;;  %v992_v62 = vadd.f32 %v991_v5, %v4183_v54  ;;  %v1011_v20 = vadd.f32 %v1010_v7, %v4193_v50 }
  0x67   :  { %v133_v0 = vld [vmem:[#allocation2 + $0x200] sm:$0xff]  ;;  %v420_v23 = vld [vmem:[#allocation5 + $0x1f8] sm:$0xff]  ;;  %v4205_v60 = vadd.f32 %v417_v27, %v129_v8  ;;  %v4207_v28 = vadd.f32 %v418_v24, %v130_v47  ;;  %9077 = vst [vmem:[#allocation82_spill] sm:$0xff] %v4209_v34  ;;  %v134_v59 = vld [vmem:[#allocation2 + $0x208] sm:$0xff]  ;;  %v4211_v40 = vadd.f32 %v419_v57, %v131_v26 }
  0x68   :  { %v421_v56 = vld [vmem:[#allocation5 + $0x200] sm:$0xff]  ;;  %v147_v2 = vld [vmem:[#allocation2 + $0x270] sm:$0xff]  ;;  %v148_v41 = vld [vmem:[#allocation2 + $0x278] sm:$0xff]  ;;  %v993_v4 = vadd.f32 %v992_v62, %v4191_v36  ;;  %v1012_v5 = vadd.f32 %v1011_v20, %v4197_v43  ;;  %v4215_v7 = vadd.f32 %v420_v23, %v132_v49 }
  0x69   :  { %9075 = vst [vmem:[#allocation80_spill] sm:$0xff] %v4205_v60  ;;  %9076 = vst [vmem:[#allocation81_spill] sm:$0xff] %v4207_v28  ;;  %v422_v54 = vld [vmem:[#allocation5 + $0x208] sm:$0xff]  ;;  %v1003_v8 = vadd.f32 %v4207_v28, %v4205_v60  ;;  %v149_v27 = vld [vmem:[#allocation2 + $0x280] sm:$0xff]  ;;  %v4219_v24 = vadd.f32 %v421_v56, %v133_v0 }
  0x6a   :  { %9078 = vst [vmem:[#allocation83_spill] sm:$0xff] %v4211_v40  ;;  %9079 = vst [vmem:[#allocation84_spill] sm:$0xff] %v4215_v7  ;;  %v150_v47 = vld [vmem:[#allocation2 + $0x288] sm:$0xff]  ;;  %v435_v6 = vld [vmem:[#allocation5 + $0x270] sm:$0xff]  ;;  %994 = vadd.xlane.f32.xlu0 %v993_v4  ;;  %v1013_v57 = vadd.f32 %v1012_v5, %v4201_v37  ;;  %v4227_v28 = vadd.f32 %v422_v54, %v134_v59 }
  0x6b   :  { %9080 = vst [vmem:[#allocation85_spill] sm:$0xff] %v4219_v24  ;;  %v436_v3 = vld [vmem:[#allocation5 + $0x278] sm:$0xff]  ;;  %v437_v26 = vld [vmem:[#allocation5 + $0x280] sm:$0xff]  ;;  %v1004_v62 = vadd.f32 %v1003_v8, %v4211_v40  ;;  %v151_v50 = vld [vmem:[#allocation2 + $0x290] sm:$0xff]  ;;  %v4223_v49 = vadd.f32 %v435_v6, %v147_v2 }
  0x6c   :  { %v438_v20 = vld [vmem:[#allocation5 + $0x288] sm:$0xff]  ;;  %v439_v43 = vld [vmem:[#allocation5 + $0x290] sm:$0xff]  ;;  %v4225_v23 = vadd.f32 %v436_v3, %v148_v41  ;;  %9083 = vst [vmem:[#allocation88_spill] sm:$0xff] %v4227_v28  ;;  %v152_v60 = vld [vmem:[#allocation2 + $0x298] sm:$0xff]  ;;  %v4229_v0 = vadd.f32 %v437_v26, %v149_v27  ;;  %v1014_v4 = vadd.f32 %v1013_v57, %v4209_v34 }
  0x6d   :  { %9081 = vst [vmem:[#allocation86_spill] sm:$0xff] %v4223_v49  ;;  %v141_v56 = vld [vmem:[#allocation2 + $0x240] sm:$0xff]  ;;  %v142_v36 = vld [vmem:[#allocation2 + $0x248] sm:$0xff]  ;;  %v1005_v5 = vadd.f32 %v1004_v62, %v4215_v7  ;;  %v440_v37 = vld [vmem:[#allocation5 + $0x298] sm:$0xff]  ;;  %v4233_v8 = vadd.f32 %v438_v20, %v150_v47  ;;  %v4237_v3 = vadd.f32 %v439_v43, %v151_v50 }
  0x6e   :  { %9082 = vst [vmem:[#allocation87_spill] sm:$0xff] %v4225_v23  ;;  %9084 = vst [vmem:[#allocation89_spill] sm:$0xff] %v4229_v0  ;;  %v1024_v2 = vadd.f32 %v4225_v23, %v4223_v49  ;;  %v143_v6 = vld [vmem:[#allocation2 + $0x250] sm:$0xff]  ;;  %v144_v41 = vld [vmem:[#allocation2 + $0x258] sm:$0xff]  ;;  %1015 = vadd.xlane.f32.xlu1 %v1014_v4  ;;  %v4245_v23 = vadd.f32 %v440_v37, %v152_v60 }
  0x6f   :  { %9085 = vst [vmem:[#allocation90_spill] sm:$0xff] %v4233_v8  ;;  %9086 = vst [vmem:[#allocation91_spill] sm:$0xff] %v4237_v3  ;;  %v429_v54 = vld [vmem:[#allocation5 + $0x240] sm:$0xff]  ;;  %v430_v59 = vld [vmem:[#allocation5 + $0x248] sm:$0xff]  ;;  %v1006_v26 = vadd.f32 %v1005_v5, %v4219_v24 }
  0x70   :  { %v431_v27 = vld [vmem:[#allocation5 + $0x250] sm:$0xff]  ;;  %v1025_v57 = vadd.f32 %v1024_v2, %v4229_v0  ;;  %v145_v40 = vld [vmem:[#allocation2 + $0x260] sm:$0xff]  ;;  %v432_v62 = vld [vmem:[#allocation5 + $0x258] sm:$0xff]  ;;  %v4241_v47 = vadd.f32 %v429_v54, %v141_v56  ;;  %v4243_v20 = vadd.f32 %v430_v59, %v142_v36  ;;  %9089 = vst [vmem:[#allocation94_spill] sm:$0xff] %v4245_v23 }
  0x71   :  { %v433_v7 = vld [vmem:[#allocation5 + $0x260] sm:$0xff]  ;;  %v146_v49 = vld [vmem:[#allocation2 + $0x268] sm:$0xff]  ;;  %v4247_v50 = vadd.f32 %v431_v27, %v143_v6  ;;  %v159_v43 = vld [vmem:[#allocation2 + $0x2d0] sm:$0xff]  ;;  %v1007_v4 = vadd.f32 %v1006_v26, %v4227_v28  ;;  %v4251_v2 = vadd.f32 %v432_v62, %v144_v41 }
  0x72   :  { %9087 = vst [vmem:[#allocation92_spill] sm:$0xff] %v4241_v47  ;;  %9088 = vst [vmem:[#allocation93_spill] sm:$0xff] %v4243_v20  ;;  %v160_v34 = vld [vmem:[#allocation2 + $0x2d8] sm:$0xff]  ;;  %v1026_v5 = vadd.f32 %v1025_v57, %v4233_v8  ;;  %v434_v24 = vld [vmem:[#allocation5 + $0x268] sm:$0xff]  ;;  %v1017_v56 = vadd.f32 %v4243_v20, %v4241_v47  ;;  %v4255_v59 = vadd.f32 %v433_v7, %v145_v40 }
  0x73   :  { %9090 = vst [vmem:[#allocation95_spill] sm:$0xff] %v4247_v50  ;;  %9091 = vst [vmem:[#allocation96_spill] sm:$0xff] %v4251_v2  ;;  %v161_v54 = vld [vmem:[#allocation2 + $0x2e0] sm:$0xff]  ;;  %v162_v36 = vld [vmem:[#allocation2 + $0x2e8] sm:$0xff]  ;;  %1008 = vadd.xlane.f32.xlu0 %v1007_v4  ;;  %v4263_v20 = vadd.f32 %v434_v24, %v146_v49 }
  0x74   :  { %9092 = vst [vmem:[#allocation97_spill] sm:$0xff] %v4255_v59  ;;  %v447_v37 = vld [vmem:[#allocation5 + $0x2d0] sm:$0xff]  ;;  %v448_v60 = vld [vmem:[#allocation5 + $0x2d8] sm:$0xff]  ;;  %v449_v6 = vld [vmem:[#allocation5 + $0x2e0] sm:$0xff]  ;;  %v1027_v27 = vadd.f32 %v1026_v5, %v4237_v3  ;;  %v1018_v26 = vadd.f32 %v1017_v56, %v4247_v50 }
  0x75   :  { %v163_v0 = vld [vmem:[#allocation2 + $0x2f0] sm:$0xff]  ;;  %v450_v57 = vld [vmem:[#allocation5 + $0x2e8] sm:$0xff]  ;;  %v4259_v41 = vadd.f32 %v447_v37, %v159_v43  ;;  %v4261_v62 = vadd.f32 %v448_v60, %v160_v34  ;;  %9095 = vst [vmem:[#allocation100_spill] sm:$0xff] %v4263_v20  ;;  %v164_v47 = vld [vmem:[#allocation2 + $0x2f8] sm:$0xff]  ;;  %v4265_v40 = vadd.f32 %v449_v6, %v161_v54 }
  0x76   :  { %v451_v8 = vld [vmem:[#allocation5 + $0x2f0] sm:$0xff]  ;;  %v153_v7 = vld [vmem:[#allocation2 + $0x2a0] sm:$0xff]  ;;  %v154_v28 = vld [vmem:[#allocation2 + $0x2a8] sm:$0xff]  ;;  %v1028_v4 = vadd.f32 %v1027_v27, %v4245_v23  ;;  %v1019_v5 = vadd.f32 %v1018_v26, %v4251_v2  ;;  %v4269_v56 = vadd.f32 %v450_v57, %v162_v36 }
  0x77   :  { %9093 = vst [vmem:[#allocation98_spill] sm:$0xff] %v4259_v41  ;;  %9094 = vst [vmem:[#allocation99_spill] sm:$0xff] %v4261_v62  ;;  %v452_v3 = vld [vmem:[#allocation5 + $0x2f8] sm:$0xff]  ;;  %v1038_v43 = vadd.f32 %v4261_v62, %v4259_v41  ;;  %v155_v37 = vld [vmem:[#allocation2 + $0x2b0] sm:$0xff]  ;;  %v4273_v60 = vadd.f32 %v451_v8, %v163_v0 }
  0x78   :  { %9096 = vst [vmem:[#allocation101_spill] sm:$0xff] %v4265_v40  ;;  %9097 = vst [vmem:[#allocation102_spill] sm:$0xff] %v4269_v56  ;;  %v156_v34 = vld [vmem:[#allocation2 + $0x2b8] sm:$0xff]  ;;  %v441_v24 = vld [vmem:[#allocation5 + $0x2a0] sm:$0xff]  ;;  %1029 = vadd.xlane.f32.xlu1 %v1028_v4  ;;  %v1020_v6 = vadd.f32 %v1019_v5, %v4255_v59  ;;  %v4281_v62 = vadd.f32 %v452_v3, %v164_v47 }
  0x79   :  { %9098 = vst [vmem:[#allocation103_spill] sm:$0xff] %v4273_v60  ;;  %v442_v49 = vld [vmem:[#allocation5 + $0x2a8] sm:$0xff]  ;;  %v443_v54 = vld [vmem:[#allocation5 + $0x2b0] sm:$0xff]  ;;  %v1039_v27 = vadd.f32 %v1038_v43, %v4265_v40  ;;  %v157_v23 = vld [vmem:[#allocation2 + $0x2c0] sm:$0xff]  ;;  %v4277_v36 = vadd.f32 %v441_v24, %v153_v7 }
  0x7a   :  { %v444_v26 = vld [vmem:[#allocation5 + $0x2b8] sm:$0xff]  ;;  %v445_v2 = vld [vmem:[#allocation5 + $0x2c0] sm:$0xff]  ;;  %v4279_v57 = vadd.f32 %v442_v49, %v154_v28  ;;  %9101 = vst [vmem:[#allocation106_spill] sm:$0xff] %v4281_v62  ;;  %v158_v41 = vld [vmem:[#allocation2 + $0x2c8] sm:$0xff]  ;;  %v4283_v0 = vadd.f32 %v443_v54, %v155_v37  ;;  %v1021_v4 = vadd.f32 %v1020_v6, %v4263_v20 }
  0x7b   :  { %9099 = vst [vmem:[#allocation104_spill] sm:$0xff] %v4277_v36  ;;  %v171_v8 = vld [vmem:[#allocation2 + $0x330] sm:$0xff]  ;;  %v172_v50 = vld [vmem:[#allocation2 + $0x338] sm:$0xff]  ;;  %v1040_v5 = vadd.f32 %v1039_v27, %v4269_v56  ;;  %v446_v59 = vld [vmem:[#allocation5 + $0x2c8] sm:$0xff]  ;;  %v4287_v43 = vadd.f32 %v444_v26, %v156_v34  ;;  %v4291_v49 = vadd.f32 %v445_v2, %v157_v23 }
  0x7c   :  { %9100 = vst [vmem:[#allocation105_spill] sm:$0xff] %v4279_v57  ;;  %9102 = vst [vmem:[#allocation107_spill] sm:$0xff] %v4283_v0  ;;  %v1031_v7 = vadd.f32 %v4279_v57, %v4277_v36  ;;  %v173_v24 = vld [vmem:[#allocation2 + $0x340] sm:$0xff]  ;;  %v174_v28 = vld [vmem:[#allocation2 + $0x348] sm:$0xff]  ;;  %1022 = vadd.xlane.f32.xlu0 %v1021_v4  ;;  %v4299_v57 = vadd.f32 %v446_v59, %v158_v41 }
  0x7d   :  { %9103 = vst [vmem:[#allocation108_spill] sm:$0xff] %v4287_v43  ;;  %9104 = vst [vmem:[#allocation109_spill] sm:$0xff] %v4291_v49  ;;  %v459_v3 = vld [vmem:[#allocation5 + $0x330] sm:$0xff]  ;;  %v460_v47 = vld [vmem:[#allocation5 + $0x338] sm:$0xff]  ;;  %v1041_v54 = vadd.f32 %v1040_v5, %v4273_v60 }
  0x7e   :  { %v461_v37 = vld [vmem:[#allocation5 + $0x340] sm:$0xff]  ;;  %v1032_v6 = vadd.f32 %v1031_v7, %v4283_v0  ;;  %v175_v20 = vld [vmem:[#allocation2 + $0x350] sm:$0xff]  ;;  %v462_v27 = vld [vmem:[#allocation5 + $0x348] sm:$0xff]  ;;  %v4295_v34 = vadd.f32 %v459_v3, %v171_v8  ;;  %v4297_v26 = vadd.f32 %v460_v47, %v172_v50  ;;  %9107 = vst [vmem:[#allocation112_spill] sm:$0xff] %v4299_v57 }
  0x7f   :  { %v463_v56 = vld [vmem:[#allocation5 + $0x350] sm:$0xff]  ;;  %v176_v36 = vld [vmem:[#allocation2 + $0x358] sm:$0xff]  ;;  %v4301_v23 = vadd.f32 %v461_v37, %v173_v24  ;;  %v165_v2 = vld [vmem:[#allocation2 + $0x300] sm:$0xff]  ;;  %v1042_v4 = vadd.f32 %v1041_v54, %v4281_v62  ;;  %v4305_v7 = vadd.f32 %v462_v27, %v174_v28 }
  0x80   :  { %9105 = vst [vmem:[#allocation110_spill] sm:$0xff] %v4295_v34  ;;  %9106 = vst [vmem:[#allocation111_spill] sm:$0xff] %v4297_v26  ;;  %v166_v40 = vld [vmem:[#allocation2 + $0x308] sm:$0xff]  ;;  %v1033_v5 = vadd.f32 %v1032_v6, %v4287_v43  ;;  %v464_v60 = vld [vmem:[#allocation5 + $0x358] sm:$0xff]  ;;  %v1052_v8 = vadd.f32 %v4297_v26, %v4295_v34  ;;  %v4309_v47 = vadd.f32 %v463_v56, %v175_v20 }
  0x81   :  { %9108 = vst [vmem:[#allocation113_spill] sm:$0xff] %v4301_v23  ;;  %9109 = vst [vmem:[#allocation114_spill] sm:$0xff] %v4305_v7  ;;  %v167_v3 = vld [vmem:[#allocation2 + $0x310] sm:$0xff]  ;;  %v168_v50 = vld [vmem:[#allocation2 + $0x318] sm:$0xff]  ;;  %1043 = vadd.xlane.f32.xlu1 %v1042_v4  ;;  %v4317_v0 = vadd.f32 %v464_v60, %v176_v36 }
  0x82   :  { %9110 = vst [vmem:[#allocation115_spill] sm:$0xff] %v4309_v47  ;;  %v453_v59 = vld [vmem:[#allocation5 + $0x300] sm:$0xff]  ;;  %v454_v41 = vld [vmem:[#allocation5 + $0x308] sm:$0xff]  ;;  %v455_v24 = vld [vmem:[#allocation5 + $0x310] sm:$0xff]  ;;  %v1034_v37 = vadd.f32 %v1033_v5, %v4291_v49  ;;  %v1053_v54 = vadd.f32 %v1052_v8, %v4301_v23 }
  0x83   :  { %v169_v62 = vld [vmem:[#allocation2 + $0x320] sm:$0xff]  ;;  %v456_v6 = vld [vmem:[#allocation5 + $0x318] sm:$0xff]  ;;  %v4313_v28 = vadd.f32 %v453_v59, %v165_v2  ;;  %v4315_v27 = vadd.f32 %v454_v41, %v166_v40  ;;  %9113 = vst [vmem:[#allocation118_spill] sm:$0xff] %v4317_v0  ;;  %v170_v26 = vld [vmem:[#allocation2 + $0x328] sm:$0xff]  ;;  %v4319_v20 = vadd.f32 %v455_v24, %v167_v3 }
  0x84   :  { %v457_v43 = vld [vmem:[#allocation5 + $0x320] sm:$0xff]  ;;  %v183_v56 = vld [vmem:[#allocation2 + $0x390] sm:$0xff]  ;;  %v184_v34 = vld [vmem:[#allocation2 + $0x398] sm:$0xff]  ;;  %v1035_v4 = vadd.f32 %v1034_v37, %v4299_v57  ;;  %v1054_v5 = vadd.f32 %v1053_v54, %v4305_v7  ;;  %v4323_v8 = vadd.f32 %v456_v6, %v168_v50 }
  0x85   :  { %9111 = vst [vmem:[#allocation116_spill] sm:$0xff] %v4313_v28  ;;  %9112 = vst [vmem:[#allocation117_spill] sm:$0xff] %v4315_v27  ;;  %v458_v49 = vld [vmem:[#allocation5 + $0x328] sm:$0xff]  ;;  %v1045_v2 = vadd.f32 %v4315_v27, %v4313_v28  ;;  %v185_v59 = vld [vmem:[#allocation2 + $0x3a0] sm:$0xff]  ;;  %v4327_v41 = vadd.f32 %v457_v43, %v169_v62 }
  0x86   :  { %9114 = vst [vmem:[#allocation119_spill] sm:$0xff] %v4319_v20  ;;  %9115 = vst [vmem:[#allocation120_spill] sm:$0xff] %v4323_v8  ;;  %v186_v40 = vld [vmem:[#allocation2 + $0x3a8] sm:$0xff]  ;;  %v471_v60 = vld [vmem:[#allocation5 + $0x390] sm:$0xff]  ;;  %1036 = vadd.xlane.f32.xlu0 %v1035_v4  ;;  %v1055_v24 = vadd.f32 %v1054_v5, %v4309_v47  ;;  %v4335_v23 = vadd.f32 %v458_v49, %v170_v26 }
  0x87   :  { %9116 = vst [vmem:[#allocation121_spill] sm:$0xff] %v4327_v41  ;;  %v472_v36 = vld [vmem:[#allocation5 + $0x398] sm:$0xff]  ;;  %v473_v3 = vld [vmem:[#allocation5 + $0x3a0] sm:$0xff]  ;;  %v1046_v37 = vadd.f32 %v1045_v2, %v4319_v20  ;;  %v187_v57 = vld [vmem:[#allocation2 + $0x3b0] sm:$0xff]  ;;  %v4331_v50 = vadd.f32 %v471_v60, %v183_v56 }
  0x88   :  { %v474_v54 = vld [vmem:[#allocation5 + $0x3a8] sm:$0xff]  ;;  %v475_v7 = vld [vmem:[#allocation5 + $0x3b0] sm:$0xff]  ;;  %v4333_v6 = vadd.f32 %v472_v36, %v184_v34  ;;  %9119 = vst [vmem:[#allocation124_spill] sm:$0xff] %v4335_v23  ;;  %v188_v27 = vld [vmem:[#allocation2 + $0x3b8] sm:$0xff]  ;;  %v4337_v62 = vadd.f32 %v473_v3, %v185_v59  ;;  %v1056_v4 = vadd.f32 %v1055_v24, %v4317_v0 }
  0x89   :  { %9117 = vst [vmem:[#allocation122_spill] sm:$0xff] %v4331_v50  ;;  %v177_v43 = vld [vmem:[#allocation2 + $0x360] sm:$0xff]  ;;  %v178_v28 = vld [vmem:[#allocation2 + $0x368] sm:$0xff]  ;;  %v1047_v5 = vadd.f32 %v1046_v37, %v4323_v8  ;;  %v476_v47 = vld [vmem:[#allocation5 + $0x3b8] sm:$0xff]  ;;  %v4341_v2 = vadd.f32 %v474_v54, %v186_v40  ;;  %v4345_v36 = vadd.f32 %v475_v7, %v187_v57 }
  0x8a   :  { %9118 = vst [vmem:[#allocation123_spill] sm:$0xff] %v4333_v6  ;;  %9120 = vst [vmem:[#allocation125_spill] sm:$0xff] %v4337_v62  ;;  %v1066_v56 = vadd.f32 %v4333_v6, %v4331_v50  ;;  %v179_v60 = vld [vmem:[#allocation2 + $0x370] sm:$0xff]  ;;  %v180_v34 = vld [vmem:[#allocation2 + $0x378] sm:$0xff]  ;;  %1057 = vadd.xlane.f32.xlu1 %v1056_v4  ;;  %v4353_v6 = vadd.f32 %v476_v47, %v188_v27  ;;  %v1323_v4 = vmul.f32 %v4061_v13, %v4061_v13 }
  0x8b   :  { %9121 = vst [vmem:[#allocation126_spill] sm:$0xff] %v4341_v2  ;;  %9122 = vst [vmem:[#allocation127_spill] sm:$0xff] %v4345_v36  ;;  %v465_v49 = vld [vmem:[#allocation5 + $0x360] sm:$0xff]  ;;  %v466_v26 = vld [vmem:[#allocation5 + $0x368] sm:$0xff]  ;;  %v1048_v3 = vadd.f32 %v1047_v5, %v4327_v41  ;;  %v1324_v5 = vmul.f32 %v4063_v14, %v4063_v14  ;;  %v1325_v14 = vmul.f32 %v4067_v17, %v4067_v17 }
  0x8c   :  { %v467_v59 = vld [vmem:[#allocation5 + $0x370] sm:$0xff]  ;;  %v1067_v24 = vadd.f32 %v1066_v56, %v4337_v62  ;;  %v181_v0 = vld [vmem:[#allocation2 + $0x380] sm:$0xff]  ;;  %v468_v37 = vld [vmem:[#allocation5 + $0x378] sm:$0xff]  ;;  %v4349_v40 = vadd.f32 %v465_v49, %v177_v43  ;;  %v4351_v54 = vadd.f32 %v466_v26, %v178_v28  ;;  %9125 = vst [vmem:[#allocation130_spill] sm:$0xff] %v4353_v6 }
  0x8d   :  { %v469_v8 = vld [vmem:[#allocation5 + $0x380] sm:$0xff]  ;;  %v182_v50 = vld [vmem:[#allocation2 + $0x388] sm:$0xff]  ;;  %v4355_v57 = vadd.f32 %v467_v59, %v179_v60  ;;  %v195_v7 = vld [vmem:[#allocation2 + $0x3f0] sm:$0xff]  ;;  %v1049_v56 = vadd.f32 %v1048_v3, %v4335_v23  ;;  %v4363_v28 = vadd.f32 %v468_v37, %v180_v34  ;;  %v1317_v3 = vmul.f32 %v4026_v29, %v4026_v29 }
  0x8e   :  { %9123 = vst [vmem:[#allocation128_spill] sm:$0xff] %v4349_v40  ;;  %9124 = vst [vmem:[#allocation129_spill] sm:$0xff] %v4351_v54  ;;  %v196_v20 = vld [vmem:[#allocation2 + $0x3f8] sm:$0xff]  ;;  %v1068_v43 = vadd.f32 %v1067_v24, %v4341_v2  ;;  %v470_v49 = vld [vmem:[#allocation5 + $0x388] sm:$0xff]  ;;  %v1059_v47 = vadd.f32 %v4351_v54, %v4349_v40  ;;  %v4367_v26 = vadd.f32 %v469_v8, %v181_v0 }
  0x8f   :  { %9126 = vst [vmem:[#allocation131_spill] sm:$0xff] %v4355_v57  ;;  %9127 = vst [vmem:[#allocation132_spill] sm:$0xff] %v4363_v28  ;;  %v197_v27 = vld [vmem:[#allocation2 + $0x400] sm:$0xff]  ;;  %v198_v60 = vld [vmem:[#allocation2 + $0x408] sm:$0xff]  ;;  %1050 = vadd.xlane.f32.xlu0 %v1049_v56  ;;  %v4379_v8 = vadd.f32 %v470_v49, %v182_v50  ;;  %v1612_v29 = vadd.f32 %v1324_v5, %v1323_v4  ;;  %v1318_v56 = vmul.f32 %v4028_v30, %v4028_v30 }
  0x90   :  { %9128 = vst [vmem:[#allocation133_spill] sm:$0xff] %v4367_v26  ;;  %v483_v59 = vld [vmem:[#allocation5 + $0x3f0] sm:$0xff]  ;;  %v484_v41 = vld [vmem:[#allocation5 + $0x3f8] sm:$0xff]  ;;  %v485_v13 = vld [vmem:[#allocation5 + $0x400] sm:$0xff]  ;;  %v1069_v34 = vadd.f32 %v1068_v43, %v4345_v36  ;;  %v1060_v24 = vadd.f32 %v1059_v47, %v4355_v57  ;;  %v1326_v5 = vmul.f32 %v4071_v25, %v4071_v25 }
  0x91   :  { %v199_v37 = vld [vmem:[#allocation2 + $0x410] sm:$0xff]  ;;  %v486_v23 = vld [vmem:[#allocation5 + $0x408] sm:$0xff]  ;;  %v4375_v54 = vadd.f32 %v483_v59, %v195_v7  ;;  %v4377_v0 = vadd.f32 %v484_v41, %v196_v20  ;;  %9131 = vst [vmem:[#allocation136_spill] sm:$0xff] %v4379_v8  ;;  %v200_v40 = vld [vmem:[#allocation2 + $0x418] sm:$0xff]  ;;  %v4381_v62 = vadd.f32 %v485_v13, %v197_v27  ;;  %v4397_v59 = vmul.f32 %v4075_v32, %v4075_v32 }
  0x92   :  { %v487_v2 = vld [vmem:[#allocation5 + $0x410] sm:$0xff]  ;;  %v189_v17 = vld [vmem:[#allocation2 + $0x3c0] sm:$0xff]  ;;  %v190_v39 = vld [vmem:[#allocation2 + $0x3c8] sm:$0xff]  ;;  %v1070_v43 = vadd.f32 %v1069_v34, %v4353_v6  ;;  %v1061_v47 = vadd.f32 %v1060_v24, %v4363_v28  ;;  %v4387_v7 = vadd.f32 %v486_v23, %v198_v60  ;;  %v1319_v23 = vmul.f32 %v4030_v31, %v4030_v31 }
  0x93   :  { %9129 = vst [vmem:[#allocation134_spill] sm:$0xff] %v4375_v54  ;;  %9130 = vst [vmem:[#allocation135_spill] sm:$0xff] %v4377_v0  ;;  %v488_v36 = vld [vmem:[#allocation5 + $0x418] sm:$0xff]  ;;  %v1080_v20 = vadd.f32 %v4377_v0, %v4375_v54  ;;  %v191_v41 = vld [vmem:[#allocation2 + $0x3d0] sm:$0xff]  ;;  %v4391_v13 = vadd.f32 %v487_v2, %v199_v37  ;;  %v1613_v31 = vadd.f32 %v1612_v29, %v1325_v14 }
  0x94   :  { %9132 = vst [vmem:[#allocation137_spill] sm:$0xff] %v4381_v62  ;;  %9133 = vst [vmem:[#allocation138_spill] sm:$0xff] %v4387_v7  ;;  %v192_v50 = vld [vmem:[#allocation2 + $0x3d8] sm:$0xff]  ;;  %v477_v49 = vld [vmem:[#allocation5 + $0x3c0] sm:$0xff]  ;;  %1071 = vadd.xlane.f32.xlu1 %v1070_v43  ;;  %v1062_v60 = vadd.f32 %v1061_v47, %v4367_v26  ;;  %v4407_v25 = vadd.f32 %v488_v36, %v200_v40  ;;  %v4413_v43 = vmul.f32 %v4035_v38, %v4035_v38 }
  0x95   :  { %9134 = vst [vmem:[#allocation139_spill] sm:$0xff] %v4391_v13  ;;  %v478_v27 = vld [vmem:[#allocation5 + $0x3c8] sm:$0xff]  ;;  %v479_v4 = vld [vmem:[#allocation5 + $0x3d0] sm:$0xff]  ;;  %v1081_v34 = vadd.f32 %v1080_v20, %v4381_v62  ;;  %v193_v2 = vld [vmem:[#allocation2 + $0x3e0] sm:$0xff]  ;;  %v4403_v30 = vadd.f32 %v477_v49, %v189_v17 }
  0x96   :  { %v480_v24 = vld [vmem:[#allocation5 + $0x3d8] sm:$0xff]  ;;  %v481_v37 = vld [vmem:[#allocation5 + $0x3e0] sm:$0xff]  ;;  %v4405_v6 = vadd.f32 %v478_v27, %v190_v39  ;;  %9137 = vst [vmem:[#allocation142_spill] sm:$0xff] %v4407_v25  ;;  %v194_v28 = vld [vmem:[#allocation2 + $0x3e8] sm:$0xff]  ;;  %v4409_v32 = vadd.f32 %v479_v4, %v191_v41  ;;  %v1063_v47 = vadd.f32 %v1062_v60, %v4379_v8  ;;  %v4425_v4 = vmul.f32 %v4083_v46, %v4083_v46 }
  0x97   :  { %9135 = vst [vmem:[#allocation140_spill] sm:$0xff] %v4403_v30  ;;  %v207_v0 = vld [vmem:[#allocation2 + $0x450] sm:$0xff]  ;;  %v208_v54 = vld [vmem:[#allocation2 + $0x458] sm:$0xff]  ;;  %v1082_v20 = vadd.f32 %v1081_v34, %v4387_v7  ;;  %v482_v17 = vld [vmem:[#allocation5 + $0x3e8] sm:$0xff]  ;;  %v4417_v49 = vadd.f32 %v480_v24, %v192_v50  ;;  %v4421_v41 = vadd.f32 %v481_v37, %v193_v2  ;;  %v4429_v60 = vmul.f32 %v4039_v42, %v4039_v42 }
  0x98   :  { %9136 = vst [vmem:[#allocation141_spill] sm:$0xff] %v4405_v6  ;;  %9138 = vst [vmem:[#allocation143_spill] sm:$0xff] %v4409_v32  ;;  %v1073_v39 = vadd.f32 %v4405_v6, %v4403_v30  ;;  %v209_v36 = vld [vmem:[#allocation2 + $0x460] sm:$0xff]  ;;  %v210_v40 = vld [vmem:[#allocation2 + $0x468] sm:$0xff]  ;;  %v1605_v50 = vadd.f32 %v1318_v56, %v1317_v3  ;;  %1064 = vadd.xlane.f32.xlu0 %v1063_v47  ;;  %v4437_v26 = vadd.f32 %v482_v17, %v194_v28 }
  0x99   :  { %9139 = vst [vmem:[#allocation144_spill] sm:$0xff] %v4417_v49  ;;  %9140 = vst [vmem:[#allocation145_spill] sm:$0xff] %v4421_v41  ;;  %v495_v27 = vld [vmem:[#allocation5 + $0x450] sm:$0xff]  ;;  %v496_v29 = vld [vmem:[#allocation5 + $0x458] sm:$0xff]  ;;  %v1083_v34 = vadd.f32 %v1082_v20, %v4391_v13  ;;  %v1614_v3 = vadd.f32 %v1613_v31, %v1326_v5  ;;  %v4443_v56 = vmul.f32 %v4047_v53, %v4047_v53 }
  0x9a   :  { %v497_v14 = vld [vmem:[#allocation5 + $0x460] sm:$0xff]  ;;  %v1074_v24 = vadd.f32 %v1073_v39, %v4409_v32  ;;  %v211_v38 = vld [vmem:[#allocation2 + $0x470] sm:$0xff]  ;;  %v498_v2 = vld [vmem:[#allocation5 + $0x468] sm:$0xff]  ;;  %v4433_v8 = vadd.f32 %v495_v27, %v207_v0  ;;  %v4435_v7 = vadd.f32 %v496_v29, %v208_v54  ;;  %9143 = vst [vmem:[#allocation148_spill] sm:$0xff] %v4437_v26  ;;  %v1606_v29 = vadd.f32 %v1605_v50, %v1319_v23 }
  0x9b   :  { %v499_v37 = vld [vmem:[#allocation5 + $0x470] sm:$0xff]  ;;  %v212_v46 = vld [vmem:[#allocation2 + $0x478] sm:$0xff]  ;;  %v4439_v6 = vadd.f32 %v497_v14, %v209_v36  ;;  %v201_v42 = vld [vmem:[#allocation2 + $0x420] sm:$0xff]  ;;  %v1084_v47 = vadd.f32 %v1083_v34, %v4407_v25  ;;  %v4447_v39 = vadd.f32 %v498_v2, %v210_v40  ;;  %v1335_v14 = vmul.f32 %v4043_v51, %v4043_v51 }
  0x9c   :  { %9141 = vst [vmem:[#allocation146_spill] sm:$0xff] %v4433_v8  ;;  %9142 = vst [vmem:[#allocation147_spill] sm:$0xff] %v4435_v7  ;;  %v202_v30 = vld [vmem:[#allocation2 + $0x428] sm:$0xff]  ;;  %v1075_v20 = vadd.f32 %v1074_v24, %v4417_v49  ;;  %v500_v0 = vld [vmem:[#allocation5 + $0x478] sm:$0xff]  ;;  %v1094_v54 = vadd.f32 %v4435_v7, %v4433_v8  ;;  %v4451_v36 = vadd.f32 %v499_v37, %v211_v38 }
  0x9d   :  { %9144 = vst [vmem:[#allocation149_spill] sm:$0xff] %v4439_v6  ;;  %9145 = vst [vmem:[#allocation150_spill] sm:$0xff] %v4447_v39  ;;  %v203_v28 = vld [vmem:[#allocation2 + $0x430] sm:$0xff]  ;;  %v204_v17 = vld [vmem:[#allocation2 + $0x438] sm:$0xff]  ;;  %v1336_v34 = vmul.f32 %v4045_v52, %v4045_v52  ;;  %1085 = vadd.xlane.f32.xlu1 %v1084_v47  ;;  %v4463_v8 = vadd.f32 %v500_v0, %v212_v46  ;;  %v1615_v47 = vadd.f32 %v1614_v3, %v4397_v59 }
  0x9e   :  { %9146 = vst [vmem:[#allocation151_spill] sm:$0xff] %v4451_v36  ;;  %v489_v27 = vld [vmem:[#allocation5 + $0x420] sm:$0xff]  ;;  %v490_v31 = vld [vmem:[#allocation5 + $0x428] sm:$0xff]  ;;  %v491_v5 = vld [vmem:[#allocation5 + $0x430] sm:$0xff]  ;;  %v1076_v40 = vadd.f32 %v1075_v20, %v4421_v41  ;;  %v1095_v24 = vadd.f32 %v1094_v54, %v4439_v6  ;;  %v1337_v20 = vmul.f32 %v4049_v55, %v4049_v55  ;;  %v1607_v3 = vadd.f32 %v1606_v29, %v4413_v43 }
  0x9f   :  { %v205_v2 = vld [vmem:[#allocation2 + $0x440] sm:$0xff]  ;;  %v492_v53 = vld [vmem:[#allocation5 + $0x438] sm:$0xff]  ;;  %v4459_v38 = vadd.f32 %v489_v27, %v201_v42  ;;  %v4461_v37 = vadd.f32 %v490_v31, %v202_v30  ;;  %9149 = vst [vmem:[#allocation154_spill] sm:$0xff] %v4463_v8  ;;  %v206_v23 = vld [vmem:[#allocation2 + $0x448] sm:$0xff]  ;;  %v4465_v50 = vadd.f32 %v491_v5, %v203_v28 }
  0xa0   :  { %v493_v7 = vld [vmem:[#allocation5 + $0x440] sm:$0xff]  ;;  %v219_v51 = vld [vmem:[#allocation2 + $0x4b0] sm:$0xff]  ;;  %v220_v25 = vld [vmem:[#allocation2 + $0x4b8] sm:$0xff]  ;;  %v1077_v54 = vadd.f32 %v1076_v40, %v4437_v26  ;;  %v1096_v52 = vadd.f32 %v1095_v24, %v4447_v39  ;;  %v4472_v27 = vadd.f32 %v492_v53, %v204_v17  ;;  %v4481_v40 = vmul.f32 %v4053_v61, %v4053_v61 }
  0xa1   :  { %9147 = vst [vmem:[#allocation152_spill] sm:$0xff] %v4459_v38  ;;  %9148 = vst [vmem:[#allocation153_spill] sm:$0xff] %v4461_v37  ;;  %v494_v42 = vld [vmem:[#allocation5 + $0x448] sm:$0xff]  ;;  %v1087_v30 = vadd.f32 %v4461_v37, %v4459_v38  ;;  %v221_v46 = vld [vmem:[#allocation2 + $0x4c0] sm:$0xff]  ;;  %v4476_v28 = vadd.f32 %v493_v7, %v205_v2  ;;  %v4485_v53 = vmul.f32 %v4057_v1, %v4057_v1 }
  0xa2   :  { %9150 = vst [vmem:[#allocation155_spill] sm:$0xff] %v4465_v50  ;;  %9151 = vst [vmem:[#allocation156_spill] sm:$0xff] %v4472_v27  ;;  %v222_v0 = vld [vmem:[#allocation2 + $0x4c8] sm:$0xff]  ;;  %v507_v31 = vld [vmem:[#allocation5 + $0x4b0] sm:$0xff]  ;;  %1078 = vadd.xlane.f32.xlu0 %v1077_v54  ;;  %v1097_v17 = vadd.f32 %v1096_v52, %v4451_v36  ;;  %v4493_v43 = vadd.f32 %v494_v42, %v206_v23  ;;  %v4499_v54 = vmul.f32 %v4065_v15, %v4065_v15 }
  0xa3   :  { %9152 = vst [vmem:[#allocation157_spill] sm:$0xff] %v4476_v28  ;;  %v508_v5 = vld [vmem:[#allocation5 + $0x4b8] sm:$0xff]  ;;  %v509_v59 = vld [vmem:[#allocation5 + $0x4c0] sm:$0xff]  ;;  %v1088_v24 = vadd.f32 %v1087_v30, %v4465_v50  ;;  %v223_v7 = vld [vmem:[#allocation2 + $0x4d0] sm:$0xff]  ;;  %v4489_v39 = vadd.f32 %v507_v31, %v219_v51  ;;  %v1626_v52 = vadd.f32 %v1336_v34, %v1335_v14  ;;  %v4510_v15 = vadd.f32 %v1615_v47, %v4425_v4 }
  0xa4   :  { %v510_v2 = vld [vmem:[#allocation5 + $0x4c8] sm:$0xff]  ;;  %v511_v55 = vld [vmem:[#allocation5 + $0x4d0] sm:$0xff]  ;;  %v4491_v37 = vadd.f32 %v508_v5, %v220_v25  ;;  %9155 = vst [vmem:[#allocation160_spill] sm:$0xff] %v4493_v43  ;;  %v224_v29 = vld [vmem:[#allocation2 + $0x4d8] sm:$0xff]  ;;  %v4495_v61 = vadd.f32 %v509_v59, %v221_v46  ;;  %v1098_v30 = vadd.f32 %v1097_v17, %v4463_v8  ;;  %v1608_v14 = vadd.f32 %v1607_v3, %v4429_v60 }
  0xa5   :  { %9153 = vst [vmem:[#allocation158_spill] sm:$0xff] %v4489_v39  ;;  %v213_v38 = vld [vmem:[#allocation2 + $0x480] sm:$0xff]  ;;  %v214_v1 = vld [vmem:[#allocation2 + $0x488] sm:$0xff]  ;;  %v1089_v36 = vadd.f32 %v1088_v24, %v4472_v27  ;;  %v512_v51 = vld [vmem:[#allocation5 + $0x4d8] sm:$0xff]  ;;  %v4503_v31 = vadd.f32 %v510_v2, %v222_v0  ;;  %v4507_v46 = vadd.f32 %v511_v55, %v223_v7  ;;  %v1329_v34 = vmul.f32 %v4013_v10, %v4013_v10 }
  0xa6   :  { %9154 = vst [vmem:[#allocation159_spill] sm:$0xff] %v4491_v37  ;;  %9156 = vst [vmem:[#allocation161_spill] sm:$0xff] %v4495_v61  ;;  %v1108_v25 = vadd.f32 %v4491_v37, %v4489_v39  ;;  %v215_v23 = vld [vmem:[#allocation2 + $0x490] sm:$0xff]  ;;  %v216_v42 = vld [vmem:[#allocation2 + $0x498] sm:$0xff]  ;;  %1099 = vadd.xlane.f32.xlu1 %v1098_v30  ;;  %v4521_v39 = vadd.f32 %v512_v51, %v224_v29  ;;  %v1627_v8 = vadd.f32 %v1626_v52, %v1337_v20 }
  0xa7   :  { %9157 = vst [vmem:[#allocation162_spill] sm:$0xff] %v4503_v31  ;;  %9158 = vst [vmem:[#allocation163_spill] sm:$0xff] %v4507_v46  ;;  %v501_v5 = vld [vmem:[#allocation5 + $0x480] sm:$0xff]  ;;  %v502_v59 = vld [vmem:[#allocation5 + $0x488] sm:$0xff]  ;;  %v1090_v0 = vadd.f32 %v1089_v36, %v4476_v28  ;;  %v1330_v36 = vmul.f32 %v4015_v11, %v4015_v11  ;;  %v4536_v52 = vadd.f32 %v1608_v14, %v4443_v56 }
  0xa8   :  { %v503_v50 = vld [vmem:[#allocation5 + $0x490] sm:$0xff]  ;;  %v1109_v17 = vadd.f32 %v1108_v25, %v4495_v61  ;;  %v217_v24 = vld [vmem:[#allocation2 + $0x4a0] sm:$0xff]  ;;  %v504_v2 = vld [vmem:[#allocation5 + $0x498] sm:$0xff]  ;;  %v4517_v7 = vadd.f32 %v501_v5, %v213_v38  ;;  %v4519_v37 = vadd.f32 %v502_v59, %v214_v1  ;;  %9161 = vst [vmem:[#allocation166_spill] sm:$0xff] %v4521_v39  ;;  %v1331_v59 = vmul.f32 %v4017_v12, %v4017_v12 }
  0xa9   :  { %v505_v55 = vld [vmem:[#allocation5 + $0x4a0] sm:$0xff]  ;;  %v218_v4 = vld [vmem:[#allocation2 + $0x4a8] sm:$0xff]  ;;  %v4523_v47 = vadd.f32 %v503_v50, %v215_v23  ;;  %v231_v60 = vld [vmem:[#allocation2 + $0x510] sm:$0xff]  ;;  %v1091_v30 = vadd.f32 %v1090_v0, %v4493_v43  ;;  %v4529_v38 = vadd.f32 %v504_v2, %v216_v42  ;;  %v4542_v42 = vmul.f32 %v4019_v18, %v4019_v18 }
  0xaa   :  { %9159 = vst [vmem:[#allocation164_spill] sm:$0xff] %v4517_v7  ;;  %9160 = vst [vmem:[#allocation165_spill] sm:$0xff] %v4519_v37  ;;  %v232_v3 = vld [vmem:[#allocation2 + $0x518] sm:$0xff]  ;;  %v1110_v25 = vadd.f32 %v1109_v17, %v4503_v31  ;;  %v506_v61 = vld [vmem:[#allocation5 + $0x4a8] sm:$0xff]  ;;  %v1101_v1 = vadd.f32 %v4519_v37, %v4517_v7  ;;  %v4533_v50 = vadd.f32 %v505_v55, %v217_v24 }
  0xab   :  { %9162 = vst [vmem:[#allocation167_spill] sm:$0xff] %v4523_v47  ;;  %9163 = vst [vmem:[#allocation168_spill] sm:$0xff] %v4529_v38  ;;  %v233_v29 = vld [vmem:[#allocation2 + $0x520] sm:$0xff]  ;;  %v234_v51 = vld [vmem:[#allocation2 + $0x528] sm:$0xff]  ;;  %1092 = vadd.xlane.f32.xlu0 %v1091_v30  ;;  %v4550_v56 = vadd.f32 %v506_v61, %v218_v4  ;;  %v1628_v30 = vadd.f32 %v1627_v8, %v4481_v40 }
  0xac   :  { %9164 = vst [vmem:[#allocation169_spill] sm:$0xff] %v4533_v50  ;;  %v519_v23 = vld [vmem:[#allocation5 + $0x510] sm:$0xff]  ;;  %v520_v5 = vld [vmem:[#allocation5 + $0x518] sm:$0xff]  ;;  %v521_v20 = vld [vmem:[#allocation5 + $0x520] sm:$0xff]  ;;  %v1111_v0 = vadd.f32 %v1110_v25, %v4507_v46  ;;  %v1102_v17 = vadd.f32 %v1101_v1, %v4523_v47  ;;  %v4557_v25 = vmul.f32 %v4023_v21, %v4023_v21  ;;  %v4569_v46 = vmul.f32 %v4032_v35, %v4032_v35 }
  0xad   :  { %v235_v24 = vld [vmem:[#allocation2 + $0x530] sm:$0xff]  ;;  %v522_v2 = vld [vmem:[#allocation5 + $0x528] sm:$0xff]  ;;  %v4546_v31 = vadd.f32 %v519_v23, %v231_v60  ;;  %v4548_v37 = vadd.f32 %v520_v5, %v232_v3  ;;  %9167 = vst [vmem:[#allocation172_spill] sm:$0xff] %v4550_v56  ;;  %v236_v14 = vld [vmem:[#allocation2 + $0x538] sm:$0xff]  ;;  %v4552_v7 = vadd.f32 %v521_v20, %v233_v29 }
  0xae   :  { %v523_v55 = vld [vmem:[#allocation5 + $0x530] sm:$0xff]  ;;  %v225_v43 = vld [vmem:[#allocation2 + $0x4e0] sm:$0xff]  ;;  %v226_v28 = vld [vmem:[#allocation2 + $0x4e8] sm:$0xff]  ;;  %v1112_v1 = vadd.f32 %v1111_v0, %v4521_v39  ;;  %v1103_v60 = vadd.f32 %v1102_v17, %v4529_v38  ;;  %v4561_v3 = vadd.f32 %v522_v2, %v234_v51  ;;  %v1619_v0 = vadd.f32 %v1330_v36, %v1329_v34 }
  0xaf   :  { %9165 = vst [vmem:[#allocation170_spill] sm:$0xff] %v4546_v31  ;;  %9166 = vst [vmem:[#allocation171_spill] sm:$0xff] %v4548_v37  ;;  %v524_v23 = vld [vmem:[#allocation5 + $0x538] sm:$0xff]  ;;  %v1122_v61 = vadd.f32 %v4548_v37, %v4546_v31  ;;  %v227_v4 = vld [vmem:[#allocation2 + $0x4f0] sm:$0xff]  ;;  %v4565_v5 = vadd.f32 %v523_v55, %v235_v24  ;;  %v1347_v17 = vmul.f32 %v4079_v44, %v4079_v44 }
  0xb0   :  { %9168 = vst [vmem:[#allocation173_spill] sm:$0xff] %v4552_v7  ;;  %9169 = vst [vmem:[#allocation174_spill] sm:$0xff] %v4561_v3  ;;  %v228_v29 = vld [vmem:[#allocation2 + $0x4f8] sm:$0xff]  ;;  %v513_v20 = vld [vmem:[#allocation5 + $0x4e0] sm:$0xff]  ;;  %1113 = vadd.xlane.f32.xlu1 %v1112_v1  ;;  %v1104_v51 = vadd.f32 %v1103_v60, %v4533_v50  ;;  %v4579_v38 = vadd.f32 %v524_v23, %v236_v14  ;;  %v1629_v1 = vadd.f32 %v1628_v30, %v4485_v53 }
  0xb1   :  { %9170 = vst [vmem:[#allocation175_spill] sm:$0xff] %v4565_v5  ;;  %v514_v8 = vld [vmem:[#allocation5 + $0x4e8] sm:$0xff]  ;;  %v515_v40 = vld [vmem:[#allocation5 + $0x4f0] sm:$0xff]  ;;  %v1123_v2 = vadd.f32 %v1122_v61, %v4552_v7  ;;  %v229_v39 = vld [vmem:[#allocation2 + $0x500] sm:$0xff]  ;;  %v4575_v55 = vadd.f32 %v513_v20, %v225_v43  ;;  %v1348_v60 = vmul.f32 %v4081_v45, %v4081_v45  ;;  %v1620_v30 = vadd.f32 %v1619_v0, %v1331_v59 }
  0xb2   :  { %v516_v37 = vld [vmem:[#allocation5 + $0x4f8] sm:$0xff]  ;;  %v517_v24 = vld [vmem:[#allocation5 + $0x500] sm:$0xff]  ;;  %v4577_v31 = vadd.f32 %v514_v8, %v226_v28  ;;  %9173 = vst [vmem:[#allocation178_spill] sm:$0xff] %v4579_v38  ;;  %v230_v47 = vld [vmem:[#allocation2 + $0x508] sm:$0xff]  ;;  %v4581_v27 = vadd.f32 %v515_v40, %v227_v4  ;;  %v1105_v61 = vadd.f32 %v1104_v51, %v4550_v56  ;;  %v1349_v45 = vmul.f32 %v4085_v48, %v4085_v48 }
  0xb3   :  { %9171 = vst [vmem:[#allocation176_spill] sm:$0xff] %v4575_v55  ;;  %v243_v34 = vld [vmem:[#allocation2 + $0x570] sm:$0xff]  ;;  %v244_v36 = vld [vmem:[#allocation2 + $0x578] sm:$0xff]  ;;  %v1124_v44 = vadd.f32 %v1123_v2, %v4561_v3  ;;  %v518_v43 = vld [vmem:[#allocation5 + $0x508] sm:$0xff]  ;;  %v4588_v20 = vadd.f32 %v516_v37, %v228_v29  ;;  %v4592_v4 = vadd.f32 %v517_v24, %v229_v39  ;;  %v4598_v51 = vmul.f32 %v4089_v58, %v4089_v58 }
  0xb4   :  { %9172 = vst [vmem:[#allocation177_spill] sm:$0xff] %v4577_v31  ;;  %9174 = vst [vmem:[#allocation179_spill] sm:$0xff] %v4581_v27  ;;  %v1115_v28 = vadd.f32 %v4577_v31, %v4575_v55  ;;  %v245_v14 = vld [vmem:[#allocation2 + $0x580] sm:$0xff]  ;;  %v246_v23 = vld [vmem:[#allocation2 + $0x588] sm:$0xff]  ;;  %1106 = vadd.xlane.f32.xlu0 %v1105_v61  ;;  %v4606_v59 = vadd.f32 %v518_v43, %v230_v47  ;;  %v4611_v61 = vadd.f32 %v1629_v1, %v4499_v54 }
  0xb5   :  { %9175 = vst [vmem:[#allocation180_spill] sm:$0xff] %v4588_v20  ;;  %9176 = vst [vmem:[#allocation181_spill] sm:$0xff] %v4592_v4  ;;  %v531_v8 = vld [vmem:[#allocation5 + $0x570] sm:$0xff]  ;;  %v532_v40 = vld [vmem:[#allocation5 + $0x578] sm:$0xff]  ;;  %v1125_v37 = vadd.f32 %v1124_v44, %v4565_v5  ;;  %v4615_v44 = vmul.f32 %v4093_v63, %v4093_v63  ;;  %v1621_v63 = vadd.f32 %v1620_v30, %v4542_v42 }
  0xb6   :  { %v533_v53 = vld [vmem:[#allocation5 + $0x580] sm:$0xff]  ;;  %v1116_v29 = vadd.f32 %v1115_v28, %v4581_v27  ;;  %v247_v2 = vld [vmem:[#allocation2 + $0x590] sm:$0xff]  ;;  %v534_v31 = vld [vmem:[#allocation5 + $0x588] sm:$0xff]  ;;  %v4602_v24 = vadd.f32 %v531_v8, %v243_v34  ;;  %v4604_v55 = vadd.f32 %v532_v40, %v244_v36  ;;  %9179 = vst [vmem:[#allocation184_spill] sm:$0xff] %v4606_v59 }
  0xb7   :  { %v535_v39 = vld [vmem:[#allocation5 + $0x590] sm:$0xff]  ;;  %v248_v0 = vld [vmem:[#allocation2 + $0x598] sm:$0xff]  ;;  %v4608_v48 = vadd.f32 %v533_v53, %v245_v14  ;;  %v237_v3 = vld [vmem:[#allocation2 + $0x540] sm:$0xff]  ;;  %v1126_v28 = vadd.f32 %v1125_v37, %v4579_v38  ;;  %v4619_v8 = vadd.f32 %v534_v31, %v246_v23  ;;  %v4628_v37 = vmul.f32 %v4101_v19, %v4101_v19 }
  0xb8   :  { %9177 = vst [vmem:[#allocation182_spill] sm:$0xff] %v4602_v24  ;;  %9178 = vst [vmem:[#allocation183_spill] sm:$0xff] %v4604_v55  ;;  %v238_v58 = vld [vmem:[#allocation2 + $0x548] sm:$0xff]  ;;  %v1117_v34 = vadd.f32 %v1116_v29, %v4588_v20  ;;  %v536_v36 = vld [vmem:[#allocation5 + $0x598] sm:$0xff]  ;;  %v1136_v47 = vadd.f32 %v4604_v55, %v4602_v24  ;;  %v4623_v40 = vadd.f32 %v535_v39, %v247_v2 }
  0xb9   :  { %9180 = vst [vmem:[#allocation185_spill] sm:$0xff] %v4608_v48  ;;  %9181 = vst [vmem:[#allocation186_spill] sm:$0xff] %v4619_v8  ;;  %v239_v43 = vld [vmem:[#allocation2 + $0x550] sm:$0xff]  ;;  %v240_v14 = vld [vmem:[#allocation2 + $0x558] sm:$0xff]  ;;  %v1640_v29 = vadd.f32 %v1348_v60, %v1347_v17  ;;  %1127 = vadd.xlane.f32.xlu1 %v1126_v28  ;;  %v4636_v20 = vadd.f32 %v536_v36, %v248_v0  ;;  %v1341_v17 = vmul.f32 %v4097_v9, %v4097_v9 }
  0xba   :  { %9182 = vst [vmem:[#allocation187_spill] sm:$0xff] %v4623_v40  ;;  %v525_v54 = vld [vmem:[#allocation5 + $0x540] sm:$0xff]  ;;  %v526_v1 = vld [vmem:[#allocation5 + $0x548] sm:$0xff]  ;;  %v527_v53 = vld [vmem:[#allocation5 + $0x550] sm:$0xff]  ;;  %v1118_v31 = vadd.f32 %v1117_v34, %v4592_v4  ;;  %v1137_v23 = vadd.f32 %v1136_v47, %v4608_v48  ;;  %v1342_v60 = vmul.f32 %v4099_v16, %v4099_v16  ;;  %v1622_v48 = vadd.f32 %v1621_v63, %v4557_v25 }
  0xbb   :  { %v241_v55 = vld [vmem:[#allocation2 + $0x560] sm:$0xff]  ;;  %v528_v24 = vld [vmem:[#allocation5 + $0x558] sm:$0xff]  ;;  %v4632_v2 = vadd.f32 %v525_v54, %v237_v3  ;;  %v4634_v39 = vadd.f32 %v526_v1, %v238_v58  ;;  %9185 = vst [vmem:[#allocation190_spill] sm:$0xff] %v4636_v20  ;;  %v242_v42 = vld [vmem:[#allocation2 + $0x568] sm:$0xff]  ;;  %v4638_v30 = vadd.f32 %v527_v53, %v239_v43  ;;  %v1641_v4 = vadd.f32 %v1640_v29, %v1349_v45 }
  0xbc   :  { %v529_v38 = vld [vmem:[#allocation5 + $0x560] sm:$0xff]  ;;  %v255_v19 = vld [vmem:[#allocation2 + $0x5d0] sm:$0xff]  ;;  %v256_v5 = vld [vmem:[#allocation2 + $0x5d8] sm:$0xff]  ;;  %v1119_v28 = vadd.f32 %v1118_v31, %v4606_v59  ;;  %v1138_v3 = vadd.f32 %v1137_v23, %v4619_v8  ;;  %v4646_v58 = vadd.f32 %v528_v24, %v240_v14  ;;  %v1343_v31 = vmul.f32 %v4103_v22, %v4103_v22 }
  0xbd   :  { %9183 = vst [vmem:[#allocation188_spill] sm:$0xff] %v4632_v2  ;;  %9184 = vst [vmem:[#allocation189_spill] sm:$0xff] %v4634_v39  ;;  %v530_v34 = vld [vmem:[#allocation5 + $0x568] sm:$0xff]  ;;  %v1129_v0 = vadd.f32 %v4634_v39, %v4632_v2  ;;  %v257_v36 = vld [vmem:[#allocation2 + $0x5e0] sm:$0xff]  ;;  %v4650_v43 = vadd.f32 %v529_v38, %v241_v55  ;;  %v1344_v29 = vmul.f32 %v4107_v33, %v4107_v33 }
  0xbe   :  { %9186 = vst [vmem:[#allocation191_spill] sm:$0xff] %v4638_v30  ;;  %9187 = vst [vmem:[#allocation192_spill] sm:$0xff] %v4646_v58  ;;  %v258_v47 = vld [vmem:[#allocation2 + $0x5e8] sm:$0xff]  ;;  %v543_v54 = vld [vmem:[#allocation5 + $0x5d0] sm:$0xff]  ;;  %1120 = vadd.xlane.f32.xlu0 %v1119_v28  ;;  %v1139_v24 = vadd.f32 %v1138_v3, %v4623_v40  ;;  %v4661_v55 = vadd.f32 %v530_v34, %v242_v42  ;;  %v1633_v28 = vadd.f32 %v1342_v60, %v1341_v17 }
  0xbf   :  { %9188 = vst [vmem:[#allocation193_spill] sm:$0xff] %v4650_v43  ;;  %v544_v1 = vld [vmem:[#allocation5 + $0x5d8] sm:$0xff]  ;;  %v545_v53 = vld [vmem:[#allocation5 + $0x5e0] sm:$0xff]  ;;  %v1130_v14 = vadd.f32 %v1129_v0, %v4638_v30  ;;  %v259_v23 = vld [vmem:[#allocation2 + $0x5f0] sm:$0xff]  ;;  %v4657_v8 = vadd.f32 %v543_v54, %v255_v19  ;;  %v4676_v30 = vadd.f32 %v1622_v48, %v4569_v46  ;;  %v1642_v17 = vadd.f32 %v1641_v4, %v4598_v51 }
  0xc0   :  { %v546_v59 = vld [vmem:[#allocation5 + $0x5e8] sm:$0xff]  ;;  %v547_v39 = vld [vmem:[#allocation5 + $0x5f0] sm:$0xff]  ;;  %v4659_v38 = vadd.f32 %v544_v1, %v256_v5  ;;  %9191 = vst [vmem:[#allocation196_spill] sm:$0xff] %v4661_v55  ;;  %v260_v2 = vld [vmem:[#allocation2 + $0x5f8] sm:$0xff]  ;;  %v4663_v63 = vadd.f32 %v545_v53, %v257_v36  ;;  %v1140_v3 = vadd.f32 %v1139_v24, %v4636_v20 }
  0xc1   :  { %9189 = vst [vmem:[#allocation194_spill] sm:$0xff] %v4657_v8  ;;  %v249_v45 = vld [vmem:[#allocation2 + $0x5a0] sm:$0xff]  ;;  %v250_v25 = vld [vmem:[#allocation2 + $0x5a8] sm:$0xff]  ;;  %v1131_v0 = vadd.f32 %v1130_v14, %v4646_v58  ;;  %v548_v40 = vld [vmem:[#allocation5 + $0x5f8] sm:$0xff]  ;;  %v4669_v19 = vadd.f32 %v546_v59, %v258_v47  ;;  %v4673_v36 = vadd.f32 %v547_v39, %v259_v23 }
  0xc2   :  { %9190 = vst [vmem:[#allocation195_spill] sm:$0xff] %v4659_v38  ;;  %9192 = vst [vmem:[#allocation197_spill] sm:$0xff] %v4663_v63  ;;  %v1150_v5 = vadd.f32 %v4659_v38, %v4657_v8  ;;  %v251_v42 = vld [vmem:[#allocation2 + $0x5b0] sm:$0xff]  ;;  %v252_v34 = vld [vmem:[#allocation2 + $0x5b8] sm:$0xff]  ;;  %1141 = vadd.xlane.f32.xlu1 %v1140_v3  ;;  %v4689_v48 = vadd.f32 %v548_v40, %v260_v2 }
  0xc3   :  { %9193 = vst [vmem:[#allocation198_spill] sm:$0xff] %v4669_v19  ;;  %9194 = vst [vmem:[#allocation199_spill] sm:$0xff] %v4673_v36  ;;  %v537_v54 = vld [vmem:[#allocation5 + $0x5a0] sm:$0xff]  ;;  %v538_v1 = vld [vmem:[#allocation5 + $0x5a8] sm:$0xff]  ;;  %v1132_v59 = vadd.f32 %v1131_v0, %v4650_v43  ;;  %v1634_v0 = vadd.f32 %v1633_v28, %v1343_v31 }
  0xc4   :  { %v539_v53 = vld [vmem:[#allocation5 + $0x5b0] sm:$0xff]  ;;  %v9195_v60 = vld [vmem:[#allocation49_spill] sm:$0xff]  ;;  %v1151_v47 = vadd.f32 %v1150_v5, %v4663_v63  ;;  %v4685_v38 = vadd.f32 %v537_v54, %v249_v45  ;;  %v4687_v8 = vadd.f32 %v538_v1, %v250_v25  ;;  %9198 = vst [vmem:[#allocation202_spill] sm:$0xff] %v4689_v48  ;;  %v254_v46 = vld [vmem:[#allocation2 + $0x5c8] sm:$0xff] }
  0xc5   :  { %v4681_v24 = vmul.f32 %v9195_v60, %v9195_v60  ;;  %v253_v14 = vld [vmem:[#allocation2 + $0x5c0] sm:$0xff]  ;;  %v540_v39 = vld [vmem:[#allocation5 + $0x5b8] sm:$0xff]  ;;  %v4691_v4 = vadd.f32 %v539_v53, %v251_v42  ;;  %v267_v51 = vld [vmem:[#allocation2 + $0x630] sm:$0xff]  ;;  %v1133_v5 = vadd.f32 %v1132_v59, %v4661_v55 }
  0xc6   :  { %v541_v23 = vld [vmem:[#allocation5 + $0x5c0] sm:$0xff]  ;;  %9196 = vst [vmem:[#allocation200_spill] sm:$0xff] %v4685_v38  ;;  %9197 = vst [vmem:[#allocation201_spill] sm:$0xff] %v4687_v8  ;;  %v268_v20 = vld [vmem:[#allocation2 + $0x638] sm:$0xff]  ;;  %v1152_v63 = vadd.f32 %v1151_v47, %v4669_v19  ;;  %v4699_v54 = vadd.f32 %v540_v39, %v252_v34  ;;  %v1143_v40 = vadd.f32 %v4687_v8, %v4685_v38 }
  0xc7   :  { %9199 = vst [vmem:[#allocation203_spill] sm:$0xff] %v4691_v4  ;;  %v9200_v58 = vld [vmem:[#allocation52_spill] sm:$0xff]  ;;  %v542_v45 = vld [vmem:[#allocation5 + $0x5c8] sm:$0xff]  ;;  %v269_v2 = vld [vmem:[#allocation2 + $0x640] sm:$0xff]  ;;  %v4703_v42 = vadd.f32 %v541_v23, %v253_v14  ;;  %1134 = vadd.xlane.f32.xlu0 %v1133_v5 }
  0xc8   :  { %v4695_v3 = vmul.f32 %v9200_v58, %v9200_v58  ;;  %9201 = vst [vmem:[#allocation204_spill] sm:$0xff] %v4699_v54  ;;  %v270_v25 = vld [vmem:[#allocation2 + $0x648] sm:$0xff]  ;;  %v555_v1 = vld [vmem:[#allocation5 + $0x630] sm:$0xff]  ;;  %v556_v53 = vld [vmem:[#allocation5 + $0x638] sm:$0xff]  ;;  %v1643_v58 = vadd.f32 %v1642_v17, %v4615_v44  ;;  %v1153_v34 = vadd.f32 %v1152_v63, %v4673_v36  ;;  %v1144_v39 = vadd.f32 %v1143_v40, %v4691_v4 }
  0xc9   :  { %9202 = vst [vmem:[#allocation205_spill] sm:$0xff] %v4703_v42  ;;  %v557_v43 = vld [vmem:[#allocation5 + $0x640] sm:$0xff]  ;;  %v9204_v59 = vld [vmem:[#allocation51_spill] sm:$0xff]  ;;  %v4712_v23 = vadd.f32 %v555_v1, %v267_v51  ;;  %v4714_v38 = vadd.f32 %v556_v53, %v268_v20  ;;  %v4716_v55 = vadd.f32 %v542_v45, %v254_v46  ;;  %v272_v44 = vld [vmem:[#allocation2 + $0x658] sm:$0xff] }
  0xca   :  { %v9203_v31 = vld [vmem:[#allocation50_spill] sm:$0xff]  ;;  %v1360_v47 = vmul.f32 %v9204_v59, %v9204_v59  ;;  %v271_v8 = vld [vmem:[#allocation2 + $0x650] sm:$0xff]  ;;  %v4718_v17 = vadd.f32 %v557_v43, %v269_v2  ;;  %v1635_v59 = vadd.f32 %v1634_v0, %v1344_v29  ;;  %v9209_v5 = vld [vmem:[#allocation53_spill] sm:$0xff]  ;;  %v1154_v40 = vadd.f32 %v1153_v34, %v4689_v48 }
  0xcb   :  { %v1359_v28 = vmul.f32 %v9203_v31, %v9203_v31  ;;  %v558_v19 = vld [vmem:[#allocation5 + $0x648] sm:$0xff]  ;;  %v559_v14 = vld [vmem:[#allocation5 + $0x650] sm:$0xff]  ;;  %9205 = vst [vmem:[#allocation206_spill] sm:$0xff] %v4712_v23  ;;  %9206 = vst [vmem:[#allocation207_spill] sm:$0xff] %v4714_v38  ;;  %v4722_v63 = vmul.f32 %v9209_v5, %v9209_v5  ;;  %v1145_v36 = vadd.f32 %v1144_v39, %v4699_v54 }
  0xcc   :  { %9207 = vst [vmem:[#allocation208_spill] sm:$0xff] %v4716_v55  ;;  %9208 = vst [vmem:[#allocation209_spill] sm:$0xff] %v4718_v17  ;;  %v261_v31 = vld [vmem:[#allocation2 + $0x600] sm:$0xff]  ;;  %v262_v60 = vld [vmem:[#allocation2 + $0x608] sm:$0xff]  ;;  %v4726_v1 = vadd.f32 %v558_v19, %v270_v25  ;;  %v1164_v20 = vadd.f32 %v4714_v38, %v4712_v23  ;;  %v4730_v45 = vadd.f32 %v559_v14, %v271_v8  ;;  %1155 = vadd.xlane.f32.xlu1 %v1154_v40 }
  0xcd   :  { %v560_v51 = vld [vmem:[#allocation5 + $0x658] sm:$0xff]  ;;  %v263_v46 = vld [vmem:[#allocation2 + $0x610] sm:$0xff]  ;;  %v549_v2 = vld [vmem:[#allocation5 + $0x600] sm:$0xff]  ;;  %v4733_v53 = vadd.f32 %v1643_v58, %v4628_v37  ;;  %v1146_v25 = vadd.f32 %v1145_v36, %v4703_v42  ;;  %v1636_v40 = vadd.f32 %v1635_v59, %v4681_v24 }
  0xce   :  { %9210 = vst [vmem:[#allocation210_spill] sm:$0xff] %v4726_v1  ;;  %v264_v43 = vld [vmem:[#allocation2 + $0x618] sm:$0xff]  ;;  %9211 = vst [vmem:[#allocation211_spill] sm:$0xff] %v4730_v45  ;;  %v550_v29 = vld [vmem:[#allocation5 + $0x608] sm:$0xff]  ;;  %v1165_v8 = vadd.f32 %v1164_v20, %v4718_v17  ;;  %v4745_v48 = vadd.f32 %v549_v2, %v261_v31  ;;  %v4749_v58 = vadd.f32 %v560_v51, %v272_v44 }
  0xcf   :  { %v551_v0 = vld [vmem:[#allocation5 + $0x610] sm:$0xff]  ;;  %v9212_v4 = vld [vmem:[#allocation54_spill] sm:$0xff]  ;;  %v552_v38 = vld [vmem:[#allocation5 + $0x618] sm:$0xff]  ;;  %v4747_v37 = vadd.f32 %v550_v29, %v262_v60  ;;  %v1147_v20 = vadd.f32 %v1146_v25, %v4716_v55  ;;  %v1654_v17 = vadd.f32 %v1360_v47, %v1359_v28 }
  0xd0   :  { %v4737_v34 = vmul.f32 %v9212_v4, %v9212_v4  ;;  %v9213_v39 = vld [vmem:[#allocation55_spill] sm:$0xff]  ;;  %v265_v14 = vld [vmem:[#allocation2 + $0x620] sm:$0xff]  ;;  %9214 = vst [vmem:[#allocation212_spill] sm:$0xff] %v4745_v48  ;;  %9216 = vst [vmem:[#allocation214_spill] sm:$0xff] %v4749_v58  ;;  %v4751_v4 = vadd.f32 %v551_v0, %v263_v46  ;;  %v1166_v31 = vadd.f32 %v1165_v8, %v4726_v1 }
  0xd1   :  { %v4741_v19 = vmul.f32 %v9213_v39, %v9213_v39  ;;  %v553_v23 = vld [vmem:[#allocation5 + $0x620] sm:$0xff]  ;;  %9215 = vst [vmem:[#allocation213_spill] sm:$0xff] %v4747_v37  ;;  %v266_v54 = vld [vmem:[#allocation2 + $0x628] sm:$0xff]  ;;  %v279_v5 = vld [vmem:[#allocation2 + $0x690] sm:$0xff]  ;;  %v4760_v60 = vadd.f32 %v552_v38, %v264_v43  ;;  %v1157_v44 = vadd.f32 %v4747_v37, %v4745_v48  ;;  %1148 = vadd.xlane.f32.xlu0 %v1147_v20 }
  0xd2   :  { %9217 = vst [vmem:[#allocation215_spill] sm:$0xff] %v4751_v4  ;;  %v280_v39 = vld [vmem:[#allocation2 + $0x698] sm:$0xff]  ;;  %v9218_v33 = vld [vmem:[#allocation58_spill] sm:$0xff]  ;;  %v4764_v29 = vadd.f32 %v553_v23, %v265_v14  ;;  %v567_v0 = vld [vmem:[#allocation5 + $0x690] sm:$0xff]  ;;  %v1167_v38 = vadd.f32 %v1166_v31, %v4730_v45  ;;  %v4781_v20 = vadd.f32 %v1636_v40, %v4695_v3  ;;  %v1655_v45 = vadd.f32 %v1654_v17, %v4722_v63 }
  0xd3   :  { %v4756_v36 = vmul.f32 %v9218_v33, %v9218_v33  ;;  %v554_v2 = vld [vmem:[#allocation5 + $0x628] sm:$0xff]  ;;  %9219 = vst [vmem:[#allocation216_spill] sm:$0xff] %v4760_v60  ;;  %v281_v51 = vld [vmem:[#allocation2 + $0x6a0] sm:$0xff]  ;;  %v568_v24 = vld [vmem:[#allocation5 + $0x698] sm:$0xff]  ;;  %v1158_v43 = vadd.f32 %v1157_v44, %v4751_v4  ;;  %v4772_v23 = vadd.f32 %v567_v0, %v279_v5 }
  0xd4   :  { %v282_v46 = vld [vmem:[#allocation2 + $0x6a8] sm:$0xff]  ;;  %9220 = vst [vmem:[#allocation217_spill] sm:$0xff] %v4764_v29  ;;  %v569_v59 = vld [vmem:[#allocation5 + $0x6a0] sm:$0xff]  ;;  %v9221_v42 = vld [vmem:[#allocation56_spill] sm:$0xff]  ;;  %v4774_v14 = vadd.f32 %v568_v24, %v280_v39  ;;  %v4776_v55 = vadd.f32 %v554_v2, %v266_v54  ;;  %v1168_v4 = vadd.f32 %v1167_v38, %v4749_v58 }
  0xd5   :  { %v1353_v33 = vmul.f32 %v9221_v42, %v9221_v42  ;;  %v9222_v25 = vld [vmem:[#allocation57_spill] sm:$0xff]  ;;  %v283_v37 = vld [vmem:[#allocation2 + $0x6b0] sm:$0xff]  ;;  %v570_v48 = vld [vmem:[#allocation5 + $0x6a8] sm:$0xff]  ;;  %9223 = vst [vmem:[#allocation218_spill] sm:$0xff] %v4772_v23  ;;  %v4778_v47 = vadd.f32 %v569_v59, %v281_v51  ;;  %v1159_v5 = vadd.f32 %v1158_v43, %v4760_v60 }
  0xd6   :  { %v1354_v8 = vmul.f32 %v9222_v25, %v9222_v25  ;;  %v571_v1 = vld [vmem:[#allocation5 + $0x6b0] sm:$0xff]  ;;  %9224 = vst [vmem:[#allocation219_spill] sm:$0xff] %v4774_v14  ;;  %9225 = vst [vmem:[#allocation220_spill] sm:$0xff] %v4776_v55  ;;  %v284_v28 = vld [vmem:[#allocation2 + $0x6b8] sm:$0xff]  ;;  %v4787_v39 = vadd.f32 %v570_v48, %v282_v46  ;;  %v1178_v54 = vadd.f32 %v4774_v14, %v4772_v23  ;;  %1169 = vadd.xlane.f32.xlu1 %v1168_v4 }
  0xd7   :  { %9226 = vst [vmem:[#allocation221_spill] sm:$0xff] %v4778_v47  ;;  %v273_v42 = vld [vmem:[#allocation2 + $0x660] sm:$0xff]  ;;  %v274_v22 = vld [vmem:[#allocation2 + $0x668] sm:$0xff]  ;;  %v572_v0 = vld [vmem:[#allocation5 + $0x6b8] sm:$0xff]  ;;  %v4791_v24 = vadd.f32 %v571_v1, %v283_v37  ;;  %v1160_v46 = vadd.f32 %v1159_v5, %v4764_v29 }
  0xd8   :  { %v9227_v31 = vld [vmem:[#allocation59_spill] sm:$0xff]  ;;  %9228 = vst [vmem:[#allocation222_spill] sm:$0xff] %v4787_v39  ;;  %v276_v51 = vld [vmem:[#allocation2 + $0x678] sm:$0xff]  ;;  %v561_v59 = vld [vmem:[#allocation5 + $0x660] sm:$0xff]  ;;  %v1179_v14 = vadd.f32 %v1178_v54, %v4778_v47  ;;  %v4808_v17 = vadd.f32 %v572_v0, %v284_v28  ;;  %v1647_v5 = vadd.f32 %v1354_v8, %v1353_v33 }
  0xd9   :  { %v1355_v44 = vmul.f32 %v9227_v31, %v9227_v31  ;;  %v275_v2 = vld [vmem:[#allocation2 + $0x670] sm:$0xff]  ;;  %9229 = vst [vmem:[#allocation223_spill] sm:$0xff] %v4791_v24  ;;  %v562_v3 = vld [vmem:[#allocation5 + $0x668] sm:$0xff]  ;;  %v9231_v43 = vld [vmem:[#allocation61_spill] sm:$0xff]  ;;  %v4804_v58 = vadd.f32 %v561_v59, %v273_v42  ;;  %v1161_v54 = vadd.f32 %v1160_v46, %v4776_v55 }
  0xda   :  { %v563_v40 = vld [vmem:[#allocation5 + $0x670] sm:$0xff]  ;;  %v4800_v48 = vmul.f32 %v9231_v43, %v9231_v43  ;;  %v277_v1 = vld [vmem:[#allocation2 + $0x680] sm:$0xff]  ;;  %v564_v37 = vld [vmem:[#allocation5 + $0x678] sm:$0xff]  ;;  %v4806_v60 = vadd.f32 %v562_v3, %v274_v22  ;;  %9234 = vst [vmem:[#allocation226_spill] sm:$0xff] %v4808_v17  ;;  %v1180_v47 = vadd.f32 %v1179_v14, %v4787_v39 }
  0xdb   :  { %v9230_v31 = vld [vmem:[#allocation60_spill] sm:$0xff]  ;;  %v565_v23 = vld [vmem:[#allocation5 + $0x680] sm:$0xff]  ;;  %9232 = vst [vmem:[#allocation224_spill] sm:$0xff] %v4804_v58  ;;  %v278_v63 = vld [vmem:[#allocation2 + $0x688] sm:$0xff]  ;;  %v4818_v59 = vadd.f32 %v564_v37, %v276_v51  ;;  %1162 = vadd.xlane.f32.xlu0 %v1161_v54 }
  0xdc   :  { %v4796_v38 = vmul.f32 %v9230_v31, %v9230_v31  ;;  %9233 = vst [vmem:[#allocation225_spill] sm:$0xff] %v4806_v60  ;;  %v4810_v31 = vadd.f32 %v563_v40, %v275_v2  ;;  %v291_v25 = vld [vmem:[#allocation2 + $0x6f0] sm:$0xff]  ;;  %v292_v43 = vld [vmem:[#allocation2 + $0x6f8] sm:$0xff]  ;;  %v566_v42 = vld [vmem:[#allocation5 + $0x688] sm:$0xff]  ;;  %v1171_v22 = vadd.f32 %v4806_v60, %v4804_v58  ;;  %v4822_v2 = vadd.f32 %v565_v23, %v277_v1 }
  0xdd   :  { %v9236_v16 = vld [vmem:[#allocation64_spill] sm:$0xff]  ;;  %9237 = vst [vmem:[#allocation228_spill] sm:$0xff] %v4818_v59  ;;  %v293_v28 = vld [vmem:[#allocation2 + $0x700] sm:$0xff]  ;;  %v294_v0 = vld [vmem:[#allocation2 + $0x708] sm:$0xff]  ;;  %v1181_v51 = vadd.f32 %v1180_v47, %v4791_v24  ;;  %v4835_v55 = vadd.f32 %v566_v42, %v278_v63 }
  0xde   :  { %9235 = vst [vmem:[#allocation227_spill] sm:$0xff] %v4810_v31  ;;  %v4814_v4 = vmul.f32 %v9236_v16, %v9236_v16  ;;  %9238 = vst [vmem:[#allocation229_spill] sm:$0xff] %v4822_v2  ;;  %v579_v3 = vld [vmem:[#allocation5 + $0x6f0] sm:$0xff]  ;;  %v580_v40 = vld [vmem:[#allocation5 + $0x6f8] sm:$0xff]  ;;  %v1656_v16 = vadd.f32 %v1655_v45, %v4737_v34  ;;  %v1172_v37 = vadd.f32 %v1171_v22, %v4810_v31 }
  0xdf   :  { %v581_v29 = vld [vmem:[#allocation5 + $0x700] sm:$0xff]  ;;  %v9240_v46 = vld [vmem:[#allocation63_spill] sm:$0xff]  ;;  %v4831_v1 = vadd.f32 %v579_v3, %v291_v25  ;;  %v4833_v58 = vadd.f32 %v580_v40, %v292_v43  ;;  %9243 = vst [vmem:[#allocation232_spill] sm:$0xff] %v4835_v55  ;;  %v296_v45 = vld [vmem:[#allocation2 + $0x718] sm:$0xff]  ;;  %v1182_v22 = vadd.f32 %v1181_v51, %v4808_v17 }
  0xe0   :  { %v9239_v33 = vld [vmem:[#allocation62_spill] sm:$0xff]  ;;  %v1372_v14 = vmul.f32 %v9240_v46, %v9240_v46  ;;  %v295_v60 = vld [vmem:[#allocation2 + $0x710] sm:$0xff]  ;;  %v4837_v34 = vadd.f32 %v581_v29, %v293_v28  ;;  %v1648_v46 = vadd.f32 %v1647_v5, %v1355_v44  ;;  %v9245_v54 = vld [vmem:[#allocation65_spill] sm:$0xff]  ;;  %v1173_v24 = vadd.f32 %v1172_v37, %v4818_v59 }
  0xe1   :  { %v1371_v8 = vmul.f32 %v9239_v33, %v9239_v33  ;;  %v582_v39 = vld [vmem:[#allocation5 + $0x708] sm:$0xff]  ;;  %v583_v23 = vld [vmem:[#allocation5 + $0x710] sm:$0xff]  ;;  %9241 = vst [vmem:[#allocation230_spill] sm:$0xff] %v4831_v1  ;;  %9242 = vst [vmem:[#allocation231_spill] sm:$0xff] %v4833_v58  ;;  %v4841_v47 = vmul.f32 %v9245_v54, %v9245_v54  ;;  %v1192_v43 = vadd.f32 %v4833_v58, %v4831_v1  ;;  %1183 = vadd.xlane.f32.xlu1 %v1182_v22 }
  0xe2   :  { %9244 = vst [vmem:[#allocation233_spill] sm:$0xff] %v4837_v34  ;;  %v285_v33 = vld [vmem:[#allocation2 + $0x6c0] sm:$0xff]  ;;  %v286_v9 = vld [vmem:[#allocation2 + $0x6c8] sm:$0xff]  ;;  %v584_v25 = vld [vmem:[#allocation5 + $0x718] sm:$0xff]  ;;  %v4845_v3 = vadd.f32 %v582_v39, %v294_v0  ;;  %v4849_v42 = vadd.f32 %v583_v23, %v295_v60  ;;  %v1657_v40 = vadd.f32 %v1656_v16, %v4741_v19  ;;  %v1174_v0 = vadd.f32 %v1173_v24, %v4822_v2 }
  0xe3   :  { %v287_v63 = vld [vmem:[#allocation2 + $0x6d0] sm:$0xff]  ;;  %v288_v29 = vld [vmem:[#allocation2 + $0x6d8] sm:$0xff]  ;;  %v573_v28 = vld [vmem:[#allocation5 + $0x6c0] sm:$0xff]  ;;  %v1193_v58 = vadd.f32 %v1192_v43, %v4837_v34  ;;  %v4866_v16 = vadd.f32 %v584_v25, %v296_v45  ;;  %v1649_v22 = vadd.f32 %v1648_v46, %v4796_v38  ;;  %v1668_v2 = vadd.f32 %v1372_v14, %v1371_v8 }
  0xe4   :  { %9246 = vst [vmem:[#allocation234_spill] sm:$0xff] %v4845_v3  ;;  %9247 = vst [vmem:[#allocation235_spill] sm:$0xff] %v4849_v42  ;;  %v574_v44 = vld [vmem:[#allocation5 + $0x6c8] sm:$0xff]  ;;  %v575_v5 = vld [vmem:[#allocation5 + $0x6d0] sm:$0xff]  ;;  %v4862_v17 = vadd.f32 %v573_v28, %v285_v33  ;;  %v1175_v43 = vadd.f32 %v1174_v0, %v4835_v55  ;;  %v4884_v34 = vadd.f32 %v1657_v40, %v4756_v36 }
  0xe5   :  { %v9248_v31 = vld [vmem:[#allocation66_spill] sm:$0xff]  ;;  %v9249_v37 = vld [vmem:[#allocation67_spill] sm:$0xff]  ;;  %v576_v23 = vld [vmem:[#allocation5 + $0x6d8] sm:$0xff]  ;;  %v4864_v59 = vadd.f32 %v574_v44, %v286_v9  ;;  %9252 = vst [vmem:[#allocation238_spill] sm:$0xff] %v4866_v16  ;;  %v1194_v33 = vadd.f32 %v1193_v58, %v4845_v3 }
  0xe6   :  { %v4854_v51 = vmul.f32 %v9248_v31, %v9248_v31  ;;  %v4858_v39 = vmul.f32 %v9249_v37, %v9249_v37  ;;  %v289_v60 = vld [vmem:[#allocation2 + $0x6e0] sm:$0xff]  ;;  %9250 = vst [vmem:[#allocation236_spill] sm:$0xff] %v4862_v17  ;;  %v290_v19 = vld [vmem:[#allocation2 + $0x6e8] sm:$0xff]  ;;  %v4868_v31 = vadd.f32 %v575_v5, %v287_v63  ;;  %v303_v54 = vld [vmem:[#allocation2 + $0x750] sm:$0xff]  ;;  %v4877_v9 = vadd.f32 %v576_v23, %v288_v29 }
  0xe7   :  { %v577_v1 = vld [vmem:[#allocation5 + $0x6e0] sm:$0xff]  ;;  %9251 = vst [vmem:[#allocation237_spill] sm:$0xff] %v4864_v59  ;;  %v304_v37 = vld [vmem:[#allocation2 + $0x758] sm:$0xff]  ;;  %v578_v28 = vld [vmem:[#allocation5 + $0x6e8] sm:$0xff]  ;;  %v1185_v45 = vadd.f32 %v4864_v59, %v4862_v17  ;;  %1176 = vadd.xlane.f32.xlu0 %v1175_v43  ;;  %v1195_v29 = vadd.f32 %v1194_v33, %v4849_v42  ;;  %v1650_v43 = vadd.f32 %v1649_v22, %v4800_v48 }
  0xe8   :  { %9253 = vst [vmem:[#allocation239_spill] sm:$0xff] %v4868_v31  ;;  %v9254_v27 = vld [vmem:[#allocation70_spill] sm:$0xff]  ;;  %9255 = vst [vmem:[#allocation240_spill] sm:$0xff] %v4877_v9  ;;  %v4881_v44 = vadd.f32 %v577_v1, %v289_v60  ;;  %v591_v5 = vld [vmem:[#allocation5 + $0x750] sm:$0xff]  ;;  %v4894_v55 = vadd.f32 %v578_v28, %v290_v19  ;;  %v1669_v22 = vadd.f32 %v1668_v2, %v4841_v47 }
  0xe9   :  { %v4873_v24 = vmul.f32 %v9254_v27, %v9254_v27  ;;  %v305_v25 = vld [vmem:[#allocation2 + $0x760] sm:$0xff]  ;;  %v306_v63 = vld [vmem:[#allocation2 + $0x768] sm:$0xff]  ;;  %v592_v38 = vld [vmem:[#allocation5 + $0x758] sm:$0xff]  ;;  %v1186_v23 = vadd.f32 %v1185_v45, %v4868_v31  ;;  %v4890_v1 = vadd.f32 %v591_v5, %v303_v54  ;;  %v1196_v45 = vadd.f32 %v1195_v29, %v4866_v16 }
  0xea   :  { %9256 = vst [vmem:[#allocation241_spill] sm:$0xff] %v4881_v44  ;;  %v593_v46 = vld [vmem:[#allocation5 + $0x760] sm:$0xff]  ;;  %v9257_v0 = vld [vmem:[#allocation68_spill] sm:$0xff]  ;;  %v594_v3 = vld [vmem:[#allocation5 + $0x768] sm:$0xff]  ;;  %v4892_v60 = vadd.f32 %v592_v38, %v304_v37 }
  0xeb   :  { %v1365_v58 = vmul.f32 %v9257_v0, %v9257_v0  ;;  %v307_v59 = vld [vmem:[#allocation2 + $0x770] sm:$0xff]  ;;  %9258 = vst [vmem:[#allocation242_spill] sm:$0xff] %v4890_v1  ;;  %9260 = vst [vmem:[#allocation244_spill] sm:$0xff] %v4894_v55  ;;  %v308_v36 = vld [vmem:[#allocation2 + $0x778] sm:$0xff]  ;;  %v4896_v40 = vadd.f32 %v593_v46, %v305_v25  ;;  %v1187_v42 = vadd.f32 %v1186_v23, %v4877_v9  ;;  %1197 = vadd.xlane.f32.xlu1 %v1196_v45 }
  0xec   :  { %v595_v17 = vld [vmem:[#allocation5 + $0x770] sm:$0xff]  ;;  %9259 = vst [vmem:[#allocation243_spill] sm:$0xff] %v4892_v60  ;;  %v297_v8 = vld [vmem:[#allocation2 + $0x720] sm:$0xff]  ;;  %v298_v14 = vld [vmem:[#allocation2 + $0x728] sm:$0xff]  ;;  %v4903_v5 = vadd.f32 %v594_v3, %v306_v63  ;;  %v1206_v37 = vadd.f32 %v4892_v60, %v4890_v1 }
  0xed   :  { %9261 = vst [vmem:[#allocation245_spill] sm:$0xff] %v4896_v40  ;;  %v9262_v0 = vld [vmem:[#allocation69_spill] sm:$0xff]  ;;  %v299_v19 = vld [vmem:[#allocation2 + $0x730] sm:$0xff]  ;;  %v4907_v25 = vadd.f32 %v595_v17, %v307_v59  ;;  %v586_v46 = vld [vmem:[#allocation5 + $0x728] sm:$0xff]  ;;  %v1188_v3 = vadd.f32 %v1187_v42, %v4881_v44 }
  0xee   :  { %v1366_v33 = vmul.f32 %v9262_v0, %v9262_v0  ;;  %v596_v54 = vld [vmem:[#allocation5 + $0x778] sm:$0xff]  ;;  %9263 = vst [vmem:[#allocation246_spill] sm:$0xff] %v4903_v5  ;;  %v585_v38 = vld [vmem:[#allocation5 + $0x720] sm:$0xff]  ;;  %v587_v48 = vld [vmem:[#allocation5 + $0x730] sm:$0xff]  ;;  %v1207_v63 = vadd.f32 %v1206_v37, %v4896_v40  ;;  %v4920_v9 = vadd.f32 %v586_v46, %v298_v14 }
  0xef   :  { %v300_v28 = vld [vmem:[#allocation2 + $0x738] sm:$0xff]  ;;  %9264 = vst [vmem:[#allocation247_spill] sm:$0xff] %v4907_v25  ;;  %v9265_v31 = vld [vmem:[#allocation71_spill] sm:$0xff]  ;;  %v301_v60 = vld [vmem:[#allocation2 + $0x740] sm:$0xff]  ;;  %v4918_v1 = vadd.f32 %v585_v38, %v297_v8  ;;  %v4922_v2 = vadd.f32 %v596_v54, %v308_v36  ;;  %v1189_v37 = vadd.f32 %v1188_v3, %v4894_v55 }
  0xf0   :  { %v1367_v29 = vmul.f32 %v9265_v31, %v9265_v31  ;;  %v9266_v16 = vld [vmem:[#allocation72_spill] sm:$0xff]  ;;  %v589_v59 = vld [vmem:[#allocation5 + $0x740] sm:$0xff]  ;;  %9268 = vst [vmem:[#allocation249_spill] sm:$0xff] %v4920_v9  ;;  %v302_v47 = vld [vmem:[#allocation2 + $0x748] sm:$0xff]  ;;  %v4924_v31 = vadd.f32 %v587_v48, %v299_v19  ;;  %v1661_v42 = vadd.f32 %v1366_v33, %v1365_v58  ;;  %v1208_v40 = vadd.f32 %v1207_v63, %v4903_v5 }
  0xf1   :  { %v4914_v23 = vmul.f32 %v9266_v16, %v9266_v16  ;;  %v588_v17 = vld [vmem:[#allocation5 + $0x738] sm:$0xff]  ;;  %9267 = vst [vmem:[#allocation248_spill] sm:$0xff] %v4918_v1  ;;  %9269 = vst [vmem:[#allocation250_spill] sm:$0xff] %v4922_v2  ;;  %v315_v0 = vld [vmem:[#allocation2 + $0x7b0] sm:$0xff]  ;;  %v1199_v36 = vadd.f32 %v4920_v9, %v4918_v1  ;;  %v4936_v19 = vadd.f32 %v589_v59, %v301_v60  ;;  %1190 = vadd.xlane.f32.xlu0 %v1189_v37 }
  0xf2   :  { %9270 = vst [vmem:[#allocation251_spill] sm:$0xff] %v4924_v31  ;;  %v316_v16 = vld [vmem:[#allocation2 + $0x7b8] sm:$0xff]  ;;  %v590_v8 = vld [vmem:[#allocation5 + $0x748] sm:$0xff]  ;;  %v4932_v38 = vadd.f32 %v588_v17, %v300_v28  ;;  %v317_v14 = vld [vmem:[#allocation2 + $0x7c0] sm:$0xff]  ;;  %v1670_v58 = vadd.f32 %v1669_v22, %v4854_v51  ;;  %v1209_v28 = vadd.f32 %v1208_v40, %v4907_v25  ;;  %v1662_v55 = vadd.f32 %v1661_v42, %v1367_v29 }
  0xf3   :  { %v9271_v27 = vld [vmem:[#allocation73_spill] sm:$0xff]  ;;  %v318_v54 = vld [vmem:[#allocation2 + $0x7c8] sm:$0xff]  ;;  %9273 = vst [vmem:[#allocation253_spill] sm:$0xff] %v4936_v19  ;;  %v603_v46 = vld [vmem:[#allocation5 + $0x7b0] sm:$0xff]  ;;  %v1200_v63 = vadd.f32 %v1199_v36, %v4924_v31 }
  0xf4   :  { %v4928_v45 = vmul.f32 %v9271_v27, %v9271_v27  ;;  %9272 = vst [vmem:[#allocation252_spill] sm:$0xff] %v4932_v38  ;;  %v604_v48 = vld [vmem:[#allocation5 + $0x7b8] sm:$0xff]  ;;  %v605_v44 = vld [vmem:[#allocation5 + $0x7c0] sm:$0xff]  ;;  %v4939_v27 = vadd.f32 %v1650_v43, %v4814_v4  ;;  %v319_v17 = vld [vmem:[#allocation2 + $0x7d0] sm:$0xff]  ;;  %v4948_v9 = vadd.f32 %v603_v46, %v315_v0  ;;  %v4952_v4 = vadd.f32 %v590_v8, %v302_v47 }
  0xf5   :  { %v9274_v33 = vld [vmem:[#allocation76_spill] sm:$0xff]  ;;  %v606_v60 = vld [vmem:[#allocation5 + $0x7c8] sm:$0xff]  ;;  %v4950_v5 = vadd.f32 %v604_v48, %v316_v16  ;;  %v4954_v51 = vadd.f32 %v605_v44, %v317_v14  ;;  %v309_v22 = vld [vmem:[#allocation2 + $0x780] sm:$0xff]  ;;  %v1210_v36 = vadd.f32 %v1209_v28, %v4922_v2  ;;  %v1201_v25 = vadd.f32 %v1200_v63, %v4932_v38 }
  0xf6   :  { %v4944_v3 = vmul.f32 %v9274_v33, %v9274_v33  ;;  %v607_v59 = vld [vmem:[#allocation5 + $0x7d0] sm:$0xff]  ;;  %9275 = vst [vmem:[#allocation254_spill] sm:$0xff] %v4948_v9  ;;  %9277 = vst [vmem:[#allocation256_spill] sm:$0xff] %v4952_v4  ;;  %v320_v43 = vld [vmem:[#allocation2 + $0x7d8] sm:$0xff]  ;;  %v4960_v0 = vadd.f32 %v606_v60, %v318_v54  ;;  %v1671_v42 = vadd.f32 %v1670_v58, %v4858_v39 }
  0xf7   :  { %9276 = vst [vmem:[#allocation255_spill] sm:$0xff] %v4950_v5  ;;  %9278 = vst [vmem:[#allocation257_spill] sm:$0xff] %v4954_v51  ;;  %v310_v1 = vld [vmem:[#allocation2 + $0x788] sm:$0xff]  ;;  %v608_v31 = vld [vmem:[#allocation5 + $0x7d8] sm:$0xff]  ;;  %v1220_v16 = vadd.f32 %v4950_v5, %v4948_v9  ;;  %v4964_v44 = vadd.f32 %v607_v59, %v319_v17  ;;  %1211 = vadd.xlane.f32.xlu1 %v1210_v36  ;;  %v1202_v54 = vadd.f32 %v1201_v25, %v4936_v19 }
  0xf8   :  { %v9279_v37 = vld [vmem:[#allocation74_spill] sm:$0xff]  ;;  %9280 = vst [vmem:[#allocation258_spill] sm:$0xff] %v4960_v0  ;;  %v311_v47 = vld [vmem:[#allocation2 + $0x790] sm:$0xff]  ;;  %v312_v8 = vld [vmem:[#allocation2 + $0x798] sm:$0xff]  ;;  %v1663_v36 = vadd.f32 %v1662_v55, %v4914_v23 }
  0xf9   :  { %v1383_v40 = vmul.f32 %v9279_v37, %v9279_v37  ;;  %9281 = vst [vmem:[#allocation259_spill] sm:$0xff] %v4964_v44  ;;  %v597_v14 = vld [vmem:[#allocation5 + $0x780] sm:$0xff]  ;;  %v598_v46 = vld [vmem:[#allocation5 + $0x788] sm:$0xff]  ;;  %v599_v29 = vld [vmem:[#allocation5 + $0x790] sm:$0xff]  ;;  %v1221_v60 = vadd.f32 %v1220_v16, %v4954_v51  ;;  %v4977_v37 = vadd.f32 %v608_v31, %v320_v43  ;;  %v1203_v16 = vadd.f32 %v1202_v54, %v4952_v4 }
  0xfa   :  { %v9282_v48 = vld [vmem:[#allocation75_spill] sm:$0xff]  ;;  %v9283_v2 = vld [vmem:[#allocation77_spill] sm:$0xff]  ;;  %v4973_v59 = vadd.f32 %v597_v14, %v309_v22  ;;  %v4975_v38 = vadd.f32 %v598_v46, %v310_v1  ;;  %v4979_v58 = vadd.f32 %v599_v29, %v311_v47  ;;  %v4995_v51 = vadd.f32 %v1671_v42, %v4873_v24  ;;  %v9314_v56 = vld [vmem:[#allocation88_spill] sm:$0xff] }
  0xfb   :  { %v1384_v28 = vmul.f32 %v9282_v48, %v9282_v48  ;;  %v1385_v63 = vmul.f32 %v9283_v2, %v9283_v2  ;;  %v313_v5 = vld [vmem:[#allocation2 + $0x7a0] sm:$0xff]  ;;  %v600_v9 = vld [vmem:[#allocation5 + $0x798] sm:$0xff]  ;;  %9286 = vst [vmem:[#allocation262_spill] sm:$0xff] %v4977_v37  ;;  %v314_v39 = vld [vmem:[#allocation2 + $0x7a8] sm:$0xff]  ;;  %v1222_v22 = vadd.f32 %v1221_v60, %v4960_v0  ;;  %1204 = vadd.xlane.f32.xlu0 %v1203_v16 }
  0xfc   :  { %v601_v17 = vld [vmem:[#allocation5 + $0x7a0] sm:$0xff]  ;;  %9284 = vst [vmem:[#allocation260_spill] sm:$0xff] %v4973_v59  ;;  %9285 = vst [vmem:[#allocation261_spill] sm:$0xff] %v4975_v38  ;;  %v327_v48 = vld [vmem:[#allocation2 + $0x810] sm:$0xff]  ;;  %v4988_v1 = vadd.f32 %v600_v9, %v312_v8  ;;  %v1213_v31 = vadd.f32 %v4975_v38, %v4973_v59 }
  0xfd   :  { %9287 = vst [vmem:[#allocation263_spill] sm:$0xff] %v4979_v58  ;;  %v328_v33 = vld [vmem:[#allocation2 + $0x818] sm:$0xff]  ;;  %v9288_v2 = vld [vmem:[#allocation78_spill] sm:$0xff]  ;;  %v4992_v46 = vadd.f32 %v601_v17, %v313_v5  ;;  %v615_v29 = vld [vmem:[#allocation5 + $0x810] sm:$0xff]  ;;  %v1682_v60 = vadd.f32 %v1384_v28, %v1383_v40  ;;  %v1223_v9 = vadd.f32 %v1222_v22, %v4964_v44  ;;  %v1664_v40 = vadd.f32 %v1663_v36, %v4928_v45 }
  0xfe   :  { %v4984_v25 = vmul.f32 %v9288_v2, %v9288_v2  ;;  %v602_v14 = vld [vmem:[#allocation5 + $0x7a8] sm:$0xff]  ;;  %9289 = vst [vmem:[#allocation264_spill] sm:$0xff] %v4988_v1  ;;  %v329_v43 = vld [vmem:[#allocation2 + $0x820] sm:$0xff]  ;;  %v616_v55 = vld [vmem:[#allocation5 + $0x818] sm:$0xff]  ;;  %v1214_v8 = vadd.f32 %v1213_v31, %v4979_v58  ;;  %v5003_v17 = vadd.f32 %v615_v29, %v327_v48 }
  0xff   :  { %v330_v47 = vld [vmem:[#allocation2 + $0x828] sm:$0xff]  ;;  %9290 = vst [vmem:[#allocation265_spill] sm:$0xff] %v4992_v46  ;;  %v617_v23 = vld [vmem:[#allocation5 + $0x820] sm:$0xff]  ;;  %v331_v38 = vld [vmem:[#allocation2 + $0x830] sm:$0xff]  ;;  %v5005_v59 = vadd.f32 %v616_v55, %v328_v33  ;;  %v5007_v4 = vadd.f32 %v602_v14, %v314_v39  ;;  %v1224_v22 = vadd.f32 %v1223_v9, %v4977_v37 }
 0x100   :  { %v9291_v19 = vld [vmem:[#allocation79_spill] sm:$0xff]  ;;  %9292 = vst [vmem:[#allocation266_spill] sm:$0xff] %v5003_v17  ;;  %v332_v24 = vld [vmem:[#allocation2 + $0x838] sm:$0xff]  ;;  %v5009_v42 = vadd.f32 %v617_v23, %v329_v43  ;;  %v9296_v28 = vld [vmem:[#allocation82_spill] sm:$0xff]  ;;  %v1215_v48 = vadd.f32 %v1214_v8, %v4988_v1  ;;  %v1683_v23 = vadd.f32 %v1682_v60, %v1385_v63 }
 0x101   :  { %v4999_v54 = vmul.f32 %v9291_v19, %v9291_v19  ;;  %v618_v0 = vld [vmem:[#allocation5 + $0x828] sm:$0xff]  ;;  %v619_v5 = vld [vmem:[#allocation5 + $0x830] sm:$0xff]  ;;  %9293 = vst [vmem:[#allocation267_spill] sm:$0xff] %v5005_v59  ;;  %9294 = vst [vmem:[#allocation268_spill] sm:$0xff] %v5007_v4  ;;  %v5014_v16 = vmul.f32 %v9296_v28, %v9296_v28  ;;  %v1234_v39 = vadd.f32 %v5005_v59, %v5003_v17  ;;  %1225 = vadd.xlane.f32.xlu1 %v1224_v22 }
 0x102   :  { %9295 = vst [vmem:[#allocation269_spill] sm:$0xff] %v5009_v42  ;;  %v321_v19 = vld [vmem:[#allocation2 + $0x7e0] sm:$0xff]  ;;  %v322_v2 = vld [vmem:[#allocation2 + $0x7e8] sm:$0xff]  ;;  %v620_v31 = vld [vmem:[#allocation5 + $0x838] sm:$0xff]  ;;  %v5018_v33 = vadd.f32 %v618_v0, %v330_v47  ;;  %v5022_v29 = vadd.f32 %v619_v5, %v331_v38  ;;  %v1216_v0 = vadd.f32 %v1215_v48, %v4992_v46  ;;  %v5039_v22 = vadd.f32 %v1664_v40, %v4944_v3 }
 0x103   :  { %v323_v14 = vld [vmem:[#allocation2 + $0x7f0] sm:$0xff]  ;;  %v324_v43 = vld [vmem:[#allocation2 + $0x7f8] sm:$0xff]  ;;  %v609_v55 = vld [vmem:[#allocation5 + $0x7e0] sm:$0xff]  ;;  %v1235_v47 = vadd.f32 %v1234_v39, %v5009_v42  ;;  %v5034_v1 = vadd.f32 %v620_v31, %v332_v24  ;;  %v1684_v46 = vadd.f32 %v1683_v23, %v4984_v25 }
 0x104   :  { %9297 = vst [vmem:[#allocation270_spill] sm:$0xff] %v5018_v33  ;;  %9298 = vst [vmem:[#allocation271_spill] sm:$0xff] %v5022_v29  ;;  %v610_v45 = vld [vmem:[#allocation5 + $0x7e8] sm:$0xff]  ;;  %v611_v36 = vld [vmem:[#allocation5 + $0x7f0] sm:$0xff]  ;;  %v5030_v38 = vadd.f32 %v609_v55, %v321_v19  ;;  %v1217_v42 = vadd.f32 %v1216_v0, %v5007_v4 }
 0x105   :  { %v9299_v44 = vld [vmem:[#allocation80_spill] sm:$0xff]  ;;  %v9300_v9 = vld [vmem:[#allocation81_spill] sm:$0xff]  ;;  %v5032_v5 = vadd.f32 %v610_v45, %v322_v2  ;;  %9303 = vst [vmem:[#allocation274_spill] sm:$0xff] %v5034_v1  ;;  %v326_v63 = vld [vmem:[#allocation2 + $0x808] sm:$0xff]  ;;  %v5036_v60 = vadd.f32 %v611_v36, %v323_v14  ;;  %v1236_v19 = vadd.f32 %v1235_v47, %v5018_v33 }
 0x106   :  { %v1377_v58 = vmul.f32 %v9299_v44, %v9299_v44  ;;  %v1378_v8 = vmul.f32 %v9300_v9, %v9300_v9  ;;  %v325_v59 = vld [vmem:[#allocation2 + $0x800] sm:$0xff]  ;;  %v612_v17 = vld [vmem:[#allocation5 + $0x7f8] sm:$0xff]  ;;  %9301 = vst [vmem:[#allocation272_spill] sm:$0xff] %v5030_v38  ;;  %v339_v44 = vld [vmem:[#allocation2 + $0x870] sm:$0xff]  ;;  %1218 = vadd.xlane.f32.xlu0 %v1217_v42  ;;  %v5072_v42 = vmul.f32 %v9314_v56, %v9314_v56 }
 0x107   :  { %v613_v37 = vld [vmem:[#allocation5 + $0x800] sm:$0xff]  ;;  %9302 = vst [vmem:[#allocation273_spill] sm:$0xff] %v5032_v5  ;;  %9304 = vst [vmem:[#allocation275_spill] sm:$0xff] %v5036_v60  ;;  %v340_v28 = vld [vmem:[#allocation2 + $0x878] sm:$0xff]  ;;  %v5045_v2 = vadd.f32 %v612_v17, %v324_v43  ;;  %v1227_v24 = vadd.f32 %v5032_v5, %v5030_v38  ;;  %v1237_v43 = vadd.f32 %v1236_v19, %v5022_v29 }
 0x108   :  { %v9305_v48 = vld [vmem:[#allocation83_spill] sm:$0xff]  ;;  %v341_v31 = vld [vmem:[#allocation2 + $0x880] sm:$0xff]  ;;  %v5049_v45 = vadd.f32 %v613_v37, %v325_v59  ;;  %v628_v3 = vld [vmem:[#allocation5 + $0x878] sm:$0xff]  ;;  %v1675_v19 = vadd.f32 %v1378_v8, %v1377_v58  ;;  %v5083_v56 = vadd.f32 %v1684_v46, %v4999_v54 }
 0x109   :  { %v1379_v39 = vmul.f32 %v9305_v48, %v9305_v48  ;;  %v614_v55 = vld [vmem:[#allocation5 + $0x808] sm:$0xff]  ;;  %9306 = vst [vmem:[#allocation276_spill] sm:$0xff] %v5045_v2  ;;  %v627_v36 = vld [vmem:[#allocation5 + $0x870] sm:$0xff]  ;;  %v629_v40 = vld [vmem:[#allocation5 + $0x880] sm:$0xff]  ;;  %v1228_v5 = vadd.f32 %v1227_v24, %v5036_v60  ;;  %v5064_v4 = vadd.f32 %v628_v3, %v340_v28  ;;  %v1238_v24 = vadd.f32 %v1237_v43, %v5034_v1 }
 0x10a   :  { %v342_v14 = vld [vmem:[#allocation2 + $0x888] sm:$0xff]  ;;  %9307 = vst [vmem:[#allocation277_spill] sm:$0xff] %v5049_v45  ;;  %v9308_v48 = vld [vmem:[#allocation84_spill] sm:$0xff]  ;;  %v9309_v47 = vld [vmem:[#allocation85_spill] sm:$0xff]  ;;  %v5062_v38 = vadd.f32 %v627_v36, %v339_v44  ;;  %v5066_v25 = vadd.f32 %v614_v55, %v326_v63 }
 0x10b   :  { %v5054_v0 = vmul.f32 %v9308_v48, %v9308_v48  ;;  %v5058_v17 = vmul.f32 %v9309_v47, %v9309_v47  ;;  %v343_v37 = vld [vmem:[#allocation2 + $0x890] sm:$0xff]  ;;  %v630_v59 = vld [vmem:[#allocation5 + $0x888] sm:$0xff]  ;;  %9311 = vst [vmem:[#allocation279_spill] sm:$0xff] %v5064_v4  ;;  %v344_v23 = vld [vmem:[#allocation2 + $0x898] sm:$0xff]  ;;  %v5068_v48 = vadd.f32 %v629_v40, %v341_v31  ;;  %v1229_v29 = vadd.f32 %v1228_v5, %v5045_v2 }
 0x10c   :  { %v631_v33 = vld [vmem:[#allocation5 + $0x890] sm:$0xff]  ;;  %9310 = vst [vmem:[#allocation278_spill] sm:$0xff] %v5062_v38  ;;  %9312 = vst [vmem:[#allocation280_spill] sm:$0xff] %v5066_v25  ;;  %v333_v9 = vld [vmem:[#allocation2 + $0x840] sm:$0xff]  ;;  %v5076_v36 = vadd.f32 %v630_v59, %v342_v14  ;;  %v1248_v28 = vadd.f32 %v5064_v4, %v5062_v38  ;;  %1239 = vadd.xlane.f32.xlu1 %v1238_v24 }
 0x10d   :  { %9313 = vst [vmem:[#allocation281_spill] sm:$0xff] %v5068_v48  ;;  %v334_v47 = vld [vmem:[#allocation2 + $0x848] sm:$0xff]  ;;  %v632_v44 = vld [vmem:[#allocation5 + $0x898] sm:$0xff]  ;;  %v335_v63 = vld [vmem:[#allocation2 + $0x850] sm:$0xff]  ;;  %v5080_v31 = vadd.f32 %v631_v33, %v343_v37  ;;  %v1230_v43 = vadd.f32 %v1229_v29, %v5049_v45 }
 0x10e   :  { %9315 = vst [vmem:[#allocation282_spill] sm:$0xff] %v5076_v36  ;;  %v336_v55 = vld [vmem:[#allocation2 + $0x858] sm:$0xff]  ;;  %v621_v3 = vld [vmem:[#allocation5 + $0x840] sm:$0xff]  ;;  %v622_v40 = vld [vmem:[#allocation5 + $0x848] sm:$0xff]  ;;  %v1249_v59 = vadd.f32 %v1248_v28, %v5068_v48  ;;  %v5095_v46 = vadd.f32 %v632_v44, %v344_v23 }
 0x10f   :  { %9316 = vst [vmem:[#allocation283_spill] sm:$0xff] %v5080_v31  ;;  %v623_v60 = vld [vmem:[#allocation5 + $0x850] sm:$0xff]  ;;  %v9317_v58 = vld [vmem:[#allocation86_spill] sm:$0xff]  ;;  %v624_v33 = vld [vmem:[#allocation5 + $0x858] sm:$0xff]  ;;  %v5091_v38 = vadd.f32 %v621_v3, %v333_v9  ;;  %v5093_v1 = vadd.f32 %v622_v40, %v334_v47  ;;  %v1231_v28 = vadd.f32 %v1230_v43, %v5066_v25 }
 0x110   :  { %v1395_v8 = vmul.f32 %v9317_v58, %v9317_v58  ;;  %v9318_v5 = vld [vmem:[#allocation87_spill] sm:$0xff]  ;;  %v337_v4 = vld [vmem:[#allocation2 + $0x860] sm:$0xff]  ;;  %9321 = vst [vmem:[#allocation286_spill] sm:$0xff] %v5095_v46  ;;  %v5097_v2 = vadd.f32 %v623_v60, %v335_v63  ;;  %v352_v50 = vld [vmem:[#allocation2 + $0x8d8] sm:$0xff]  ;;  %v1250_v48 = vadd.f32 %v1249_v59, %v5076_v36  ;;  %v5103_v9 = vadd.f32 %v624_v33, %v336_v55 }
 0x111   :  { %v1396_v14 = vmul.f32 %v9318_v5, %v9318_v5  ;;  %v625_v37 = vld [vmem:[#allocation5 + $0x860] sm:$0xff]  ;;  %9319 = vst [vmem:[#allocation284_spill] sm:$0xff] %v5091_v38  ;;  %9320 = vst [vmem:[#allocation285_spill] sm:$0xff] %v5093_v1  ;;  %v338_v54 = vld [vmem:[#allocation2 + $0x868] sm:$0xff]  ;;  %v1676_v5 = vadd.f32 %v1675_v19, %v1379_v39  ;;  %v1241_v47 = vadd.f32 %v5093_v1, %v5091_v38  ;;  %1232 = vadd.xlane.f32.xlu0 %v1231_v28 }
 0x112   :  { %9322 = vst [vmem:[#allocation287_spill] sm:$0xff] %v5097_v2  ;;  %v351_v58 = vld [vmem:[#allocation2 + $0x8d0] sm:$0xff]  ;;  %v9323_v24 = vld [vmem:[#allocation89_spill] sm:$0xff]  ;;  %v626_v45 = vld [vmem:[#allocation5 + $0x868] sm:$0xff]  ;;  %v5107_v60 = vadd.f32 %v625_v37, %v337_v4  ;;  %v1251_v55 = vadd.f32 %v1250_v48, %v5080_v31 }
 0x113   :  { %v1397_v29 = vmul.f32 %v9323_v24, %v9323_v24  ;;  %9324 = vst [vmem:[#allocation288_spill] sm:$0xff] %v5103_v9  ;;  %v353_v23 = vld [vmem:[#allocation2 + $0x8e0] sm:$0xff]  ;;  %v354_v44 = vld [vmem:[#allocation2 + $0x8e8] sm:$0xff]  ;;  %v639_v63 = vld [vmem:[#allocation5 + $0x8d0] sm:$0xff]  ;;  %v1696_v19 = vadd.f32 %v1396_v14, %v1395_v8  ;;  %v1242_v33 = vadd.f32 %v1241_v47, %v5097_v2  ;;  %v5119_v25 = vadd.f32 %v626_v45, %v338_v54 }
 0x114   :  { %9325 = vst [vmem:[#allocation289_spill] sm:$0xff] %v5107_v60  ;;  %v640_v3 = vld [vmem:[#allocation5 + $0x8d8] sm:$0xff]  ;;  %v641_v39 = vld [vmem:[#allocation5 + $0x8e0] sm:$0xff]  ;;  %v355_v1 = vld [vmem:[#allocation2 + $0x8f0] sm:$0xff]  ;;  %v5115_v4 = vadd.f32 %v639_v63, %v351_v58  ;;  %v1677_v28 = vadd.f32 %v1676_v5, %v5054_v0  ;;  %v1252_v47 = vadd.f32 %v1251_v55, %v5095_v46 }
 0x115   :  { %v9326_v40 = vld [vmem:[#allocation92_spill] sm:$0xff]  ;;  %v9327_v43 = vld [vmem:[#allocation93_spill] sm:$0xff]  ;;  %v642_v36 = vld [vmem:[#allocation5 + $0x8e8] sm:$0xff]  ;;  %v5117_v37 = vadd.f32 %v640_v3, %v352_v50  ;;  %9330 = vst [vmem:[#allocation292_spill] sm:$0xff] %v5119_v25  ;;  %v5121_v14 = vadd.f32 %v641_v39, %v353_v23  ;;  %v1243_v31 = vadd.f32 %v1242_v33, %v5103_v9  ;;  %v1697_v5 = vadd.f32 %v1696_v19, %v1397_v29 }
 0x116   :  { %v1389_v24 = vmul.f32 %v9326_v40, %v9326_v40  ;;  %v1390_v59 = vmul.f32 %v9327_v43, %v9327_v43  ;;  %v643_v38 = vld [vmem:[#allocation5 + $0x8f0] sm:$0xff]  ;;  %9328 = vst [vmem:[#allocation290_spill] sm:$0xff] %v5115_v4  ;;  %v356_v8 = vld [vmem:[#allocation2 + $0x8f8] sm:$0xff]  ;;  %v345_v40 = vld [vmem:[#allocation2 + $0x8a0] sm:$0xff]  ;;  %v5128_v63 = vadd.f32 %v642_v36, %v354_v44  ;;  %1253 = vadd.xlane.f32.xlu1 %v1252_v47 }
 0x117   :  { %9329 = vst [vmem:[#allocation291_spill] sm:$0xff] %v5117_v37  ;;  %9331 = vst [vmem:[#allocation293_spill] sm:$0xff] %v5121_v14  ;;  %v346_v7 = vld [vmem:[#allocation2 + $0x8a8] sm:$0xff]  ;;  %v644_v58 = vld [vmem:[#allocation5 + $0x8f8] sm:$0xff]  ;;  %v1262_v50 = vadd.f32 %v5117_v37, %v5115_v4  ;;  %v5132_v23 = vadd.f32 %v643_v38, %v355_v1  ;;  %v1244_v33 = vadd.f32 %v1243_v31, %v5107_v60 }
 0x118   :  { %v9332_v43 = vld [vmem:[#allocation90_spill] sm:$0xff]  ;;  %9333 = vst [vmem:[#allocation294_spill] sm:$0xff] %v5128_v63  ;;  %v347_v45 = vld [vmem:[#allocation2 + $0x8b0] sm:$0xff]  ;;  %v348_v54 = vld [vmem:[#allocation2 + $0x8b8] sm:$0xff]  ;;  %v1689_v55 = vadd.f32 %v1390_v59, %v1389_v24  ;;  %v5142_v1 = vadd.f32 %v644_v58, %v356_v8  ;;  %v5158_v58 = vadd.f32 %v5083_v56, %v5014_v16  ;;  %v1678_v56 = vadd.f32 %v1677_v28, %v5058_v17 }
 0x119   :  { %v1398_v48 = vmul.f32 %v9332_v43, %v9332_v43  ;;  %9334 = vst [vmem:[#allocation295_spill] sm:$0xff] %v5132_v23  ;;  %v633_v3 = vld [vmem:[#allocation5 + $0x8a0] sm:$0xff]  ;;  %v634_v39 = vld [vmem:[#allocation5 + $0x8a8] sm:$0xff]  ;;  %v635_v0 = vld [vmem:[#allocation5 + $0x8b0] sm:$0xff]  ;;  %v1263_v36 = vadd.f32 %v1262_v50, %v5121_v14  ;;  %v1245_v31 = vadd.f32 %v1244_v33, %v5119_v25 }
 0x11a   :  { %v9335_v2 = vld [vmem:[#allocation95_spill] sm:$0xff]  ;;  %v636_v44 = vld [vmem:[#allocation5 + $0x8b8] sm:$0xff]  ;;  %v5138_v46 = vadd.f32 %v633_v3, %v345_v40  ;;  %v5140_v37 = vadd.f32 %v634_v39, %v346_v7  ;;  %9338 = vst [vmem:[#allocation298_spill] sm:$0xff] %v5142_v1  ;;  %v349_v38 = vld [vmem:[#allocation2 + $0x8c0] sm:$0xff]  ;;  %v5144_v9 = vadd.f32 %v635_v0, %v347_v45 }
 0x11b   :  { %v1391_v43 = vmul.f32 %v9335_v2, %v9335_v2  ;;  %v637_v4 = vld [vmem:[#allocation5 + $0x8c0] sm:$0xff]  ;;  %v9341_v24 = vld [vmem:[#allocation99_spill] sm:$0xff]  ;;  %v1264_v47 = vadd.f32 %v1263_v36, %v5128_v63  ;;  %v5152_v7 = vadd.f32 %v636_v44, %v348_v54  ;;  %v1698_v39 = vadd.f32 %v1697_v5, %v1398_v48  ;;  %v9344_v0 = vld [vmem:[#allocation96_spill] sm:$0xff]  ;;  %1246 = vadd.xlane.f32.xlu0 %v1245_v31 }
 0x11c   :  { %9336 = vst [vmem:[#allocation296_spill] sm:$0xff] %v5138_v46  ;;  %9337 = vst [vmem:[#allocation297_spill] sm:$0xff] %v5140_v37  ;;  %v9340_v29 = vld [vmem:[#allocation98_spill] sm:$0xff]  ;;  %v1408_v59 = vmul.f32 %v9341_v24, %v9341_v24  ;;  %v1255_v8 = vadd.f32 %v5140_v37, %v5138_v46  ;;  %v9343_v45 = vld [vmem:[#allocation91_spill] sm:$0xff]  ;;  %v1392_v33 = vmul.f32 %v9344_v0, %v9344_v0 }
 0x11d   :  { %9339 = vst [vmem:[#allocation299_spill] sm:$0xff] %v5144_v9  ;;  %v1407_v19 = vmul.f32 %v9340_v29, %v9340_v29  ;;  %v350_v40 = vld [vmem:[#allocation2 + $0x8c8] sm:$0xff]  ;;  %9342 = vst [vmem:[#allocation300_spill] sm:$0xff] %v5152_v7  ;;  %v1399_v3 = vmul.f32 %v9343_v45, %v9343_v45  ;;  %v1265_v36 = vadd.f32 %v1264_v47, %v5132_v23  ;;  %v9347_v16 = vld [vmem:[#allocation101_spill] sm:$0xff] }
 0x11e   :  { %v638_v50 = vld [vmem:[#allocation5 + $0x8c8] sm:$0xff]  ;;  %v5165_v63 = vadd.f32 %v637_v4, %v349_v38  ;;  %v1256_v54 = vadd.f32 %v1255_v8, %v5144_v9  ;;  %v1690_v44 = vadd.f32 %v1689_v55, %v1391_v43  ;;  %v1409_v46 = vmul.f32 %v9347_v16, %v9347_v16  ;;  %v9348_v31 = vld [vmem:[#allocation104_spill] sm:$0xff]  ;;  %v9349_v4 = vld [vmem:[#allocation105_spill] sm:$0xff] }
 0x11f   :  { %v5168_v37 = vadd.f32 %v638_v50, %v350_v40  ;;  %v1710_v14 = vadd.f32 %v1408_v59, %v1407_v19  ;;  %v1266_v48 = vadd.f32 %v1265_v36, %v5142_v1  ;;  %v1401_v47 = vmul.f32 %v9348_v31, %v9348_v31  ;;  %v9350_v8 = vld [vmem:[#allocation94_spill] sm:$0xff]  ;;  %v9352_v28 = vld [vmem:[#allocation111_spill] sm:$0xff]  ;;  %v9353_v50 = vld [vmem:[#allocation97_spill] sm:$0xff] }
 0x120   :  { %9345 = vst [vmem:[#allocation301_spill] sm:$0xff] %v5165_v63  ;;  %v1257_v5 = vadd.f32 %v1256_v54, %v5152_v7  ;;  %v1402_v38 = vmul.f32 %v9349_v4, %v9349_v4  ;;  %v1400_v43 = vmul.f32 %v9350_v8, %v9350_v8  ;;  %v1699_v55 = vadd.f32 %v1698_v39, %v1399_v3  ;;  %v9351_v40 = vld [vmem:[#allocation110_spill] sm:$0xff]  ;;  %v9354_v54 = vld [vmem:[#allocation100_spill] sm:$0xff]  ;;  %v9356_v25 = vld [vmem:[#allocation107_spill] sm:$0xff] }
 0x121   :  { %9346 = vst [vmem:[#allocation302_spill] sm:$0xff] %v5168_v37  ;;  %v1419_v17 = vmul.f32 %v9351_v40, %v9351_v40  ;;  %v1420_v19 = vmul.f32 %v9352_v28, %v9352_v28  ;;  %1267 = vadd.xlane.f32.xlu1 %v1266_v48  ;;  %v1393_v36 = vmul.f32 %v9353_v50, %v9353_v50  ;;  %v9355_v3 = vld [vmem:[#allocation102_spill] sm:$0xff]  ;;  %v9357_v60 = vld [vmem:[#allocation116_spill] sm:$0xff]  ;;  %v9358_v40 = vld [vmem:[#allocation117_spill] sm:$0xff] }
 0x122   :  { %v1258_v59 = vadd.f32 %v1257_v5, %v5165_v63  ;;  %v5190_v1 = vmul.f32 %v9354_v54, %v9354_v54  ;;  %v1691_v7 = vadd.f32 %v1690_v44, %v1392_v33  ;;  %v5193_v23 = vadd.f32 %v1678_v56, %v5072_v42  ;;  %v9359_v42 = vld [vmem:[#allocation103_spill] sm:$0xff]  ;;  %v9360_v56 = vld [vmem:[#allocation113_spill] sm:$0xff]  ;;  %v9412_v35 = vld [vmem:[#allocation160_spill] sm:$0xff] }
 0x123   :  { %v1410_v39 = vmul.f32 %v9355_v3, %v9355_v3  ;;  %v1711_v9 = vadd.f32 %v1710_v14, %v1409_v46  ;;  %v1403_v48 = vmul.f32 %v9356_v25, %v9356_v25  ;;  %v1703_v63 = vadd.f32 %v1402_v38, %v1401_v47  ;;  %v9361_v47 = vld [vmem:[#allocation106_spill] sm:$0xff]  ;;  %v9376_v24 = vld [vmem:[#allocation121_spill] sm:$0xff]  ;;  %v9406_v21 = vld [vmem:[#allocation151_spill] sm:$0xff] }
 0x124   :  { %v1259_v5 = vadd.f32 %v1258_v59, %v5168_v37  ;;  %v1413_v28 = vmul.f32 %v9357_v60, %v9357_v60  ;;  %v1414_v4 = vmul.f32 %v9358_v40, %v9358_v40  ;;  %v5204_v33 = vadd.f32 %v1699_v55, %v1400_v43  ;;  %v9362_v37 = vld [vmem:[#allocation119_spill] sm:$0xff]  ;;  %v5219_v55 = vpop.xlane.xlu1 %952  ;;  %v9363_v40 = vld [vmem:[#allocation108_spill] sm:$0xff]  ;;  %v9563_v8 = vld [vmem:[#allocation237_spill] sm:$0xff] }
 0x125   :  { %v1411_v44 = vmul.f32 %v9359_v42, %v9359_v42  ;;  %v1421_v46 = vmul.f32 %v9360_v56, %v9360_v56  ;;  %v1724_v14 = vadd.f32 %v1420_v19, %v1419_v17  ;;  %1617 = vadd.xlane.f32.xlu1 %v4510_v15  ;;  %v5211_v59 = vadd.f32 %v1691_v7, %v1393_v36  ;;  %v9364_v56 = vld [vmem:[#allocation122_spill] sm:$0xff]  ;;  %v9365_v19 = vld [vmem:[#allocation123_spill] sm:$0xff]  ;;  %v9366_v36 = vld [vmem:[#allocation109_spill] sm:$0xff] }
 0x126   :  { %1260 = vadd.xlane.f32.xlu0 %v1259_v5  ;;  %v5215_v38 = vmul.f32 %v9361_v47, %v9361_v47  ;;  %v1415_v43 = vmul.f32 %v9362_v37, %v9362_v37  ;;  %v1404_v60 = vmul.f32 %v9363_v40, %v9363_v40  ;;  %v1717_v25 = vadd.f32 %v1414_v4, %v1413_v28  ;;  %v9367_v47 = vld [vmem:[#allocation125_spill] sm:$0xff]  ;;  %v9368_v42 = vld [vmem:[#allocation114_spill] sm:$0xff]  ;;  %v9369_v40 = vld [vmem:[#allocation120_spill] sm:$0xff] }
 0x127   :  { %v1431_v17 = vmul.f32 %v9364_v56, %v9364_v56  ;;  %v1432_v15 = vmul.f32 %v9365_v19, %v9365_v19  ;;  %v1712_v7 = vadd.f32 %v1711_v9, %v1410_v39  ;;  %v1405_v5 = vmul.f32 %v9366_v36, %v9366_v36  ;;  %v9370_v39 = vld [vmem:[#allocation128_spill] sm:$0xff]  ;;  %v9574_v29 = vld [vmem:[#allocation242_spill] sm:$0xff]  ;;  %v9580_v54 = vld [vmem:[#allocation245_spill] sm:$0xff] }
 0x128   :  { %v1704_v31 = vadd.f32 %v1703_v63, %v1403_v48  ;;  %v1433_v37 = vmul.f32 %v9367_v47, %v9367_v47  ;;  %v1422_v3 = vmul.f32 %v9368_v42, %v9368_v42  ;;  %v1725_v16 = vadd.f32 %v1724_v14, %v1421_v46  ;;  %v9371_v63 = vld [vmem:[#allocation129_spill] sm:$0xff]  ;;  %v9372_v47 = vld [vmem:[#allocation112_spill] sm:$0xff]  ;;  %v9373_v42 = vld [vmem:[#allocation126_spill] sm:$0xff] }
 0x129   :  { %v1416_v4 = vmul.f32 %v9369_v40, %v9369_v40  ;;  %v1738_v28 = vadd.f32 %v1432_v15, %v1431_v17  ;;  %1631 = vadd.xlane.f32.xlu1 %v4611_v61  ;;  %v1718_v9 = vadd.f32 %v1717_v25, %v1415_v43  ;;  %v1425_v19 = vmul.f32 %v9370_v39, %v9370_v39  ;;  %v9374_v43 = vld [vmem:[#allocation134_spill] sm:$0xff]  ;;  %v5249_v40 = vpop.xlane.xlu1 %959  ;;  %v9584_v0 = vld [vmem:[#allocation249_spill] sm:$0xff] }
 0x12a   :  { %1610 = vadd.xlane.f32.xlu0 %v4536_v52  ;;  %v1426_v48 = vmul.f32 %v9371_v63, %v9371_v63  ;;  %v1406_v56 = vmul.f32 %v9372_v47, %v9372_v47  ;;  %v1434_v46 = vmul.f32 %v9373_v42, %v9373_v42  ;;  %v1427_v17 = vmul.f32 %v4355_v57, %v4355_v57  ;;  %v939_v52 = vpop.xlane.xlu0 %938  ;;  %v9375_v63 = vld [vmem:[#allocation115_spill] sm:$0xff] }
 0x12b   :  { %v1739_v14 = vadd.f32 %v1738_v28, %v1433_v37  ;;  %v1713_v15 = vadd.f32 %v1712_v7, %v1411_v44  ;;  %v1705_v61 = vadd.f32 %v1704_v31, %v1404_v60  ;;  %v1443_v39 = vmul.f32 %v9374_v43, %v9374_v43  ;;  %v9377_v37 = vld [vmem:[#allocation135_spill] sm:$0xff] }
 0x12c   :  { %v1731_v25 = vadd.f32 %v1426_v48, %v1425_v19  ;;  %v1423_v36 = vmul.f32 %v9375_v63, %v9375_v63  ;;  %v1726_v47 = vadd.f32 %v1725_v16, %v1422_v3  ;;  %v1417_v42 = vmul.f32 %v9376_v24, %v9376_v24  ;;  %v9378_v31 = vld [vmem:[#allocation127_spill] sm:$0xff]  ;;  %v9379_v19 = vld [vmem:[#allocation132_spill] sm:$0xff]  ;;  %v9380_v24 = vld [vmem:[#allocation118_spill] sm:$0xff] }
 0x12d   :  { %v1444_v28 = vmul.f32 %v9377_v37, %v9377_v37  ;;  %1645 = vadd.xlane.f32.xlu1 %v4733_v53  ;;  %v1719_v60 = vadd.f32 %v1718_v9, %v1416_v4  ;;  %v1435_v44 = vmul.f32 %v9378_v31, %v9378_v31  ;;  %v1428_v7 = vmul.f32 %v9379_v19, %v9379_v19  ;;  %v9382_v4 = vld [vmem:[#allocation141_spill] sm:$0xff]  ;;  %v9383_v63 = vld [vmem:[#allocation124_spill] sm:$0xff] }
 0x12e   :  { %1624 = vadd.xlane.f32.xlu0 %v4676_v30  ;;  %v1740_v48 = vadd.f32 %v1739_v14, %v1434_v46  ;;  %v1732_v43 = vadd.f32 %v1731_v25, %v1427_v17  ;;  %v1445_v16 = vmul.f32 %v4381_v62, %v4381_v62  ;;  %v1706_v57 = vadd.f32 %v1705_v61, %v1405_v5  ;;  %v9381_v30 = vld [vmem:[#allocation140_spill] sm:$0xff]  ;;  %v9384_v46 = vld [vmem:[#allocation130_spill] sm:$0xff]  ;;  %v5277_v5 = vpop.xlane.xlu0 %945  ;;  %v9385_v61 = vld [vmem:[#allocation133_spill] sm:$0xff] }
 0x12f   :  { %v1752_v3 = vadd.f32 %v1444_v28, %v1443_v39  ;;  %v1424_v37 = vmul.f32 %v9380_v24, %v9380_v24  ;;  %v1437_v53 = vmul.f32 %v9381_v30, %v9381_v30  ;;  %v1438_v9 = vmul.f32 %v9382_v4, %v9382_v4  ;;  %v9386_v30 = vld [vmem:[#allocation138_spill] sm:$0xff]  ;;  %v9609_v24 = vld [vmem:[#allocation261_spill] sm:$0xff] }
 0x130   :  { %v1727_v31 = vadd.f32 %v1726_v47, %v1423_v36  ;;  %v1418_v19 = vmul.f32 %v9383_v63, %v9383_v63  ;;  %v1436_v14 = vmul.f32 %v9384_v46, %v9384_v46  ;;  %v1439_v39 = vmul.f32 %v4409_v32, %v4409_v32  ;;  %v5283_v36 = vpop.xlane.xlu1 %973  ;;  %v9630_v63 = vld [vmem:[#allocation269_spill] sm:$0xff] }
 0x131   :  { %1659 = vadd.xlane.f32.xlu1 %v4884_v34  ;;  %v1720_v17 = vadd.f32 %v1719_v60, %v1417_v42  ;;  %v1429_v25 = vmul.f32 %v9385_v61, %v9385_v61  ;;  %v1745_v47 = vadd.f32 %v1438_v9, %v1437_v53  ;;  %v1741_v28 = vadd.f32 %v1740_v48, %v1435_v44  ;;  %v9388_v44 = vld [vmem:[#allocation136_spill] sm:$0xff] }
 0x132   :  { %1638 = vadd.xlane.f32.xlu0 %v4781_v20  ;;  %v1733_v4 = vadd.f32 %v1732_v43, %v1428_v7  ;;  %v1446_v62 = vmul.f32 %v9386_v30, %v9386_v30  ;;  %v1753_v46 = vadd.f32 %v1752_v3, %v1445_v16  ;;  %v5289_v32 = vadd.f32 %v5211_v59, %v5190_v1 }
 0x133   :  { %v5292_v20 = vadd.f32 %v1713_v15, %v5215_v38  ;;  %v5294_v34 = vadd.f32 %v1706_v57, %v1406_v56  ;;  %v5297_v42 = vmul.f32 0.0013020834, %v5219_v55  ;;  %v5299_v60 = vadd.f32 %v1727_v31, %v1424_v37  ;;  %v9389_v56 = vld [vmem:[#allocation142_spill] sm:$0xff] }
 0x134   :  { %v1430_v43 = vmul.f32 %v9388_v44, %v9388_v44  ;;  %v1440_v7 = vmul.f32 %v4417_v49, %v4417_v49  ;;  %v1746_v48 = vadd.f32 %v1745_v47, %v1439_v39  ;;  %v5307_v1 = vadd.f32 %v1720_v17, %v1418_v19  ;;  %v9391_v31 = vld [vmem:[#allocation146_spill] sm:$0xff]  ;;  %v5329_v9 = vpop.xlane.xlu1 %987  ;;  %v9394_v39 = vld [vmem:[#allocation153_spill] sm:$0xff]  ;;  %v9654_v44 = vld [vmem:[#allocation287_spill] sm:$0xff] }
 0x135   :  { %9387 = vst [vmem:[#allocation303_spill] sm:$0xff] %v5297_v42  ;;  %1673 = vadd.xlane.f32.xlu1 %v4995_v51  ;;  %v1447_v57 = vmul.f32 %v4391_v13, %v4391_v13  ;;  %v1448_v59 = vmul.f32 %v9389_v56, %v9389_v56  ;;  %v5313_v38 = vmul.f32 0.0013020834, %v939_v52  ;;  %v5315_v55 = vadd.f32 %v1741_v28, %v1436_v14  ;;  %v9392_v52 = vld [vmem:[#allocation147_spill] sm:$0xff]  ;;  %v9653_v56 = vld [vmem:[#allocation285_spill] sm:$0xff] }
 0x136   :  { %1652 = vadd.xlane.f32.xlu0 %v4939_v27  ;;  %v1734_v15 = vadd.f32 %v1733_v4, %v1429_v25  ;;  %v1754_v37 = vadd.f32 %v1753_v46, %v1446_v62  ;;  %v1455_v16 = vmul.f32 %v9391_v31, %v9391_v31  ;;  %v5319_v27 = vpop.xlane.xlu0 %966  ;;  %v1441_v51 = vmul.f32 %v4421_v41, %v4421_v41  ;;  %v9393_v46 = vld [vmem:[#allocation152_spill] sm:$0xff]  ;;  %v9395_v28 = vld [vmem:[#allocation155_spill] sm:$0xff] }
 0x137   :  { %9390 = vst [vmem:[#allocation304_spill] sm:$0xff] %v5313_v38  ;;  %v1442_v19 = vmul.f32 %v4437_v26, %v4437_v26  ;;  %v1456_v53 = vmul.f32 %v9392_v52, %v9392_v52  ;;  %v1747_v62 = vadd.f32 %v1746_v48, %v1440_v7  ;;  %v1457_v4 = vmul.f32 %v4439_v6, %v4439_v6  ;;  %v9416_v38 = vld [vmem:[#allocation164_spill] sm:$0xff]  ;;  %v9672_v6 = vld [vmem:[#allocation295_spill] sm:$0xff] }
 0x138   :  { %v1449_v14 = vmul.f32 %v9393_v46, %v9393_v46  ;;  %v1450_v17 = vmul.f32 %v9394_v39, %v9394_v39  ;;  %v1451_v7 = vmul.f32 %v9395_v28, %v9395_v28  ;;  %v5344_v48 = vmul.f32 0.0013020834, %v5249_v40 }
 0x139   :  { %1687 = vadd.xlane.f32.xlu1 %v5158_v58  ;;  %v1766_v47 = vadd.f32 %v1456_v53, %v1455_v16  ;;  %v5346_v3 = vadd.f32 %v1734_v15, %v1430_v43  ;;  %v1755_v10 = vadd.f32 %v1754_v37, %v1447_v57  ;;  %v1748_v25 = vadd.f32 %v1747_v62, %v1441_v51  ;;  %v9399_v15 = vld [vmem:[#allocation150_spill] sm:$0xff]  ;;  %v5373_v57 = vpop.xlane.xlu1 %1001 }
 0x13a   :  { %1666 = vadd.xlane.f32.xlu0 %v5039_v22  ;;  %9396 = vst [vmem:[#allocation305_spill] sm:$0xff] %v5344_v48  ;;  %v1759_v46 = vadd.f32 %v1450_v17, %v1449_v14  ;;  %v1458_v37 = vmul.f32 %v9399_v15, %v9399_v15  ;;  %v5362_v17 = vpop.xlane.xlu0 %980  ;;  %v9401_v22 = vld [vmem:[#allocation156_spill] sm:$0xff]  ;;  %v5371_v62 = vmul.f32 0.0013020834, %v5277_v5  ;;  %v1459_v18 = vmul.f32 %v9406_v21, %v9406_v21  ;;  %v9433_v48 = vld [vmem:[#allocation170_spill] sm:$0xff] }
 0x13b   :  { %v1767_v14 = vadd.f32 %v1766_v47, %v1457_v4  ;;  %v1452_v39 = vmul.f32 %v9401_v22, %v9401_v22  ;;  %v5375_v40 = vadd.f32 %v1755_v10, %v1448_v59  ;;  %v9409_v10 = vld [vmem:[#allocation159_spill] sm:$0xff]  ;;  %v5391_v11 = vadd.f32 %v1748_v25, %v1442_v19  ;;  %v9410_v4 = vld [vmem:[#allocation157_spill] sm:$0xff] }
 0x13c   :  { %v1760_v51 = vadd.f32 %v1759_v46, %v1451_v7  ;;  %9402 = vst [vmem:[#allocation306_spill] sm:$0xff] %v5371_v62  ;;  %v9407_v46 = vld [vmem:[#allocation154_spill] sm:$0xff]  ;;  %v1468_v59 = vmul.f32 %v9409_v10, %v9409_v10  ;;  %v1454_v58 = vmul.f32 %v9412_v35, %v9412_v35  ;;  %v5402_v42 = vmul.f32 0.0013020834, %v5283_v36  ;;  %v9421_v19 = vld [vmem:[#allocation167_spill] sm:$0xff] }
 0x13d   :  { %1701 = vadd.xlane.f32.xlu1 %v5204_v33  ;;  %v1460_v5 = vmul.f32 %v9407_v46, %v9407_v46  ;;  %v9408_v7 = vld [vmem:[#allocation158_spill] sm:$0xff]  ;;  %v1768_v47 = vadd.f32 %v1767_v14, %v1458_v37  ;;  %v1453_v33 = vmul.f32 %v9410_v4, %v9410_v4  ;;  %v1463_v14 = vmul.f32 %v9421_v19, %v9421_v19  ;;  %v5422_v37 = vpop.xlane.xlu1 %1015  ;;  %v9431_v36 = vld [vmem:[#allocation163_spill] sm:$0xff] }
 0x13e   :  { %1680 = vadd.xlane.f32.xlu0 %v5193_v23  ;;  %v1467_v12 = vmul.f32 %v9408_v7, %v9408_v7  ;;  %v9411_v23 = vld [vmem:[#allocation161_spill] sm:$0xff]  ;;  %v1761_v43 = vadd.f32 %v1760_v51, %v1452_v39  ;;  %9413 = vst [vmem:[#allocation307_spill] sm:$0xff] %v5402_v42  ;;  %v5412_v10 = vpop.xlane.xlu0 %994  ;;  %v9422_v7 = vld [vmem:[#allocation162_spill] sm:$0xff]  ;;  %v5433_v39 = vmul.f32 0.0013020834, %v5319_v27  ;;  %v9432_v27 = vld [vmem:[#allocation168_spill] sm:$0xff]  ;;  %v1583_v13 = vmul.f32 %v9654_v44, %v9654_v44 }
 0x13f   :  { %v1469_v16 = vmul.f32 %v9411_v23, %v9411_v23  ;;  %v1461_v23 = vmul.f32 %v9416_v38, %v9416_v38  ;;  %v1769_v38 = vadd.f32 %v1768_v47, %v1459_v18  ;;  %v1464_v51 = vmul.f32 %v9432_v27, %v9432_v27  ;;  %v9440_v62 = vld [vmem:[#allocation174_spill] sm:$0xff]  ;;  %v9443_v27 = vld [vmem:[#allocation179_spill] sm:$0xff] }
 0x140   :  { %v1780_v53 = vadd.f32 %v1468_v59, %v1467_v12  ;;  %v1762_v12 = vadd.f32 %v1761_v43, %v1453_v33  ;;  %9425 = vst [vmem:[#allocation308_spill] sm:$0xff] %v5433_v39  ;;  %v1471_v59 = vmul.f32 %v9431_v36, %v9431_v36  ;;  %v9435_v43 = vld [vmem:[#allocation166_spill] sm:$0xff]  ;;  %v1475_v19 = vmul.f32 %v9443_v27, %v9443_v27  ;;  %v9462_v27 = vld [vmem:[#allocation185_spill] sm:$0xff] }
 0x141   :  { %1715 = vadd.xlane.f32.xlu1 %v5292_v20  ;;  %v1770_v47 = vadd.f32 %v1769_v38, %v1460_v5  ;;  %v1472_v33 = vmul.f32 %v9435_v43, %v9435_v43  ;;  %v9438_v5 = vld [vmem:[#allocation169_spill] sm:$0xff] }
 0x142   :  { %1694 = vadd.xlane.f32.xlu0 %v5289_v32  ;;  %v9417_v32 = vld [vmem:[#allocation165_spill] sm:$0xff]  ;;  %v1781_v35 = vadd.f32 %v1780_v53, %v1469_v16  ;;  %v1479_v53 = vmul.f32 %v9433_v48, %v9433_v48  ;;  %v9434_v16 = vld [vmem:[#allocation171_spill] sm:$0xff] }
 0x143   :  { %v1462_v20 = vmul.f32 %v9417_v32, %v9417_v32  ;;  %v1470_v32 = vmul.f32 %v9422_v7, %v9422_v7  ;;  %v9455_v7 = vld [vmem:[#allocation178_spill] sm:$0xff] }
 0x145   :  { %v1773_v4 = vadd.f32 %v1462_v20, %v1461_v23  ;;  %1729 = vadd.xlane.f32.xlu1 %v5299_v60  ;;  %v1782_v18 = vadd.f32 %v1781_v35, %v1470_v32  ;;  %v1480_v23 = vmul.f32 %v9434_v16, %v9434_v16  ;;  %v1763_v20 = vadd.f32 %v1762_v12, %v1454_v58  ;;  %v9436_v60 = vld [vmem:[#allocation173_spill] sm:$0xff]  ;;  %v9439_v32 = vld [vmem:[#allocation172_spill] sm:$0xff] }
 0x146   :  { %1708 = vadd.xlane.f32.xlu0 %v5294_v34  ;;  %v5453_v34 = vpop.xlane.xlu0 %1008  ;;  %v1481_v38 = vmul.f32 %v9436_v60, %v9436_v60  ;;  %v5462_v35 = vmul.f32 0.0013020834, %v5329_v9  ;;  %v9441_v16 = vld [vmem:[#allocation176_spill] sm:$0xff]  ;;  %v9442_v60 = vld [vmem:[#allocation177_spill] sm:$0xff] }
 0x147   :  { %v1774_v25 = vadd.f32 %v1773_v4, %v1463_v14  ;;  %v5464_v4 = vpop.xlane.xlu1 %1029  ;;  %v1465_v14 = vmul.f32 %v9438_v5, %v9438_v5  ;;  %v1794_v58 = vadd.f32 %v1480_v23, %v1479_v53  ;;  %v1473_v48 = vmul.f32 %v9441_v16, %v9441_v16  ;;  %v9447_v53 = vld [vmem:[#allocation180_spill] sm:$0xff] }
 0x148   :  { %9437 = vst [vmem:[#allocation309_spill] sm:$0xff] %v5462_v35  ;;  %v1474_v9 = vmul.f32 %v9442_v60, %v9442_v60  ;;  %v1783_v43 = vadd.f32 %v1782_v18, %v1471_v59  ;;  %v1476_v23 = vmul.f32 %v9447_v53, %v9447_v53  ;;  %v5489_v59 = vmul.f32 0.0013020834, %v5362_v17  ;;  %v9457_v53 = vld [vmem:[#allocation182_spill] sm:$0xff]  ;;  %v9461_v18 = vld [vmem:[#allocation183_spill] sm:$0xff]  ;;  %v9489_v35 = vld [vmem:[#allocation200_spill] sm:$0xff] }
 0x149   :  { %1743 = vadd.xlane.f32.xlu1 %v5315_v55  ;;  %v1482_v55 = vmul.f32 %v9440_v62, %v9440_v62  ;;  %v1775_v12 = vadd.f32 %v1774_v25, %v1464_v51  ;;  %v1795_v22 = vadd.f32 %v1794_v58, %v1481_v38  ;;  %v9446_v25 = vld [vmem:[#allocation175_spill] sm:$0xff]  ;;  %v1484_v58 = vmul.f32 %v9455_v7, %v9455_v7  ;;  %v9467_v38 = vld [vmem:[#allocation189_spill] sm:$0xff] }
 0x14a   :  { %1722 = vadd.xlane.f32.xlu0 %v5307_v1  ;;  %v1466_v1 = vmul.f32 %v9439_v32, %v9439_v32  ;;  %v1483_v51 = vmul.f32 %v9446_v25, %v9446_v25  ;;  %v1787_v60 = vadd.f32 %v1474_v9, %v1473_v48  ;;  %9448 = vst [vmem:[#allocation310_spill] sm:$0xff] %v5489_v59  ;;  %v5497_v32 = vpop.xlane.xlu0 %1022  ;;  %v9559_v7 = vld [vmem:[#allocation233_spill] sm:$0xff] }
 0x14b   :  { %v1776_v5 = vadd.f32 %v1775_v12, %v1465_v14  ;;  %v5503_v16 = vpop.xlane.xlu1 %1043  ;;  %v1784_v36 = vadd.f32 %v1783_v43, %v1472_v33  ;;  %v1492_v48 = vmul.f32 %v9461_v18, %v9461_v18  ;;  %v9466_v33 = vld [vmem:[#allocation186_spill] sm:$0xff]  ;;  %v1486_v42 = vmul.f32 %v9467_v38, %v9467_v38  ;;  %v9468_v18 = vld [vmem:[#allocation191_spill] sm:$0xff] }
 0x14c   :  { %v1788_v9 = vadd.f32 %v1787_v60, %v1475_v19  ;;  %v1491_v19 = vmul.f32 %v9457_v53, %v9457_v53  ;;  %v5515_v60 = vmul.f32 0.0013020834, %v5373_v57  ;;  %v1494_v43 = vmul.f32 %v9466_v33, %v9466_v33 }
 0x14d   :  { %1757 = vadd.xlane.f32.xlu1 %v5375_v40  ;;  %v1796_v40 = vadd.f32 %v1795_v22, %v1482_v55  ;;  %v9456_v22 = vld [vmem:[#allocation181_spill] sm:$0xff] }
 0x14e   :  { %1736 = vadd.xlane.f32.xlu0 %v5346_v3  ;;  %v1477_v55 = vmul.f32 %v9456_v22, %v9456_v22  ;;  %v1789_v12 = vadd.f32 %v1788_v9, %v1476_v23  ;;  %9458 = vst [vmem:[#allocation311_spill] sm:$0xff] %v5515_v60  ;;  %v9465_v9 = vld [vmem:[#allocation188_spill] sm:$0xff]  ;;  %v1808_v17 = vadd.f32 %v1492_v48, %v1491_v19  ;;  %v9471_v48 = vld [vmem:[#allocation187_spill] sm:$0xff] }
 0x14f   :  { %v1797_v14 = vadd.f32 %v1796_v40, %v1483_v51  ;;  %v1485_v3 = vmul.f32 %v9465_v9, %v9465_v9  ;;  %v9469_v23 = vld [vmem:[#allocation184_spill] sm:$0xff]  ;;  %v5542_v51 = vmul.f32 0.0013020834, %v5412_v10  ;;  %v5544_v39 = vpop.xlane.xlu1 %1057  ;;  %v1495_v19 = vmul.f32 %v9471_v48, %v9471_v48  ;;  %v9486_v10 = vld [vmem:[#allocation195_spill] sm:$0xff]  ;;  %v9819_v26 = vld [vmem:[#allocation309_spill] sm:$0xff] }
 0x150   :  { %v1478_v57 = vmul.f32 %v9469_v23, %v9469_v23  ;;  %v1790_v40 = vadd.f32 %v1789_v12, %v1477_v55  ;;  %v9472_v9 = vld [vmem:[#allocation192_spill] sm:$0xff]  ;;  %v9477_v23 = vld [vmem:[#allocation190_spill] sm:$0xff]  ;;  %v5567_v55 = vmul.f32 0.0013020834, %v5422_v37  ;;  %v1504_v37 = vmul.f32 %v9486_v10, %v9486_v10  ;;  %v9517_v22 = vld [vmem:[#allocation211_spill] sm:$0xff] }
 0x151   :  { %1771 = vadd.xlane.f32.xlu1 %v1770_v47  ;;  %v1777_v47 = vadd.f32 %v1776_v5, %v1466_v1  ;;  %v5537_v5 = vpop.xlane.xlu0 %1036  ;;  %v1798_v1 = vadd.f32 %v1797_v14, %v1484_v58  ;;  %9470 = vst [vmem:[#allocation312_spill] sm:$0xff] %v5542_v51  ;;  %v1801_v33 = vadd.f32 %v1486_v42, %v1485_v3  ;;  %v9482_v12 = vld [vmem:[#allocation196_spill] sm:$0xff]  ;;  %v9487_v14 = vld [vmem:[#allocation197_spill] sm:$0xff] }
 0x152   :  { %1750 = vadd.xlane.f32.xlu0 %v5391_v11  ;;  %v1493_v11 = vmul.f32 %v9462_v27, %v9462_v27  ;;  %v1487_v27 = vmul.f32 %v9468_v18, %v9468_v18  ;;  %v1488_v18 = vmul.f32 %v9472_v9, %v9472_v9  ;;  %v1496_v48 = vmul.f32 %v9477_v23, %v9477_v23  ;;  %v9512_v23 = vld [vmem:[#allocation210_spill] sm:$0xff]  ;;  %v9537_v51 = vld [vmem:[#allocation224_spill] sm:$0xff] }
 0x153   :  { %v1791_v3 = vadd.f32 %v1790_v40, %v1478_v57  ;;  %9481 = vst [vmem:[#allocation313_spill] sm:$0xff] %v5567_v55  ;;  %v9490_v40 = vld [vmem:[#allocation198_spill] sm:$0xff]  ;;  %v9544_v55 = vld [vmem:[#allocation223_spill] sm:$0xff] }
 0x154   :  { %v1809_v38 = vadd.f32 %v1808_v17, %v1493_v11  ;;  %v9478_v11 = vld [vmem:[#allocation193_spill] sm:$0xff]  ;;  %v1802_v42 = vadd.f32 %v1801_v33, %v1487_v27 }
 0x155   :  { %1785 = vadd.xlane.f32.xlu1 %v1784_v36  ;;  %v1489_v9 = vmul.f32 %v9478_v11, %v9478_v11  ;;  %v9483_v36 = vld [vmem:[#allocation194_spill] sm:$0xff]  ;;  %v5573_v33 = vpop.xlane.xlu0 %1050  ;;  %v9518_v11 = vld [vmem:[#allocation215_spill] sm:$0xff] }
 0x156   :  { %1764 = vadd.xlane.f32.xlu0 %v1763_v20  ;;  %v1810_v17 = vadd.f32 %v1809_v38, %v1494_v43  ;;  %v1490_v38 = vmul.f32 %v9482_v12, %v9482_v12  ;;  %v1803_v43 = vadd.f32 %v1802_v42, %v1488_v18  ;;  %v1503_v27 = vmul.f32 %v9483_v36, %v9483_v36  ;;  %v9492_v12 = vld [vmem:[#allocation203_spill] sm:$0xff]  ;;  %v9497_v18 = vld [vmem:[#allocation204_spill] sm:$0xff] }
 0x157   :  { %v1497_v36 = vmul.f32 %v9489_v35, %v9489_v35  ;;  %v9496_v42 = vld [vmem:[#allocation199_spill] sm:$0xff]  ;;  %v1511_v60 = vmul.f32 %v9518_v11, %v9518_v11  ;;  %v9535_v11 = vld [vmem:[#allocation221_spill] sm:$0xff] }
 0x158   :  { %v1811_v53 = vadd.f32 %v1810_v17, %v1495_v19  ;;  %v1505_v19 = vmul.f32 %v9487_v14, %v9487_v14  ;;  %v5583_v17 = vpop.xlane.xlu1 %1071  ;;  %v1804_v20 = vadd.f32 %v1803_v43, %v1489_v9  ;;  %v1822_v57 = vadd.f32 %v1504_v37, %v1503_v27 }
 0x159   :  { %1799 = vadd.xlane.f32.xlu1 %v1798_v1  ;;  %v1506_v1 = vmul.f32 %v9490_v40, %v9490_v40  ;;  %v1499_v14 = vmul.f32 %v9492_v12, %v9492_v12  ;;  %v1507_v27 = vmul.f32 %v9496_v42, %v9496_v42  ;;  %v5610_v9 = vmul.f32 0.0013020834, %v5453_v34  ;;  %v9506_v12 = vld [vmem:[#allocation208_spill] sm:$0xff] }
 0x15a   :  { %1778 = vadd.xlane.f32.xlu0 %v1777_v47  ;;  %v1812_v58 = vadd.f32 %v1811_v53, %v1496_v48  ;;  %v9491_v47 = vld [vmem:[#allocation201_spill] sm:$0xff]  ;;  %v1823_v37 = vadd.f32 %v1822_v57, %v1505_v19  ;;  %v1502_v48 = vmul.f32 %v9506_v12, %v9506_v12  ;;  %v1518_v12 = vmul.f32 %v9512_v23, %v9512_v23 }
 0x15b   :  { %v1498_v10 = vmul.f32 %v9491_v47, %v9491_v47  ;;  %v1500_v47 = vmul.f32 %v9497_v18, %v9497_v18  ;;  %9500 = vst [vmem:[#allocation314_spill] sm:$0xff] %v5610_v9 }
 0x15c   :  { %v1824_v19 = vadd.f32 %v1823_v37, %v1506_v1  ;;  %v5621_v43 = vpop.xlane.xlu1 %1085  ;;  %v9508_v37 = vld [vmem:[#allocation207_spill] sm:$0xff] }
 0x15d   :  { %1813 = vadd.xlane.f32.xlu1 %v1812_v58  ;;  %v1815_v35 = vadd.f32 %v1498_v10, %v1497_v36  ;;  %v5613_v58 = vmul.f32 0.0013020834, %v5464_v4  ;;  %v9503_v36 = vld [vmem:[#allocation205_spill] sm:$0xff]  ;;  %v1519_v4 = vmul.f32 %v9517_v22, %v9517_v22 }
 0x15e   :  { %1792 = vadd.xlane.f32.xlu0 %v1791_v3  ;;  %v1805_v3 = vadd.f32 %v1804_v20, %v1490_v38  ;;  %v5615_v20 = vpop.xlane.xlu0 %1064  ;;  %v9502_v38 = vld [vmem:[#allocation202_spill] sm:$0xff]  ;;  %v1501_v10 = vmul.f32 %v9503_v36, %v9503_v36  ;;  %v1825_v59 = vadd.f32 %v1824_v19, %v1507_v27  ;;  %v1516_v36 = vmul.f32 %v9508_v37, %v9508_v37  ;;  %v9514_v19 = vld [vmem:[#allocation213_spill] sm:$0xff] }
 0x15f   :  { %9501 = vst [vmem:[#allocation315_spill] sm:$0xff] %v5613_v58  ;;  %v1508_v57 = vmul.f32 %v9502_v38, %v9502_v38  ;;  %v1816_v40 = vadd.f32 %v1815_v35, %v1499_v14  ;;  %v9509_v35 = vld [vmem:[#allocation209_spill] sm:$0xff]  ;;  %v9513_v38 = vld [vmem:[#allocation212_spill] sm:$0xff]  ;;  %v1510_v37 = vmul.f32 %v9514_v19, %v9514_v19 }
 0x160   :  { %v1517_v14 = vmul.f32 %v9509_v35, %v9509_v35  ;;  %v9534_v35 = vld [vmem:[#allocation219_spill] sm:$0xff] }
 0x161   :  { %v1817_v1 = vadd.f32 %v1816_v40, %v1500_v47  ;;  %v1826_v27 = vadd.f32 %v1825_v59, %v1508_v57  ;;  %v9519_v57 = vld [vmem:[#allocation216_spill] sm:$0xff]  ;;  %v1528_v19 = vmul.f32 %v9534_v35, %v9534_v35  ;;  %v9539_v35 = vld [vmem:[#allocation225_spill] sm:$0xff] }
 0x162   :  { %1806 = vadd.xlane.f32.xlu0 %v1805_v3  ;;  %v9507_v3 = vld [vmem:[#allocation206_spill] sm:$0xff]  ;;  %v5653_v23 = vpop.xlane.xlu0 %1078 }
 0x163   :  { %v1515_v53 = vmul.f32 %v9507_v3, %v9507_v3  ;;  %v1509_v3 = vmul.f32 %v9513_v38, %v9513_v38  ;;  %v1818_v47 = vadd.f32 %v1817_v1, %v1501_v10  ;;  %1827 = vadd.xlane.f32.xlu1 %v1826_v27  ;;  %v5657_v1 = vpop.xlane.xlu1 %1099  ;;  %v5666_v38 = vmul.f32 0.0013020834, %v5497_v32 }
 0x165   :  { %v1836_v40 = vadd.f32 %v1516_v36, %v1515_v53  ;;  %v1819_v59 = vadd.f32 %v1818_v47, %v1502_v48  ;;  %v1512_v36 = vmul.f32 %v9519_v57, %v9519_v57  ;;  %v1829_v10 = vadd.f32 %v1510_v37, %v1509_v3  ;;  %9523 = vst [vmem:[#allocation316_spill] sm:$0xff] %v5666_v38  ;;  %v9524_v48 = vld [vmem:[#allocation214_spill] sm:$0xff]  ;;  %v9525_v3 = vld [vmem:[#allocation217_spill] sm:$0xff]  ;;  %v9530_v57 = vld [vmem:[#allocation220_spill] sm:$0xff] }
 0x166   :  { %v1513_v37 = vmul.f32 %v9525_v3, %v9525_v3  ;;  %v1553_v38 = vmul.f32 %v9580_v54, %v9580_v54  ;;  %v9585_v54 = vld [vmem:[#allocation251_spill] sm:$0xff] }
 0x167   :  { %v1837_v53 = vadd.f32 %v1836_v40, %v1517_v14  ;;  %1820 = vadd.xlane.f32.xlu0 %v1819_v59  ;;  %v1520_v14 = vmul.f32 %v9524_v48, %v9524_v48  ;;  %v1830_v47 = vadd.f32 %v1829_v10, %v1511_v60  ;;  %v9531_v48 = vld [vmem:[#allocation218_spill] sm:$0xff]  ;;  %v1529_v59 = vmul.f32 %v9535_v11, %v9535_v11  ;;  %v5698_v18 = vpop.xlane.xlu1 %1113  ;;  %v9540_v11 = vld [vmem:[#allocation227_spill] sm:$0xff] }
 0x168   :  { %v1527_v60 = vmul.f32 %v9531_v48, %v9531_v48  ;;  %v1521_v48 = vmul.f32 %v9537_v51, %v9537_v51  ;;  %v9538_v10 = vld [vmem:[#allocation222_spill] sm:$0xff]  ;;  %v1523_v3 = vmul.f32 %v9540_v11, %v9540_v11  ;;  %v9545_v51 = vld [vmem:[#allocation228_spill] sm:$0xff] }
 0x169   :  { %v1838_v27 = vadd.f32 %v1837_v53, %v1518_v12  ;;  %v1514_v12 = vmul.f32 %v9530_v57, %v9530_v57  ;;  %v1831_v53 = vadd.f32 %v1830_v47, %v1512_v36  ;;  %v1530_v34 = vmul.f32 %v9538_v10, %v9538_v10 }
 0x16a   :  { %v1850_v40 = vadd.f32 %v1528_v19, %v1527_v60  ;;  %v1522_v57 = vmul.f32 %v9539_v35, %v9539_v35  ;;  %v1531_v19 = vmul.f32 %v9544_v55, %v9544_v55  ;;  %v1524_v35 = vmul.f32 %v9545_v51, %v9545_v51 }
 0x16b   :  { %v1839_v42 = vadd.f32 %v1838_v27, %v1519_v4  ;;  %v5692_v4 = vpop.xlane.xlu0 %1092  ;;  %v1832_v32 = vadd.f32 %v1831_v53, %v1513_v37  ;;  %v9551_v53 = vld [vmem:[#allocation229_spill] sm:$0xff]  ;;  %v5738_v11 = vpop.xlane.xlu1 %1127  ;;  %v1534_v36 = vmul.f32 %v9563_v8, %v9563_v8 }
 0x16c   :  { %v1851_v60 = vadd.f32 %v1850_v40, %v1529_v59  ;;  %v1843_v10 = vadd.f32 %v1522_v57, %v1521_v48  ;;  %v1525_v57 = vmul.f32 %v9551_v53, %v9551_v53 }
 0x16d   :  { %v1840_v47 = vadd.f32 %v1839_v42, %v1520_v14  ;;  %v1833_v27 = vadd.f32 %v1832_v32, %v1514_v12  ;;  %v9555_v12 = vld [vmem:[#allocation230_spill] sm:$0xff]  ;;  %v9558_v14 = vld [vmem:[#allocation231_spill] sm:$0xff] }
 0x16e   :  { %v1852_v59 = vadd.f32 %v1851_v60, %v1530_v34  ;;  %v1844_v48 = vadd.f32 %v1843_v10, %v1523_v3  ;;  %v1539_v32 = vmul.f32 %v9555_v12, %v9555_v12  ;;  %v9556_v10 = vld [vmem:[#allocation232_spill] sm:$0xff]  ;;  %v1541_v12 = vmul.f32 %v9559_v7, %v9559_v7  ;;  %v9564_v42 = vld [vmem:[#allocation239_spill] sm:$0xff] }
 0x16f   :  { %1841 = vadd.xlane.f32.xlu1 %v1840_v47  ;;  %1834 = vadd.xlane.f32.xlu0 %v1833_v27  ;;  %v9550_v47 = vld [vmem:[#allocation226_spill] sm:$0xff]  ;;  %v5728_v37 = vpop.xlane.xlu0 %1106  ;;  %v1526_v60 = vmul.f32 %v9556_v10, %v9556_v10  ;;  %v1540_v27 = vmul.f32 %v9558_v14, %v9558_v14  ;;  %v1535_v45 = vmul.f32 %v9564_v42, %v9564_v42  ;;  %v5775_v7 = vpop.xlane.xlu1 %1141  ;;  %v9818_v10 = vld [vmem:[#allocation308_spill] sm:$0xff] }
 0x170   :  { %v1532_v40 = vmul.f32 %v9550_v47, %v9550_v47  ;;  %v1853_v3 = vadd.f32 %v1852_v59, %v1531_v19  ;;  %v1845_v9 = vadd.f32 %v1844_v48, %v1524_v35  ;;  %v5753_v19 = vmul.f32 0.0013020834, %v5503_v16  ;;  %v9561_v59 = vld [vmem:[#allocation236_spill] sm:$0xff]  ;;  %v9562_v48 = vld [vmem:[#allocation234_spill] sm:$0xff] }
 0x171   :  { %v1533_v35 = vmul.f32 %v9561_v59, %v9561_v59  ;;  %v1542_v22 = vmul.f32 %v9562_v48, %v9562_v48  ;;  %v1864_v34 = vadd.f32 %v1540_v27, %v1539_v32  ;;  %v9566_v32 = vld [vmem:[#allocation235_spill] sm:$0xff]  ;;  %v9567_v59 = vld [vmem:[#allocation240_spill] sm:$0xff] }
 0x172   :  { %v1854_v53 = vadd.f32 %v1853_v3, %v1532_v40  ;;  %v1846_v51 = vadd.f32 %v1845_v9, %v1525_v57  ;;  %9560 = vst [vmem:[#allocation317_spill] sm:$0xff] %v5753_v19  ;;  %v1543_v27 = vmul.f32 %v9566_v32, %v9566_v32  ;;  %v1536_v42 = vmul.f32 %v9567_v59, %v9567_v59  ;;  %v9579_v9 = vld [vmem:[#allocation243_spill] sm:$0xff] }
 0x173   :  { %v5769_v3 = vpop.xlane.xlu0 %1120  ;;  %v1865_v8 = vadd.f32 %v1864_v34, %v1541_v12  ;;  %v1857_v48 = vadd.f32 %v1534_v36, %v1533_v35  ;;  %v9569_v12 = vld [vmem:[#allocation238_spill] sm:$0xff]  ;;  %v9570_v36 = vld [vmem:[#allocation241_spill] sm:$0xff]  ;;  %v5817_v50 = vpop.xlane.xlu1 %1155  ;;  %v1546_v19 = vmul.f32 %v9584_v0, %v9584_v0 }
 0x174   :  { %1855 = vadd.xlane.f32.xlu1 %v1854_v53  ;;  %v1847_v57 = vadd.f32 %v1846_v51, %v1526_v60  ;;  %v5784_v53 = vmul.f32 0.0013020834, %v5537_v5  ;;  %v1544_v34 = vmul.f32 %v9569_v12, %v9569_v12  ;;  %v1537_v35 = vmul.f32 %v9570_v36, %v9570_v36  ;;  %v9589_v36 = vld [vmem:[#allocation247_spill] sm:$0xff]  ;;  %v9605_v12 = vld [vmem:[#allocation257_spill] sm:$0xff] }
 0x175   :  { %v1866_v60 = vadd.f32 %v1865_v8, %v1542_v22  ;;  %v1858_v40 = vadd.f32 %v1857_v48, %v1535_v45  ;;  %v1551_v5 = vmul.f32 %v9574_v29, %v9574_v29  ;;  %v9576_v22 = vld [vmem:[#allocation244_spill] sm:$0xff]  ;;  %v1552_v51 = vmul.f32 %v9579_v9, %v9579_v9  ;;  %v9583_v48 = vld [vmem:[#allocation246_spill] sm:$0xff] }
 0x176   :  { %1848 = vadd.xlane.f32.xlu0 %v1847_v57  ;;  %9568 = vst [vmem:[#allocation318_spill] sm:$0xff] %v5784_v53  ;;  %v1538_v58 = vmul.f32 %v9576_v22, %v9576_v22  ;;  %v1554_v57 = vmul.f32 %v9583_v48, %v9583_v48  ;;  %v1547_v9 = vmul.f32 %v9585_v54, %v9585_v54  ;;  %v9590_v48 = vld [vmem:[#allocation252_spill] sm:$0xff] }
 0x177   :  { %v1867_v8 = vadd.f32 %v1866_v60, %v1543_v27  ;;  %v1859_v45 = vadd.f32 %v1858_v40, %v1536_v42  ;;  %v5810_v29 = vpop.xlane.xlu0 %1134  ;;  %v5813_v60 = vmul.f32 0.0013020834, %v5544_v39  ;;  %v9582_v42 = vld [vmem:[#allocation248_spill] sm:$0xff]  ;;  %v1878_v16 = vadd.f32 %v1552_v51, %v1551_v5  ;;  %v5858_v39 = vpop.xlane.xlu1 %1169 }
 0x178   :  { %v1545_v40 = vmul.f32 %v9582_v42, %v9582_v42  ;;  %v1555_v51 = vmul.f32 %v9589_v36, %v9589_v36  ;;  %v1548_v0 = vmul.f32 %v9590_v48, %v9590_v48  ;;  %v9801_v36 = vld [vmem:[#allocation303_spill] sm:$0xff] }
 0x179   :  { %v1868_v2 = vadd.f32 %v1867_v8, %v1544_v34  ;;  %v1860_v27 = vadd.f32 %v1859_v45, %v1537_v35  ;;  %9581 = vst [vmem:[#allocation319_spill] sm:$0xff] %v5813_v60  ;;  %v1879_v5 = vadd.f32 %v1878_v16, %v1553_v38  ;;  %v9600_v8 = vld [vmem:[#allocation254_spill] sm:$0xff]  ;;  %v9610_v35 = vld [vmem:[#allocation263_spill] sm:$0xff]  ;;  %v9634_v60 = vld [vmem:[#allocation273_spill] sm:$0xff] }
 0x17a   :  { %v1871_v59 = vadd.f32 %v1546_v19, %v1545_v40  ;;  %v1563_v54 = vmul.f32 %v9600_v8, %v9600_v8  ;;  %v1565_v8 = vmul.f32 %v9605_v12, %v9605_v12 }
 0x17b   :  { %1869 = vadd.xlane.f32.xlu1 %v1868_v2  ;;  %v1861_v22 = vadd.f32 %v1860_v27, %v1538_v58  ;;  %v5842_v2 = vmul.f32 0.0013020834, %v5573_v33  ;;  %v9595_v58 = vld [vmem:[#allocation250_spill] sm:$0xff]  ;;  %v1880_v16 = vadd.f32 %v1879_v5, %v1554_v57  ;;  %v9596_v27 = vld [vmem:[#allocation253_spill] sm:$0xff]  ;;  %v5848_v45 = vpop.xlane.xlu0 %1148  ;;  %v9604_v33 = vld [vmem:[#allocation255_spill] sm:$0xff]  ;;  %v1559_v57 = vmul.f32 %v9610_v35, %v9610_v35 }
 0x17c   :  { %v1556_v38 = vmul.f32 %v9595_v58, %v9595_v58  ;;  %v1549_v19 = vmul.f32 %v9596_v27, %v9596_v27  ;;  %v1872_v40 = vadd.f32 %v1871_v59, %v1547_v9  ;;  %v9602_v9 = vld [vmem:[#allocation256_spill] sm:$0xff]  ;;  %v1564_v42 = vmul.f32 %v9604_v33, %v9604_v33 }
 0x17d   :  { %1862 = vadd.xlane.f32.xlu0 %v1861_v22  ;;  %9594 = vst [vmem:[#allocation320_spill] sm:$0xff] %v5842_v2  ;;  %v1881_v59 = vadd.f32 %v1880_v16, %v1555_v51  ;;  %v1550_v53 = vmul.f32 %v9602_v9, %v9602_v9  ;;  %v5873_v51 = vmul.f32 0.0013020834, %v5583_v17  ;;  %v9607_v16 = vld [vmem:[#allocation260_spill] sm:$0xff]  ;;  %v1558_v22 = vmul.f32 %v9609_v24, %v9609_v24  ;;  %v5895_v9 = vpop.xlane.xlu1 %1183 }
 0x17e   :  { %v1873_v27 = vadd.f32 %v1872_v40, %v1548_v0  ;;  %v1557_v0 = vmul.f32 %v9607_v16, %v9607_v16  ;;  %v9608_v40 = vld [vmem:[#allocation258_spill] sm:$0xff]  ;;  %v1892_v5 = vadd.f32 %v1564_v42, %v1563_v54  ;;  %v9614_v54 = vld [vmem:[#allocation259_spill] sm:$0xff] }
 0x17f   :  { %v1882_v48 = vadd.f32 %v1881_v59, %v1556_v38  ;;  %9606 = vst [vmem:[#allocation321_spill] sm:$0xff] %v5873_v51  ;;  %v1566_v34 = vmul.f32 %v9608_v40, %v9608_v40  ;;  %v5889_v12 = vpop.xlane.xlu0 %1162  ;;  %v1567_v42 = vmul.f32 %v9614_v54, %v9614_v54  ;;  %v9615_v40 = vld [vmem:[#allocation264_spill] sm:$0xff]  ;;  %v9629_v59 = vld [vmem:[#allocation267_spill] sm:$0xff]  ;;  %v1570_v51 = vmul.f32 %v9634_v60, %v9634_v60 }
 0x180   :  { %v1874_v58 = vadd.f32 %v1873_v27, %v1549_v19  ;;  %v1893_v24 = vadd.f32 %v1892_v5, %v1565_v8  ;;  %v1560_v35 = vmul.f32 %v9615_v40, %v9615_v40  ;;  %v1885_v33 = vadd.f32 %v1558_v22, %v1557_v0  ;;  %v9619_v8 = vld [vmem:[#allocation262_spill] sm:$0xff]  ;;  %v9620_v22 = vld [vmem:[#allocation265_spill] sm:$0xff] }
 0x181   :  { %1883 = vadd.xlane.f32.xlu1 %v1882_v48  ;;  %v1568_v5 = vmul.f32 %v9619_v8, %v9619_v8  ;;  %v1561_v0 = vmul.f32 %v9620_v22, %v9620_v22  ;;  %v1576_v48 = vmul.f32 %v9629_v59, %v9629_v59  ;;  %v5937_v38 = vpop.xlane.xlu1 %1197  ;;  %v9639_v8 = vld [vmem:[#allocation271_spill] sm:$0xff] }
 0x182   :  { %v1875_v16 = vadd.f32 %v1874_v58, %v1550_v53  ;;  %v5904_v58 = vmul.f32 0.0013020834, %v5615_v20  ;;  %v1894_v19 = vadd.f32 %v1893_v24, %v1566_v34  ;;  %v1886_v27 = vadd.f32 %v1885_v33, %v1559_v57  ;;  %v9624_v53 = vld [vmem:[#allocation266_spill] sm:$0xff]  ;;  %v9626_v34 = vld [vmem:[#allocation268_spill] sm:$0xff] }
 0x183   :  { %v1575_v20 = vmul.f32 %v9624_v53, %v9624_v53  ;;  %v1562_v22 = vmul.f32 %v9626_v34, %v9626_v34  ;;  %v1577_v53 = vmul.f32 %v9630_v63, %v9630_v63  ;;  %v5930_v40 = vpop.xlane.xlu0 %1176  ;;  %v9633_v57 = vld [vmem:[#allocation270_spill] sm:$0xff]  ;;  %v9635_v63 = vld [vmem:[#allocation275_spill] sm:$0xff] }
 0x184   :  { %1876 = vadd.xlane.f32.xlu0 %v1875_v16  ;;  %9618 = vst [vmem:[#allocation322_spill] sm:$0xff] %v5904_v58  ;;  %v1895_v24 = vadd.f32 %v1894_v19, %v1567_v42  ;;  %v1887_v33 = vadd.f32 %v1886_v27, %v1560_v35  ;;  %v5933_v42 = vmul.f32 0.0013020834, %v5621_v43  ;;  %v9632_v35 = vld [vmem:[#allocation272_spill] sm:$0xff]  ;;  %v1578_v16 = vmul.f32 %v9633_v57, %v9633_v57 }
 0x185   :  { %v1569_v27 = vmul.f32 %v9632_v35, %v9632_v35  ;;  %v1906_v17 = vadd.f32 %v1576_v48, %v1575_v20  ;;  %v1571_v59 = vmul.f32 %v9635_v63, %v9635_v63  ;;  %v1579_v48 = vmul.f32 %v9639_v8, %v9639_v8  ;;  %v9640_v57 = vld [vmem:[#allocation276_spill] sm:$0xff]  ;;  %v9646_v35 = vld [vmem:[#allocation278_spill] sm:$0xff]  ;;  %v5978_v61 = vpop.xlane.xlu1 %1211  ;;  %v9650_v63 = vld [vmem:[#allocation281_spill] sm:$0xff] }
 0x186   :  { %v1896_v2 = vadd.f32 %v1895_v24, %v1568_v5  ;;  %v1888_v19 = vadd.f32 %v1887_v33, %v1561_v0  ;;  %9631 = vst [vmem:[#allocation323_spill] sm:$0xff] %v5933_v42  ;;  %v1572_v60 = vmul.f32 %v9640_v57, %v9640_v57  ;;  %v1587_v24 = vmul.f32 %v9646_v35, %v9646_v35  ;;  %v3125_v57 = vld [vmem:[#allocation8] sm:$0x3f] }
 0x187   :  { %v1907_v20 = vadd.f32 %v1906_v17, %v1577_v53  ;;  %v1899_v54 = vadd.f32 %v1570_v51, %v1569_v27  ;;  %v5968_v33 = vpop.xlane.xlu0 %1190  ;;  %v1589_v5 = vmul.f32 %v9650_v63, %v9650_v63 }
 0x188   :  { %1897 = vadd.xlane.f32.xlu1 %v1896_v2  ;;  %v1889_v34 = vadd.f32 %v1888_v19, %v1562_v22  ;;  %v5962_v2 = vmul.f32 0.0013020834, %v5653_v23  ;;  %v9642_v22 = vld [vmem:[#allocation274_spill] sm:$0xff]  ;;  %v9643_v19 = vld [vmem:[#allocation277_spill] sm:$0xff]  ;;  %v9649_v23 = vld [vmem:[#allocation279_spill] sm:$0xff] }
 0x189   :  { %v1580_v17 = vmul.f32 %v9642_v22, %v9642_v22  ;;  %v1908_v53 = vadd.f32 %v1907_v20, %v1578_v16  ;;  %v1573_v51 = vmul.f32 %v9643_v19, %v9643_v19  ;;  %v1900_v27 = vadd.f32 %v1899_v54, %v1571_v59  ;;  %v9647_v54 = vld [vmem:[#allocation280_spill] sm:$0xff] }
 0x18a   :  { %1890 = vadd.xlane.f32.xlu0 %v1889_v34  ;;  %v1574_v20 = vmul.f32 %v9647_v54, %v9647_v54  ;;  %v1588_v30 = vmul.f32 %v9649_v23, %v9649_v23  ;;  %v1582_v34 = vmul.f32 %v9653_v56, %v9653_v56  ;;  %v6015_v23 = vpop.xlane.xlu1 %1225  ;;  %v9812_v22 = vlaneseq  ;;  %v9817_v54 = vld [vmem:[#allocation307_spill] sm:$0xff] }
 0x18b   :  { %v1909_v59 = vadd.f32 %v1908_v53, %v1579_v48  ;;  %v1901_v43 = vadd.f32 %v1900_v27, %v1572_v60  ;;  %v5993_v48 = vmul.f32 0.0013020834, %v5657_v1  ;;  %v9651_v53 = vld [vmem:[#allocation284_spill] sm:$0xff]  ;;  %v9652_v27 = vld [vmem:[#allocation282_spill] sm:$0xff] }
 0x18c   :  { %v1581_v60 = vmul.f32 %v9651_v53, %v9651_v53  ;;  %v1590_v0 = vmul.f32 %v9652_v27, %v9652_v27  ;;  %v1920_v16 = vadd.f32 %v1588_v30, %v1587_v24  ;;  %v6009_v53 = vpop.xlane.xlu0 %1204  ;;  %v9657_v30 = vld [vmem:[#allocation283_spill] sm:$0xff]  ;;  %v9658_v27 = vld [vmem:[#allocation288_spill] sm:$0xff]  ;;  %v2808_v8 = vshrl.u32 %v9812_v22, 7 }
 0x18d   :  { %v1910_v58 = vadd.f32 %v1909_v59, %v1580_v17  ;;  %v1902_v35 = vadd.f32 %v1901_v43, %v1573_v51  ;;  %v1591_v24 = vmul.f32 %v9657_v30, %v9657_v30  ;;  %v1584_v44 = vmul.f32 %v9658_v27, %v9658_v27  ;;  %v9661_v51 = vld [vmem:[#allocation290_spill] sm:$0xff]  ;;  %v9665_v30 = vld [vmem:[#allocation293_spill] sm:$0xff] }
 0x18e   :  { %v1921_v56 = vadd.f32 %v1920_v16, %v1589_v5  ;;  %v1913_v63 = vadd.f32 %v1582_v34, %v1581_v60  ;;  %v9659_v5 = vld [vmem:[#allocation286_spill] sm:$0xff]  ;;  %v9660_v34 = vld [vmem:[#allocation289_spill] sm:$0xff]  ;;  %v2809_v14 = vsub.s32 0, %v2808_v8  ;;  %v2813_v19 = vsub.s32 1, %v2808_v8 }
 0x18f   :  { %1911 = vadd.xlane.f32.xlu1 %v1910_v58  ;;  %v1903_v59 = vadd.f32 %v1902_v35, %v1574_v20  ;;  %v6024_v35 = vmul.f32 0.0013020834, %v5692_v4  ;;  %v1592_v16 = vmul.f32 %v9659_v5, %v9659_v5  ;;  %v1585_v60 = vmul.f32 %v9660_v34, %v9660_v34  ;;  %v9664_v5 = vld [vmem:[#allocation291_spill] sm:$0xff] }
 0x190   :  { %v1922_v20 = vadd.f32 %v1921_v56, %v1590_v0  ;;  %v1914_v17 = vadd.f32 %v1913_v63, %v1583_v13  ;;  %v1599_v4 = vmul.f32 %v9661_v51, %v9661_v51  ;;  %v9662_v0 = vld [vmem:[#allocation292_spill] sm:$0xff]  ;;  %v1600_v58 = vmul.f32 %v9664_v5, %v9664_v5  ;;  %v6050_v15 = vpop.xlane.xlu0 %1218  ;;  %v9668_v5 = vld [vmem:[#allocation297_spill] sm:$0xff] }
 0x191   :  { %1904 = vadd.xlane.f32.xlu0 %v1903_v59  ;;  %v1586_v34 = vmul.f32 %v9662_v0, %v9662_v0  ;;  %v1601_v51 = vmul.f32 %v9665_v30, %v9665_v30  ;;  %v9667_v0 = vld [vmem:[#allocation294_spill] sm:$0xff]  ;;  %v1594_v46 = vmul.f32 %v9668_v5, %v9668_v5  ;;  %v9669_v30 = vld [vmem:[#allocation299_spill] sm:$0xff]  ;;  %v2829_v47 = vsub.s32 5, %v2808_v8 }
 0x192   :  { %v1923_v56 = vadd.f32 %v1922_v20, %v1591_v24  ;;  %v1915_v13 = vadd.f32 %v1914_v17, %v1584_v44  ;;  %v6053_v20 = vmul.f32 0.0013020834, %v5698_v18  ;;  %v9666_v44 = vld [vmem:[#allocation296_spill] sm:$0xff]  ;;  %v1602_v59 = vmul.f32 %v9667_v0, %v9667_v0 }
 0x193   :  { %v1593_v17 = vmul.f32 %v9666_v44, %v9666_v44  ;;  %v1934_v1 = vadd.f32 %v1600_v58, %v1599_v4  ;;  %v1595_v21 = vmul.f32 %v9669_v30, %v9669_v30  ;;  %v1603_v58 = vmul.f32 %v9672_v6, %v9672_v6  ;;  %v9673_v0 = vld [vmem:[#allocation300_spill] sm:$0xff] }
 0x194   :  { %v1924_v27 = vadd.f32 %v1923_v56, %v1592_v16  ;;  %v1916_v24 = vadd.f32 %v1915_v13, %v1585_v60  ;;  %v1596_v5 = vmul.f32 %v9673_v0, %v9673_v0  ;;  %v6097_v18 = vmul.f32 0.0013020834, %v5738_v11 }
 0x195   :  { %v6057_v63 = vpop.xlane.xlu1 %1239  ;;  %v1935_v4 = vadd.f32 %v1934_v1, %v1601_v51  ;;  %v1927_v52 = vadd.f32 %v1594_v46, %v1593_v17  ;;  %v6112_v13 = vmul.f32 0.0013020834, %v5769_v3  ;;  %v6125_v3 = vmul.f32 0.0013020834, %v5775_v7 }
 0x196   :  { %1925 = vadd.xlane.f32.xlu1 %v1924_v27  ;;  %v1917_v44 = vadd.f32 %v1916_v24, %v1586_v34  ;;  %v6082_v27 = vmul.f32 0.0013020834, %v5728_v37  ;;  %v9678_v34 = vld [vmem:[#allocation298_spill] sm:$0xff]  ;;  %v9679_v24 = vld [vmem:[#allocation301_spill] sm:$0xff]  ;;  %9683 = vst [vmem:[#allocation325_spill] sm:$0xff] %v6097_v18  ;;  %v9843_v18 = vld [vmem:[#allocation20_spill] sm:$0xff] }
 0x197   :  { %v1604_v1 = vmul.f32 %v9678_v34, %v9678_v34  ;;  %v1936_v51 = vadd.f32 %v1935_v4, %v1602_v59  ;;  %v1597_v46 = vmul.f32 %v9679_v24, %v9679_v24  ;;  %v1928_v17 = vadd.f32 %v1927_v52, %v1595_v21  ;;  %v9685_v52 = vld [vmem:[#allocation302_spill] sm:$0xff]  ;;  %9689 = vst [vmem:[#allocation326_spill] sm:$0xff] %v6112_v13  ;;  %v9841_v13 = vld [vmem:[#allocation40_spill] sm:$0xff] }
 0x198   :  { %1918 = vadd.xlane.f32.xlu0 %v1917_v44  ;;  %9677 = vst [vmem:[#allocation324_spill] sm:$0xff] %v6082_v27  ;;  %v1598_v24 = vmul.f32 %v9685_v52, %v9685_v52  ;;  %9695 = vst [vmem:[#allocation327_spill] sm:$0xff] %v6125_v3  ;;  %v6152_v7 = vmul.f32 0.0013020834, %v5810_v29  ;;  %v6175_v11 = vmul.f32 0.0013020834, %v5858_v39 }
 0x199   :  { %v1937_v21 = vadd.f32 %v1936_v51, %v1603_v58  ;;  %v1929_v60 = vadd.f32 %v1928_v17, %v1596_v5  ;;  %v6250_v4 = vmul.f32 0.0013020834, %v5930_v40  ;;  %v6261_v51 = vmul.f32 0.0013020834, %v5937_v38  ;;  %v9757_v39 = vld [vmem:[#allocation306_spill] sm:$0xff]  ;;  %v9797_v40 = vld [vmem:[#allocation305_spill] sm:$0xff] }
 0x19a   :  { %v6088_v0 = vpop.xlane.xlu0 %1232  ;;  %9704 = vst [vmem:[#allocation328_spill] sm:$0xff] %v6152_v7  ;;  %9714 = vst [vmem:[#allocation331_spill] sm:$0xff] %v6175_v11  ;;  %v6273_v30 = vmul.f32 0.0013020834, %v5978_v61  ;;  %v6279_v38 = vmul.f32 0.0013020834, %v6015_v23  ;;  %v6473_v58 = vrot.slane %v3125_v57, %v2829_v47 }
 0x19b   :  { %v1938_v52 = vadd.f32 %v1937_v21, %v1604_v1  ;;  %v1930_v5 = vadd.f32 %v1929_v60, %v1597_v46  ;;  %v6161_v46 = vmul.f32 0.0013020834, %v5817_v50  ;;  %v6178_v50 = vmul.f32 0.0013020834, %v5889_v12  ;;  %9747 = vst [vmem:[#allocation334_spill] sm:$0xff] %v6250_v4  ;;  %9751 = vst [vmem:[#allocation335_spill] sm:$0xff] %v6261_v51 }
 0x19c   :  { %v6270_v12 = vmul.f32 0.0013020834, %v5968_v33  ;;  %9754 = vst [vmem:[#allocation337_spill] sm:$0xff] %v6273_v30  ;;  %9756 = vst [vmem:[#allocation339_spill] sm:$0xff] %v6279_v38  ;;  %v9761_v1 = vld [vmem:[#allocation304_spill] sm:$0xff]  ;;  %v2821_v4 = vsub.s32 3, %v2808_v8 }
 0x19d   :  { %1939 = vadd.xlane.f32.xlu1 %v1938_v52  ;;  %v1931_v37 = vadd.f32 %v1930_v5, %v1598_v24  ;;  %9708 = vst [vmem:[#allocation329_spill] sm:$0xff] %v6161_v46  ;;  %v6172_v5 = vmul.f32 0.0013020834, %v5848_v45  ;;  %9715 = vst [vmem:[#allocation332_spill] sm:$0xff] %v6178_v50  ;;  %v6187_v24 = vmul.f32 0.0013020834, %v5895_v9  ;;  %v6283_v52 = vmul.f32 %v9757_v39, %v9757_v39 }
 0x19e   :  { %9753 = vst [vmem:[#allocation336_spill] sm:$0xff] %v6270_v12  ;;  %v6276_v9 = vmul.f32 0.0013020834, %v6009_v53  ;;  %v6293_v53 = vmul.f32 %v9761_v1, %v9761_v1  ;;  %v6365_v23 = vmul.f32 0.0013020834, %v6057_v63  ;;  %v9826_v50 = vld [vmem:[#allocation316_spill] sm:$0xff] }
 0x19f   :  { %v6099_v34 = vpop.xlane.xlu1 %1253  ;;  %1932 = vadd.xlane.f32.xlu0 %v1931_v37  ;;  %9713 = vst [vmem:[#allocation330_spill] sm:$0xff] %v6172_v5  ;;  %9719 = vst [vmem:[#allocation333_spill] sm:$0xff] %v6187_v24  ;;  %v6354_v24 = vmul.f32 0.0013020834, %v6050_v15  ;;  %v6376_v32 = vmul.f32 0.0013020834, %v6088_v0  ;;  %v6389_v15 = vmul.f32 %v9797_v40, %v9797_v40  ;;  %v1993_v0 = vmul.f32 %v9818_v10, %v9818_v10 }
 0x1a0   :  { %9755 = vst [vmem:[#allocation338_spill] sm:$0xff] %v6276_v9  ;;  %9789 = vst [vmem:[#allocation304_spill] sm:$0xff] %v6365_v23  ;;  %v6379_v55 = vmul.f32 0.0013020834, %v6099_v34  ;;  %v2805_v30 = vld [vmem:[#allocation7] sm:$0x3f]  ;;  %v2001_v11 = vmul.f32 %v9826_v50, %v9826_v50 }
 0x1a1   :  { %9785 = vst [vmem:[#allocation306_spill] sm:$0xff] %v6354_v24  ;;  %9793 = vst [vmem:[#allocation340_spill] sm:$0xff] %v6376_v32  ;;  %v6465_v12 = vrot.slane %v2805_v30, %v2829_v47  ;;  %v9839_v46 = vld [vmem:[#allocation37_spill] sm:$0xff] }
 0x1a2   :  { %9794 = vst [vmem:[#allocation341_spill] sm:$0xff] %v6379_v55  ;;  %v6457_v55 = vrot.slane %v3125_v57, %v2813_v19  ;;  %v9840_v7 = vsub.f32 %v9839_v46, %v9757_v39  ;;  %v9845_v27 = vld [vmem:[#allocation21_spill] sm:$0xff] }
 0x1a4   :  { %v6133_v21 = vpop.xlane.xlu0 %1246 }
 0x1a5   :  { %v6382_v63 = vmul.f32 0.0013020834, %v6133_v21  ;;  %v1991_v21 = vmul.f32 %v9801_v36, %v9801_v36 }
 0x1a7   :  { %9795 = vst [vmem:[#allocation342_spill] sm:$0xff] %v6382_v63  ;;  %v2825_v63 = vsub.s32 4, %v2808_v8 }
 0x1a9   :  { %v6463_v24 = vrot.slane %v2805_v30, %v2825_v63  ;;  %v6471_v17 = vrot.slane %v3125_v57, %v2825_v63 }
 0x1aa   :  { %v6143_v31 = vpop.xlane.xlu1 %1267 }
 0x1ab   :  { %v6385_v61 = vmul.f32 0.0013020834, %v6143_v31 }
 0x1ad   :  { %9796 = vst [vmem:[#allocation343_spill] sm:$0xff] %v6385_v61  ;;  %v1994_v61 = vmul.f32 %v9817_v54, %v9817_v54 }
 0x1ae   :  { %v6199_v44 = vpop.xlane.xlu1 %1617 }
 0x1af   :  { %v6189_v45 = vpop.xlane.xlu0 %1260  ;;  %v1942_v31 = vmul.f32 0.0013020834, %v6199_v44  ;;  %v6451_v44 = vrot.slane %v2805_v30, %v2809_v14 }
 0x1b0   :  { %v6441_v9 = vmul.f32 0.0013020834, %v6189_v45  ;;  %v2817_v45 = vsub.s32 2, %v2808_v8  ;;  %v6469_v8 = vrot.slane %v3125_v57, %v2821_v4 }
 0x1b2   :  { %v6252_v37 = vpop.xlane.xlu1 %1631  ;;  %9816 = vst [vmem:[#allocation305_spill] sm:$0xff] %v6441_v9  ;;  %v6459_v23 = vrot.slane %v2805_v30, %v2817_v45  ;;  %v6467_v51 = vrot.slane %v3125_v57, %v2817_v45  ;;  %v1996_v45 = vmul.f32 %v9819_v26, %v9819_v26 }
 0x1b3   :  { %v6241_v16 = vpop.xlane.xlu0 %1610  ;;  %v1944_v22 = vmul.f32 0.0013020834, %v6252_v37  ;;  %v6455_v37 = vrot.slane %v3125_v57, %v2809_v14  ;;  %v2038_v14 = vsub.f32 %v1942_v31, %v6283_v52 }
 0x1b4   :  { %v1941_v38 = vmul.f32 0.0013020834, %v6241_v16  ;;  %v6453_v16 = vrot.slane %v2805_v30, %v2813_v19 }
 0x1b5   :  { %v2040_v59 = vsub.f32 %v1944_v22, %v6389_v15  ;;  %v2086_v63 = vmax.f32 %v2038_v14, 0.0  ;;  %v9821_v22 = vld [vmem:[#allocation311_spill] sm:$0xff] }
 0x1b6   :  { %v6313_v62 = vpop.xlane.xlu1 %1645  ;;  %v2037_v19 = vsub.f32 %v1941_v38, %v6293_v53  ;;  %v9820_v53 = vld [vmem:[#allocation310_spill] sm:$0xff]  ;;  %v1998_v43 = vmul.f32 %v9821_v22, %v9821_v22 }
 0x1b7   :  { %v6303_v33 = vpop.xlane.xlu0 %1624  ;;  %v1946_v28 = vmul.f32 0.0013020834, %v6313_v62  ;;  %v2088_v47 = vmax.f32 %v2040_v59, 0.0  ;;  %v2134_v62 = vadd.f32 1e-05, %v2086_v63  ;;  %v9822_v59 = vld [vmem:[#allocation312_spill] sm:$0xff] }
 0x1b8   :  { %v1943_v25 = vmul.f32 0.0013020834, %v6303_v33  ;;  %v6461_v33 = vrot.slane %v2805_v30, %v2821_v4  ;;  %v2085_v41 = vmax.f32 %v2037_v19, 0.0 }
 0x1b9   :  { %v2042_v52 = vsub.f32 %v1946_v28, %v1994_v61  ;;  %3759 = vrsqrt.f32 %v2134_v62  ;;  %v1997_v61 = vmul.f32 %v9822_v59, %v9822_v59 }
 0x1ba   :  { %v6367_v60 = vpop.xlane.xlu1 %1659  ;;  %v2039_v56 = vsub.f32 %v1943_v25, %v1991_v21  ;;  %v1995_v25 = vmul.f32 %v9820_v53, %v9820_v53  ;;  %v2133_v21 = vadd.f32 1e-05, %v2085_v41 }
 0x1bb   :  { %v6356_v29 = vpop.xlane.xlu0 %1638  ;;  %v1948_v4 = vmul.f32 0.0013020834, %v6367_v60  ;;  %v2090_v60 = vmax.f32 %v2042_v52, 0.0 }
 0x1bc   :  { %v1945_v30 = vmul.f32 0.0013020834, %v6356_v29  ;;  %v2087_v57 = vmax.f32 %v2039_v56, 0.0  ;;  %v2136_v29 = vadd.f32 1e-05, %v2088_v47  ;;  %3761 = vrsqrt.f32 %v2133_v21 }
 0x1bd   :  { %v2044_v38 = vsub.f32 %v1948_v4, %v1996_v45 }
 0x1be   :  { %v6425_v34 = vpop.xlane.xlu1 %1673  ;;  %v2041_v31 = vsub.f32 %v1945_v30, %v1993_v0  ;;  %v2135_v42 = vadd.f32 1e-05, %v2087_v57  ;;  %v2138_v0 = vadd.f32 1e-05, %v2090_v60  ;;  %3763 = vrsqrt.f32 %v2136_v29  ;;  %v9823_v57 = vld [vmem:[#allocation313_spill] sm:$0xff] }
 0x1bf   :  { %v6415_v6 = vpop.xlane.xlu0 %1652  ;;  %v2092_v19 = vmax.f32 %v2044_v38, 0.0  ;;  %v1950_v28 = vmul.f32 0.0013020834, %v6425_v34  ;;  %v2000_v52 = vmul.f32 %v9823_v57, %v9823_v57 }
 0x1c0   :  { %v2089_v14 = vmax.f32 %v2041_v31, 0.0  ;;  %v1947_v56 = vmul.f32 0.0013020834, %v6415_v6  ;;  %3765 = vrsqrt.f32 %v2135_v42  ;;  %v9824_v6 = vld [vmem:[#allocation314_spill] sm:$0xff] }
 0x1c1   :  { %v2140_v41 = vadd.f32 1e-05, %v2092_v19  ;;  %v2046_v4 = vsub.f32 %v1950_v28, %v1998_v43  ;;  %v1999_v34 = vmul.f32 %v9824_v6, %v9824_v6  ;;  %3767 = vrsqrt.f32 %v2138_v0 }
 0x1c2   :  { %v1688_v32 = vpop.xlane.xlu1 %1687  ;;  %v2137_v30 = vadd.f32 1e-05, %v2089_v14  ;;  %v2043_v45 = vsub.f32 %v1947_v56, %v1995_v25  ;;  %v9825_v25 = vld [vmem:[#allocation315_spill] sm:$0xff] }
 0x1c3   :  { %v1667_v9 = vpop.xlane.xlu0 %1666  ;;  %v1952_v31 = vmul.f32 0.0013020834, %v1688_v32  ;;  %v2094_v21 = vmax.f32 %v2046_v4, 0.0  ;;  %v2002_v43 = vmul.f32 %v9825_v25, %v9825_v25 }
 0x1c4   :  { %v1949_v63 = vmul.f32 0.0013020834, %v1667_v9  ;;  %v2091_v62 = vmax.f32 %v2043_v45, 0.0  ;;  %3769 = vrsqrt.f32 %v2137_v30 }
 0x1c5   :  { %v2048_v14 = vsub.f32 %v1952_v31, %v2000_v52  ;;  %3771 = vrsqrt.f32 %v2140_v41  ;;  %v2142_v9 = vadd.f32 1e-05, %v2094_v21 }
 0x1c6   :  { %v1702_v15 = vpop.xlane.xlu1 %1701  ;;  %v2045_v60 = vsub.f32 %v1949_v63, %v1997_v61  ;;  %v2139_v42 = vadd.f32 1e-05, %v2091_v62  ;;  %v9827_v61 = vld [vmem:[#allocation317_spill] sm:$0xff] }
 0x1c7   :  { %v1681_v49 = vpop.xlane.xlu0 %1680  ;;  %v2096_v56 = vmax.f32 %v2048_v14, 0.0  ;;  %v1954_v28 = vmul.f32 0.0013020834, %v1702_v15  ;;  %v6501_v30 = vmul.f32 %v9827_v61, %v9827_v61  ;;  %v9828_v15 = vld [vmem:[#allocation318_spill] sm:$0xff]  ;;  %v9853_v61 = vld [vmem:[#allocation28_spill] sm:$0xff] }
 0x1c8   :  { %v1951_v29 = vmul.f32 0.0013020834, %v1681_v49  ;;  %v2093_v19 = vmax.f32 %v2045_v60, 0.0  ;;  %3773 = vrsqrt.f32 %v2139_v42  ;;  %v6507_v62 = vmul.f32 %v9828_v15, %v9828_v15 }
 0x1c9   :  { %3775 = vrsqrt.f32 %v2142_v9  ;;  %v2144_v4 = vadd.f32 1e-05, %v2096_v56  ;;  %v2050_v63 = vsub.f32 %v1954_v28, %v2002_v43  ;;  %v9829_v43 = vld [vmem:[#allocation319_spill] sm:$0xff]  ;;  %v9830_v56 = vld [vmem:[#allocation320_spill] sm:$0xff]  ;;  %v9854_v50 = vsub.f32 %v9853_v61, %v9761_v1 }
 0x1ca   :  { %v1716_v38 = vpop.xlane.xlu1 %1715  ;;  %v2047_v32 = vsub.f32 %v1951_v29, %v1999_v34  ;;  %v2141_v0 = vadd.f32 1e-05, %v2093_v19  ;;  %v6517_v42 = vmul.f32 %v9829_v43, %v9829_v43 }
 0x1cb   :  { %v1695_v47 = vpop.xlane.xlu0 %1694  ;;  %v6503_v34 = vmul.f32 0.0013020834, %v1716_v38  ;;  %v2098_v21 = vmax.f32 %v2050_v63, 0.0  ;;  %v3760_v38 = vpop.eup %3759 }
 0x1cc   :  { %v1953_v45 = vmul.f32 0.0013020834, %v1695_v47  ;;  %v2095_v41 = vmax.f32 %v2047_v32, 0.0  ;;  %3777 = vrsqrt.f32 %v2141_v0  ;;  %v6527_v32 = vmul.f32 %v9830_v56, %v9830_v56  ;;  %v3762_v28 = vpop.eup %3761  ;;  %v9831_v0 = vld [vmem:[#allocation32_spill] sm:$0xff] }
 0x1cd   :  { %3779 = vrsqrt.f32 %v2144_v4  ;;  %v6521_v9 = vadd.f32 1e-05, %v2098_v21  ;;  %v9833_v4 = vld [vmem:[#allocation33_spill] sm:$0xff]  ;;  %v9837_v21 = vld [vmem:[#allocation36_spill] sm:$0xff]  ;;  %v3764_v5 = vpop.eup %3763  ;;  %v2527_v3 = vmul.f32 %v3760_v38, %v9840_v7 }
 0x1ce   :  { %v1730_v52 = vpop.xlane.xlu1 %1729  ;;  %v2049_v31 = vsub.f32 %v1953_v45, %v2001_v11  ;;  %v2143_v47 = vadd.f32 1e-05, %v2095_v41  ;;  %v9832_v45 = vsub.f32 %v9831_v0, %v9757_v39  ;;  %v9834_v41 = vsub.f32 %v9833_v4, %v9757_v39  ;;  %v6553_v56 = vpop.eup %3765 }
 0x1cf   :  { %v1709_v49 = vpop.xlane.xlu0 %1708  ;;  %v6519_v11 = vmul.f32 0.0013020834, %v1730_v52  ;;  %v9835_v52 = vld [vmem:[#allocation35_spill] sm:$0xff]  ;;  %v9838_v19 = vsub.f32 %v9837_v21, %v9757_v39  ;;  %v9842_v0 = vsub.f32 %v9841_v13, %v9757_v39  ;;  %v9844_v4 = vsub.f32 %v9843_v18, %v9761_v1  ;;  %v6559_v13 = vpop.eup %3767 }
 0x1d0   :  { %v6509_v60 = vmul.f32 0.0013020834, %v1709_v49  ;;  %v6511_v14 = vmax.f32 %v2049_v31, 0.0  ;;  %3781 = vrsqrt.f32 %v2143_v47  ;;  %v2523_v49 = vmul.f32 %v3760_v38, %v9832_v45 }
 0x1d1   :  { %v2524_v63 = vmul.f32 %v3760_v38, %v9834_v41  ;;  %v9836_v31 = vsub.f32 %v9835_v52, %v9757_v39  ;;  %v2526_v29 = vmul.f32 %v3760_v38, %v9838_v19  ;;  %v2528_v45 = vmul.f32 %v3760_v38, %v9842_v0  ;;  %v6569_v43 = vpop.eup %3769 }
 0x1d2   :  { %v2517_v41 = vmul.f32 %v3762_v28, %v9844_v4  ;;  %v9846_v52 = vsub.f32 %v9845_v27, %v9761_v1  ;;  %v2843_v19 = vmul.f32 %v6451_v44, %v2523_v49  ;;  %v2847_v39 = vmul.f32 %v6463_v24, %v2527_v3  ;;  %v9849_v4 = vld [vmem:[#allocation24_spill] sm:$0xff]  ;;  %v6575_v15 = vpop.eup %3771 }
 0x1d3   :  { %v2525_v47 = vmul.f32 %v3760_v38, %v9836_v31  ;;  %v2844_v21 = vmul.f32 %v6453_v16, %v2524_v63  ;;  %v2846_v7 = vmul.f32 %v6461_v33, %v2526_v29  ;;  %v2848_v18 = vmul.f32 %v6465_v12, %v2528_v45  ;;  %v9847_v38 = vld [vmem:[#allocation22_spill] sm:$0xff] }
 0x1d4   :  { %v2518_v31 = vmul.f32 %v3762_v28, %v9846_v52  ;;  %v9848_v27 = vsub.f32 %v9847_v38, %v9761_v1  ;;  %v9850_v52 = vsub.f32 %v9849_v4, %v9761_v1  ;;  %v3163_v63 = vadd.f32 %v6455_v37, %v2843_v19 }
 0x1d5   :  { %v2845_v46 = vmul.f32 %v6459_v23, %v2525_v47  ;;  %v3164_v29 = vadd.f32 %v6457_v55, %v2844_v21  ;;  %v3166_v3 = vadd.f32 %v6469_v8, %v2846_v7  ;;  %v3167_v45 = vadd.f32 %v6471_v17, %v2847_v39 }
 0x1d6   :  { %v2519_v0 = vmul.f32 %v3762_v28, %v9848_v27  ;;  %v2520_v49 = vmul.f32 %v3762_v28, %v9850_v52  ;;  %v3168_v38 = vadd.f32 %v6473_v58, %v2848_v18  ;;  %v9851_v27 = vld [vmem:[#allocation25_spill] sm:$0xff]  ;;  %v2522_v19 = vmul.f32 %v3762_v28, %v9854_v50  ;;  %3451 = vst [vmem:[#allocation10 + $0x30] sm:$0xff] %v3163_v63  ;;  %v6589_v18 = vpop.eup %3773  ;;  %v9855_v50 = vld [vmem:[#allocation26_spill] sm:$0xff]  ;;  %v9857_v63 = vld [vmem:[#allocation27_spill] sm:$0xff] }
 0x1d7   :  { %v3165_v47 = vadd.f32 %v6467_v51, %v2845_v46  ;;  %v9852_v4 = vsub.f32 %v9851_v27, %v9761_v1  ;;  %3452 = vst [vmem:[#allocation10 + $0x38] sm:$0xff] %v3164_v29  ;;  %3454 = vst [vmem:[#allocation10 + $0x48] sm:$0xff] %v3166_v3  ;;  %v2837_v21 = vmul.f32 %v6451_v44, %v2517_v41  ;;  %v6599_v29 = vpop.eup %3775  ;;  %3783 = vrsqrt.f32 %v6521_v9 }
 0x1d8   :  { %v2838_v46 = vmul.f32 %v6453_v16, %v2518_v31  ;;  %v2839_v7 = vmul.f32 %v6459_v23, %v2519_v0  ;;  %v2840_v39 = vmul.f32 %v6461_v33, %v2520_v49  ;;  %3455 = vst [vmem:[#allocation10 + $0x50] sm:$0xff] %v3167_v45  ;;  %3456 = vst [vmem:[#allocation10 + $0x58] sm:$0xff] %v3168_v38 }
 0x1d9   :  { %v2521_v52 = vmul.f32 %v3762_v28, %v9852_v4  ;;  %3453 = vst [vmem:[#allocation10 + $0x40] sm:$0xff] %v3165_v47  ;;  %v2842_v1 = vmul.f32 %v6465_v12, %v2522_v19  ;;  %v9856_v61 = vsub.f32 %v9855_v50, %v9797_v40  ;;  %v9858_v41 = vsub.f32 %v9857_v63, %v9797_v40  ;;  %v6605_v45 = vpop.eup %3777 }
 0x1da   :  { %v3157_v0 = vadd.f32 %v6455_v37, %v2837_v21  ;;  %v3158_v49 = vadd.f32 %v6457_v55, %v2838_v46  ;;  %v3159_v47 = vadd.f32 %v6467_v51, %v2839_v7  ;;  %v3160_v3 = vadd.f32 %v6469_v8, %v2840_v39  ;;  %v9863_v46 = vld [vmem:[#allocation31_spill] sm:$0xff] }
 0x1db   :  { %v2841_v27 = vmul.f32 %v6463_v24, %v2521_v52  ;;  %v2535_v28 = vmul.f32 %v3764_v5, %v9856_v61  ;;  %v2536_v31 = vmul.f32 %v3764_v5, %v9858_v41  ;;  %v3162_v4 = vadd.f32 %v6473_v58, %v2842_v1  ;;  %v9859_v52 = vld [vmem:[#allocation29_spill] sm:$0xff]  ;;  %v9861_v61 = vld [vmem:[#allocation30_spill] sm:$0xff]  ;;  %v6615_v41 = vpop.eup %3779 }
 0x1dc   :  { %v9860_v19 = vsub.f32 %v9859_v52, %v9797_v40  ;;  %v9862_v63 = vsub.f32 %v9861_v61, %v9797_v40  ;;  %3445 = vst [vmem:[#allocation10] sm:$0xff] %v3157_v0  ;;  %3446 = vst [vmem:[#allocation10 + $0x8] sm:$0xff] %v3158_v49  ;;  %v9864_v7 = vsub.f32 %v9863_v46, %v9797_v40  ;;  %v9867_v49 = vld [vmem:[#allocation15_spill] sm:$0xff] }
 0x1dd   :  { %v3161_v38 = vadd.f32 %v6471_v17, %v2841_v27  ;;  %3447 = vst [vmem:[#allocation10 + $0x10] sm:$0xff] %v3159_v47  ;;  %3448 = vst [vmem:[#allocation10 + $0x18] sm:$0xff] %v3160_v3  ;;  %v9865_v27 = vld [vmem:[#allocation34_spill] sm:$0xff]  ;;  %v2855_v52 = vmul.f32 %v6451_v44, %v2535_v28  ;;  %v9868_v47 = vsub.f32 %v9867_v49, %v9801_v36 }
 0x1de   :  { %v2537_v50 = vmul.f32 %v3764_v5, %v9860_v19  ;;  %v2538_v21 = vmul.f32 %v3764_v5, %v9862_v63  ;;  %v2539_v39 = vmul.f32 %v3764_v5, %v9864_v7  ;;  %v9866_v1 = vsub.f32 %v9865_v27, %v9797_v40  ;;  %3450 = vst [vmem:[#allocation10 + $0x28] sm:$0xff] %v3162_v4  ;;  %v9869_v63 = vld [vmem:[#allocation16_spill] sm:$0xff]  ;;  %v6635_v40 = vpop.eup %3781  ;;  %v9871_v7 = vld [vmem:[#allocation17_spill] sm:$0xff]  ;;  %v9873_v49 = vld [vmem:[#allocation18_spill] sm:$0xff] }
 0x1df   :  { %v2856_v19 = vmul.f32 %v6453_v16, %v2536_v31  ;;  %3449 = vst [vmem:[#allocation10 + $0x20] sm:$0xff] %v3161_v38  ;;  %v2529_v3 = vmul.f32 %v6553_v56, %v9868_v47  ;;  %v9870_v46 = vsub.f32 %v9869_v63, %v9801_v36  ;;  %v3175_v38 = vadd.f32 %v6455_v37, %v2855_v52  ;;  %v9877_v63 = vld [vmem:[#allocation23_spill] sm:$0xff] }
 0x1e0   :  { %v2540_v25 = vmul.f32 %v3764_v5, %v9866_v1  ;;  %v2857_v61 = vmul.f32 %v6459_v23, %v2537_v50  ;;  %v2858_v0 = vmul.f32 %v6461_v33, %v2538_v21  ;;  %v2859_v28 = vmul.f32 %v6463_v24, %v2539_v39 }
 0x1e1   :  { %v2530_v5 = vmul.f32 %v6553_v56, %v9870_v46  ;;  %v3176_v4 = vadd.f32 %v6457_v55, %v2856_v19  ;;  %v9872_v27 = vsub.f32 %v9871_v7, %v9801_v36  ;;  %v9874_v47 = vsub.f32 %v9873_v49, %v9801_v36  ;;  %3463 = vst [vmem:[#allocation10 + $0x90] sm:$0xff] %v3175_v38  ;;  %v9875_v19 = vld [vmem:[#allocation19_spill] sm:$0xff] }
 0x1e2   :  { %v2860_v31 = vmul.f32 %v6465_v12, %v2540_v25  ;;  %v3177_v50 = vadd.f32 %v6467_v51, %v2857_v61  ;;  %v3178_v21 = vadd.f32 %v6469_v8, %v2858_v0  ;;  %v3179_v25 = vadd.f32 %v6471_v17, %v2859_v28 }
 0x1e3   :  { %v2531_v1 = vmul.f32 %v6553_v56, %v9872_v27  ;;  %v2532_v39 = vmul.f32 %v6553_v56, %v9874_v47  ;;  %3464 = vst [vmem:[#allocation10 + $0x98] sm:$0xff] %v3176_v4  ;;  %v9876_v61 = vsub.f32 %v9875_v19, %v9801_v36  ;;  %v9878_v46 = vsub.f32 %v9877_v63, %v9801_v36  ;;  %v9879_v47 = vld [vmem:[#allocation38_spill] sm:$0xff] }
 0x1e4   :  { %v3180_v52 = vadd.f32 %v6473_v58, %v2860_v31  ;;  %3465 = vst [vmem:[#allocation10 + $0xa0] sm:$0xff] %v3177_v50  ;;  %3466 = vst [vmem:[#allocation10 + $0xa8] sm:$0xff] %v3178_v21  ;;  %v2849_v27 = vmul.f32 %v6451_v44, %v2529_v3  ;;  %v2850_v28 = vmul.f32 %v6453_v16, %v2530_v5  ;;  %v9881_v50 = vld [vmem:[#allocation39_spill] sm:$0xff] }
 0x1e5   :  { %v2533_v0 = vmul.f32 %v6553_v56, %v9876_v61  ;;  %v2534_v7 = vmul.f32 %v6553_v56, %v9878_v46  ;;  %v2851_v31 = vmul.f32 %v6459_v23, %v2531_v1  ;;  %v2852_v38 = vmul.f32 %v6461_v33, %v2532_v39  ;;  %3467 = vst [vmem:[#allocation10 + $0xb0] sm:$0xff] %v3179_v25  ;;  %v9883_v61 = vld [vmem:[#allocation41_spill] sm:$0xff]  ;;  %v9885_v46 = vld [vmem:[#allocation42_spill] sm:$0xff] }
 0x1e6   :  { %3468 = vst [vmem:[#allocation10 + $0xb8] sm:$0xff] %v3180_v52  ;;  %v9880_v36 = vsub.f32 %v9879_v47, %v9817_v54  ;;  %v9882_v3 = vsub.f32 %v9881_v50, %v9817_v54  ;;  %v3169_v21 = vadd.f32 %v6455_v37, %v2849_v27  ;;  %v3170_v1 = vadd.f32 %v6457_v55, %v2850_v28  ;;  %v9887_v28 = vld [vmem:[#allocation43_spill] sm:$0xff] }
 0x1e7   :  { %v2853_v4 = vmul.f32 %v6463_v24, %v2533_v0  ;;  %v2854_v49 = vmul.f32 %v6465_v12, %v2534_v7  ;;  %v3171_v39 = vadd.f32 %v6467_v51, %v2851_v31  ;;  %v3172_v25 = vadd.f32 %v6469_v8, %v2852_v38 }
 0x1e8   :  { %v2547_v56 = vmul.f32 %v6559_v13, %v9880_v36  ;;  %v2548_v5 = vmul.f32 %v6559_v13, %v9882_v3  ;;  %v9884_v0 = vsub.f32 %v9883_v61, %v9817_v54  ;;  %v9886_v7 = vsub.f32 %v9885_v46, %v9817_v54  ;;  %3457 = vst [vmem:[#allocation10 + $0x60] sm:$0xff] %v3169_v21  ;;  %v9893_v61 = vld [vmem:[#allocation45_spill] sm:$0xff]  ;;  %v9895_v46 = vld [vmem:[#allocation47_spill] sm:$0xff] }
 0x1e9   :  { %v3173_v52 = vadd.f32 %v6471_v17, %v2853_v4  ;;  %v3174_v19 = vadd.f32 %v6473_v58, %v2854_v49  ;;  %3458 = vst [vmem:[#allocation10 + $0x68] sm:$0xff] %v3170_v1  ;;  %3459 = vst [vmem:[#allocation10 + $0x70] sm:$0xff] %v3171_v39  ;;  %v9888_v31 = vsub.f32 %v9887_v28, %v9817_v54  ;;  %v9889_v4 = vld [vmem:[#allocation46_spill] sm:$0xff]  ;;  %v9891_v1 = vld [vmem:[#allocation44_spill] sm:$0xff] }
 0x1ea   :  { %v2549_v63 = vmul.f32 %v6559_v13, %v9884_v0  ;;  %v2550_v27 = vmul.f32 %v6559_v13, %v9886_v7  ;;  %3460 = vst [vmem:[#allocation10 + $0x78] sm:$0xff] %v3172_v25  ;;  %v9890_v49 = vsub.f32 %v9889_v4, %v9817_v54  ;;  %v2867_v36 = vmul.f32 %v6451_v44, %v2547_v56  ;;  %v9897_v28 = vld [vmem:[#allocation48_spill] sm:$0xff] }
 0x1eb   :  { %v2551_v38 = vmul.f32 %v6559_v13, %v9888_v31  ;;  %v2868_v50 = vmul.f32 %v6453_v16, %v2548_v5  ;;  %3461 = vst [vmem:[#allocation10 + $0x80] sm:$0xff] %v3173_v52  ;;  %3462 = vst [vmem:[#allocation10 + $0x88] sm:$0xff] %v3174_v19  ;;  %v9892_v39 = vsub.f32 %v9891_v1, %v9818_v10 }
 0x1ec   :  { %v2552_v47 = vmul.f32 %v6559_v13, %v9890_v49  ;;  %v2869_v3 = vmul.f32 %v6459_v23, %v2549_v63  ;;  %v2870_v21 = vmul.f32 %v6461_v33, %v2550_v27  ;;  %v9894_v54 = vsub.f32 %v9893_v61, %v9818_v10 }
 0x1ed   :  { %v2541_v25 = vmul.f32 %v6569_v43, %v9892_v39  ;;  %v2871_v56 = vmul.f32 %v6463_v24, %v2551_v38  ;;  %v3187_v52 = vadd.f32 %v6455_v37, %v2867_v36  ;;  %v3188_v19 = vadd.f32 %v6457_v55, %v2868_v50 }
 0x1ee   :  { %v2542_v13 = vmul.f32 %v6569_v43, %v9894_v54  ;;  %v2872_v5 = vmul.f32 %v6465_v12, %v2552_v47  ;;  %v3189_v0 = vadd.f32 %v6467_v51, %v2869_v3  ;;  %v3190_v63 = vadd.f32 %v6469_v8, %v2870_v21  ;;  %v9899_v47 = vld [vmem:[#allocation49_spill] sm:$0xff]  ;;  %v9901_v3 = vld [vmem:[#allocation52_spill] sm:$0xff] }
 0x1ef   :  { %v9896_v7 = vsub.f32 %v9895_v46, %v9818_v10  ;;  %v9898_v31 = vsub.f32 %v9897_v28, %v9818_v10  ;;  %v3191_v4 = vadd.f32 %v6471_v17, %v2871_v56  ;;  %3475 = vst [vmem:[#allocation10 + $0xf0] sm:$0xff] %v3187_v52  ;;  %3476 = vst [vmem:[#allocation10 + $0xf8] sm:$0xff] %v3188_v19  ;;  %v9903_v19 = vld [vmem:[#allocation50_spill] sm:$0xff] }
 0x1f0   :  { %v3192_v49 = vadd.f32 %v6473_v58, %v2872_v5  ;;  %v9900_v36 = vsub.f32 %v9899_v47, %v9818_v10  ;;  %v9902_v21 = vsub.f32 %v9901_v3, %v9818_v10  ;;  %3477 = vst [vmem:[#allocation10 + $0x100] sm:$0xff] %v3189_v0  ;;  %3478 = vst [vmem:[#allocation10 + $0x108] sm:$0xff] %v3190_v63  ;;  %v9905_v0 = vld [vmem:[#allocation51_spill] sm:$0xff]  ;;  %v9909_v47 = vld [vmem:[#allocation54_spill] sm:$0xff] }
 0x1f1   :  { %v2543_v27 = vmul.f32 %v6569_v43, %v9896_v7  ;;  %v2544_v38 = vmul.f32 %v6569_v43, %v9898_v31  ;;  %v2861_v39 = vmul.f32 %v6451_v44, %v2541_v25  ;;  %v2862_v61 = vmul.f32 %v6453_v16, %v2542_v13  ;;  %3479 = vst [vmem:[#allocation10 + $0x110] sm:$0xff] %v3191_v4  ;;  %v9911_v3 = vld [vmem:[#allocation55_spill] sm:$0xff] }
 0x1f2   :  { %v2545_v50 = vmul.f32 %v6569_v43, %v9900_v36  ;;  %v2546_v1 = vmul.f32 %v6569_v43, %v9902_v21  ;;  %3480 = vst [vmem:[#allocation10 + $0x118] sm:$0xff] %v3192_v49  ;;  %v9904_v10 = vsub.f32 %v9903_v19, %v9819_v26  ;;  %v9906_v25 = vsub.f32 %v9905_v0, %v9819_v26 }
 0x1f3   :  { %v2863_v54 = vmul.f32 %v6459_v23, %v2543_v27  ;;  %v2864_v56 = vmul.f32 %v6461_v33, %v2544_v38  ;;  %v3181_v63 = vadd.f32 %v6455_v37, %v2861_v39  ;;  %v3182_v46 = vadd.f32 %v6457_v55, %v2862_v61  ;;  %v9907_v38 = vld [vmem:[#allocation53_spill] sm:$0xff]  ;;  %v9913_v39 = vld [vmem:[#allocation58_spill] sm:$0xff] }
 0x1f4   :  { %v2865_v5 = vmul.f32 %v6463_v24, %v2545_v50  ;;  %v2866_v52 = vmul.f32 %v6465_v12, %v2546_v1  ;;  %v2559_v43 = vmul.f32 %v6575_v15, %v9904_v10  ;;  %v2560_v13 = vmul.f32 %v6575_v15, %v9906_v25  ;;  %v9915_v10 = vld [vmem:[#allocation56_spill] sm:$0xff] }
 0x1f5   :  { %v3183_v7 = vadd.f32 %v6467_v51, %v2863_v54  ;;  %v3184_v27 = vadd.f32 %v6469_v8, %v2864_v56  ;;  %v9908_v4 = vsub.f32 %v9907_v38, %v9819_v26  ;;  %v9910_v36 = vsub.f32 %v9909_v47, %v9819_v26  ;;  %3469 = vst [vmem:[#allocation10 + $0xc0] sm:$0xff] %v3181_v63  ;;  %v9917_v63 = vld [vmem:[#allocation57_spill] sm:$0xff] }
 0x1f6   :  { %v3185_v28 = vadd.f32 %v6471_v17, %v2865_v5  ;;  %v3186_v31 = vadd.f32 %v6473_v58, %v2866_v52  ;;  %3470 = vst [vmem:[#allocation10 + $0xc8] sm:$0xff] %v3182_v46  ;;  %v9912_v21 = vsub.f32 %v9911_v3, %v9819_v26  ;;  %v9914_v61 = vsub.f32 %v9913_v39, %v9819_v26 }
 0x1f7   :  { %v2561_v49 = vmul.f32 %v6575_v15, %v9908_v4  ;;  %v2562_v50 = vmul.f32 %v6575_v15, %v9910_v36  ;;  %3471 = vst [vmem:[#allocation10 + $0xd0] sm:$0xff] %v3183_v7  ;;  %3472 = vst [vmem:[#allocation10 + $0xd8] sm:$0xff] %v3184_v27  ;;  %v2879_v56 = vmul.f32 %v6451_v44, %v2559_v43 }
 0x1f8   :  { %v2563_v1 = vmul.f32 %v6575_v15, %v9912_v21  ;;  %v2564_v54 = vmul.f32 %v6575_v15, %v9914_v61  ;;  %v2880_v5 = vmul.f32 %v6453_v16, %v2560_v13  ;;  %3473 = vst [vmem:[#allocation10 + $0xe0] sm:$0xff] %v3185_v28  ;;  %3474 = vst [vmem:[#allocation10 + $0xe8] sm:$0xff] %v3186_v31  ;;  %v9919_v31 = vld [vmem:[#allocation59_spill] sm:$0xff]  ;;  %v9923_v21 = vld [vmem:[#allocation61_spill] sm:$0xff] }
 0x1f9   :  { %v2881_v52 = vmul.f32 %v6459_v23, %v2561_v49  ;;  %v2882_v19 = vmul.f32 %v6461_v33, %v2562_v50  ;;  %v9916_v0 = vsub.f32 %v9915_v10, %v9820_v53  ;;  %v9918_v26 = vsub.f32 %v9917_v63, %v9820_v53  ;;  %v9921_v49 = vld [vmem:[#allocation60_spill] sm:$0xff] }
 0x1fa   :  { %v2883_v43 = vmul.f32 %v6463_v24, %v2563_v1  ;;  %v2884_v13 = vmul.f32 %v6465_v12, %v2564_v54  ;;  %v3199_v46 = vadd.f32 %v6455_v37, %v2879_v56  ;;  %v3200_v7 = vadd.f32 %v6457_v55, %v2880_v5  ;;  %v9925_v61 = vld [vmem:[#allocation64_spill] sm:$0xff] }
 0x1fb   :  { %v2553_v25 = vmul.f32 %v6589_v18, %v9916_v0  ;;  %v2554_v15 = vmul.f32 %v6589_v18, %v9918_v26  ;;  %v3201_v27 = vadd.f32 %v6467_v51, %v2881_v52  ;;  %v3202_v28 = vadd.f32 %v6469_v8, %v2882_v19  ;;  %v9927_v26 = vld [vmem:[#allocation62_spill] sm:$0xff] }
 0x1fc   :  { %v9920_v38 = vsub.f32 %v9919_v31, %v9820_v53  ;;  %v9922_v47 = vsub.f32 %v9921_v49, %v9820_v53  ;;  %v3203_v50 = vadd.f32 %v6471_v17, %v2883_v43  ;;  %v3204_v3 = vadd.f32 %v6473_v58, %v2884_v13  ;;  %3487 = vst [vmem:[#allocation10 + $0x150] sm:$0xff] %v3199_v46  ;;  %v9929_v43 = vld [vmem:[#allocation63_spill] sm:$0xff] }
 0x1fd   :  { %3488 = vst [vmem:[#allocation10 + $0x158] sm:$0xff] %v3200_v7  ;;  %v9924_v1 = vsub.f32 %v9923_v21, %v9820_v53  ;;  %v9926_v54 = vsub.f32 %v9925_v61, %v9820_v53  ;;  %3489 = vst [vmem:[#allocation10 + $0x160] sm:$0xff] %v3201_v27  ;;  %v2873_v5 = vmul.f32 %v6451_v44, %v2553_v25 }
 0x1fe   :  { %v2555_v4 = vmul.f32 %v6589_v18, %v9920_v38  ;;  %v2556_v36 = vmul.f32 %v6589_v18, %v9922_v47  ;;  %3490 = vst [vmem:[#allocation10 + $0x168] sm:$0xff] %v3202_v28  ;;  %v2874_v52 = vmul.f32 %v6453_v16, %v2554_v15  ;;  %3491 = vst [vmem:[#allocation10 + $0x170] sm:$0xff] %v3203_v50  ;;  %v9931_v38 = vld [vmem:[#allocation65_spill] sm:$0xff]  ;;  %v9933_v47 = vld [vmem:[#allocation66_spill] sm:$0xff] }
 0x1ff   :  { %v2557_v39 = vmul.f32 %v6589_v18, %v9924_v1  ;;  %v2558_v56 = vmul.f32 %v6589_v18, %v9926_v54  ;;  %3492 = vst [vmem:[#allocation10 + $0x178] sm:$0xff] %v3204_v3  ;;  %v9928_v53 = vsub.f32 %v9927_v26, %v9821_v22  ;;  %v9930_v25 = vsub.f32 %v9929_v43, %v9821_v22  ;;  %v9935_v3 = vld [vmem:[#allocation67_spill] sm:$0xff]  ;;  %v9941_v26 = vld [vmem:[#allocation69_spill] sm:$0xff] }
 0x200   :  { %v2875_v19 = vmul.f32 %v6459_v23, %v2555_v4  ;;  %v2876_v10 = vmul.f32 %v6461_v33, %v2556_v36  ;;  %v3193_v13 = vadd.f32 %v6455_v37, %v2873_v5  ;;  %v3194_v46 = vadd.f32 %v6457_v55, %v2874_v52 }
 0x201   :  { %v2877_v0 = vmul.f32 %v6463_v24, %v2557_v39  ;;  %v2878_v63 = vmul.f32 %v6465_v12, %v2558_v56  ;;  %v2571_v18 = vmul.f32 %v6599_v29, %v9928_v53  ;;  %v2572_v15 = vmul.f32 %v6599_v29, %v9930_v25  ;;  %v9937_v39 = vld [vmem:[#allocation70_spill] sm:$0xff] }
 0x202   :  { %v3195_v7 = vadd.f32 %v6467_v51, %v2875_v19  ;;  %v3196_v27 = vadd.f32 %v6469_v8, %v2876_v10  ;;  %v9932_v4 = vsub.f32 %v9931_v38, %v9821_v22  ;;  %v9934_v36 = vsub.f32 %v9933_v47, %v9821_v22  ;;  %3481 = vst [vmem:[#allocation10 + $0x120] sm:$0xff] %v3193_v13  ;;  %v9939_v10 = vld [vmem:[#allocation68_spill] sm:$0xff]  ;;  %v9947_v47 = vld [vmem:[#allocation73_spill] sm:$0xff] }
 0x203   :  { %v3197_v28 = vadd.f32 %v6471_v17, %v2877_v0  ;;  %v3198_v31 = vadd.f32 %v6473_v58, %v2878_v63  ;;  %3482 = vst [vmem:[#allocation10 + $0x128] sm:$0xff] %v3194_v46  ;;  %v9936_v21 = vsub.f32 %v9935_v3, %v9821_v22  ;;  %v9938_v61 = vsub.f32 %v9937_v39, %v9821_v22  ;;  %v9943_v46 = vld [vmem:[#allocation71_spill] sm:$0xff]  ;;  %v9949_v3 = vld [vmem:[#allocation76_spill] sm:$0xff] }
 0x204   :  { %v2573_v49 = vmul.f32 %v6599_v29, %v9932_v4  ;;  %v2574_v50 = vmul.f32 %v6599_v29, %v9934_v36  ;;  %3483 = vst [vmem:[#allocation10 + $0x130] sm:$0xff] %v3195_v7  ;;  %3484 = vst [vmem:[#allocation10 + $0x138] sm:$0xff] %v3196_v27  ;;  %v2891_v56 = vmul.f32 %v6451_v44, %v2571_v18 }
 0x205   :  { %v2575_v1 = vmul.f32 %v6599_v29, %v9936_v21  ;;  %v2576_v54 = vmul.f32 %v6599_v29, %v9938_v61  ;;  %v2892_v5 = vmul.f32 %v6453_v16, %v2572_v15  ;;  %3485 = vst [vmem:[#allocation10 + $0x140] sm:$0xff] %v3197_v28  ;;  %3486 = vst [vmem:[#allocation10 + $0x148] sm:$0xff] %v3198_v31  ;;  %v9945_v28 = vld [vmem:[#allocation72_spill] sm:$0xff] }
 0x206   :  { %v2893_v52 = vmul.f32 %v6459_v23, %v2573_v49  ;;  %v2894_v19 = vmul.f32 %v6461_v33, %v2574_v50  ;;  %v9940_v0 = vsub.f32 %v9939_v10, %v9822_v59  ;;  %v9942_v22 = vsub.f32 %v9941_v26, %v9822_v59 }
 0x207   :  { %v2895_v53 = vmul.f32 %v6463_v24, %v2575_v1  ;;  %v2896_v18 = vmul.f32 %v6465_v12, %v2576_v54  ;;  %v3211_v43 = vadd.f32 %v6455_v37, %v2891_v56  ;;  %v3212_v25 = vadd.f32 %v6457_v55, %v2892_v5  ;;  %v6881_v5 = vpop.xlane.xlu0 %1722 }
 0x208   :  { %v2565_v63 = vmul.f32 %v6605_v45, %v9940_v0  ;;  %v2566_v29 = vmul.f32 %v6605_v45, %v9942_v22  ;;  %v3213_v15 = vadd.f32 %v6467_v51, %v2893_v52  ;;  %v3214_v13 = vadd.f32 %v6469_v8, %v2894_v19  ;;  %v9951_v19 = vld [vmem:[#allocation74_spill] sm:$0xff]  ;;  %v9953_v0 = vld [vmem:[#allocation75_spill] sm:$0xff] }
 0x209   :  { %v9944_v7 = vsub.f32 %v9943_v46, %v9822_v59  ;;  %v9946_v31 = vsub.f32 %v9945_v28, %v9822_v59  ;;  %v3215_v4 = vadd.f32 %v6471_v17, %v2895_v53  ;;  %v3216_v49 = vadd.f32 %v6473_v58, %v2896_v18  ;;  %3499 = vst [vmem:[#allocation10 + $0x1b0] sm:$0xff] %v3211_v43  ;;  %v6897_v43 = vpop.xlane.xlu1 %1743 }
 0x20a   :  { %3500 = vst [vmem:[#allocation10 + $0x1b8] sm:$0xff] %v3212_v25  ;;  %v9948_v36 = vsub.f32 %v9947_v47, %v9822_v59  ;;  %v9950_v21 = vsub.f32 %v9949_v3, %v9822_v59  ;;  %3501 = vst [vmem:[#allocation10 + $0x1c0] sm:$0xff] %v3213_v15  ;;  %v2885_v39 = vmul.f32 %v6451_v44, %v2565_v63  ;;  %v9961_v47 = vld [vmem:[#allocation82_spill] sm:$0xff] }
 0x20b   :  { %v2567_v27 = vmul.f32 %v6605_v45, %v9944_v7  ;;  %v2568_v38 = vmul.f32 %v6605_v45, %v9946_v31  ;;  %3502 = vst [vmem:[#allocation10 + $0x1c8] sm:$0xff] %v3214_v13  ;;  %v2886_v61 = vmul.f32 %v6453_v16, %v2566_v29  ;;  %3503 = vst [vmem:[#allocation10 + $0x1d0] sm:$0xff] %v3215_v4  ;;  %v9955_v13 = vld [vmem:[#allocation77_spill] sm:$0xff] }
 0x20c   :  { %v2569_v50 = vmul.f32 %v6605_v45, %v9948_v36  ;;  %v2570_v1 = vmul.f32 %v6605_v45, %v9950_v21  ;;  %3504 = vst [vmem:[#allocation10 + $0x1d8] sm:$0xff] %v3216_v49  ;;  %v9952_v45 = vsub.f32 %v9951_v19, %v9823_v57  ;;  %v9954_v63 = vsub.f32 %v9953_v0, %v9823_v57  ;;  %v1737_v0 = vpop.xlane.xlu0 %1736 }
 0x20d   :  { %v2887_v54 = vmul.f32 %v6459_v23, %v2567_v27  ;;  %v2888_v56 = vmul.f32 %v6461_v33, %v2568_v38  ;;  %v3205_v22 = vadd.f32 %v6455_v37, %v2885_v39  ;;  %v3206_v29 = vadd.f32 %v6457_v55, %v2886_v61  ;;  %v9957_v27 = vld [vmem:[#allocation78_spill] sm:$0xff]  ;;  %v9959_v38 = vld [vmem:[#allocation79_spill] sm:$0xff]  ;;  %v9963_v61 = vld [vmem:[#allocation80_spill] sm:$0xff] }
 0x20e   :  { %v2889_v52 = vmul.f32 %v6463_v24, %v2569_v50  ;;  %v2890_v59 = vmul.f32 %v6465_v12, %v2570_v1  ;;  %v2583_v10 = vmul.f32 %v6615_v41, %v9952_v45  ;;  %v2584_v26 = vmul.f32 %v6615_v41, %v9954_v63 }
 0x20f   :  { %v3207_v53 = vadd.f32 %v6467_v51, %v2887_v54  ;;  %v3208_v18 = vadd.f32 %v6469_v8, %v2888_v56  ;;  %v9956_v46 = vsub.f32 %v9955_v13, %v9823_v57  ;;  %v9958_v28 = vsub.f32 %v9957_v27, %v9823_v57  ;;  %3493 = vst [vmem:[#allocation10 + $0x180] sm:$0xff] %v3205_v22  ;;  %v9967_v22 = vld [vmem:[#allocation83_spill] sm:$0xff] }
 0x210   :  { %v3209_v25 = vadd.f32 %v6471_v17, %v2889_v52  ;;  %v3210_v15 = vadd.f32 %v6473_v58, %v2890_v59  ;;  %3494 = vst [vmem:[#allocation10 + $0x188] sm:$0xff] %v3206_v29  ;;  %v9960_v4 = vsub.f32 %v9959_v38, %v9823_v57  ;;  %v9962_v36 = vsub.f32 %v9961_v47, %v9823_v57  ;;  %v9965_v52 = vld [vmem:[#allocation81_spill] sm:$0xff]  ;;  %v1751_v9 = vpop.xlane.xlu0 %1750 }
 0x211   :  { %v2585_v7 = vmul.f32 %v6615_v41, %v9956_v46  ;;  %v2586_v31 = vmul.f32 %v6615_v41, %v9958_v28  ;;  %3495 = vst [vmem:[#allocation10 + $0x190] sm:$0xff] %v3207_v53  ;;  %3496 = vst [vmem:[#allocation10 + $0x198] sm:$0xff] %v3208_v18  ;;  %v2903_v3 = vmul.f32 %v6451_v44, %v2583_v10  ;;  %v9969_v18 = vld [vmem:[#allocation84_spill] sm:$0xff] }
 0x212   :  { %v2587_v49 = vmul.f32 %v6615_v41, %v9960_v4  ;;  %v2588_v50 = vmul.f32 %v6615_v41, %v9962_v36  ;;  %v2904_v21 = vmul.f32 %v6453_v16, %v2584_v26  ;;  %3497 = vst [vmem:[#allocation10 + $0x1a0] sm:$0xff] %v3209_v25  ;;  %3498 = vst [vmem:[#allocation10 + $0x1a8] sm:$0xff] %v3210_v15 }
 0x213   :  { %v2905_v1 = vmul.f32 %v6459_v23, %v2585_v7  ;;  %v2906_v39 = vmul.f32 %v6461_v33, %v2586_v31  ;;  %v9964_v54 = vsub.f32 %v9963_v61, %v9824_v6  ;;  %v9966_v57 = vsub.f32 %v9965_v52, %v9824_v6  ;;  %v9971_v7 = vld [vmem:[#allocation85_spill] sm:$0xff]  ;;  %v9973_v31 = vld [vmem:[#allocation88_spill] sm:$0xff] }
 0x214   :  { %v2907_v59 = vmul.f32 %v6463_v24, %v2587_v49  ;;  %v2908_v19 = vmul.f32 %v6465_v12, %v2588_v50  ;;  %v3223_v45 = vadd.f32 %v6455_v37, %v2903_v3  ;;  %v3224_v10 = vadd.f32 %v6457_v55, %v2904_v21  ;;  %v1758_v49 = vpop.xlane.xlu1 %1757 }
 0x215   :  { %v2577_v56 = vmul.f32 %v6635_v40, %v9964_v54  ;;  %v2578_v41 = vmul.f32 %v6635_v40, %v9966_v57  ;;  %v3225_v63 = vadd.f32 %v6467_v51, %v2905_v1  ;;  %v3226_v26 = vadd.f32 %v6469_v8, %v2906_v39 }
 0x216   :  { %v9968_v29 = vsub.f32 %v9967_v22, %v9824_v6  ;;  %v9970_v25 = vsub.f32 %v9969_v18, %v9824_v6  ;;  %v3227_v13 = vadd.f32 %v6471_v17, %v2907_v59  ;;  %v3228_v46 = vadd.f32 %v6473_v58, %v2908_v19  ;;  %3511 = vst [vmem:[#allocation10 + $0x210] sm:$0xff] %v3223_v45 }
 0x217   :  { %3512 = vst [vmem:[#allocation10 + $0x218] sm:$0xff] %v3224_v10  ;;  %v9972_v27 = vsub.f32 %v9971_v7, %v9824_v6  ;;  %v9974_v38 = vsub.f32 %v9973_v31, %v9824_v6  ;;  %3513 = vst [vmem:[#allocation10 + $0x220] sm:$0xff] %v3225_v63  ;;  %v2897_v47 = vmul.f32 %v6451_v44, %v2577_v56  ;;  %v2145_v6 = vadd.f32 1e-05, %v6511_v14  ;;  %v9977_v10 = vld [vmem:[#allocation321_spill] sm:$0xff]  ;;  %v1765_v31 = vpop.xlane.xlu0 %1764 }
 0x218   :  { %v2579_v53 = vmul.f32 %v6635_v40, %v9968_v29  ;;  %v2580_v15 = vmul.f32 %v6635_v40, %v9970_v25  ;;  %3514 = vst [vmem:[#allocation10 + $0x228] sm:$0xff] %v3226_v26  ;;  %v2898_v36 = vmul.f32 %v6453_v16, %v2578_v41  ;;  %3515 = vst [vmem:[#allocation10 + $0x230] sm:$0xff] %v3227_v13  ;;  %v1957_v45 = vmul.f32 0.0013020834, %v6881_v5  ;;  %v9978_v26 = vld [vmem:[#allocation322_spill] sm:$0xff] }
 0x219   :  { %v2581_v28 = vmul.f32 %v6635_v40, %v9972_v27  ;;  %v2582_v4 = vmul.f32 %v6635_v40, %v9974_v38  ;;  %3516 = vst [vmem:[#allocation10 + $0x238] sm:$0xff] %v3228_v46  ;;  %v3217_v40 = vadd.f32 %v6455_v37, %v2897_v47  ;;  %3785 = vrsqrt.f32 %v2145_v6 }
 0x21a   :  { %v2899_v50 = vmul.f32 %v6459_v23, %v2579_v53  ;;  %v2900_v3 = vmul.f32 %v6461_v33, %v2580_v15  ;;  %v3218_v39 = vadd.f32 %v6457_v55, %v2898_v36  ;;  %v9975_v57 = vsub.f32 %v6503_v34, %v6501_v30  ;;  %v1772_v53 = vpop.xlane.xlu1 %1771 }
 0x21b   :  { %v2901_v21 = vmul.f32 %v6463_v24, %v2581_v28  ;;  %v2902_v1 = vmul.f32 %v6465_v12, %v2582_v4  ;;  %3505 = vst [vmem:[#allocation10 + $0x1e0] sm:$0xff] %v3217_v40  ;;  %v9976_v14 = vsub.f32 %v6509_v60, %v6507_v62  ;;  %v2054_v19 = vsub.f32 %v6519_v11, %v6517_v42  ;;  %v9979_v42 = vld [vmem:[#allocation323_spill] sm:$0xff] }
 0x21c   :  { %v3219_v61 = vadd.f32 %v6467_v51, %v2899_v50  ;;  %v3220_v54 = vadd.f32 %v6469_v8, %v2900_v3  ;;  %v2100_v41 = vmax.f32 %v9975_v57, 0.0  ;;  %3506 = vst [vmem:[#allocation10 + $0x1e8] sm:$0xff] %v3218_v39  ;;  %v2008_v63 = vmul.f32 %v9977_v10, %v9977_v10 }
 0x21d   :  { %v3221_v56 = vadd.f32 %v6471_v17, %v2901_v21  ;;  %v3222_v52 = vadd.f32 %v6473_v58, %v2902_v1  ;;  %v2099_v59 = vmax.f32 %v9976_v14, 0.0  ;;  %v1960_v34 = vmul.f32 0.0013020834, %v6897_v43 }
 0x21e   :  { %3507 = vst [vmem:[#allocation10 + $0x1f0] sm:$0xff] %v3219_v61  ;;  %3508 = vst [vmem:[#allocation10 + $0x1f8] sm:$0xff] %v3220_v54  ;;  %v2148_v30 = vadd.f32 1e-05, %v2100_v41  ;;  %v2007_v22 = vmul.f32 %v9978_v26, %v9978_v26  ;;  %v1959_v29 = vmul.f32 0.0013020834, %v1737_v0  ;;  %v2053_v18 = vsub.f32 %v1957_v45, %v6527_v32  ;;  %v1786_v3 = vpop.xlane.xlu1 %1785  ;;  %v3784_v54 = vpop.eup %3783 }
 0x21f   :  { %3509 = vst [vmem:[#allocation10 + $0x200] sm:$0xff] %v3221_v56  ;;  %3510 = vst [vmem:[#allocation10 + $0x208] sm:$0xff] %v3222_v52  ;;  %v2147_v62 = vadd.f32 1e-05, %v2099_v59  ;;  %v2102_v60 = vmax.f32 %v2054_v19, 0.0  ;;  %v2010_v11 = vmul.f32 %v9979_v42, %v9979_v42  ;;  %v2056_v5 = vsub.f32 %v1960_v34, %v2008_v63  ;;  %v9980_v41 = vld [vmem:[#allocation86_spill] sm:$0xff] }
 0x220   :  { %3787 = vrsqrt.f32 %v2148_v30  ;;  %v2055_v25 = vsub.f32 %v1959_v29, %v2007_v22  ;;  %v1962_v15 = vmul.f32 0.0013020834, %v1758_v49  ;;  %v2101_v46 = vmax.f32 %v2053_v18, 0.0  ;;  %v9983_v19 = vld [vmem:[#allocation87_spill] sm:$0xff]  ;;  %v9985_v30 = vld [vmem:[#allocation89_spill] sm:$0xff]  ;;  %v9987_v29 = vld [vmem:[#allocation90_spill] sm:$0xff] }
 0x221   :  { %3789 = vrsqrt.f32 %v2147_v62  ;;  %v2150_v13 = vadd.f32 1e-05, %v2102_v60  ;;  %v2009_v43 = vmul.f32 %v5962_v2, %v5962_v2  ;;  %v2104_v7 = vmax.f32 %v2056_v5, 0.0  ;;  %v9989_v18 = vld [vmem:[#allocation91_spill] sm:$0xff] }
 0x222   :  { %v2103_v0 = vmax.f32 %v2055_v25, 0.0  ;;  %v2058_v27 = vsub.f32 %v1962_v15, %v2010_v11  ;;  %v1961_v28 = vmul.f32 0.0013020834, %v1751_v9  ;;  %v2149_v32 = vadd.f32 1e-05, %v2101_v46  ;;  %v9981_v9 = vld [vmem:[#allocation315_spill] sm:$0xff] }
 0x223   :  { %3791 = vrsqrt.f32 %v2150_v13  ;;  %v2012_v38 = vmul.f32 %v5993_v48, %v5993_v48  ;;  %v1964_v4 = vmul.f32 0.0013020834, %v1772_v53  ;;  %v2152_v47 = vadd.f32 1e-05, %v2104_v7  ;;  %v9991_v25 = vld [vmem:[#allocation94_spill] sm:$0xff] }
 0x224   :  { %v2151_v36 = vadd.f32 1e-05, %v2103_v0  ;;  %v2106_v49 = vmax.f32 %v2058_v27, 0.0  ;;  %v2057_v50 = vsub.f32 %v1961_v28, %v2009_v43  ;;  %3793 = vrsqrt.f32 %v2149_v32  ;;  %v9993_v32 = vld [vmem:[#allocation92_spill] sm:$0xff] }
 0x225   :  { %v2060_v21 = vsub.f32 %v1964_v4, %v2012_v38  ;;  %v6990_v1 = vmul.f32 %v6024_v35, %v6024_v35  ;;  %v6992_v6 = vmul.f32 0.0013020834, %v1765_v31  ;;  %3795 = vrsqrt.f32 %v2152_v47  ;;  %v9994_v38 = vld [vmem:[#allocation316_spill] sm:$0xff] }
 0x226   :  { %v2154_v40 = vadd.f32 1e-05, %v2106_v49  ;;  %v2105_v39 = vmax.f32 %v2057_v50, 0.0  ;;  %v6996_v61 = vmul.f32 %v6053_v20, %v6053_v20  ;;  %3797 = vrsqrt.f32 %v2151_v36  ;;  %v3786_v60 = vpop.eup %3785  ;;  %v9996_v36 = vld [vmem:[#allocation93_spill] sm:$0xff] }
 0x227   :  { %v6998_v56 = vmax.f32 %v2060_v21, 0.0  ;;  %v2059_v52 = vsub.f32 %v6992_v6, %v6990_v1  ;;  %v7002_v57 = vmul.f32 0.0013020834, %v1786_v3  ;;  %v9982_v14 = vsub.f32 %v9980_v41, %v9981_v9 }
 0x228   :  { %v9984_v45 = vsub.f32 %v9983_v19, %v9981_v9  ;;  %v9986_v34 = vsub.f32 %v9985_v30, %v9981_v9  ;;  %v9988_v53 = vsub.f32 %v9987_v29, %v9981_v9  ;;  %v9990_v11 = vsub.f32 %v9989_v18, %v9981_v9 }
 0x229   :  { %v2595_v59 = vmul.f32 %v3784_v54, %v9982_v14  ;;  %v9992_v15 = vsub.f32 %v9991_v25, %v9981_v9  ;;  %3799 = vrsqrt.f32 %v2154_v40  ;;  %v7022_v46 = vadd.f32 1e-05, %v2105_v39  ;;  %v9998_v14 = vld [vmem:[#allocation95_spill] sm:$0xff] }
 0x22a   :  { %v2596_v63 = vmul.f32 %v3784_v54, %v9984_v45  ;;  %v2597_v22 = vmul.f32 %v3784_v54, %v9986_v34  ;;  %v2598_v62 = vmul.f32 %v3784_v54, %v9988_v53  ;;  %v2599_v5 = vmul.f32 %v3784_v54, %v9990_v11  ;;  %v10000_v45 = vld [vmem:[#allocation96_spill] sm:$0xff] }
 0x22b   :  { %v2600_v13 = vmul.f32 %v3784_v54, %v9992_v15  ;;  %v2915_v43 = vmul.f32 %v6451_v44, %v2595_v59  ;;  %v9995_v4 = vsub.f32 %v9993_v32, %v9994_v38  ;;  %v9997_v49 = vsub.f32 %v9996_v36, %v9994_v38 }
 0x22c   :  { %v2916_v7 = vmul.f32 %v6453_v16, %v2596_v63  ;;  %v2917_v0 = vmul.f32 %v6459_v23, %v2597_v22  ;;  %v2918_v27 = vmul.f32 %v6461_v33, %v2598_v62  ;;  %v2919_v28 = vmul.f32 %v6463_v24, %v2599_v5  ;;  %v10002_v22 = vld [vmem:[#allocation97_spill] sm:$0xff]  ;;  %v10004_v62 = vld [vmem:[#allocation100_spill] sm:$0xff] }
 0x22d   :  { %v2920_v31 = vmul.f32 %v6465_v12, %v2600_v13  ;;  %v2589_v47 = vmul.f32 %v3786_v60, %v9995_v4  ;;  %v2590_v50 = vmul.f32 %v3786_v60, %v9997_v49  ;;  %v3235_v3 = vadd.f32 %v6455_v37, %v2915_v43  ;;  %v3788_v54 = vpop.eup %3787  ;;  %v10006_v43 = vld [vmem:[#allocation98_spill] sm:$0xff] }
 0x22e   :  { %v3236_v21 = vadd.f32 %v6457_v55, %v2916_v7  ;;  %v3237_v40 = vadd.f32 %v6467_v51, %v2917_v0  ;;  %v3238_v39 = vadd.f32 %v6469_v8, %v2918_v27  ;;  %v3239_v41 = vadd.f32 %v6471_v17, %v2919_v28  ;;  %v3790_v34 = vpop.eup %3789  ;;  %v10007_v7 = vld [vmem:[#allocation317_spill] sm:$0xff]  ;;  %v10009_v28 = vld [vmem:[#allocation99_spill] sm:$0xff] }
 0x22f   :  { %v3240_v9 = vadd.f32 %v6473_v58, %v2920_v31  ;;  %v9999_v59 = vsub.f32 %v9998_v14, %v9994_v38  ;;  %v10001_v63 = vsub.f32 %v10000_v45, %v9994_v38  ;;  %3523 = vst [vmem:[#allocation10 + $0x270] sm:$0xff] %v3235_v3  ;;  %v10003_v29 = vsub.f32 %v10002_v22, %v9994_v38  ;;  %v10011_v3 = vld [vmem:[#allocation101_spill] sm:$0xff]  ;;  %v10015_v45 = vld [vmem:[#allocation103_spill] sm:$0xff]  ;;  %v10017_v22 = vld [vmem:[#allocation106_spill] sm:$0xff] }
 0x230   :  { %3524 = vst [vmem:[#allocation10 + $0x278] sm:$0xff] %v3236_v21  ;;  %3525 = vst [vmem:[#allocation10 + $0x280] sm:$0xff] %v3237_v40  ;;  %v10005_v18 = vsub.f32 %v10004_v62, %v9994_v38  ;;  %v2909_v5 = vmul.f32 %v6451_v44, %v2589_v47  ;;  %v2910_v25 = vmul.f32 %v6453_v16, %v2590_v50  ;;  %v7064_v38 = vpop.eup %3791  ;;  %3801 = vrsqrt.f32 %v7022_v46 }
 0x231   :  { %v2591_v19 = vmul.f32 %v3786_v60, %v9999_v59  ;;  %v2592_v30 = vmul.f32 %v3786_v60, %v10001_v63  ;;  %3526 = vst [vmem:[#allocation10 + $0x288] sm:$0xff] %v3238_v39  ;;  %v2593_v53 = vmul.f32 %v3786_v60, %v10003_v29  ;;  %3527 = vst [vmem:[#allocation10 + $0x290] sm:$0xff] %v3239_v41  ;;  %v10013_v39 = vld [vmem:[#allocation102_spill] sm:$0xff]  ;;  %v7078_v14 = vpop.eup %3793 }
 0x232   :  { %v2594_v11 = vmul.f32 %v3786_v60, %v10005_v18  ;;  %3528 = vst [vmem:[#allocation10 + $0x298] sm:$0xff] %v3240_v9  ;;  %v10008_v0 = vsub.f32 %v10006_v43, %v10007_v7  ;;  %v10010_v31 = vsub.f32 %v10009_v28, %v10007_v7  ;;  %v3229_v47 = vadd.f32 %v6455_v37, %v2909_v5  ;;  %v7088_v62 = vpop.eup %3795  ;;  %v10019_v43 = vld [vmem:[#allocation104_spill] sm:$0xff] }
 0x233   :  { %v2911_v15 = vmul.f32 %v6459_v23, %v2591_v19  ;;  %v2912_v13 = vmul.f32 %v6461_v33, %v2592_v30  ;;  %v2913_v60 = vmul.f32 %v6463_v24, %v2593_v53  ;;  %v3230_v36 = vadd.f32 %v6457_v55, %v2910_v25 }
 0x234   :  { %v2607_v27 = vmul.f32 %v3788_v54, %v10008_v0  ;;  %v2608_v32 = vmul.f32 %v3788_v54, %v10010_v31  ;;  %v2914_v4 = vmul.f32 %v6465_v12, %v2594_v11  ;;  %v10012_v21 = vsub.f32 %v10011_v3, %v10007_v7  ;;  %3517 = vst [vmem:[#allocation10 + $0x240] sm:$0xff] %v3229_v47  ;;  %v10022_v31 = vld [vmem:[#allocation105_spill] sm:$0xff] }
 0x235   :  { %v3231_v49 = vadd.f32 %v6467_v51, %v2911_v15  ;;  %v3232_v50 = vadd.f32 %v6469_v8, %v2912_v13  ;;  %v10014_v41 = vsub.f32 %v10013_v39, %v10007_v7  ;;  %v3233_v59 = vadd.f32 %v6471_v17, %v2913_v60  ;;  %3518 = vst [vmem:[#allocation10 + $0x248] sm:$0xff] %v3230_v36  ;;  %v7094_v15 = vpop.eup %3797 }
 0x236   :  { %v2609_v40 = vmul.f32 %v3788_v54, %v10012_v21  ;;  %v3234_v19 = vadd.f32 %v6473_v58, %v2914_v4  ;;  %v10016_v63 = vsub.f32 %v10015_v45, %v10007_v7  ;;  %v10018_v29 = vsub.f32 %v10017_v22, %v10007_v7  ;;  %v10020_v7 = vld [vmem:[#allocation318_spill] sm:$0xff]  ;;  %v10024_v21 = vld [vmem:[#allocation107_spill] sm:$0xff] }
 0x237   :  { %v2610_v9 = vmul.f32 %v3788_v54, %v10014_v41  ;;  %3519 = vst [vmem:[#allocation10 + $0x250] sm:$0xff] %v3231_v49  ;;  %3520 = vst [vmem:[#allocation10 + $0x258] sm:$0xff] %v3232_v50  ;;  %v2927_v18 = vmul.f32 %v6451_v44, %v2607_v27  ;;  %v2928_v11 = vmul.f32 %v6453_v16, %v2608_v32  ;;  %v7108_v49 = vpop.eup %3799  ;;  %v10026_v41 = vld [vmem:[#allocation108_spill] sm:$0xff] }
 0x238   :  { %v2611_v30 = vmul.f32 %v3788_v54, %v10016_v63  ;;  %v2612_v53 = vmul.f32 %v3788_v54, %v10018_v29  ;;  %v2929_v5 = vmul.f32 %v6459_v23, %v2609_v40  ;;  %3521 = vst [vmem:[#allocation10 + $0x260] sm:$0xff] %v3233_v59  ;;  %3522 = vst [vmem:[#allocation10 + $0x268] sm:$0xff] %v3234_v19  ;;  %v10028_v19 = vld [vmem:[#allocation109_spill] sm:$0xff] }
 0x239   :  { %v2930_v25 = vmul.f32 %v6461_v33, %v2610_v9  ;;  %v10021_v0 = vsub.f32 %v10019_v43, %v10020_v7  ;;  %v10023_v27 = vsub.f32 %v10022_v31, %v10020_v7  ;;  %v3247_v60 = vadd.f32 %v6455_v37, %v2927_v18 }
 0x23a   :  { %v2931_v13 = vmul.f32 %v6463_v24, %v2611_v30  ;;  %v2932_v54 = vmul.f32 %v6465_v12, %v2612_v53  ;;  %v3248_v4 = vadd.f32 %v6457_v55, %v2928_v11  ;;  %v3249_v47 = vadd.f32 %v6467_v51, %v2929_v5  ;;  %v10030_v30 = vld [vmem:[#allocation112_spill] sm:$0xff] }
 0x23b   :  { %v2601_v28 = vmul.f32 %v3790_v34, %v10021_v0  ;;  %v2602_v32 = vmul.f32 %v3790_v34, %v10023_v27  ;;  %v3250_v36 = vadd.f32 %v6469_v8, %v2930_v25  ;;  %v10025_v40 = vsub.f32 %v10024_v21, %v10020_v7  ;;  %3535 = vst [vmem:[#allocation10 + $0x2d0] sm:$0xff] %v3247_v60  ;;  %v10032_v25 = vld [vmem:[#allocation110_spill] sm:$0xff]  ;;  %v10035_v0 = vld [vmem:[#allocation111_spill] sm:$0xff] }
 0x23c   :  { %v3251_v50 = vadd.f32 %v6471_v17, %v2931_v13  ;;  %v3252_v3 = vadd.f32 %v6473_v58, %v2932_v54  ;;  %v10027_v9 = vsub.f32 %v10026_v41, %v10020_v7  ;;  %3536 = vst [vmem:[#allocation10 + $0x2d8] sm:$0xff] %v3248_v4  ;;  %3537 = vst [vmem:[#allocation10 + $0x2e0] sm:$0xff] %v3249_v47  ;;  %v10033_v13 = vld [vmem:[#allocation319_spill] sm:$0xff]  ;;  %v10037_v47 = vld [vmem:[#allocation113_spill] sm:$0xff] }
 0x23d   :  { %v2603_v39 = vmul.f32 %v3790_v34, %v10025_v40  ;;  %3538 = vst [vmem:[#allocation10 + $0x2e8] sm:$0xff] %v3250_v36  ;;  %v10029_v45 = vsub.f32 %v10028_v19, %v10020_v7  ;;  %v10031_v22 = vsub.f32 %v10030_v30, %v10020_v7  ;;  %v2921_v53 = vmul.f32 %v6451_v44, %v2601_v28 }
 0x23e   :  { %v2604_v59 = vmul.f32 %v3790_v34, %v10027_v9  ;;  %v2922_v18 = vmul.f32 %v6453_v16, %v2602_v32  ;;  %3539 = vst [vmem:[#allocation10 + $0x2f0] sm:$0xff] %v3251_v50  ;;  %3540 = vst [vmem:[#allocation10 + $0x2f8] sm:$0xff] %v3252_v3  ;;  %v10034_v54 = vsub.f32 %v10032_v25, %v10033_v13  ;;  %v10039_v3 = vld [vmem:[#allocation114_spill] sm:$0xff]  ;;  %v10041_v9 = vld [vmem:[#allocation115_spill] sm:$0xff] }
 0x23f   :  { %v2605_v63 = vmul.f32 %v3790_v34, %v10029_v45  ;;  %v2606_v29 = vmul.f32 %v3790_v34, %v10031_v22  ;;  %v2923_v11 = vmul.f32 %v6459_v23, %v2603_v39  ;;  %v10036_v31 = vsub.f32 %v10035_v0, %v10033_v13  ;;  %v10043_v45 = vld [vmem:[#allocation118_spill] sm:$0xff]  ;;  %v10045_v25 = vld [vmem:[#allocation116_spill] sm:$0xff]  ;;  %v10048_v0 = vld [vmem:[#allocation117_spill] sm:$0xff] }
 0x240   :  { %v2924_v5 = vmul.f32 %v6461_v33, %v2604_v59  ;;  %v2619_v43 = vmul.f32 %v7064_v38, %v10034_v54  ;;  %v3241_v27 = vadd.f32 %v6455_v37, %v2921_v53  ;;  %v3242_v32 = vadd.f32 %v6457_v55, %v2922_v18 }
 0x241   :  { %v2620_v34 = vmul.f32 %v7064_v38, %v10036_v31  ;;  %v2925_v7 = vmul.f32 %v6463_v24, %v2605_v63  ;;  %v2926_v28 = vmul.f32 %v6465_v12, %v2606_v29  ;;  %v3243_v60 = vadd.f32 %v6467_v51, %v2923_v11 }
 0x242   :  { %v3244_v4 = vadd.f32 %v6469_v8, %v2924_v5  ;;  %v10038_v36 = vsub.f32 %v10037_v47, %v10033_v13  ;;  %v10040_v21 = vsub.f32 %v10039_v3, %v10033_v13  ;;  %3529 = vst [vmem:[#allocation10 + $0x2a0] sm:$0xff] %v3241_v27  ;;  %3530 = vst [vmem:[#allocation10 + $0x2a8] sm:$0xff] %v3242_v32 }
 0x243   :  { %v3245_v39 = vadd.f32 %v6471_v17, %v2925_v7  ;;  %v3246_v41 = vadd.f32 %v6473_v58, %v2926_v28  ;;  %v10042_v59 = vsub.f32 %v10041_v9, %v10033_v13  ;;  %v10044_v63 = vsub.f32 %v10043_v45, %v10033_v13  ;;  %3531 = vst [vmem:[#allocation10 + $0x2b0] sm:$0xff] %v3243_v60  ;;  %v10046_v13 = vld [vmem:[#allocation320_spill] sm:$0xff] }
 0x244   :  { %v2621_v50 = vmul.f32 %v7064_v38, %v10038_v36  ;;  %v2622_v40 = vmul.f32 %v7064_v38, %v10040_v21  ;;  %3532 = vst [vmem:[#allocation10 + $0x2b8] sm:$0xff] %v3244_v4  ;;  %v2939_v22 = vmul.f32 %v6451_v44, %v2619_v43  ;;  %v2940_v29 = vmul.f32 %v6453_v16, %v2620_v34  ;;  %v10050_v4 = vld [vmem:[#allocation119_spill] sm:$0xff]  ;;  %v10056_v9 = vld [vmem:[#allocation124_spill] sm:$0xff] }
 0x245   :  { %v2623_v19 = vmul.f32 %v7064_v38, %v10042_v59  ;;  %v2624_v30 = vmul.f32 %v7064_v38, %v10044_v63  ;;  %3533 = vst [vmem:[#allocation10 + $0x2c0] sm:$0xff] %v3245_v39  ;;  %3534 = vst [vmem:[#allocation10 + $0x2c8] sm:$0xff] %v3246_v41  ;;  %v10047_v54 = vsub.f32 %v10045_v25, %v10046_v13 }
 0x246   :  { %v2941_v53 = vmul.f32 %v6459_v23, %v2621_v50  ;;  %v2942_v18 = vmul.f32 %v6461_v33, %v2622_v40  ;;  %v10049_v43 = vsub.f32 %v10048_v0, %v10046_v13  ;;  %v3259_v34 = vadd.f32 %v6455_v37, %v2939_v22  ;;  %v10052_v50 = vld [vmem:[#allocation120_spill] sm:$0xff]  ;;  %v10054_v40 = vld [vmem:[#allocation121_spill] sm:$0xff] }
 0x247   :  { %v2943_v11 = vmul.f32 %v6463_v24, %v2623_v19  ;;  %v2944_v5 = vmul.f32 %v6465_v12, %v2624_v30  ;;  %v2613_v38 = vmul.f32 %v7078_v14, %v10047_v54  ;;  %v3260_v7 = vadd.f32 %v6457_v55, %v2940_v29  ;;  %v10058_v29 = vld [vmem:[#allocation122_spill] sm:$0xff] }
 0x248   :  { %v2614_v31 = vmul.f32 %v7078_v14, %v10049_v43  ;;  %v3261_v28 = vadd.f32 %v6467_v51, %v2941_v53  ;;  %v3262_v27 = vadd.f32 %v6469_v8, %v2942_v18  ;;  %v10051_v47 = vsub.f32 %v10050_v4, %v10046_v13  ;;  %3547 = vst [vmem:[#allocation10 + $0x330] sm:$0xff] %v3259_v34 }
 0x249   :  { %v3263_v32 = vadd.f32 %v6471_v17, %v2943_v11  ;;  %v3264_v60 = vadd.f32 %v6473_v58, %v2944_v5  ;;  %v10053_v3 = vsub.f32 %v10052_v50, %v10046_v13  ;;  %3548 = vst [vmem:[#allocation10 + $0x338] sm:$0xff] %v3260_v7  ;;  %v10055_v39 = vsub.f32 %v10054_v40, %v10046_v13  ;;  %v10060_v11 = vld [vmem:[#allocation123_spill] sm:$0xff] }
 0x24a   :  { %v2615_v36 = vmul.f32 %v7078_v14, %v10051_v47  ;;  %3549 = vst [vmem:[#allocation10 + $0x340] sm:$0xff] %v3261_v28  ;;  %3550 = vst [vmem:[#allocation10 + $0x348] sm:$0xff] %v3262_v27  ;;  %v10057_v59 = vsub.f32 %v10056_v9, %v10046_v13  ;;  %v2933_v45 = vmul.f32 %v6451_v44, %v2613_v38  ;;  %v10064_v28 = vld [vmem:[#allocation126_spill] sm:$0xff]  ;;  %v10066_v47 = vld [vmem:[#allocation127_spill] sm:$0xff] }
 0x24b   :  { %v2616_v21 = vmul.f32 %v7078_v14, %v10053_v3  ;;  %v2617_v41 = vmul.f32 %v7078_v14, %v10055_v39  ;;  %v2934_v63 = vmul.f32 %v6453_v16, %v2614_v31  ;;  %3551 = vst [vmem:[#allocation10 + $0x350] sm:$0xff] %v3263_v32  ;;  %3552 = vst [vmem:[#allocation10 + $0x358] sm:$0xff] %v3264_v60  ;;  %v10062_v31 = vld [vmem:[#allocation125_spill] sm:$0xff]  ;;  %v10068_v3 = vld [vmem:[#allocation130_spill] sm:$0xff] }
 0x24c   :  { %v2618_v19 = vmul.f32 %v7078_v14, %v10057_v59  ;;  %v2935_v30 = vmul.f32 %v6459_v23, %v2615_v36  ;;  %v10059_v53 = vsub.f32 %v10058_v29, %v9977_v10  ;;  %v10061_v5 = vsub.f32 %v10060_v11, %v9977_v10 }
 0x24d   :  { %v2936_v22 = vmul.f32 %v6461_v33, %v2616_v21  ;;  %v2937_v25 = vmul.f32 %v6463_v24, %v2617_v41  ;;  %v3253_v54 = vadd.f32 %v6455_v37, %v2933_v45  ;;  %v3254_v38 = vadd.f32 %v6457_v55, %v2934_v63  ;;  %v10070_v63 = vld [vmem:[#allocation128_spill] sm:$0xff] }
 0x24e   :  { %v2631_v18 = vmul.f32 %v7088_v62, %v10059_v53  ;;  %v2632_v14 = vmul.f32 %v7088_v62, %v10061_v5  ;;  %v2938_v13 = vmul.f32 %v6465_v12, %v2618_v19  ;;  %v3255_v0 = vadd.f32 %v6467_v51, %v2935_v30  ;;  %v7236_v19 = vpop.xlane.xlu0 %1778 }
 0x24f   :  { %v3256_v43 = vadd.f32 %v6469_v8, %v2936_v22  ;;  %v10063_v34 = vsub.f32 %v10062_v31, %v9977_v10  ;;  %v10065_v27 = vsub.f32 %v10064_v28, %v9977_v10  ;;  %v3257_v60 = vadd.f32 %v6471_v17, %v2937_v25  ;;  %3541 = vst [vmem:[#allocation10 + $0x300] sm:$0xff] %v3253_v54  ;;  %v10072_v22 = vld [vmem:[#allocation129_spill] sm:$0xff]  ;;  %v10076_v31 = vld [vmem:[#allocation132_spill] sm:$0xff] }
 0x250   :  { %v3258_v4 = vadd.f32 %v6473_v58, %v2938_v13  ;;  %3542 = vst [vmem:[#allocation10 + $0x308] sm:$0xff] %v3254_v38  ;;  %v10067_v36 = vsub.f32 %v10066_v47, %v9977_v10  ;;  %v10069_v21 = vsub.f32 %v10068_v3, %v9977_v10  ;;  %3543 = vst [vmem:[#allocation10 + $0x310] sm:$0xff] %v3255_v0  ;;  %v10074_v38 = vld [vmem:[#allocation131_spill] sm:$0xff]  ;;  %v10078_v28 = vld [vmem:[#allocation133_spill] sm:$0xff] }
 0x251   :  { %v2633_v7 = vmul.f32 %v7088_v62, %v10063_v34  ;;  %v2634_v32 = vmul.f32 %v7088_v62, %v10065_v27  ;;  %3544 = vst [vmem:[#allocation10 + $0x318] sm:$0xff] %v3256_v43  ;;  %v2951_v39 = vmul.f32 %v6451_v44, %v2631_v18  ;;  %v2952_v41 = vmul.f32 %v6453_v16, %v2632_v14  ;;  %v7248_v18 = vpop.xlane.xlu1 %1799 }
 0x252   :  { %v2635_v50 = vmul.f32 %v7088_v62, %v10067_v36  ;;  %v2636_v40 = vmul.f32 %v7088_v62, %v10069_v21  ;;  %3545 = vst [vmem:[#allocation10 + $0x320] sm:$0xff] %v3257_v60  ;;  %3546 = vst [vmem:[#allocation10 + $0x328] sm:$0xff] %v3258_v4  ;;  %v10071_v62 = vsub.f32 %v10070_v63, %v9978_v26  ;;  %v10080_v60 = vld [vmem:[#allocation136_spill] sm:$0xff]  ;;  %v1968_v6 = vmul.f32 0.0013020834, %v7248_v18 }
 0x253   :  { %v2953_v9 = vmul.f32 %v6459_v23, %v2633_v7  ;;  %v2954_v59 = vmul.f32 %v6461_v33, %v2634_v32  ;;  %v10073_v29 = vsub.f32 %v10072_v22, %v9978_v26  ;;  %v3271_v11 = vadd.f32 %v6455_v37, %v2951_v39 }
 0x254   :  { %v2955_v45 = vmul.f32 %v6463_v24, %v2635_v50  ;;  %v2956_v10 = vmul.f32 %v6465_v12, %v2636_v40  ;;  %v2625_v30 = vmul.f32 %v7094_v15, %v10071_v62  ;;  %v3272_v5 = vadd.f32 %v6457_v55, %v2952_v41  ;;  %v10082_v40 = vld [vmem:[#allocation134_spill] sm:$0xff]  ;;  %v1793_v62 = vpop.xlane.xlu0 %1792 }
 0x255   :  { %v2626_v53 = vmul.f32 %v7094_v15, %v10073_v29  ;;  %v3273_v14 = vadd.f32 %v6467_v51, %v2953_v9  ;;  %v3274_v25 = vadd.f32 %v6469_v8, %v2954_v59  ;;  %v10075_v0 = vsub.f32 %v10074_v38, %v9978_v26  ;;  %3559 = vst [vmem:[#allocation10 + $0x390] sm:$0xff] %v3271_v11  ;;  %v10084_v9 = vld [vmem:[#allocation135_spill] sm:$0xff]  ;;  %v10086_v29 = vld [vmem:[#allocation137_spill] sm:$0xff] }
 0x256   :  { %v3275_v13 = vadd.f32 %v6471_v17, %v2955_v45  ;;  %v3276_v54 = vadd.f32 %v6473_v58, %v2956_v10  ;;  %v10077_v34 = vsub.f32 %v10076_v31, %v9978_v26  ;;  %3560 = vst [vmem:[#allocation10 + $0x398] sm:$0xff] %v3272_v5  ;;  %v10079_v27 = vsub.f32 %v10078_v28, %v9978_v26  ;;  %v10088_v5 = vld [vmem:[#allocation138_spill] sm:$0xff] }
 0x257   :  { %v2627_v43 = vmul.f32 %v7094_v15, %v10075_v0  ;;  %3561 = vst [vmem:[#allocation10 + $0x3a0] sm:$0xff] %v3273_v14  ;;  %3562 = vst [vmem:[#allocation10 + $0x3a8] sm:$0xff] %v3274_v25  ;;  %v10081_v4 = vsub.f32 %v10080_v60, %v9978_v26  ;;  %v2945_v36 = vmul.f32 %v6451_v44, %v2625_v30  ;;  %v10090_v0 = vld [vmem:[#allocation139_spill] sm:$0xff] }
 0x258   :  { %v2628_v7 = vmul.f32 %v7094_v15, %v10077_v34  ;;  %v2629_v32 = vmul.f32 %v7094_v15, %v10079_v27  ;;  %v2946_v50 = vmul.f32 %v6453_v16, %v2626_v53  ;;  %3563 = vst [vmem:[#allocation10 + $0x3b0] sm:$0xff] %v3275_v13  ;;  %3564 = vst [vmem:[#allocation10 + $0x3b8] sm:$0xff] %v3276_v54  ;;  %v1814_v13 = vpop.xlane.xlu1 %1813  ;;  %v10092_v34 = vld [vmem:[#allocation142_spill] sm:$0xff]  ;;  %v1807_v46 = vpop.xlane.xlu0 %1806 }
 0x259   :  { %v2630_v47 = vmul.f32 %v7094_v15, %v10081_v4  ;;  %v2947_v3 = vmul.f32 %v6459_v23, %v2627_v43  ;;  %v10083_v39 = vsub.f32 %v10082_v40, %v9979_v42  ;;  %v10085_v26 = vsub.f32 %v10084_v9, %v9979_v42  ;;  %v10094_v9 = vld [vmem:[#allocation324_spill] sm:$0xff] }
 0x25a   :  { %v2948_v21 = vmul.f32 %v6461_v33, %v2628_v7  ;;  %v2949_v59 = vmul.f32 %v6463_v24, %v2629_v32  ;;  %v3265_v10 = vadd.f32 %v6455_v37, %v2945_v36  ;;  %v3266_v63 = vadd.f32 %v6457_v55, %v2946_v50 }
 0x25b   :  { %v2643_v41 = vmul.f32 %v7108_v49, %v10083_v39  ;;  %v2644_v15 = vmul.f32 %v7108_v49, %v10085_v26  ;;  %v2950_v45 = vmul.f32 %v6465_v12, %v2630_v47  ;;  %v3267_v30 = vadd.f32 %v6467_v51, %v2947_v3 }
 0x25c   :  { %v3268_v22 = vadd.f32 %v6469_v8, %v2948_v21  ;;  %v10087_v53 = vsub.f32 %v10086_v29, %v9979_v42  ;;  %v10089_v14 = vsub.f32 %v10088_v5, %v9979_v42  ;;  %v3269_v54 = vadd.f32 %v6471_v17, %v2949_v59  ;;  %3553 = vst [vmem:[#allocation10 + $0x360] sm:$0xff] %v3265_v10  ;;  %v10095_v59 = vld [vmem:[#allocation325_spill] sm:$0xff]  ;;  %v1828_v10 = vpop.xlane.xlu1 %1827  ;;  %v10098_v5 = vld [vmem:[#allocation328_spill] sm:$0xff] }
 0x25d   :  { %v3270_v38 = vadd.f32 %v6473_v58, %v2950_v45  ;;  %3554 = vst [vmem:[#allocation10 + $0x368] sm:$0xff] %v3266_v63  ;;  %v10091_v43 = vsub.f32 %v10090_v0, %v9979_v42  ;;  %v10093_v7 = vsub.f32 %v10092_v34, %v9979_v42  ;;  %3555 = vst [vmem:[#allocation10 + $0x370] sm:$0xff] %v3267_v30  ;;  %v2156_v42 = vadd.f32 1e-05, %v6998_v56 }
 0x25e   :  { %v2645_v11 = vmul.f32 %v7108_v49, %v10087_v53  ;;  %v2646_v25 = vmul.f32 %v7108_v49, %v10089_v14  ;;  %3556 = vst [vmem:[#allocation10 + $0x378] sm:$0xff] %v3268_v22  ;;  %v2963_v27 = vmul.f32 %v6451_v44, %v2643_v41  ;;  %v2964_v32 = vmul.f32 %v6453_v16, %v2644_v15 }
 0x25f   :  { %v2647_v31 = vmul.f32 %v7108_v49, %v10091_v43  ;;  %v2648_v28 = vmul.f32 %v7108_v49, %v10093_v7  ;;  %3557 = vst [vmem:[#allocation10 + $0x380] sm:$0xff] %v3269_v54  ;;  %3558 = vst [vmem:[#allocation10 + $0x388] sm:$0xff] %v3270_v38  ;;  %3803 = vrsqrt.f32 %v2156_v42  ;;  %v2107_v41 = vmax.f32 %v2059_v52, 0.0  ;;  %v10096_v52 = vld [vmem:[#allocation326_spill] sm:$0xff]  ;;  %v1821_v7 = vpop.xlane.xlu0 %1820 }
 0x260   :  { %v2965_v60 = vmul.f32 %v6459_v23, %v2645_v11  ;;  %v2966_v4 = vmul.f32 %v6461_v33, %v2646_v25  ;;  %v3283_v49 = vadd.f32 %v6455_v37, %v2963_v27  ;;  %v3284_v50 = vadd.f32 %v6457_v55, %v2964_v32  ;;  %v1842_v32 = vpop.xlane.xlu1 %1841 }
 0x261   :  { %v2967_v47 = vmul.f32 %v6463_v24, %v2647_v31  ;;  %v2968_v36 = vmul.f32 %v6465_v12, %v2648_v28  ;;  %v2062_v56 = vsub.f32 %v7002_v57, %v6996_v61  ;;  %v2013_v26 = vmul.f32 %v10094_v9, %v10094_v9  ;;  %v10097_v57 = vld [vmem:[#allocation327_spill] sm:$0xff]  ;;  %v10099_v31 = vld [vmem:[#allocation329_spill] sm:$0xff] }
 0x262   :  { %v3285_v3 = vadd.f32 %v6467_v51, %v2965_v60  ;;  %v3286_v21 = vadd.f32 %v6469_v8, %v2966_v4  ;;  %3571 = vst [vmem:[#allocation10 + $0x3f0] sm:$0xff] %v3283_v49  ;;  %3572 = vst [vmem:[#allocation10 + $0x3f8] sm:$0xff] %v3284_v50  ;;  %v1965_v15 = vmul.f32 0.0013020834, %v7236_v19  ;;  %v2016_v45 = vmul.f32 %v10095_v59, %v10095_v59 }
 0x263   :  { %v3287_v40 = vadd.f32 %v6471_v17, %v2967_v47  ;;  %v3288_v39 = vadd.f32 %v6473_v58, %v2968_v36  ;;  %v2155_v1 = vadd.f32 1e-05, %v2107_v41  ;;  %v2015_v63 = vmul.f32 %v10096_v52, %v10096_v52  ;;  %v10100_v36 = vld [vmem:[#allocation330_spill] sm:$0xff] }
 0x264   :  { %3573 = vst [vmem:[#allocation10 + $0x400] sm:$0xff] %v3285_v3  ;;  %3574 = vst [vmem:[#allocation10 + $0x408] sm:$0xff] %v3286_v21  ;;  %v1967_v30 = vmul.f32 0.0013020834, %v1793_v62  ;;  %v2110_v22 = vmax.f32 %v2062_v56, 0.0  ;;  %v2061_v61 = vsub.f32 %v1965_v15, %v2013_v26  ;;  %v2018_v29 = vmul.f32 %v10097_v57, %v10097_v57  ;;  %v10102_v15 = vld [vmem:[#allocation332_spill] sm:$0xff] }
 0x265   :  { %3575 = vst [vmem:[#allocation10 + $0x410] sm:$0xff] %v3287_v40  ;;  %3576 = vst [vmem:[#allocation10 + $0x418] sm:$0xff] %v3288_v39  ;;  %v1970_v53 = vmul.f32 0.0013020834, %v1814_v13  ;;  %3805 = vrsqrt.f32 %v2155_v1  ;;  %v2064_v19 = vsub.f32 %v1968_v6, %v2016_v45  ;;  %v2017_v14 = vmul.f32 %v10098_v5, %v10098_v5  ;;  %v10101_v40 = vld [vmem:[#allocation331_spill] sm:$0xff] }
 0x266   :  { %v2063_v11 = vsub.f32 %v1967_v30, %v2015_v63  ;;  %v2158_v25 = vadd.f32 1e-05, %v2110_v22  ;;  %v2109_v54 = vmax.f32 %v2061_v61, 0.0  ;;  %v1969_v18 = vmul.f32 0.0013020834, %v1807_v46  ;;  %v3802_v46 = vpop.eup %3801  ;;  %v10105_v63 = vld [vmem:[#allocation141_spill] sm:$0xff] }
 0x267   :  { %v2066_v38 = vsub.f32 %v1970_v53, %v2018_v29  ;;  %v2112_v0 = vmax.f32 %v2064_v19, 0.0  ;;  %v2020_v62 = vmul.f32 %v10099_v31, %v10099_v31  ;;  %v1972_v34 = vmul.f32 0.0013020834, %v1828_v10  ;;  %v10103_v10 = vld [vmem:[#allocation140_spill] sm:$0xff]  ;;  %v10107_v61 = vld [vmem:[#allocation143_spill] sm:$0xff] }
 0x268   :  { %v2111_v43 = vmax.f32 %v2063_v11, 0.0  ;;  %3807 = vrsqrt.f32 %v2158_v25  ;;  %v2157_v28 = vadd.f32 1e-05, %v2109_v54  ;;  %v2065_v27 = vsub.f32 %v1969_v18, %v2017_v14  ;;  %v10109_v19 = vld [vmem:[#allocation144_spill] sm:$0xff]  ;;  %v10111_v54 = vld [vmem:[#allocation145_spill] sm:$0xff] }
 0x269   :  { %v2114_v13 = vmax.f32 %v2066_v38, 0.0  ;;  %v2160_v60 = vadd.f32 1e-05, %v2112_v0  ;;  %v2068_v47 = vsub.f32 %v1972_v34, %v2020_v62  ;;  %v7343_v42 = vmul.f32 %v10100_v36, %v10100_v36  ;;  %v10113_v0 = vld [vmem:[#allocation148_spill] sm:$0xff] }
 0x26a   :  { %v2159_v4 = vadd.f32 1e-05, %v2111_v43  ;;  %3809 = vrsqrt.f32 %v2157_v28  ;;  %v2113_v50 = vmax.f32 %v2065_v27, 0.0  ;;  %v7345_v3 = vmul.f32 0.0013020834, %v1821_v7 }
 0x26b   :  { %v2162_v49 = vadd.f32 1e-05, %v2114_v13  ;;  %3811 = vrsqrt.f32 %v2160_v60  ;;  %v2116_v21 = vmax.f32 %v2068_v47, 0.0  ;;  %v7349_v39 = vmul.f32 %v10101_v40, %v10101_v40 }
 0x26c   :  { %v7351_v41 = vmul.f32 0.0013020834, %v1842_v32  ;;  %3813 = vrsqrt.f32 %v2159_v4  ;;  %v7353_v56 = vadd.f32 1e-05, %v2113_v50  ;;  %v2067_v26 = vsub.f32 %v7345_v3, %v7343_v42  ;;  %v3804_v25 = vpop.eup %3803  ;;  %v10115_v4 = vld [vmem:[#allocation146_spill] sm:$0xff]  ;;  %v10117_v50 = vld [vmem:[#allocation147_spill] sm:$0xff] }
 0x26d   :  { %v7359_v45 = vmul.f32 %v10102_v15, %v10102_v15  ;;  %v10104_v1 = vsub.f32 %v10103_v10, %v5962_v2  ;;  %v10106_v30 = vsub.f32 %v10105_v63, %v5962_v2  ;;  %v10108_v29 = vsub.f32 %v10107_v61, %v5962_v2  ;;  %v10119_v61 = vld [vmem:[#allocation149_spill] sm:$0xff] }
 0x26e   :  { %v10110_v11 = vsub.f32 %v10109_v19, %v5962_v2  ;;  %v10112_v38 = vsub.f32 %v10111_v54, %v5962_v2  ;;  %v10114_v43 = vsub.f32 %v10113_v0, %v5962_v2  ;;  %3815 = vrsqrt.f32 %v2162_v49  ;;  %v10121_v19 = vld [vmem:[#allocation150_spill] sm:$0xff]  ;;  %v10123_v54 = vld [vmem:[#allocation151_spill] sm:$0xff] }
 0x26f   :  { %v2637_v6 = vmul.f32 %v3802_v46, %v10104_v1  ;;  %v2638_v22 = vmul.f32 %v3802_v46, %v10106_v30  ;;  %v2639_v53 = vmul.f32 %v3802_v46, %v10108_v29  ;;  %v7379_v34 = vadd.f32 1e-05, %v2116_v21  ;;  %v10125_v0 = vld [vmem:[#allocation154_spill] sm:$0xff] }
 0x270   :  { %v2640_v14 = vmul.f32 %v3802_v46, %v10110_v11  ;;  %v2641_v18 = vmul.f32 %v3802_v46, %v10112_v38  ;;  %v2642_v62 = vmul.f32 %v3802_v46, %v10114_v43  ;;  %v10116_v47 = vsub.f32 %v10115_v4, %v5993_v48 }
 0x271   :  { %v2957_v7 = vmul.f32 %v6451_v44, %v2637_v6  ;;  %v2958_v28 = vmul.f32 %v6453_v16, %v2638_v22  ;;  %v2959_v13 = vmul.f32 %v6459_v23, %v2639_v53  ;;  %v10118_v49 = vsub.f32 %v10117_v50, %v5993_v48 }
 0x272   :  { %v2960_v27 = vmul.f32 %v6461_v33, %v2640_v14  ;;  %v2961_v32 = vmul.f32 %v6463_v24, %v2641_v18  ;;  %v2962_v60 = vmul.f32 %v6465_v12, %v2642_v62  ;;  %v2655_v2 = vmul.f32 %v3804_v25, %v10116_v47  ;;  %v3806_v63 = vpop.eup %3805  ;;  %v10129_v47 = vld [vmem:[#allocation153_spill] sm:$0xff] }
 0x273   :  { %v2656_v21 = vmul.f32 %v3804_v25, %v10118_v49  ;;  %v3277_v46 = vadd.f32 %v6455_v37, %v2957_v7  ;;  %v3278_v10 = vadd.f32 %v6457_v55, %v2958_v28  ;;  %v3279_v1 = vadd.f32 %v6467_v51, %v2959_v13 }
 0x274   :  { %v3280_v6 = vadd.f32 %v6469_v8, %v2960_v27  ;;  %v3281_v30 = vadd.f32 %v6471_v17, %v2961_v32  ;;  %v3282_v22 = vadd.f32 %v6473_v58, %v2962_v60  ;;  %v10120_v29 = vsub.f32 %v10119_v61, %v5993_v48  ;;  %v10127_v32 = vld [vmem:[#allocation152_spill] sm:$0xff] }
 0x275   :  { %v10122_v11 = vsub.f32 %v10121_v19, %v5993_v48  ;;  %3565 = vst [vmem:[#allocation10 + $0x3c0] sm:$0xff] %v3277_v46  ;;  %3566 = vst [vmem:[#allocation10 + $0x3c8] sm:$0xff] %v3278_v10  ;;  %v10124_v38 = vsub.f32 %v10123_v54, %v5993_v48  ;;  %v10126_v43 = vsub.f32 %v10125_v0, %v5993_v48  ;;  %v3808_v48 = vpop.eup %3807  ;;  %v10133_v61 = vld [vmem:[#allocation156_spill] sm:$0xff]  ;;  %v10135_v54 = vld [vmem:[#allocation157_spill] sm:$0xff]  ;;  %3817 = vrsqrt.f32 %v7353_v56 }
 0x276   :  { %v2657_v53 = vmul.f32 %v3804_v25, %v10120_v29  ;;  %3567 = vst [vmem:[#allocation10 + $0x3d0] sm:$0xff] %v3279_v1  ;;  %3568 = vst [vmem:[#allocation10 + $0x3d8] sm:$0xff] %v3280_v6  ;;  %v2975_v7 = vmul.f32 %v6451_v44, %v2655_v2  ;;  %v2976_v28 = vmul.f32 %v6453_v16, %v2656_v21  ;;  %v10131_v6 = vld [vmem:[#allocation155_spill] sm:$0xff]  ;;  %v10137_v0 = vld [vmem:[#allocation160_spill] sm:$0xff]  ;;  %3819 = vrsqrt.f32 %v7379_v34 }
 0x277   :  { %v2658_v14 = vmul.f32 %v3804_v25, %v10122_v11  ;;  %v2659_v18 = vmul.f32 %v3804_v25, %v10124_v38  ;;  %v2660_v62 = vmul.f32 %v3804_v25, %v10126_v43  ;;  %3569 = vst [vmem:[#allocation10 + $0x3e0] sm:$0xff] %v3281_v30  ;;  %3570 = vst [vmem:[#allocation10 + $0x3e8] sm:$0xff] %v3282_v22  ;;  %v3810_v19 = vpop.eup %3809 }
 0x278   :  { %v2977_v13 = vmul.f32 %v6459_v23, %v2657_v53  ;;  %v10128_v60 = vsub.f32 %v10127_v32, %v6024_v35  ;;  %v10130_v50 = vsub.f32 %v10129_v47, %v6024_v35  ;;  %v3295_v21 = vadd.f32 %v6455_v37, %v2975_v7  ;;  %v7441_v7 = vpop.eup %3811 }
 0x279   :  { %v2978_v27 = vmul.f32 %v6461_v33, %v2658_v14  ;;  %v2979_v25 = vmul.f32 %v6463_v24, %v2659_v18  ;;  %v2980_v2 = vmul.f32 %v6465_v12, %v2660_v62  ;;  %v3296_v46 = vadd.f32 %v6457_v55, %v2976_v28 }
 0x27a   :  { %v2649_v4 = vmul.f32 %v3806_v63, %v10128_v60  ;;  %v2650_v49 = vmul.f32 %v3806_v63, %v10130_v50  ;;  %v3297_v10 = vadd.f32 %v6467_v51, %v2977_v13  ;;  %v10132_v30 = vsub.f32 %v10131_v6, %v6024_v35  ;;  %3583 = vst [vmem:[#allocation10 + $0x450] sm:$0xff] %v3295_v21  ;;  %v7447_v60 = vpop.eup %3813 }
 0x27b   :  { %v3298_v1 = vadd.f32 %v6469_v8, %v2978_v27  ;;  %v10134_v29 = vsub.f32 %v10133_v61, %v6024_v35  ;;  %v3299_v11 = vadd.f32 %v6471_v17, %v2979_v25  ;;  %v3300_v14 = vadd.f32 %v6473_v58, %v2980_v2  ;;  %3584 = vst [vmem:[#allocation10 + $0x458] sm:$0xff] %v3296_v46  ;;  %v10141_v2 = vld [vmem:[#allocation159_spill] sm:$0xff]  ;;  %v7461_v6 = vpop.eup %3815  ;;  %v10143_v61 = vld [vmem:[#allocation161_spill] sm:$0xff] }
 0x27c   :  { %v2651_v22 = vmul.f32 %v3806_v63, %v10132_v30  ;;  %v10136_v38 = vsub.f32 %v10135_v54, %v6024_v35  ;;  %v10138_v43 = vsub.f32 %v10137_v0, %v6024_v35  ;;  %3585 = vst [vmem:[#allocation10 + $0x460] sm:$0xff] %v3297_v10  ;;  %v2969_v28 = vmul.f32 %v6451_v44, %v2649_v4 }
 0x27d   :  { %v2652_v53 = vmul.f32 %v3806_v63, %v10134_v29  ;;  %3586 = vst [vmem:[#allocation10 + $0x468] sm:$0xff] %v3298_v1  ;;  %v2970_v13 = vmul.f32 %v6453_v16, %v2650_v49  ;;  %3587 = vst [vmem:[#allocation10 + $0x470] sm:$0xff] %v3299_v11  ;;  %v10142_v4 = vsub.f32 %v10141_v2, %v6053_v20  ;;  %v10145_v11 = vld [vmem:[#allocation162_spill] sm:$0xff]  ;;  %v10153_v2 = vld [vmem:[#allocation165_spill] sm:$0xff] }
 0x27e   :  { %v2653_v18 = vmul.f32 %v3806_v63, %v10136_v38  ;;  %v2654_v62 = vmul.f32 %v3806_v63, %v10138_v43  ;;  %v2971_v27 = vmul.f32 %v6459_v23, %v2651_v22  ;;  %3588 = vst [vmem:[#allocation10 + $0x478] sm:$0xff] %v3300_v14  ;;  %v10139_v63 = vld [vmem:[#allocation158_spill] sm:$0xff]  ;;  %v3289_v21 = vadd.f32 %v6455_v37, %v2969_v28  ;;  %v10147_v38 = vld [vmem:[#allocation163_spill] sm:$0xff] }
 0x27f   :  { %v2972_v32 = vmul.f32 %v6461_v33, %v2652_v53  ;;  %v10140_v50 = vsub.f32 %v10139_v63, %v6053_v20  ;;  %v2668_v49 = vmul.f32 %v3808_v48, %v10142_v4  ;;  %v3290_v46 = vadd.f32 %v6457_v55, %v2970_v13  ;;  %v10149_v43 = vld [vmem:[#allocation166_spill] sm:$0xff] }
 0x280   :  { %v2973_v47 = vmul.f32 %v6463_v24, %v2653_v18  ;;  %v2974_v35 = vmul.f32 %v6465_v12, %v2654_v62  ;;  %v3291_v10 = vadd.f32 %v6467_v51, %v2971_v27  ;;  %v10144_v29 = vsub.f32 %v10143_v61, %v6053_v20  ;;  %3577 = vst [vmem:[#allocation10 + $0x420] sm:$0xff] %v3289_v21  ;;  %v10157_v61 = vld [vmem:[#allocation168_spill] sm:$0xff] }
 0x281   :  { %v2667_v25 = vmul.f32 %v3808_v48, %v10140_v50  ;;  %v3292_v1 = vadd.f32 %v6469_v8, %v2972_v32  ;;  %v10146_v14 = vsub.f32 %v10145_v11, %v6053_v20  ;;  %3578 = vst [vmem:[#allocation10 + $0x428] sm:$0xff] %v3290_v46  ;;  %v10148_v18 = vsub.f32 %v10147_v38, %v6053_v20 }
 0x282   :  { %v3293_v30 = vadd.f32 %v6471_v17, %v2973_v47  ;;  %v3294_v22 = vadd.f32 %v6473_v58, %v2974_v35  ;;  %v2669_v53 = vmul.f32 %v3808_v48, %v10144_v29  ;;  %3579 = vst [vmem:[#allocation10 + $0x430] sm:$0xff] %v3291_v10  ;;  %v10150_v62 = vsub.f32 %v10149_v43, %v6053_v20  ;;  %v10151_v35 = vld [vmem:[#allocation164_spill] sm:$0xff] }
 0x283   :  { %v2670_v54 = vmul.f32 %v3808_v48, %v10146_v14  ;;  %3580 = vst [vmem:[#allocation10 + $0x438] sm:$0xff] %v3292_v1  ;;  %v2671_v0 = vmul.f32 %v3808_v48, %v10148_v18  ;;  %v2987_v13 = vmul.f32 %v6451_v44, %v2667_v25  ;;  %v2988_v27 = vmul.f32 %v6453_v16, %v2668_v49  ;;  %v10155_v1 = vld [vmem:[#allocation167_spill] sm:$0xff] }
 0x284   :  { %v2672_v28 = vmul.f32 %v3808_v48, %v10150_v62  ;;  %3581 = vst [vmem:[#allocation10 + $0x440] sm:$0xff] %v3293_v30  ;;  %3582 = vst [vmem:[#allocation10 + $0x448] sm:$0xff] %v3294_v22  ;;  %v2989_v32 = vmul.f32 %v6459_v23, %v2669_v53  ;;  %v10152_v63 = vsub.f32 %v10151_v35, %v10094_v9 }
 0x285   :  { %v2990_v47 = vmul.f32 %v6461_v33, %v2670_v54  ;;  %v10154_v4 = vsub.f32 %v10153_v2, %v10094_v9  ;;  %v2991_v20 = vmul.f32 %v6463_v24, %v2671_v0  ;;  %v3307_v25 = vadd.f32 %v6455_v37, %v2987_v13  ;;  %v10159_v54 = vld [vmem:[#allocation169_spill] sm:$0xff]  ;;  %v10161_v0 = vld [vmem:[#allocation172_spill] sm:$0xff]  ;;  %v10165_v2 = vld [vmem:[#allocation171_spill] sm:$0xff] }
 0x286   :  { %v2661_v50 = vmul.f32 %v3810_v19, %v10152_v63  ;;  %v2992_v48 = vmul.f32 %v6465_v12, %v2672_v28  ;;  %v3308_v49 = vadd.f32 %v6457_v55, %v2988_v27  ;;  %v3309_v46 = vadd.f32 %v6467_v51, %v2989_v32  ;;  %v10163_v63 = vld [vmem:[#allocation170_spill] sm:$0xff] }
 0x287   :  { %v2662_v21 = vmul.f32 %v3810_v19, %v10154_v4  ;;  %v3310_v10 = vadd.f32 %v6469_v8, %v2990_v47  ;;  %v10156_v30 = vsub.f32 %v10155_v1, %v10094_v9  ;;  %v10158_v29 = vsub.f32 %v10157_v61, %v10094_v9  ;;  %3595 = vst [vmem:[#allocation10 + $0x4b0] sm:$0xff] %v3307_v25 }
 0x288   :  { %v3311_v11 = vadd.f32 %v6471_v17, %v2991_v20  ;;  %v3312_v14 = vadd.f32 %v6473_v58, %v2992_v48  ;;  %3596 = vst [vmem:[#allocation10 + $0x4b8] sm:$0xff] %v3308_v49  ;;  %v10160_v38 = vsub.f32 %v10159_v54, %v10094_v9  ;;  %v10162_v43 = vsub.f32 %v10161_v0, %v10094_v9  ;;  %v10173_v54 = vld [vmem:[#allocation178_spill] sm:$0xff] }
 0x289   :  { %v2663_v22 = vmul.f32 %v3810_v19, %v10156_v30  ;;  %v2664_v53 = vmul.f32 %v3810_v19, %v10158_v29  ;;  %3597 = vst [vmem:[#allocation10 + $0x4c0] sm:$0xff] %v3309_v46  ;;  %3598 = vst [vmem:[#allocation10 + $0x4c8] sm:$0xff] %v3310_v10  ;;  %v2981_v28 = vmul.f32 %v6451_v44, %v2661_v50  ;;  %v10167_v10 = vld [vmem:[#allocation173_spill] sm:$0xff] }
 0x28a   :  { %v2665_v18 = vmul.f32 %v3810_v19, %v10160_v38  ;;  %v2666_v62 = vmul.f32 %v3810_v19, %v10162_v43  ;;  %v2982_v13 = vmul.f32 %v6453_v16, %v2662_v21  ;;  %3599 = vst [vmem:[#allocation10 + $0x4d0] sm:$0xff] %v3311_v11  ;;  %3600 = vst [vmem:[#allocation10 + $0x4d8] sm:$0xff] %v3312_v14 }
 0x28b   :  { %v2983_v27 = vmul.f32 %v6459_v23, %v2663_v22  ;;  %v2984_v32 = vmul.f32 %v6461_v33, %v2664_v53  ;;  %v10164_v9 = vsub.f32 %v10163_v63, %v10095_v59  ;;  %v10166_v50 = vsub.f32 %v10165_v2, %v10095_v59  ;;  %v10169_v22 = vld [vmem:[#allocation174_spill] sm:$0xff]  ;;  %v10171_v53 = vld [vmem:[#allocation175_spill] sm:$0xff] }
 0x28c   :  { %v2985_v47 = vmul.f32 %v6463_v24, %v2665_v18  ;;  %v2986_v35 = vmul.f32 %v6465_v12, %v2666_v62  ;;  %v3301_v21 = vadd.f32 %v6455_v37, %v2981_v28  ;;  %v3302_v20 = vadd.f32 %v6457_v55, %v2982_v13  ;;  %v7545_v62 = vpop.xlane.xlu0 %1834 }
 0x28d   :  { %v2679_v19 = vmul.f32 %v7441_v7, %v10164_v9  ;;  %v2680_v4 = vmul.f32 %v7441_v7, %v10166_v50  ;;  %v3303_v48 = vadd.f32 %v6467_v51, %v2983_v27  ;;  %v3304_v25 = vadd.f32 %v6469_v8, %v2984_v32  ;;  %v10175_v27 = vld [vmem:[#allocation176_spill] sm:$0xff]  ;;  %v7561_v50 = vpop.xlane.xlu1 %1855 }
 0x28e   :  { %v3305_v49 = vadd.f32 %v6471_v17, %v2985_v47  ;;  %v3306_v46 = vadd.f32 %v6473_v58, %v2986_v35  ;;  %v10168_v1 = vsub.f32 %v10167_v10, %v10095_v59  ;;  %v10170_v61 = vsub.f32 %v10169_v22, %v10095_v59  ;;  %3589 = vst [vmem:[#allocation10 + $0x480] sm:$0xff] %v3301_v21  ;;  %v10183_v22 = vld [vmem:[#allocation181_spill] sm:$0xff] }
 0x28f   :  { %3590 = vst [vmem:[#allocation10 + $0x488] sm:$0xff] %v3302_v20  ;;  %3591 = vst [vmem:[#allocation10 + $0x490] sm:$0xff] %v3303_v48  ;;  %v10172_v11 = vsub.f32 %v10171_v53, %v10095_v59  ;;  %v10174_v38 = vsub.f32 %v10173_v54, %v10095_v59  ;;  %v2999_v0 = vmul.f32 %v6451_v44, %v2679_v19  ;;  %v10177_v59 = vld [vmem:[#allocation177_spill] sm:$0xff]  ;;  %v10179_v20 = vld [vmem:[#allocation179_spill] sm:$0xff]  ;;  %v1976_v34 = vmul.f32 0.0013020834, %v7561_v50 }
 0x290   :  { %v2681_v30 = vmul.f32 %v7441_v7, %v10168_v1  ;;  %v2682_v29 = vmul.f32 %v7441_v7, %v10170_v61  ;;  %3592 = vst [vmem:[#allocation10 + $0x498] sm:$0xff] %v3304_v25  ;;  %v3000_v43 = vmul.f32 %v6453_v16, %v2680_v4  ;;  %3593 = vst [vmem:[#allocation10 + $0x4a0] sm:$0xff] %v3305_v49  ;;  %v10181_v49 = vld [vmem:[#allocation180_spill] sm:$0xff] }
 0x291   :  { %v2683_v14 = vmul.f32 %v7441_v7, %v10172_v11  ;;  %v2684_v18 = vmul.f32 %v7441_v7, %v10174_v38  ;;  %3594 = vst [vmem:[#allocation10 + $0x4a8] sm:$0xff] %v3306_v46  ;;  %v10176_v32 = vsub.f32 %v10175_v27, %v10096_v52  ;;  %v10178_v7 = vsub.f32 %v10177_v59, %v10096_v52  ;;  %v10185_v53 = vld [vmem:[#allocation184_spill] sm:$0xff]  ;;  %v10189_v27 = vld [vmem:[#allocation183_spill] sm:$0xff]  ;;  %v1849_v59 = vpop.xlane.xlu0 %1848 }
 0x292   :  { %v3001_v28 = vmul.f32 %v6459_v23, %v2681_v30  ;;  %v3002_v13 = vmul.f32 %v6461_v33, %v2682_v29  ;;  %v3319_v19 = vadd.f32 %v6455_v37, %v2999_v0  ;;  %v3320_v2 = vadd.f32 %v6457_v55, %v3000_v43 }
 0x293   :  { %v2673_v47 = vmul.f32 %v7447_v60, %v10176_v32  ;;  %v2674_v35 = vmul.f32 %v7447_v60, %v10178_v7  ;;  %v3003_v63 = vmul.f32 %v6463_v24, %v2683_v14  ;;  %v3004_v9 = vmul.f32 %v6465_v12, %v2684_v18 }
 0x294   :  { %v3321_v4 = vadd.f32 %v6467_v51, %v3001_v28  ;;  %v3322_v21 = vadd.f32 %v6469_v8, %v3002_v13  ;;  %v10180_v48 = vsub.f32 %v10179_v20, %v10096_v52  ;;  %v10182_v46 = vsub.f32 %v10181_v49, %v10096_v52  ;;  %3607 = vst [vmem:[#allocation10 + $0x510] sm:$0xff] %v3319_v19  ;;  %v10187_v13 = vld [vmem:[#allocation182_spill] sm:$0xff] }
 0x295   :  { %v3323_v1 = vadd.f32 %v6471_v17, %v3003_v63  ;;  %v3324_v30 = vadd.f32 %v6473_v58, %v3004_v9  ;;  %3608 = vst [vmem:[#allocation10 + $0x518] sm:$0xff] %v3320_v2  ;;  %v10184_v61 = vsub.f32 %v10183_v22, %v10096_v52  ;;  %v10186_v11 = vsub.f32 %v10185_v53, %v10096_v52  ;;  %v10197_v22 = vld [vmem:[#allocation190_spill] sm:$0xff]  ;;  %v1863_v56 = vpop.xlane.xlu0 %1862 }
 0x296   :  { %v2675_v25 = vmul.f32 %v7447_v60, %v10180_v48  ;;  %v2676_v10 = vmul.f32 %v7447_v60, %v10182_v46  ;;  %3609 = vst [vmem:[#allocation10 + $0x520] sm:$0xff] %v3321_v4  ;;  %3610 = vst [vmem:[#allocation10 + $0x528] sm:$0xff] %v3322_v21  ;;  %v2993_v54 = vmul.f32 %v6451_v44, %v2673_v47  ;;  %v10191_v4 = vld [vmem:[#allocation185_spill] sm:$0xff]  ;;  %v10193_v48 = vld [vmem:[#allocation186_spill] sm:$0xff]  ;;  %v1870_v46 = vpop.xlane.xlu1 %1869 }
 0x297   :  { %v2677_v29 = vmul.f32 %v7447_v60, %v10184_v61  ;;  %v2678_v14 = vmul.f32 %v7447_v60, %v10186_v11  ;;  %v2994_v38 = vmul.f32 %v6453_v16, %v2674_v35  ;;  %3611 = vst [vmem:[#allocation10 + $0x530] sm:$0xff] %v3323_v1  ;;  %3612 = vst [vmem:[#allocation10 + $0x538] sm:$0xff] %v3324_v30 }
 0x298   :  { %v2995_v18 = vmul.f32 %v6459_v23, %v2675_v25  ;;  %v2996_v0 = vmul.f32 %v6461_v33, %v2676_v10  ;;  %v10188_v52 = vsub.f32 %v10187_v13, %v10097_v57  ;;  %v10190_v32 = vsub.f32 %v10189_v27, %v10097_v57  ;;  %v10195_v10 = vld [vmem:[#allocation187_spill] sm:$0xff] }
 0x299   :  { %v2997_v43 = vmul.f32 %v6463_v24, %v2677_v29  ;;  %v2998_v28 = vmul.f32 %v6465_v12, %v2678_v14  ;;  %v3313_v7 = vadd.f32 %v6455_v37, %v2993_v54  ;;  %v3314_v35 = vadd.f32 %v6457_v55, %v2994_v38 }
 0x29a   :  { %v2691_v60 = vmul.f32 %v7461_v6, %v10188_v52  ;;  %v2692_v47 = vmul.f32 %v7461_v6, %v10190_v32  ;;  %v3315_v63 = vadd.f32 %v6467_v51, %v2995_v18  ;;  %v3316_v9 = vadd.f32 %v6469_v8, %v2996_v0  ;;  %v10200_v32 = vld [vmem:[#allocation334_spill] sm:$0xff] }
 0x29b   :  { %v3317_v19 = vadd.f32 %v6471_v17, %v2997_v43  ;;  %v3318_v2 = vadd.f32 %v6473_v58, %v2998_v28  ;;  %v10192_v21 = vsub.f32 %v10191_v4, %v10097_v57  ;;  %v10194_v25 = vsub.f32 %v10193_v48, %v10097_v57  ;;  %3601 = vst [vmem:[#allocation10 + $0x4e0] sm:$0xff] %v3313_v7  ;;  %v1884_v7 = vpop.xlane.xlu1 %1883 }
 0x29c   :  { %3602 = vst [vmem:[#allocation10 + $0x4e8] sm:$0xff] %v3314_v35  ;;  %3603 = vst [vmem:[#allocation10 + $0x4f0] sm:$0xff] %v3315_v63  ;;  %v10196_v1 = vsub.f32 %v10195_v10, %v10097_v57  ;;  %v10198_v61 = vsub.f32 %v10197_v22, %v10097_v57  ;;  %v3011_v53 = vmul.f32 %v6451_v44, %v2691_v60  ;;  %v2115_v38 = vmax.f32 %v2067_v26, 0.0  ;;  %v10199_v60 = vld [vmem:[#allocation333_spill] sm:$0xff] }
 0x29d   :  { %v2693_v20 = vmul.f32 %v7461_v6, %v10192_v21  ;;  %v2694_v49 = vmul.f32 %v7461_v6, %v10194_v25  ;;  %3604 = vst [vmem:[#allocation10 + $0x4f8] sm:$0xff] %v3316_v9  ;;  %v3012_v11 = vmul.f32 %v6453_v16, %v2692_v47  ;;  %3605 = vst [vmem:[#allocation10 + $0x500] sm:$0xff] %v3317_v19  ;;  %v1973_v26 = vmul.f32 0.0013020834, %v7545_v62  ;;  %v10203_v25 = vld [vmem:[#allocation337_spill] sm:$0xff] }
 0x29e   :  { %v2695_v30 = vmul.f32 %v7461_v6, %v10196_v1  ;;  %v2696_v29 = vmul.f32 %v7461_v6, %v10198_v61  ;;  %3606 = vst [vmem:[#allocation10 + $0x508] sm:$0xff] %v3318_v2  ;;  %v3331_v18 = vadd.f32 %v6455_v37, %v3011_v53  ;;  %v2163_v13 = vadd.f32 1e-05, %v2115_v38  ;;  %v10202_v2 = vld [vmem:[#allocation336_spill] sm:$0xff] }
 0x29f   :  { %v3013_v14 = vmul.f32 %v6459_v23, %v2693_v20  ;;  %v3014_v54 = vmul.f32 %v6461_v33, %v2694_v49  ;;  %v3332_v0 = vadd.f32 %v6457_v55, %v3012_v11  ;;  %v2070_v3 = vsub.f32 %v7351_v41, %v7349_v39  ;;  %v10201_v41 = vld [vmem:[#allocation335_spill] sm:$0xff]  ;;  %v1898_v38 = vpop.xlane.xlu1 %1897 }
 0x2a0   :  { %v3015_v57 = vmul.f32 %v6463_v24, %v2695_v30  ;;  %v3016_v6 = vmul.f32 %v6465_v12, %v2696_v29  ;;  %3619 = vst [vmem:[#allocation10 + $0x570] sm:$0xff] %v3331_v18  ;;  %3821 = vrsqrt.f32 %v2163_v13  ;;  %v2024_v27 = vmul.f32 %v10199_v60, %v10199_v60  ;;  %v10204_v29 = vld [vmem:[#allocation338_spill] sm:$0xff]  ;;  %v10205_v18 = vld [vmem:[#allocation339_spill] sm:$0xff] }
 0x2a1   :  { %v3333_v43 = vadd.f32 %v6467_v51, %v3013_v14  ;;  %v3334_v28 = vadd.f32 %v6469_v8, %v3014_v54  ;;  %3620 = vst [vmem:[#allocation10 + $0x578] sm:$0xff] %v3332_v0  ;;  %v2023_v47 = vmul.f32 %v10200_v32, %v10200_v32  ;;  %v2118_v35 = vmax.f32 %v2070_v3, 0.0  ;;  %v10206_v3 = vld [vmem:[#allocation306_spill] sm:$0xff] }
 0x2a2   :  { %v3335_v52 = vadd.f32 %v6471_v17, %v3015_v57  ;;  %v3336_v42 = vadd.f32 %v6473_v58, %v3016_v6  ;;  %v2069_v63 = vsub.f32 %v1973_v26, %v7359_v45  ;;  %v1975_v39 = vmul.f32 0.0013020834, %v1849_v59  ;;  %v1877_v59 = vpop.xlane.xlu0 %1876 }
 0x2a3   :  { %3621 = vst [vmem:[#allocation10 + $0x580] sm:$0xff] %v3333_v43  ;;  %3622 = vst [vmem:[#allocation10 + $0x588] sm:$0xff] %v3334_v28  ;;  %v2026_v62 = vmul.f32 %v10201_v41, %v10201_v41  ;;  %v2072_v9 = vsub.f32 %v1976_v34, %v2024_v27  ;;  %v1978_v19 = vmul.f32 0.0013020834, %v1870_v46  ;;  %v2025_v4 = vmul.f32 %v10202_v2, %v10202_v2  ;;  %v10207_v27 = vld [vmem:[#allocation188_spill] sm:$0xff] }
 0x2a4   :  { %3623 = vst [vmem:[#allocation10 + $0x590] sm:$0xff] %v3335_v52  ;;  %3624 = vst [vmem:[#allocation10 + $0x598] sm:$0xff] %v3336_v42  ;;  %v1977_v21 = vmul.f32 0.0013020834, %v1863_v56  ;;  %v2166_v50 = vadd.f32 1e-05, %v2118_v35  ;;  %v2071_v48 = vsub.f32 %v1975_v39, %v2023_v47  ;;  %v2028_v49 = vmul.f32 %v10203_v25, %v10203_v25  ;;  %v3818_v56 = vpop.eup %3817 }
 0x2a5   :  { %v2117_v20 = vmax.f32 %v2069_v63, 0.0  ;;  %v2120_v10 = vmax.f32 %v2072_v9, 0.0  ;;  %v2074_v1 = vsub.f32 %v1978_v19, %v2026_v62  ;;  %v1980_v45 = vmul.f32 0.0013020834, %v1884_v7  ;;  %v10209_v7 = vld [vmem:[#allocation189_spill] sm:$0xff]  ;;  %v10211_v39 = vld [vmem:[#allocation191_spill] sm:$0xff] }
 0x2a6   :  { %v2073_v30 = vsub.f32 %v1977_v21, %v2025_v4  ;;  %3823 = vrsqrt.f32 %v2166_v50  ;;  %v2119_v61 = vmax.f32 %v2071_v48, 0.0  ;;  %v7653_v46 = vmul.f32 %v10204_v29, %v10204_v29  ;;  %v10213_v19 = vld [vmem:[#allocation192_spill] sm:$0xff]  ;;  %v3820_v50 = vpop.eup %3819 }
 0x2a7   :  { %v2165_v22 = vadd.f32 1e-05, %v2117_v20  ;;  %v2168_v53 = vadd.f32 1e-05, %v2120_v10  ;;  %v2122_v11 = vmax.f32 %v2074_v1, 0.0  ;;  %v2076_v54 = vsub.f32 %v1980_v45, %v2028_v49  ;;  %v10215_v20 = vld [vmem:[#allocation193_spill] sm:$0xff] }
 0x2a8   :  { %v2121_v14 = vmax.f32 %v2073_v30, 0.0  ;;  %v2167_v57 = vadd.f32 1e-05, %v2119_v61  ;;  %v7655_v6 = vmul.f32 0.0013020834, %v1877_v59  ;;  %v7659_v0 = vmul.f32 %v10205_v18, %v10205_v18  ;;  %v10217_v10 = vld [vmem:[#allocation196_spill] sm:$0xff] }
 0x2a9   :  { %3825 = vrsqrt.f32 %v2165_v22  ;;  %v2170_v43 = vadd.f32 1e-05, %v2122_v11  ;;  %v2124_v13 = vmax.f32 %v2076_v54, 0.0  ;;  %v7665_v42 = vmul.f32 0.0013020834, %v1898_v38  ;;  %v10219_v38 = vld [vmem:[#allocation194_spill] sm:$0xff] }
 0x2aa   :  { %3827 = vrsqrt.f32 %v2168_v53  ;;  %v7661_v28 = vadd.f32 1e-05, %v2121_v14  ;;  %v2075_v52 = vsub.f32 %v7655_v6, %v7653_v46  ;;  %v7669_v26 = vmul.f32 %v10206_v3, %v10206_v3 }
 0x2ab   :  { %3829 = vrsqrt.f32 %v2167_v57  ;;  %v10208_v34 = vsub.f32 %v10207_v27, %v10098_v5  ;;  %v10210_v35 = vsub.f32 %v10209_v7, %v10098_v5  ;;  %v10212_v62 = vsub.f32 %v10211_v39, %v10098_v5  ;;  %v10223_v39 = vld [vmem:[#allocation197_spill] sm:$0xff] }
 0x2ac   :  { %v10214_v4 = vsub.f32 %v10213_v19, %v10098_v5  ;;  %v10216_v48 = vsub.f32 %v10215_v20, %v10098_v5  ;;  %v10218_v1 = vsub.f32 %v10217_v10, %v10098_v5  ;;  %3831 = vrsqrt.f32 %v2170_v43  ;;  %v10221_v43 = vld [vmem:[#allocation195_spill] sm:$0xff]  ;;  %v10225_v19 = vld [vmem:[#allocation198_spill] sm:$0xff] }
 0x2ad   :  { %v2685_v47 = vmul.f32 %v3818_v56, %v10208_v34  ;;  %v2686_v63 = vmul.f32 %v3818_v56, %v10210_v35  ;;  %v2687_v9 = vmul.f32 %v3818_v56, %v10212_v62  ;;  %v7689_v45 = vadd.f32 1e-05, %v2124_v13  ;;  %v3822_v11 = vpop.eup %3821  ;;  %v10227_v20 = vld [vmem:[#allocation199_spill] sm:$0xff]  ;;  %v10229_v10 = vld [vmem:[#allocation202_spill] sm:$0xff] }
 0x2ae   :  { %v2688_v21 = vmul.f32 %v3818_v56, %v10214_v4  ;;  %v2689_v49 = vmul.f32 %v3818_v56, %v10216_v48  ;;  %v2690_v30 = vmul.f32 %v3818_v56, %v10218_v1  ;;  %v10220_v5 = vsub.f32 %v10219_v38, %v10099_v31 }
 0x2af   :  { %v3005_v59 = vmul.f32 %v6451_v44, %v2685_v47  ;;  %v3006_v22 = vmul.f32 %v6453_v16, %v2686_v63  ;;  %v3007_v61 = vmul.f32 %v6459_v23, %v2687_v9  ;;  %v10222_v13 = vsub.f32 %v10221_v43, %v10099_v31 }
 0x2b0   :  { %v3008_v53 = vmul.f32 %v6461_v33, %v2688_v21  ;;  %v3009_v14 = vmul.f32 %v6463_v24, %v2689_v49  ;;  %v3010_v54 = vmul.f32 %v6465_v12, %v2690_v30  ;;  %v2703_v57 = vmul.f32 %v3820_v50, %v10220_v5  ;;  %v10233_v5 = vld [vmem:[#allocation201_spill] sm:$0xff] }
 0x2b1   :  { %v2704_v56 = vmul.f32 %v3820_v50, %v10222_v13  ;;  %v3325_v27 = vadd.f32 %v6455_v37, %v3005_v59  ;;  %v3326_v34 = vadd.f32 %v6457_v55, %v3006_v22  ;;  %v3327_v47 = vadd.f32 %v6467_v51, %v3007_v61 }
 0x2b2   :  { %v3328_v7 = vadd.f32 %v6469_v8, %v3008_v53  ;;  %v3329_v35 = vadd.f32 %v6471_v17, %v3009_v14  ;;  %v3330_v63 = vadd.f32 %v6473_v58, %v3010_v54  ;;  %v10224_v62 = vsub.f32 %v10223_v39, %v10099_v31  ;;  %v10231_v14 = vld [vmem:[#allocation200_spill] sm:$0xff] }
 0x2b3   :  { %v10226_v4 = vsub.f32 %v10225_v19, %v10099_v31  ;;  %3613 = vst [vmem:[#allocation10 + $0x540] sm:$0xff] %v3325_v27  ;;  %3614 = vst [vmem:[#allocation10 + $0x548] sm:$0xff] %v3326_v34  ;;  %v10228_v48 = vsub.f32 %v10227_v20, %v10099_v31  ;;  %v10230_v1 = vsub.f32 %v10229_v10, %v10099_v31  ;;  %v3824_v31 = vpop.eup %3823  ;;  %v10237_v39 = vld [vmem:[#allocation204_spill] sm:$0xff]  ;;  %v10239_v20 = vld [vmem:[#allocation205_spill] sm:$0xff]  ;;  %3833 = vrsqrt.f32 %v7661_v28 }
 0x2b4   :  { %v2705_v9 = vmul.f32 %v3820_v50, %v10224_v62  ;;  %3615 = vst [vmem:[#allocation10 + $0x550] sm:$0xff] %v3327_v47  ;;  %3616 = vst [vmem:[#allocation10 + $0x558] sm:$0xff] %v3328_v7  ;;  %v3023_v59 = vmul.f32 %v6451_v44, %v2703_v57  ;;  %v3024_v22 = vmul.f32 %v6453_v16, %v2704_v56  ;;  %v10235_v7 = vld [vmem:[#allocation203_spill] sm:$0xff]  ;;  %v10241_v10 = vld [vmem:[#allocation208_spill] sm:$0xff]  ;;  %3835 = vrsqrt.f32 %v7689_v45 }
 0x2b5   :  { %v2706_v21 = vmul.f32 %v3820_v50, %v10226_v4  ;;  %v2707_v49 = vmul.f32 %v3820_v50, %v10228_v48  ;;  %v2708_v30 = vmul.f32 %v3820_v50, %v10230_v1  ;;  %3617 = vst [vmem:[#allocation10 + $0x560] sm:$0xff] %v3329_v35  ;;  %3618 = vst [vmem:[#allocation10 + $0x568] sm:$0xff] %v3330_v63 }
 0x2b6   :  { %v3025_v61 = vmul.f32 %v6459_v23, %v2705_v9  ;;  %v10232_v54 = vsub.f32 %v10231_v14, %v10100_v36  ;;  %v10234_v43 = vsub.f32 %v10233_v5, %v10100_v36  ;;  %v3343_v56 = vadd.f32 %v6455_v37, %v3023_v59  ;;  %v3826_v19 = vpop.eup %3825 }
 0x2b7   :  { %v3026_v53 = vmul.f32 %v6461_v33, %v2706_v21  ;;  %v3027_v50 = vmul.f32 %v6463_v24, %v2707_v49  ;;  %v3028_v57 = vmul.f32 %v6465_v12, %v2708_v30  ;;  %v3344_v27 = vadd.f32 %v6457_v55, %v3024_v22  ;;  %v7751_v59 = vpop.eup %3827 }
 0x2b8   :  { %v2697_v38 = vmul.f32 %v3822_v11, %v10232_v54  ;;  %v2698_v13 = vmul.f32 %v3822_v11, %v10234_v43  ;;  %v3345_v34 = vadd.f32 %v6467_v51, %v3025_v61  ;;  %v10236_v35 = vsub.f32 %v10235_v7, %v10100_v36  ;;  %3631 = vst [vmem:[#allocation10 + $0x5d0] sm:$0xff] %v3343_v56  ;;  %v7757_v54 = vpop.eup %3829 }
 0x2b9   :  { %v3346_v47 = vadd.f32 %v6469_v8, %v3026_v53  ;;  %v10238_v62 = vsub.f32 %v10237_v39, %v10100_v36  ;;  %v3347_v4 = vadd.f32 %v6471_v17, %v3027_v50  ;;  %v3348_v21 = vadd.f32 %v6473_v58, %v3028_v57  ;;  %3632 = vst [vmem:[#allocation10 + $0x5d8] sm:$0xff] %v3344_v27  ;;  %v10245_v57 = vld [vmem:[#allocation207_spill] sm:$0xff]  ;;  %v7771_v7 = vpop.eup %3831  ;;  %v10247_v39 = vld [vmem:[#allocation209_spill] sm:$0xff] }
 0x2ba   :  { %v2699_v63 = vmul.f32 %v3822_v11, %v10236_v35  ;;  %v10240_v48 = vsub.f32 %v10239_v20, %v10100_v36  ;;  %v10242_v1 = vsub.f32 %v10241_v10, %v10100_v36  ;;  %3633 = vst [vmem:[#allocation10 + $0x5e0] sm:$0xff] %v3345_v34  ;;  %v3017_v22 = vmul.f32 %v6451_v44, %v2697_v38 }
 0x2bb   :  { %v2700_v9 = vmul.f32 %v3822_v11, %v10238_v62  ;;  %3634 = vst [vmem:[#allocation10 + $0x5e8] sm:$0xff] %v3346_v47  ;;  %v3018_v61 = vmul.f32 %v6453_v16, %v2698_v13  ;;  %3635 = vst [vmem:[#allocation10 + $0x5f0] sm:$0xff] %v3347_v4  ;;  %v10246_v38 = vsub.f32 %v10245_v57, %v10101_v40  ;;  %v10249_v4 = vld [vmem:[#allocation210_spill] sm:$0xff]  ;;  %v10257_v57 = vld [vmem:[#allocation213_spill] sm:$0xff] }
 0x2bc   :  { %v2701_v49 = vmul.f32 %v3822_v11, %v10240_v48  ;;  %v2702_v30 = vmul.f32 %v3822_v11, %v10242_v1  ;;  %v3019_v53 = vmul.f32 %v6459_v23, %v2699_v63  ;;  %3636 = vst [vmem:[#allocation10 + $0x5f8] sm:$0xff] %v3348_v21  ;;  %v10243_v11 = vld [vmem:[#allocation206_spill] sm:$0xff]  ;;  %v3337_v56 = vadd.f32 %v6455_v37, %v3017_v22  ;;  %v10251_v48 = vld [vmem:[#allocation211_spill] sm:$0xff] }
 0x2bd   :  { %v3020_v14 = vmul.f32 %v6461_v33, %v2700_v9  ;;  %v10244_v43 = vsub.f32 %v10243_v11, %v10101_v40  ;;  %v2716_v13 = vmul.f32 %v3824_v31, %v10246_v38  ;;  %v3338_v27 = vadd.f32 %v6457_v55, %v3018_v61  ;;  %v10253_v1 = vld [vmem:[#allocation214_spill] sm:$0xff] }
 0x2be   :  { %v3021_v5 = vmul.f32 %v6463_v24, %v2701_v49  ;;  %v3022_v36 = vmul.f32 %v6465_v12, %v2702_v30  ;;  %v3339_v34 = vadd.f32 %v6467_v51, %v3019_v53  ;;  %v10248_v62 = vsub.f32 %v10247_v39, %v10101_v40  ;;  %3625 = vst [vmem:[#allocation10 + $0x5a0] sm:$0xff] %v3337_v56  ;;  %v10261_v39 = vld [vmem:[#allocation216_spill] sm:$0xff] }
 0x2bf   :  { %v2715_v50 = vmul.f32 %v3824_v31, %v10244_v43  ;;  %v3340_v47 = vadd.f32 %v6469_v8, %v3020_v14  ;;  %v10250_v21 = vsub.f32 %v10249_v4, %v10101_v40  ;;  %3626 = vst [vmem:[#allocation10 + $0x5a8] sm:$0xff] %v3338_v27  ;;  %v10252_v49 = vsub.f32 %v10251_v48, %v10101_v40 }
 0x2c0   :  { %v3341_v35 = vadd.f32 %v6471_v17, %v3021_v5  ;;  %v3342_v63 = vadd.f32 %v6473_v58, %v3022_v36  ;;  %v2717_v9 = vmul.f32 %v3824_v31, %v10248_v62  ;;  %3627 = vst [vmem:[#allocation10 + $0x5b0] sm:$0xff] %v3339_v34  ;;  %v10254_v30 = vsub.f32 %v10253_v1, %v10101_v40  ;;  %v10255_v36 = vld [vmem:[#allocation212_spill] sm:$0xff] }
 0x2c1   :  { %v2718_v20 = vmul.f32 %v3824_v31, %v10250_v21  ;;  %3628 = vst [vmem:[#allocation10 + $0x5b8] sm:$0xff] %v3340_v47  ;;  %v2719_v10 = vmul.f32 %v3824_v31, %v10252_v49  ;;  %v3035_v61 = vmul.f32 %v6451_v44, %v2715_v50  ;;  %v3036_v53 = vmul.f32 %v6453_v16, %v2716_v13  ;;  %v10259_v47 = vld [vmem:[#allocation215_spill] sm:$0xff] }
 0x2c2   :  { %v2720_v22 = vmul.f32 %v3824_v31, %v10254_v30  ;;  %3629 = vst [vmem:[#allocation10 + $0x5c0] sm:$0xff] %v3341_v35  ;;  %3630 = vst [vmem:[#allocation10 + $0x5c8] sm:$0xff] %v3342_v63  ;;  %v3037_v14 = vmul.f32 %v6459_v23, %v2717_v9  ;;  %v10256_v11 = vsub.f32 %v10255_v36, %v10102_v15 }
 0x2c3   :  { %v3038_v5 = vmul.f32 %v6461_v33, %v2718_v20  ;;  %v10258_v38 = vsub.f32 %v10257_v57, %v10102_v15  ;;  %v3039_v40 = vmul.f32 %v6463_v24, %v2719_v10  ;;  %v3355_v50 = vadd.f32 %v6455_v37, %v3035_v61  ;;  %v10263_v20 = vld [vmem:[#allocation217_spill] sm:$0xff]  ;;  %v10265_v10 = vld [vmem:[#allocation220_spill] sm:$0xff]  ;;  %v10269_v57 = vld [vmem:[#allocation219_spill] sm:$0xff] }
 0x2c4   :  { %v2709_v43 = vmul.f32 %v3826_v19, %v10256_v11  ;;  %v3040_v31 = vmul.f32 %v6465_v12, %v2720_v22  ;;  %v3356_v13 = vadd.f32 %v6457_v55, %v3036_v53  ;;  %v3357_v27 = vadd.f32 %v6467_v51, %v3037_v14  ;;  %v10267_v11 = vld [vmem:[#allocation218_spill] sm:$0xff] }
 0x2c5   :  { %v2710_v56 = vmul.f32 %v3826_v19, %v10258_v38  ;;  %v3358_v34 = vadd.f32 %v6469_v8, %v3038_v5  ;;  %v10260_v35 = vsub.f32 %v10259_v47, %v10102_v15  ;;  %v10262_v62 = vsub.f32 %v10261_v39, %v10102_v15  ;;  %3643 = vst [vmem:[#allocation10 + $0x630] sm:$0xff] %v3355_v50 }
 0x2c6   :  { %v3359_v4 = vadd.f32 %v6471_v17, %v3039_v40  ;;  %v3360_v21 = vadd.f32 %v6473_v58, %v3040_v31  ;;  %3644 = vst [vmem:[#allocation10 + $0x638] sm:$0xff] %v3356_v13  ;;  %v10264_v48 = vsub.f32 %v10263_v20, %v10102_v15  ;;  %v10266_v1 = vsub.f32 %v10265_v10, %v10102_v15  ;;  %v10277_v20 = vld [vmem:[#allocation226_spill] sm:$0xff] }
 0x2c7   :  { %v2711_v63 = vmul.f32 %v3826_v19, %v10260_v35  ;;  %v2712_v9 = vmul.f32 %v3826_v19, %v10262_v62  ;;  %3645 = vst [vmem:[#allocation10 + $0x640] sm:$0xff] %v3357_v27  ;;  %3646 = vst [vmem:[#allocation10 + $0x648] sm:$0xff] %v3358_v34  ;;  %v3029_v22 = vmul.f32 %v6451_v44, %v2709_v43  ;;  %v10271_v34 = vld [vmem:[#allocation221_spill] sm:$0xff] }
 0x2c8   :  { %v2713_v49 = vmul.f32 %v3826_v19, %v10264_v48  ;;  %v2714_v30 = vmul.f32 %v3826_v19, %v10266_v1  ;;  %v3030_v61 = vmul.f32 %v6453_v16, %v2710_v56  ;;  %3647 = vst [vmem:[#allocation10 + $0x650] sm:$0xff] %v3359_v4  ;;  %3648 = vst [vmem:[#allocation10 + $0x658] sm:$0xff] %v3360_v21 }
 0x2c9   :  { %v3031_v53 = vmul.f32 %v6459_v23, %v2711_v63  ;;  %v3032_v14 = vmul.f32 %v6461_v33, %v2712_v9  ;;  %v10268_v15 = vsub.f32 %v10267_v11, %v10199_v60  ;;  %v10270_v43 = vsub.f32 %v10269_v57, %v10199_v60  ;;  %v10273_v63 = vld [vmem:[#allocation222_spill] sm:$0xff]  ;;  %v10275_v9 = vld [vmem:[#allocation223_spill] sm:$0xff] }
 0x2ca   :  { %v3033_v5 = vmul.f32 %v6463_v24, %v2713_v49  ;;  %v3034_v36 = vmul.f32 %v6465_v12, %v2714_v30  ;;  %v3349_v56 = vadd.f32 %v6455_v37, %v3029_v22  ;;  %v3350_v40 = vadd.f32 %v6457_v55, %v3030_v61  ;;  %v7855_v30 = vpop.xlane.xlu0 %1890 }
 0x2cb   :  { %v2727_v19 = vmul.f32 %v7751_v59, %v10268_v15  ;;  %v2728_v38 = vmul.f32 %v7751_v59, %v10270_v43  ;;  %v3351_v31 = vadd.f32 %v6467_v51, %v3031_v53  ;;  %v3352_v50 = vadd.f32 %v6469_v8, %v3032_v14  ;;  %v10279_v53 = vld [vmem:[#allocation224_spill] sm:$0xff] }
 0x2cc   :  { %v3353_v13 = vadd.f32 %v6471_v17, %v3033_v5  ;;  %v3354_v27 = vadd.f32 %v6473_v58, %v3034_v36  ;;  %v10272_v47 = vsub.f32 %v10271_v34, %v10199_v60  ;;  %v10274_v39 = vsub.f32 %v10273_v63, %v10199_v60  ;;  %3637 = vst [vmem:[#allocation10 + $0x600] sm:$0xff] %v3349_v56  ;;  %v10283_v56 = vld [vmem:[#allocation227_spill] sm:$0xff]  ;;  %v1912_v34 = vpop.xlane.xlu1 %1911  ;;  %v10287_v63 = vld [vmem:[#allocation229_spill] sm:$0xff] }
 0x2cd   :  { %3638 = vst [vmem:[#allocation10 + $0x608] sm:$0xff] %v3350_v40  ;;  %3639 = vst [vmem:[#allocation10 + $0x610] sm:$0xff] %v3351_v31  ;;  %v10276_v4 = vsub.f32 %v10275_v9, %v10199_v60  ;;  %v10278_v48 = vsub.f32 %v10277_v20, %v10199_v60  ;;  %v3047_v10 = vmul.f32 %v6451_v44, %v2727_v19  ;;  %v10281_v60 = vld [vmem:[#allocation225_spill] sm:$0xff]  ;;  %v10289_v9 = vld [vmem:[#allocation232_spill] sm:$0xff]  ;;  %v1984_v45 = vmul.f32 0.0013020834, %v1912_v34 }
 0x2ce   :  { %v2729_v35 = vmul.f32 %v7751_v59, %v10272_v47  ;;  %v2730_v62 = vmul.f32 %v7751_v59, %v10274_v39  ;;  %3640 = vst [vmem:[#allocation10 + $0x618] sm:$0xff] %v3352_v50  ;;  %v3048_v1 = vmul.f32 %v6453_v16, %v2728_v38  ;;  %3641 = vst [vmem:[#allocation10 + $0x620] sm:$0xff] %v3353_v13  ;;  %v10285_v50 = vld [vmem:[#allocation228_spill] sm:$0xff] }
 0x2cf   :  { %v2731_v21 = vmul.f32 %v7751_v59, %v10276_v4  ;;  %v2732_v49 = vmul.f32 %v7751_v59, %v10278_v48  ;;  %3642 = vst [vmem:[#allocation10 + $0x628] sm:$0xff] %v3354_v27  ;;  %v10280_v14 = vsub.f32 %v10279_v53, %v10200_v32  ;;  %v10282_v59 = vsub.f32 %v10281_v60, %v10200_v32  ;;  %v10293_v53 = vld [vmem:[#allocation231_spill] sm:$0xff]  ;;  %v1905_v60 = vpop.xlane.xlu0 %1904 }
 0x2d0   :  { %v3049_v22 = vmul.f32 %v6459_v23, %v2729_v35  ;;  %v3050_v61 = vmul.f32 %v6461_v33, %v2730_v62  ;;  %v3367_v19 = vadd.f32 %v6455_v37, %v3047_v10  ;;  %v3368_v57 = vadd.f32 %v6457_v55, %v3048_v1 }
 0x2d1   :  { %v2721_v5 = vmul.f32 %v7757_v54, %v10280_v14  ;;  %v2722_v36 = vmul.f32 %v7757_v54, %v10282_v59  ;;  %v3051_v11 = vmul.f32 %v6463_v24, %v2731_v21  ;;  %v3052_v15 = vmul.f32 %v6465_v12, %v2732_v49 }
 0x2d2   :  { %v3369_v43 = vadd.f32 %v6467_v51, %v3049_v22  ;;  %v3370_v38 = vadd.f32 %v6469_v8, %v3050_v61  ;;  %v10284_v40 = vsub.f32 %v10283_v56, %v10200_v32  ;;  %v10286_v13 = vsub.f32 %v10285_v50, %v10200_v32  ;;  %3655 = vst [vmem:[#allocation10 + $0x690] sm:$0xff] %v3367_v19  ;;  %v10291_v61 = vld [vmem:[#allocation230_spill] sm:$0xff] }
 0x2d3   :  { %v3371_v47 = vadd.f32 %v6471_v17, %v3051_v11  ;;  %v3372_v35 = vadd.f32 %v6473_v58, %v3052_v15  ;;  %3656 = vst [vmem:[#allocation10 + $0x698] sm:$0xff] %v3368_v57  ;;  %v10288_v39 = vsub.f32 %v10287_v63, %v10200_v32  ;;  %v10290_v4 = vsub.f32 %v10289_v9, %v10200_v32  ;;  %v1919_v28 = vpop.xlane.xlu0 %1918 }
 0x2d4   :  { %v2723_v31 = vmul.f32 %v7757_v54, %v10284_v40  ;;  %v2724_v27 = vmul.f32 %v7757_v54, %v10286_v13  ;;  %3657 = vst [vmem:[#allocation10 + $0x6a0] sm:$0xff] %v3369_v43  ;;  %3658 = vst [vmem:[#allocation10 + $0x6a8] sm:$0xff] %v3370_v38  ;;  %v3041_v20 = vmul.f32 %v6451_v44, %v2721_v5  ;;  %v10295_v43 = vld [vmem:[#allocation233_spill] sm:$0xff]  ;;  %v10297_v40 = vld [vmem:[#allocation234_spill] sm:$0xff] }
 0x2d5   :  { %v2725_v62 = vmul.f32 %v7757_v54, %v10288_v39  ;;  %v2726_v21 = vmul.f32 %v7757_v54, %v10290_v4  ;;  %v3042_v48 = vmul.f32 %v6453_v16, %v2722_v36  ;;  %3659 = vst [vmem:[#allocation10 + $0x6b0] sm:$0xff] %v3371_v47  ;;  %3660 = vst [vmem:[#allocation10 + $0x6b8] sm:$0xff] %v3372_v35  ;;  %v10299_v13 = vld [vmem:[#allocation235_spill] sm:$0xff]  ;;  %v10301_v35 = vld [vmem:[#allocation238_spill] sm:$0xff]  ;;  %v1926_v4 = vpop.xlane.xlu1 %1925 }
 0x2d6   :  { %v3043_v49 = vmul.f32 %v6459_v23, %v2723_v31  ;;  %v3044_v10 = vmul.f32 %v6461_v33, %v2724_v27  ;;  %v10292_v32 = vsub.f32 %v10291_v61, %v10201_v41  ;;  %v10294_v14 = vsub.f32 %v10293_v53, %v10201_v41 }
 0x2d7   :  { %v3045_v1 = vmul.f32 %v6463_v24, %v2725_v62  ;;  %v3046_v22 = vmul.f32 %v6465_v12, %v2726_v21  ;;  %v3361_v59 = vadd.f32 %v6455_v37, %v3041_v20  ;;  %v3362_v36 = vadd.f32 %v6457_v55, %v3042_v48 }
 0x2d8   :  { %v2739_v54 = vmul.f32 %v7771_v7, %v10292_v32  ;;  %v2740_v5 = vmul.f32 %v7771_v7, %v10294_v14  ;;  %v3363_v11 = vadd.f32 %v6467_v51, %v3043_v49  ;;  %v3364_v15 = vadd.f32 %v6469_v8, %v3044_v10  ;;  %v10304_v14 = vld [vmem:[#allocation340_spill] sm:$0xff] }
 0x2d9   :  { %v3365_v19 = vadd.f32 %v6471_v17, %v3045_v1  ;;  %v3366_v57 = vadd.f32 %v6473_v58, %v3046_v22  ;;  %v10296_v38 = vsub.f32 %v10295_v43, %v10201_v41  ;;  %v10298_v31 = vsub.f32 %v10297_v40, %v10201_v41  ;;  %3649 = vst [vmem:[#allocation10 + $0x660] sm:$0xff] %v3361_v59 }
 0x2da   :  { %3650 = vst [vmem:[#allocation10 + $0x668] sm:$0xff] %v3362_v36  ;;  %3651 = vst [vmem:[#allocation10 + $0x670] sm:$0xff] %v3363_v11  ;;  %v10300_v27 = vsub.f32 %v10299_v13, %v10201_v41  ;;  %v10302_v63 = vsub.f32 %v10301_v35, %v10201_v41  ;;  %v3059_v62 = vmul.f32 %v6451_v44, %v2739_v54  ;;  %v2123_v48 = vmax.f32 %v2075_v52, 0.0  ;;  %v10303_v54 = vld [vmem:[#allocation304_spill] sm:$0xff]  ;;  %v10308_v35 = vld [vmem:[#allocation282_spill] sm:$0xff] }
 0x2db   :  { %v2741_v56 = vmul.f32 %v7771_v7, %v10296_v38  ;;  %v2742_v50 = vmul.f32 %v7771_v7, %v10298_v31  ;;  %3652 = vst [vmem:[#allocation10 + $0x678] sm:$0xff] %v3364_v15  ;;  %v3060_v9 = vmul.f32 %v6453_v16, %v2740_v5  ;;  %3653 = vst [vmem:[#allocation10 + $0x680] sm:$0xff] %v3365_v19  ;;  %v1981_v52 = vmul.f32 0.0013020834, %v7855_v30  ;;  %v10305_v15 = vld [vmem:[#allocation341_spill] sm:$0xff]  ;;  %v10307_v31 = vld [vmem:[#allocation343_spill] sm:$0xff] }
 0x2dc   :  { %v2743_v47 = vmul.f32 %v7771_v7, %v10300_v27  ;;  %v2744_v39 = vmul.f32 %v7771_v7, %v10302_v63  ;;  %3654 = vst [vmem:[#allocation10 + $0x688] sm:$0xff] %v3366_v57  ;;  %v3379_v49 = vadd.f32 %v6455_v37, %v3059_v62  ;;  %v2171_v61 = vadd.f32 1e-05, %v2123_v48  ;;  %v10306_v57 = vld [vmem:[#allocation342_spill] sm:$0xff] }
 0x2dd   :  { %v3061_v21 = vmul.f32 %v6459_v23, %v2741_v56  ;;  %v3062_v20 = vmul.f32 %v6461_v33, %v2742_v50  ;;  %v3380_v10 = vadd.f32 %v6457_v55, %v3060_v9  ;;  %v2078_v6 = vsub.f32 %v7665_v42, %v7659_v0  ;;  %v1940_v42 = vpop.xlane.xlu1 %1939 }
 0x2de   :  { %v3063_v41 = vmul.f32 %v6463_v24, %v2743_v47  ;;  %v3064_v7 = vmul.f32 %v6465_v12, %v2744_v39  ;;  %3667 = vst [vmem:[#allocation10 + $0x6f0] sm:$0xff] %v3379_v49  ;;  %3837 = vrsqrt.f32 %v2171_v61  ;;  %v2032_v53 = vmul.f32 %v10303_v54, %v10303_v54  ;;  %v1933_v47 = vpop.xlane.xlu0 %1932 }
 0x2df   :  { %v3381_v1 = vadd.f32 %v6467_v51, %v3061_v21  ;;  %v3382_v22 = vadd.f32 %v6469_v8, %v3062_v20  ;;  %3668 = vst [vmem:[#allocation10 + $0x6f8] sm:$0xff] %v3380_v10  ;;  %v2031_v5 = vmul.f32 %v10304_v14, %v10304_v14  ;;  %v2126_v59 = vmax.f32 %v2078_v6, 0.0  ;;  %v10310_v10 = vld [vmem:[#allocation283_spill] sm:$0xff] }
 0x2e0   :  { %v3383_v32 = vadd.f32 %v6471_v17, %v3063_v41  ;;  %v3384_v46 = vadd.f32 %v6473_v58, %v3064_v7  ;;  %v2077_v36 = vsub.f32 %v1981_v52, %v7669_v26  ;;  %v1983_v11 = vmul.f32 0.0013020834, %v1905_v60  ;;  %v10309_v41 = vld [vmem:[#allocation305_spill] sm:$0xff] }
 0x2e1   :  { %3669 = vst [vmem:[#allocation10 + $0x700] sm:$0xff] %v3381_v1  ;;  %3670 = vst [vmem:[#allocation10 + $0x708] sm:$0xff] %v3382_v22  ;;  %v2034_v0 = vmul.f32 %v10305_v15, %v10305_v15  ;;  %v2080_v30 = vsub.f32 %v1984_v45, %v2032_v53  ;;  %v1986_v19 = vmul.f32 0.0013020834, %v1926_v4  ;;  %v2033_v43 = vmul.f32 %v10306_v57, %v10306_v57  ;;  %v10312_v53 = vld [vmem:[#allocation236_spill] sm:$0xff] }
 0x2e2   :  { %3671 = vst [vmem:[#allocation10 + $0x710] sm:$0xff] %v3383_v32  ;;  %3672 = vst [vmem:[#allocation10 + $0x718] sm:$0xff] %v3384_v46  ;;  %v1985_v38 = vmul.f32 0.0013020834, %v1919_v28  ;;  %v2174_v34 = vadd.f32 1e-05, %v2126_v59  ;;  %v2079_v40 = vsub.f32 %v1983_v11, %v2031_v5  ;;  %v2036_v50 = vmul.f32 %v10307_v31, %v10307_v31  ;;  %v3834_v28 = vpop.eup %3833 }
 0x2e3   :  { %v2125_v56 = vmax.f32 %v2077_v36, 0.0  ;;  %v2128_v13 = vmax.f32 %v2080_v30, 0.0  ;;  %v2082_v27 = vsub.f32 %v1986_v19, %v2034_v0  ;;  %v1988_v60 = vmul.f32 0.0013020834, %v1940_v42  ;;  %v10311_v32 = vld [vmem:[#allocation286_spill] sm:$0xff]  ;;  %v10314_v59 = vld [vmem:[#allocation237_spill] sm:$0xff] }
 0x2e4   :  { %v2081_v26 = vsub.f32 %v1985_v38, %v2033_v43  ;;  %v2502_v63 = vsub.f32 %v10308_v35, %v10305_v15  ;;  %3839 = vrsqrt.f32 %v2174_v34  ;;  %v2127_v62 = vmax.f32 %v2079_v40, 0.0  ;;  %v10316_v0 = vld [vmem:[#allocation239_spill] sm:$0xff]  ;;  %v10318_v19 = vld [vmem:[#allocation240_spill] sm:$0xff]  ;;  %v3836_v34 = vpop.eup %3835 }
 0x2e5   :  { %v2173_v39 = vadd.f32 1e-05, %v2125_v56  ;;  %v2176_v9 = vadd.f32 1e-05, %v2128_v13  ;;  %v2130_v4 = vmax.f32 %v2082_v27, 0.0  ;;  %v2084_v20 = vsub.f32 %v1988_v60, %v2036_v50  ;;  %v10320_v56 = vld [vmem:[#allocation241_spill] sm:$0xff] }
 0x2e6   :  { %v2129_v21 = vmax.f32 %v2081_v26, 0.0  ;;  %v2175_v48 = vadd.f32 1e-05, %v2127_v62  ;;  %v7962_v7 = vmul.f32 %v10309_v41, %v10309_v41  ;;  %v7964_v49 = vmul.f32 0.0013020834, %v1933_v47  ;;  %v10322_v13 = vld [vmem:[#allocation244_spill] sm:$0xff] }
 0x2e7   :  { %3841 = vrsqrt.f32 %v2173_v39  ;;  %v2503_v1 = vsub.f32 %v10310_v10, %v10305_v15  ;;  %v2178_v22 = vadd.f32 1e-05, %v2130_v4  ;;  %v2132_v61 = vmax.f32 %v2084_v20, 0.0 }
 0x2e8   :  { %3843 = vrsqrt.f32 %v2176_v9  ;;  %v2504_v46 = vsub.f32 %v10311_v32, %v10305_v15  ;;  %v7970_v6 = vadd.f32 1e-05, %v2129_v21  ;;  %v2083_v52 = vsub.f32 %v7964_v49, %v7962_v7  ;;  %v10402_v49 = vld [vmem:[#allocation284_spill] sm:$0xff] }
 0x2e9   :  { %3845 = vrsqrt.f32 %v2175_v48  ;;  %v10313_v45 = vsub.f32 %v10312_v53, %v10202_v2  ;;  %v10315_v36 = vsub.f32 %v10314_v59, %v10202_v2  ;;  %v10317_v42 = vsub.f32 %v10316_v0, %v10202_v2  ;;  %v10324_v48 = vld [vmem:[#allocation242_spill] sm:$0xff] }
 0x2ea   :  { %v10319_v43 = vsub.f32 %v10318_v19, %v10202_v2  ;;  %v10321_v40 = vsub.f32 %v10320_v56, %v10202_v2  ;;  %v10323_v27 = vsub.f32 %v10322_v13, %v10202_v2  ;;  %3847 = vrsqrt.f32 %v2178_v22  ;;  %v10326_v22 = vld [vmem:[#allocation243_spill] sm:$0xff] }
 0x2eb   :  { %v2733_v5 = vmul.f32 %v3834_v28, %v10313_v45  ;;  %v2734_v11 = vmul.f32 %v3834_v28, %v10315_v36  ;;  %v2735_v30 = vmul.f32 %v3834_v28, %v10317_v42  ;;  %v7992_v60 = vadd.f32 1e-05, %v2132_v61  ;;  %v3838_v4 = vpop.eup %3837  ;;  %v10328_v42 = vld [vmem:[#allocation245_spill] sm:$0xff] }
 0x2ec   :  { %v2736_v38 = vmul.f32 %v3834_v28, %v10319_v43  ;;  %v2737_v50 = vmul.f32 %v3834_v28, %v10321_v40  ;;  %v2738_v26 = vmul.f32 %v3834_v28, %v10323_v27  ;;  %v10325_v2 = vsub.f32 %v10324_v48, %v10203_v25  ;;  %v10330_v43 = vld [vmem:[#allocation246_spill] sm:$0xff]  ;;  %v10332_v40 = vld [vmem:[#allocation247_spill] sm:$0xff] }
 0x2ed   :  { %v3053_v47 = vmul.f32 %v6451_v44, %v2733_v5  ;;  %v3054_v39 = vmul.f32 %v6453_v16, %v2734_v11  ;;  %v3055_v62 = vmul.f32 %v6459_v23, %v2735_v30  ;;  %v10327_v61 = vsub.f32 %v10326_v22, %v10203_v25  ;;  %v10334_v27 = vld [vmem:[#allocation250_spill] sm:$0xff]  ;;  %v10338_v22 = vld [vmem:[#allocation249_spill] sm:$0xff] }
 0x2ee   :  { %v3056_v9 = vmul.f32 %v6461_v33, %v2736_v38  ;;  %v3057_v21 = vmul.f32 %v6463_v24, %v2737_v50  ;;  %v3058_v20 = vmul.f32 %v6465_v12, %v2738_v26  ;;  %v2751_v28 = vmul.f32 %v3836_v34, %v10325_v2 }
 0x2ef   :  { %v2752_v53 = vmul.f32 %v3836_v34, %v10327_v61  ;;  %v3373_v45 = vadd.f32 %v6455_v37, %v3053_v47  ;;  %v3374_v5 = vadd.f32 %v6457_v55, %v3054_v39  ;;  %v3375_v59 = vadd.f32 %v6467_v51, %v3055_v62 }
 0x2f0   :  { %v3376_v36 = vadd.f32 %v6469_v8, %v3056_v9  ;;  %v3377_v11 = vadd.f32 %v6471_v17, %v3057_v21  ;;  %v3378_v0 = vadd.f32 %v6473_v58, %v3058_v20  ;;  %v10329_v30 = vsub.f32 %v10328_v42, %v10203_v25  ;;  %v10336_v20 = vld [vmem:[#allocation248_spill] sm:$0xff] }
 0x2f1   :  { %v10331_v38 = vsub.f32 %v10330_v43, %v10203_v25  ;;  %3661 = vst [vmem:[#allocation10 + $0x6c0] sm:$0xff] %v3373_v45  ;;  %3662 = vst [vmem:[#allocation10 + $0x6c8] sm:$0xff] %v3374_v5  ;;  %v10333_v50 = vsub.f32 %v10332_v40, %v10203_v25  ;;  %v10335_v26 = vsub.f32 %v10334_v27, %v10203_v25  ;;  %v3840_v25 = vpop.eup %3839  ;;  %3849 = vrsqrt.f32 %v7970_v6 }
 0x2f2   :  { %v2753_v19 = vmul.f32 %v3836_v34, %v10329_v30  ;;  %3663 = vst [vmem:[#allocation10 + $0x6d0] sm:$0xff] %v3375_v59  ;;  %3664 = vst [vmem:[#allocation10 + $0x6d8] sm:$0xff] %v3376_v36  ;;  %v3071_v39 = vmul.f32 %v6451_v44, %v2751_v28  ;;  %v3072_v62 = vmul.f32 %v6453_v16, %v2752_v53  ;;  %v10342_v30 = vld [vmem:[#allocation252_spill] sm:$0xff]  ;;  %v2131_v10 = vmax.f32 %v2083_v52, 0.0 }
 0x2f3   :  { %v2754_v56 = vmul.f32 %v3836_v34, %v10331_v38  ;;  %v2755_v13 = vmul.f32 %v3836_v34, %v10333_v50  ;;  %v2756_v47 = vmul.f32 %v3836_v34, %v10335_v26  ;;  %3665 = vst [vmem:[#allocation10 + $0x6e0] sm:$0xff] %v3377_v11  ;;  %3666 = vst [vmem:[#allocation10 + $0x6e8] sm:$0xff] %v3378_v0  ;;  %v10340_v11 = vld [vmem:[#allocation251_spill] sm:$0xff]  ;;  %v10344_v50 = vld [vmem:[#allocation253_spill] sm:$0xff]  ;;  %3851 = vrsqrt.f32 %v7992_v60 }
 0x2f4   :  { %v3073_v9 = vmul.f32 %v6459_v23, %v2753_v19  ;;  %v10337_v48 = vsub.f32 %v10336_v20, %v10204_v29  ;;  %v10339_v61 = vsub.f32 %v10338_v22, %v10204_v29  ;;  %v3391_v53 = vadd.f32 %v6455_v37, %v3071_v39  ;;  %v3842_v38 = vpop.eup %3841  ;;  %v10346_v26 = vld [vmem:[#allocation256_spill] sm:$0xff]  ;;  %v10404_v60 = vld [vmem:[#allocation287_spill] sm:$0xff] }
 0x2f5   :  { %v3074_v21 = vmul.f32 %v6461_v33, %v2754_v56  ;;  %v3075_v34 = vmul.f32 %v6463_v24, %v2755_v13  ;;  %v3076_v28 = vmul.f32 %v6465_v12, %v2756_v47  ;;  %v3392_v5 = vadd.f32 %v6457_v55, %v3072_v62  ;;  %v8054_v62 = vpop.eup %3843 }
 0x2f6   :  { %v2745_v2 = vmul.f32 %v3838_v4, %v10337_v48  ;;  %v2746_v45 = vmul.f32 %v3838_v4, %v10339_v61  ;;  %v3393_v59 = vadd.f32 %v6467_v51, %v3073_v9  ;;  %v10341_v0 = vsub.f32 %v10340_v11, %v10204_v29  ;;  %3679 = vst [vmem:[#allocation10 + $0x750] sm:$0xff] %v3391_v53  ;;  %v8060_v22 = vpop.eup %3845  ;;  %v10350_v53 = vld [vmem:[#allocation255_spill] sm:$0xff] }
 0x2f7   :  { %v3394_v36 = vadd.f32 %v6469_v8, %v3074_v21  ;;  %v10343_v19 = vsub.f32 %v10342_v30, %v10204_v29  ;;  %v3395_v56 = vadd.f32 %v6471_v17, %v3075_v34  ;;  %v3396_v40 = vadd.f32 %v6473_v58, %v3076_v28  ;;  %3680 = vst [vmem:[#allocation10 + $0x758] sm:$0xff] %v3392_v5 }
 0x2f8   :  { %v2747_v42 = vmul.f32 %v3838_v4, %v10341_v0  ;;  %v10345_v13 = vsub.f32 %v10344_v50, %v10204_v29  ;;  %v10347_v47 = vsub.f32 %v10346_v26, %v10204_v29  ;;  %3681 = vst [vmem:[#allocation10 + $0x760] sm:$0xff] %v3393_v59  ;;  %v3065_v9 = vmul.f32 %v6451_v44, %v2745_v2  ;;  %v8074_v0 = vpop.eup %3847 }
 0x2f9   :  { %v2748_v43 = vmul.f32 %v3838_v4, %v10343_v19  ;;  %3682 = vst [vmem:[#allocation10 + $0x768] sm:$0xff] %v3394_v36  ;;  %v3066_v21 = vmul.f32 %v6453_v16, %v2746_v45  ;;  %3683 = vst [vmem:[#allocation10 + $0x770] sm:$0xff] %v3395_v56  ;;  %v10351_v2 = vsub.f32 %v10350_v53, %v10205_v18  ;;  %v10352_v19 = vld [vmem:[#allocation257_spill] sm:$0xff] }
 0x2fa   :  { %v2749_v27 = vmul.f32 %v3838_v4, %v10345_v13  ;;  %v2750_v39 = vmul.f32 %v3838_v4, %v10347_v47  ;;  %v3067_v20 = vmul.f32 %v6459_v23, %v2747_v42  ;;  %3684 = vst [vmem:[#allocation10 + $0x778] sm:$0xff] %v3396_v40  ;;  %v10348_v4 = vld [vmem:[#allocation254_spill] sm:$0xff]  ;;  %v3385_v5 = vadd.f32 %v6455_v37, %v3065_v9 }
 0x2fb   :  { %v3068_v48 = vmul.f32 %v6461_v33, %v2748_v43  ;;  %v10349_v34 = vsub.f32 %v10348_v4, %v10205_v18  ;;  %v2764_v45 = vmul.f32 %v3840_v25, %v10351_v2  ;;  %v3386_v59 = vadd.f32 %v6457_v55, %v3066_v21  ;;  %v10354_v40 = vld [vmem:[#allocation258_spill] sm:$0xff]  ;;  %v10360_v4 = vld [vmem:[#allocation260_spill] sm:$0xff]  ;;  %v10362_v2 = vld [vmem:[#allocation261_spill] sm:$0xff] }
 0x2fc   :  { %v3069_v61 = vmul.f32 %v6463_v24, %v2749_v27  ;;  %v3070_v29 = vmul.f32 %v6465_v12, %v2750_v39  ;;  %v3387_v36 = vadd.f32 %v6467_v51, %v3067_v20  ;;  %v10353_v43 = vsub.f32 %v10352_v19, %v10205_v18  ;;  %3673 = vst [vmem:[#allocation10 + $0x720] sm:$0xff] %v3385_v5  ;;  %v10356_v27 = vld [vmem:[#allocation259_spill] sm:$0xff]  ;;  %v10358_v39 = vld [vmem:[#allocation262_spill] sm:$0xff] }
 0x2fd   :  { %v2763_v28 = vmul.f32 %v3840_v25, %v10349_v34  ;;  %v3388_v11 = vadd.f32 %v6469_v8, %v3068_v48  ;;  %v10355_v50 = vsub.f32 %v10354_v40, %v10205_v18  ;;  %3674 = vst [vmem:[#allocation10 + $0x728] sm:$0xff] %v3386_v59  ;;  %v10357_v26 = vsub.f32 %v10356_v27, %v10205_v18  ;;  %v10368_v27 = vld [vmem:[#allocation265_spill] sm:$0xff] }
 0x2fe   :  { %v3389_v42 = vadd.f32 %v6471_v17, %v3069_v61  ;;  %v3390_v30 = vadd.f32 %v6473_v58, %v3070_v29  ;;  %v2765_v56 = vmul.f32 %v3840_v25, %v10353_v43  ;;  %3675 = vst [vmem:[#allocation10 + $0x730] sm:$0xff] %v3387_v36  ;;  %v10359_v9 = vsub.f32 %v10358_v39, %v10205_v18  ;;  %v10366_v43 = vld [vmem:[#allocation264_spill] sm:$0xff] }
 0x2ff   :  { %v2766_v13 = vmul.f32 %v3840_v25, %v10355_v50  ;;  %3676 = vst [vmem:[#allocation10 + $0x738] sm:$0xff] %v3388_v11  ;;  %v2767_v47 = vmul.f32 %v3840_v25, %v10357_v26  ;;  %v3083_v20 = vmul.f32 %v6451_v44, %v2763_v28  ;;  %v3084_v48 = vmul.f32 %v6453_v16, %v2764_v45  ;;  %v10370_v39 = vld [vmem:[#allocation268_spill] sm:$0xff] }
 0x300   :  { %v2768_v21 = vmul.f32 %v3840_v25, %v10359_v9  ;;  %3677 = vst [vmem:[#allocation10 + $0x740] sm:$0xff] %v3389_v42  ;;  %3678 = vst [vmem:[#allocation10 + $0x748] sm:$0xff] %v3390_v30  ;;  %v3085_v61 = vmul.f32 %v6459_v23, %v2765_v56  ;;  %v10361_v34 = vsub.f32 %v10360_v4, %v10206_v3  ;;  %v10364_v42 = vld [vmem:[#allocation263_spill] sm:$0xff] }
 0x301   :  { %v3086_v29 = vmul.f32 %v6461_v33, %v2766_v13  ;;  %v10363_v5 = vsub.f32 %v10362_v2, %v10206_v3  ;;  %v3087_v18 = vmul.f32 %v6463_v24, %v2767_v47  ;;  %v3403_v28 = vadd.f32 %v6455_v37, %v3083_v20  ;;  %v10372_v2 = vld [vmem:[#allocation266_spill] sm:$0xff] }
 0x302   :  { %v2757_v53 = vmul.f32 %v3842_v38, %v10361_v34  ;;  %v3088_v25 = vmul.f32 %v6465_v12, %v2768_v21  ;;  %v3404_v45 = vadd.f32 %v6457_v55, %v3084_v48  ;;  %v3405_v36 = vadd.f32 %v6467_v51, %v3085_v61 }
 0x303   :  { %v2758_v59 = vmul.f32 %v3842_v38, %v10363_v5  ;;  %v3406_v11 = vadd.f32 %v6469_v8, %v3086_v29  ;;  %v10365_v30 = vsub.f32 %v10364_v42, %v10206_v3  ;;  %v10367_v56 = vsub.f32 %v10366_v43, %v10206_v3  ;;  %3691 = vst [vmem:[#allocation10 + $0x7b0] sm:$0xff] %v3403_v28  ;;  %v10374_v5 = vld [vmem:[#allocation267_spill] sm:$0xff]  ;;  %v10376_v42 = vld [vmem:[#allocation269_spill] sm:$0xff]  ;;  %v10378_v43 = vld [vmem:[#allocation270_spill] sm:$0xff] }
 0x304   :  { %v3407_v50 = vadd.f32 %v6471_v17, %v3087_v18  ;;  %v3408_v13 = vadd.f32 %v6473_v58, %v3088_v25  ;;  %3692 = vst [vmem:[#allocation10 + $0x7b8] sm:$0xff] %v3404_v45  ;;  %v10369_v26 = vsub.f32 %v10368_v27, %v10206_v3  ;;  %v10371_v9 = vsub.f32 %v10370_v39, %v10206_v3 }
 0x305   :  { %v2759_v19 = vmul.f32 %v3842_v38, %v10365_v30  ;;  %v2760_v40 = vmul.f32 %v3842_v38, %v10367_v56  ;;  %3693 = vst [vmem:[#allocation10 + $0x7c0] sm:$0xff] %v3405_v36  ;;  %3694 = vst [vmem:[#allocation10 + $0x7c8] sm:$0xff] %v3406_v11  ;;  %v3077_v20 = vmul.f32 %v6451_v44, %v2757_v53 }
 0x306   :  { %v2761_v47 = vmul.f32 %v3842_v38, %v10369_v26  ;;  %v2762_v21 = vmul.f32 %v3842_v38, %v10371_v9  ;;  %v3078_v48 = vmul.f32 %v6453_v16, %v2758_v59  ;;  %3695 = vst [vmem:[#allocation10 + $0x7d0] sm:$0xff] %v3407_v50  ;;  %3696 = vst [vmem:[#allocation10 + $0x7d8] sm:$0xff] %v3408_v13  ;;  %v10380_v50 = vld [vmem:[#allocation271_spill] sm:$0xff]  ;;  %v10382_v26 = vld [vmem:[#allocation274_spill] sm:$0xff] }
 0x307   :  { %v3079_v61 = vmul.f32 %v6459_v23, %v2759_v19  ;;  %v3080_v29 = vmul.f32 %v6461_v33, %v2760_v40  ;;  %v10373_v3 = vsub.f32 %v10372_v2, %v10303_v54  ;;  %v10375_v53 = vsub.f32 %v10374_v5, %v10303_v54 }
 0x308   :  { %v3081_v4 = vmul.f32 %v6463_v24, %v2761_v47  ;;  %v3082_v34 = vmul.f32 %v6465_v12, %v2762_v21  ;;  %v3397_v18 = vadd.f32 %v6455_v37, %v3077_v20  ;;  %v3398_v25 = vadd.f32 %v6457_v55, %v3078_v48 }
 0x309   :  { %v2775_v38 = vmul.f32 %v8054_v62, %v10373_v3  ;;  %v2776_v59 = vmul.f32 %v8054_v62, %v10375_v53  ;;  %v3399_v28 = vadd.f32 %v6467_v51, %v3079_v61  ;;  %v3400_v45 = vadd.f32 %v6469_v8, %v3080_v29  ;;  %v10384_v61 = vld [vmem:[#allocation272_spill] sm:$0xff] }
 0x30a   :  { %v3401_v36 = vadd.f32 %v6471_v17, %v3081_v4  ;;  %v3402_v11 = vadd.f32 %v6473_v58, %v3082_v34  ;;  %v10377_v30 = vsub.f32 %v10376_v42, %v10303_v54  ;;  %v10379_v56 = vsub.f32 %v10378_v43, %v10303_v54  ;;  %3685 = vst [vmem:[#allocation10 + $0x780] sm:$0xff] %v3397_v18  ;;  %v10386_v34 = vld [vmem:[#allocation273_spill] sm:$0xff]  ;;  %v10388_v18 = vld [vmem:[#allocation275_spill] sm:$0xff] }
 0x30b   :  { %3686 = vst [vmem:[#allocation10 + $0x788] sm:$0xff] %v3398_v25  ;;  %3687 = vst [vmem:[#allocation10 + $0x790] sm:$0xff] %v3399_v28  ;;  %v10381_v13 = vsub.f32 %v10380_v50, %v10303_v54  ;;  %v10383_v47 = vsub.f32 %v10382_v26, %v10303_v54  ;;  %v3095_v9 = vmul.f32 %v6451_v44, %v2775_v38 }
 0x30c   :  { %v2777_v19 = vmul.f32 %v8054_v62, %v10377_v30  ;;  %v2778_v40 = vmul.f32 %v8054_v62, %v10379_v56  ;;  %3688 = vst [vmem:[#allocation10 + $0x798] sm:$0xff] %v3400_v45  ;;  %v3096_v21 = vmul.f32 %v6453_v16, %v2776_v59  ;;  %3689 = vst [vmem:[#allocation10 + $0x7a0] sm:$0xff] %v3401_v36  ;;  %v10390_v45 = vld [vmem:[#allocation276_spill] sm:$0xff] }
 0x30d   :  { %v2779_v27 = vmul.f32 %v8054_v62, %v10381_v13  ;;  %v2780_v39 = vmul.f32 %v8054_v62, %v10383_v47  ;;  %3690 = vst [vmem:[#allocation10 + $0x7a8] sm:$0xff] %v3402_v11  ;;  %v10385_v29 = vsub.f32 %v10384_v61, %v10304_v14  ;;  %v10387_v54 = vsub.f32 %v10386_v34, %v10304_v14 }
 0x30e   :  { %v3097_v20 = vmul.f32 %v6459_v23, %v2777_v19  ;;  %v3098_v48 = vmul.f32 %v6461_v33, %v2778_v40  ;;  %v3415_v38 = vadd.f32 %v6455_v37, %v3095_v9  ;;  %v3416_v5 = vadd.f32 %v6457_v55, %v3096_v21  ;;  %v10392_v19 = vld [vmem:[#allocation277_spill] sm:$0xff]  ;;  %v10394_v40 = vld [vmem:[#allocation280_spill] sm:$0xff] }
 0x30f   :  { %v2769_v4 = vmul.f32 %v8060_v22, %v10385_v29  ;;  %v2770_v62 = vmul.f32 %v8060_v22, %v10387_v54  ;;  %v3099_v2 = vmul.f32 %v6463_v24, %v2779_v27  ;;  %v3100_v3 = vmul.f32 %v6465_v12, %v2780_v39 }
 0x310   :  { %v3417_v53 = vadd.f32 %v6467_v51, %v3097_v20  ;;  %v3418_v59 = vadd.f32 %v6469_v8, %v3098_v48  ;;  %v10389_v25 = vsub.f32 %v10388_v18, %v10304_v14  ;;  %v10391_v36 = vsub.f32 %v10390_v45, %v10304_v14  ;;  %3703 = vst [vmem:[#allocation10 + $0x810] sm:$0xff] %v3415_v38  ;;  %v10396_v20 = vld [vmem:[#allocation278_spill] sm:$0xff]  ;;  %v10398_v48 = vld [vmem:[#allocation279_spill] sm:$0xff]  ;;  %v10400_v38 = vld [vmem:[#allocation281_spill] sm:$0xff] }
 0x311   :  { %v3419_v42 = vadd.f32 %v6471_v17, %v3099_v2  ;;  %v3420_v30 = vadd.f32 %v6473_v58, %v3100_v3  ;;  %3704 = vst [vmem:[#allocation10 + $0x818] sm:$0xff] %v3416_v5  ;;  %v10393_v43 = vsub.f32 %v10392_v19, %v10304_v14  ;;  %v10395_v50 = vsub.f32 %v10394_v40, %v10304_v14  ;;  %v10406_v40 = vld [vmem:[#allocation289_spill] sm:$0xff] }
 0x312   :  { %v2771_v28 = vmul.f32 %v8060_v22, %v10389_v25  ;;  %v2772_v11 = vmul.f32 %v8060_v22, %v10391_v36  ;;  %3705 = vst [vmem:[#allocation10 + $0x820] sm:$0xff] %v3417_v53  ;;  %3706 = vst [vmem:[#allocation10 + $0x828] sm:$0xff] %v3418_v59  ;;  %v3089_v27 = vmul.f32 %v6451_v44, %v2769_v4 }
 0x313   :  { %v2773_v56 = vmul.f32 %v8060_v22, %v10393_v43  ;;  %v2774_v13 = vmul.f32 %v8060_v22, %v10395_v50  ;;  %v3090_v26 = vmul.f32 %v6453_v16, %v2770_v62  ;;  %3707 = vst [vmem:[#allocation10 + $0x830] sm:$0xff] %v3419_v42  ;;  %3708 = vst [vmem:[#allocation10 + $0x838] sm:$0xff] %v3420_v30  ;;  %v10403_v42 = vld [vmem:[#allocation285_spill] sm:$0xff]  ;;  %v10405_v43 = vld [vmem:[#allocation288_spill] sm:$0xff] }
 0x314   :  { %v3091_v47 = vmul.f32 %v6459_v23, %v2771_v28  ;;  %v3092_v39 = vmul.f32 %v6461_v33, %v2772_v11  ;;  %v10397_v14 = vsub.f32 %v10396_v20, %v10305_v15  ;;  %v10399_v61 = vsub.f32 %v10398_v48, %v10305_v15  ;;  %v10412_v48 = vld [vmem:[#allocation295_spill] sm:$0xff] }
 0x315   :  { %v3093_v9 = vmul.f32 %v6463_v24, %v2773_v56  ;;  %v3094_v21 = vmul.f32 %v6465_v12, %v2774_v13  ;;  %v3409_v4 = vadd.f32 %v6455_v37, %v3089_v27  ;;  %v3410_v34 = vadd.f32 %v6457_v55, %v3090_v26  ;;  %v10407_v13 = vld [vmem:[#allocation292_spill] sm:$0xff]  ;;  %v10408_v26 = vld [vmem:[#allocation290_spill] sm:$0xff] }
 0x316   :  { %v2787_v22 = vmul.f32 %v8074_v0, %v10397_v14  ;;  %v2788_v29 = vmul.f32 %v8074_v0, %v10399_v61  ;;  %v3411_v54 = vadd.f32 %v6467_v51, %v3091_v47  ;;  %v3412_v62 = vadd.f32 %v6469_v8, %v3092_v39  ;;  %v10409_v39 = vld [vmem:[#allocation291_spill] sm:$0xff]  ;;  %v10411_v14 = vld [vmem:[#allocation294_spill] sm:$0xff] }
 0x317   :  { %v3413_v2 = vadd.f32 %v6471_v17, %v3093_v9  ;;  %v3414_v3 = vadd.f32 %v6473_v58, %v3094_v21  ;;  %v10401_v5 = vsub.f32 %v10400_v38, %v10305_v15  ;;  %v2790_v59 = vmul.f32 %v8074_v0, %v2502_v63  ;;  %3697 = vst [vmem:[#allocation10 + $0x7e0] sm:$0xff] %v3409_v4  ;;  %v10410_v21 = vld [vmem:[#allocation293_spill] sm:$0xff] }
 0x318   :  { %3698 = vst [vmem:[#allocation10 + $0x7e8] sm:$0xff] %v3410_v34  ;;  %3699 = vst [vmem:[#allocation10 + $0x7f0] sm:$0xff] %v3411_v54  ;;  %v2791_v18 = vmul.f32 %v8074_v0, %v2503_v1  ;;  %v2792_v25 = vmul.f32 %v8074_v0, %v2504_v46  ;;  %v3107_v28 = vmul.f32 %v6451_v44, %v2787_v22  ;;  %v2179_v11 = vadd.f32 1e-05, %v2131_v10  ;;  %v3850_v34 = vpop.eup %3849 }
 0x319   :  { %v2789_v53 = vmul.f32 %v8074_v0, %v10401_v5  ;;  %3700 = vst [vmem:[#allocation10 + $0x7f8] sm:$0xff] %v3412_v62  ;;  %v3108_v35 = vmul.f32 %v6453_v16, %v2788_v29  ;;  %3701 = vst [vmem:[#allocation10 + $0x800] sm:$0xff] %v3413_v2  ;;  %v3110_v45 = vmul.f32 %v6461_v33, %v2790_v59  ;;  %v10413_v29 = vld [vmem:[#allocation298_spill] sm:$0xff]  ;;  %v10415_v62 = vld [vmem:[#allocation297_spill] sm:$0xff] }
 0x31a   :  { %3702 = vst [vmem:[#allocation10 + $0x808] sm:$0xff] %v3414_v3  ;;  %v3111_v15 = vmul.f32 %v6463_v24, %v2791_v18  ;;  %v3112_v1 = vmul.f32 %v6465_v12, %v2792_v25  ;;  %v3427_v32 = vadd.f32 %v6455_v37, %v3107_v28  ;;  %3853 = vrsqrt.f32 %v2179_v11  ;;  %v10416_v3 = vld [vmem:[#allocation299_spill] sm:$0xff]  ;;  %v10417_v5 = vld [vmem:[#allocation300_spill] sm:$0xff] }
 0x31b   :  { %v3109_v63 = vmul.f32 %v6459_v23, %v2789_v53  ;;  %v3428_v46 = vadd.f32 %v6457_v55, %v3108_v35  ;;  %v3430_v36 = vadd.f32 %v6469_v8, %v3110_v45  ;;  %v2493_v52 = vsub.f32 %v10402_v49, %v10306_v57  ;;  %v3852_v35 = vpop.eup %3851  ;;  %v10419_v45 = vld [vmem:[#allocation302_spill] sm:$0xff] }
 0x31c   :  { %v3431_v6 = vadd.f32 %v6471_v17, %v3111_v15  ;;  %v3432_v7 = vadd.f32 %v6473_v58, %v3112_v1  ;;  %3715 = vst [vmem:[#allocation10 + $0x870] sm:$0xff] %v3427_v32  ;;  %v2494_v30 = vsub.f32 %v10403_v42, %v10306_v57  ;;  %v2495_v19 = vsub.f32 %v10404_v60, %v10306_v57 }
 0x31d   :  { %v3429_v0 = vadd.f32 %v6467_v51, %v3109_v63  ;;  %3716 = vst [vmem:[#allocation10 + $0x878] sm:$0xff] %v3428_v46  ;;  %3718 = vst [vmem:[#allocation10 + $0x888] sm:$0xff] %v3430_v36  ;;  %v2496_v56 = vsub.f32 %v10405_v43, %v10306_v57  ;;  %v2497_v50 = vsub.f32 %v10406_v40, %v10306_v57 }
 0x31e   :  { %3719 = vst [vmem:[#allocation10 + $0x890] sm:$0xff] %v3431_v6  ;;  %3720 = vst [vmem:[#allocation10 + $0x898] sm:$0xff] %v3432_v7  ;;  %v2498_v27 = vsub.f32 %v10407_v13, %v10306_v57  ;;  %v2511_v47 = vsub.f32 %v10408_v26, %v10307_v31  ;;  %v2512_v9 = vsub.f32 %v10409_v39, %v10307_v31  ;;  %v10414_v57 = vld [vmem:[#allocation296_spill] sm:$0xff] }
 0x31f   :  { %3717 = vst [vmem:[#allocation10 + $0x880] sm:$0xff] %v3429_v0  ;;  %v2513_v20 = vsub.f32 %v10410_v21, %v10307_v31  ;;  %v2514_v22 = vsub.f32 %v10411_v14, %v10307_v31  ;;  %v2515_v61 = vsub.f32 %v10412_v48, %v10307_v31  ;;  %v2516_v4 = vsub.f32 %v10413_v29, %v10307_v31  ;;  %v10418_v31 = vld [vmem:[#allocation301_spill] sm:$0xff] }
 0x320   :  { %v2505_v54 = vsub.f32 %v10414_v57, %v10309_v41  ;;  %v2506_v2 = vsub.f32 %v10415_v62, %v10309_v41  ;;  %v2507_v38 = vsub.f32 %v10416_v3, %v10309_v41  ;;  %v2508_v53 = vsub.f32 %v10417_v5, %v10309_v41 }
 0x321   :  { %v2781_v59 = vmul.f32 %v3850_v34, %v2493_v52  ;;  %v2782_v18 = vmul.f32 %v3850_v34, %v2494_v30  ;;  %v2783_v25 = vmul.f32 %v3850_v34, %v2495_v19  ;;  %v2784_v28 = vmul.f32 %v3850_v34, %v2496_v56 }
 0x322   :  { %v2509_v63 = vsub.f32 %v10418_v31, %v10309_v41  ;;  %v2510_v10 = vsub.f32 %v10419_v45, %v10309_v41  ;;  %v2785_v15 = vmul.f32 %v3850_v34, %v2497_v50  ;;  %v2786_v1 = vmul.f32 %v3850_v34, %v2498_v27 }
 0x323   :  { %v3101_v32 = vmul.f32 %v6451_v44, %v2781_v59  ;;  %v3102_v46 = vmul.f32 %v6453_v16, %v2782_v18  ;;  %v3103_v0 = vmul.f32 %v6459_v23, %v2783_v25  ;;  %v3104_v36 = vmul.f32 %v6461_v33, %v2784_v28 }
 0x324   :  { %v3105_v11 = vmul.f32 %v6463_v24, %v2785_v15  ;;  %v3106_v6 = vmul.f32 %v6465_v12, %v2786_v1  ;;  %v2799_v7 = vmul.f32 %v3852_v35, %v2511_v47  ;;  %v2800_v49 = vmul.f32 %v3852_v35, %v2512_v9 }
 0x325   :  { %v3421_v42 = vadd.f32 %v6455_v37, %v3101_v32  ;;  %v3422_v41 = vadd.f32 %v6457_v55, %v3102_v46  ;;  %v3423_v30 = vadd.f32 %v6467_v51, %v3103_v0  ;;  %v3424_v60 = vadd.f32 %v6469_v8, %v3104_v36 }
 0x326   :  { %v3425_v19 = vadd.f32 %v6471_v17, %v3105_v11  ;;  %v3426_v43 = vadd.f32 %v6473_v58, %v3106_v6  ;;  %v2801_v56 = vmul.f32 %v3852_v35, %v2513_v20  ;;  %v2802_v40 = vmul.f32 %v3852_v35, %v2514_v22 }
 0x327   :  { %v3854_v52 = vpop.eup %3853  ;;  %3709 = vst [vmem:[#allocation10 + $0x840] sm:$0xff] %v3421_v42  ;;  %3710 = vst [vmem:[#allocation10 + $0x848] sm:$0xff] %v3422_v41  ;;  %v2803_v50 = vmul.f32 %v3852_v35, %v2515_v61  ;;  %v2804_v13 = vmul.f32 %v3852_v35, %v2516_v4  ;;  %v3119_v27 = vmul.f32 %v6451_v44, %v2799_v7 }
 0x328   :  { %3711 = vst [vmem:[#allocation10 + $0x850] sm:$0xff] %v3423_v30  ;;  %3712 = vst [vmem:[#allocation10 + $0x858] sm:$0xff] %v3424_v60  ;;  %v3120_v26 = vmul.f32 %v6453_v16, %v2800_v49  ;;  %v3121_v47 = vmul.f32 %v6459_v23, %v2801_v56  ;;  %v3122_v39 = vmul.f32 %v6461_v33, %v2802_v40 }
 0x329   :  { %3713 = vst [vmem:[#allocation10 + $0x860] sm:$0xff] %v3425_v19  ;;  %3714 = vst [vmem:[#allocation10 + $0x868] sm:$0xff] %v3426_v43  ;;  %v2793_v9 = vmul.f32 %v3854_v52, %v2505_v54  ;;  %v2794_v21 = vmul.f32 %v3854_v52, %v2506_v2  ;;  %v3123_v20 = vmul.f32 %v6463_v24, %v2803_v50 }
 0x32a   :  { %v3124_v14 = vmul.f32 %v6465_v12, %v2804_v13  ;;  %v3439_v22 = vadd.f32 %v6455_v37, %v3119_v27  ;;  %v3440_v48 = vadd.f32 %v6457_v55, %v3120_v26  ;;  %v3441_v61 = vadd.f32 %v6467_v51, %v3121_v47 }
 0x32b   :  { %v3442_v29 = vadd.f32 %v6469_v8, %v3122_v39  ;;  %v2795_v4 = vmul.f32 %v3854_v52, %v2507_v38  ;;  %v2796_v34 = vmul.f32 %v3854_v52, %v2508_v53  ;;  %v3443_v57 = vadd.f32 %v6471_v17, %v3123_v20 }
 0x32c   :  { %v3444_v62 = vadd.f32 %v6473_v58, %v3124_v14  ;;  %3727 = vst [vmem:[#allocation10 + $0x8d0] sm:$0xff] %v3439_v22  ;;  %3728 = vst [vmem:[#allocation10 + $0x8d8] sm:$0xff] %v3440_v48  ;;  %v2797_v54 = vmul.f32 %v3854_v52, %v2509_v63  ;;  %v2798_v2 = vmul.f32 %v3854_v52, %v2510_v10 }
 0x32d   :  { %3729 = vst [vmem:[#allocation10 + $0x8e0] sm:$0xff] %v3441_v61  ;;  %3730 = vst [vmem:[#allocation10 + $0x8e8] sm:$0xff] %v3442_v29  ;;  %v3113_v3 = vmul.f32 %v6451_v44, %v2793_v9  ;;  %v3114_v5 = vmul.f32 %v6453_v16, %v2794_v21  ;;  %v3115_v59 = vmul.f32 %v6459_v23, %v2795_v4 }
 0x32e   :  { %v3116_v18 = vmul.f32 %v6461_v33, %v2796_v34  ;;  %3731 = vst [vmem:[#allocation10 + $0x8f0] sm:$0xff] %v3443_v57  ;;  %3732 = vst [vmem:[#allocation10 + $0x8f8] sm:$0xff] %v3444_v62  ;;  %v3117_v38 = vmul.f32 %v6463_v24, %v2797_v54  ;;  %v3118_v53 = vmul.f32 %v6465_v12, %v2798_v2 }
 0x32f   :  { %v3433_v25 = vadd.f32 %v6455_v37, %v3113_v3  ;;  %v3434_v28 = vadd.f32 %v6457_v55, %v3114_v5  ;;  %v3435_v44 = vadd.f32 %v6467_v51, %v3115_v59 }
 0x330   :  { %v3436_v16 = vadd.f32 %v6469_v8, %v3116_v18  ;;  %v3437_v23 = vadd.f32 %v6471_v17, %v3117_v38  ;;  %v3438_v33 = vadd.f32 %v6473_v58, %v3118_v53 }
 0x331   :  { %3721 = vst [vmem:[#allocation10 + $0x8a0] sm:$0xff] %v3433_v25  ;;  %3722 = vst [vmem:[#allocation10 + $0x8a8] sm:$0xff] %v3434_v28 }
 0x332   :  { %3723 = vst [vmem:[#allocation10 + $0x8b0] sm:$0xff] %v3435_v44  ;;  %3724 = vst [vmem:[#allocation10 + $0x8b8] sm:$0xff] %v3436_v16 }
 0x333   :  { %3725 = vst [vmem:[#allocation10 + $0x8c0] sm:$0xff] %v3437_v23  ;;  %3726 = vst [vmem:[#allocation10 + $0x8c8] sm:$0xff] %v3438_v33 }
 0x334   :  { %3946 = shalt.err (!%p3943_p10)
}
 0x335   :  { %3744 = dma.vmem_to_hbm [thread:$0]  %s3739_s3, 36864, %s8327_s4, [#allocation4], %s3965_s20, %s3965_s20, %s3966_s21  }
 0x336   :  { %3961 = dma.done.wait [#allocation4], 36864  }
 0x337   :  { %3962 = vsyncadd [#allocation4], 4294930432 }
 0x338   :  { %3748 = vsyncpa [#allocation3], 1 }
 0x339   :  { %3749 = vsyncpa [#allocation6], 1 }
 0x33a   :  { %3750 = vsyncpa [#allocation9], 1 }
 0x33b   :  { %3751 = vsyncpa [#allocation4], 1 }

</bundles_post_ra>
